<compile_context>
chip_gen: v7x
topology: tpu7x:2x2x1
jax: 0.10.0
libtpu: 0.0.40
codegen_flags: <defaults>
</compile_context>

<pallas_src>
import jax
import jax.numpy as jnp
from jax.experimental import pallas as pl
from jax.experimental.pallas import tpu as pltpu


# ----------------------------- Pallas kernels ------------------------------


def _conv_pool_kernel(p_ref, w_ref, b_ref, alpha_ref, o_ref):
    """Fused im2col-conv + bias + PReLU + 2x2 max-pool.

    p_ref:     (4, mt, K) bf16  -- im2col rows for the 4 pool taps
    w_ref:     (K, C)     bf16
    b_ref:     (1, C)     f32
    alpha_ref: (1,)       f32 in SMEM (PyTorch nn.PReLU() scalar weight)
    o_ref:     (mt, C)    bf16  -- pooled output, channels on the lane axis
    """
    w = w_ref[...]
    b = b_ref[...]
    a = alpha_ref[0]

    def tap(t):
        acc = jnp.dot(p_ref[t], w, preferred_element_type=jnp.float32) + b
        return jnp.where(acc > 0, acc, a * acc)          # PReLU (scalar alpha)

    o = jnp.maximum(jnp.maximum(tap(0), tap(1)), jnp.maximum(tap(2), tap(3)))
    o_ref[...] = o.astype(o_ref.dtype)


def _mlp_kernel(x_ref, w1_ref, b1_ref, a1_ref, w2_ref, b2_ref, a2_ref,
                w3_ref, b3_ref, o_ref):
    """Fused fc1 -> PReLU -> fc2 -> PReLU -> fc3; all weights VMEM-resident."""
    h = jnp.dot(x_ref[...], w1_ref[...], preferred_element_type=jnp.float32)
    h = h + b1_ref[...]
    h = jnp.where(h > 0, h, a1_ref[0] * h)
    h = jnp.dot(h.astype(w2_ref.dtype), w2_ref[...],
                preferred_element_type=jnp.float32) + b2_ref[...]
    h = jnp.where(h > 0, h, a2_ref[0] * h)
    o = jnp.dot(h.astype(w3_ref.dtype), w3_ref[...],
                preferred_element_type=jnp.float32) + b3_ref[...]
    o_ref[...] = o.astype(o_ref.dtype)


# ------------------------------ plain-JAX glue ------------------------------


def im2col_pooled(x, kh, kw):
    """NHWC (B,H,W,Cin) -> (4, B*Hp*Wp, kh*kw*Cin) patch tensor.

    Leading axis enumerates the 4 taps of the subsequent 2x2/stride-2 max-pool,
    so the fused kernel reduces them with an elementwise max.  K is ordered
    (kh, kw, cin) to match the (KH, KW, Cin, Cout)-reshaped conv weight.
    """
    B, H, W, Cin = x.shape
    Ho, Wo = H - kh + 1, W - kw + 1
    Hp, Wp = Ho // 2, Wo // 2
    cols = []
    for i in range(kh):
        for j in range(kw):
            cols.append(x[:, i:i + 2 * Hp, j:j + 2 * Wp, :])   # (B, 2Hp, 2Wp, Cin)
    t = jnp.stack(cols, axis=3)                                # (B, 2Hp, 2Wp, khkw, Cin)
    t = t.reshape(B, Hp, 2, Wp, 2, kh * kw, Cin)
    t = jnp.transpose(t, (2, 4, 0, 1, 3, 5, 6))                # (dy, dx, B, Hp, Wp, khkw, Cin)
    return t.reshape(4, B * Hp * Wp, kh * kw * Cin), (B, Hp, Wp)


def conv_pool_prelu(x_nhwc, w_hwio, b, alpha, *, max_block_bytes=8 << 20):
    """Valid stride-1 Conv2d + PReLU + MaxPool2d(2) as one fused Pallas call."""
    KH, KW, Cin, Cout = w_hwio.shape
    patches, (B, Hp, Wp) = im2col_pooled(x_nhwc, KH, KW)       # (4, Mp, K) bf16
    Mp = B * Hp * Wp
    K = KH * KW * Cin
    w2 = w_hwio.reshape(K, Cout)

    # Single block at small sizes; only tile pool-rows if the double-buffered
    # working set would exceed the cap (sized well under v7x's 64 MiB VMEM).
    bpe = 2  # bf16
    mt = Mp
    while (2 * (4 * mt * K + mt * Cout) * bpe + K * Cout * bpe) > max_block_bytes \
            and mt % 2 == 0:
        mt //= 2
    assert Mp % mt == 0
    grid = (Mp // mt,)

    out = pl.pallas_call(
        _conv_pool_kernel,
        out_shape=jax.ShapeDtypeStruct((Mp, Cout), jnp.bfloat16),
        grid=grid,
        in_specs=[
            pl.BlockSpec((4, mt, K), lambda i: (0, i, 0)),
            pl.BlockSpec((K, Cout), lambda i: (0, 0)),
            pl.BlockSpec((1, Cout), lambda i: (0, 0)),
            pl.BlockSpec(memory_space=pltpu.MemorySpace.SMEM),   # PReLU alpha
        ],
        out_specs=pl.BlockSpec((mt, Cout), lambda i: (i, 0)),
        compiler_params=pltpu.CompilerParams(
            dimension_semantics=("parallel",)),
    )(patches, w2, b, alpha)
    return out.reshape(B, Hp, Wp, Cout)                         # NHWC, bf16


def mlp_head(x, p):
    """Fused 1024->256->256->2 MLP (single block; everything fits VMEM)."""
    B = x.shape[0]
    vmem = pl.BlockSpec(memory_space=pltpu.MemorySpace.VMEM)
    smem = pl.BlockSpec(memory_space=pltpu.MemorySpace.SMEM)
    return pl.pallas_call(
        _mlp_kernel,
        out_shape=jax.ShapeDtypeStruct((B, 2), jnp.float32),
        in_specs=[vmem, vmem, vmem, smem, vmem, vmem, smem, vmem, vmem],
        out_specs=vmem,
    )(x, p["fc1_w"], p["fc1_b"], p["alpha3"],
      p["fc2_w"], p["fc2_b"], p["alpha4"],
      p["fc3_w"], p["fc3_b"])


# ------------------------------ parameters ------------------------------


def init_torch_params(key):
    """Random parameters in native PyTorch layouts (as a state_dict would be)."""
    ks = jax.random.split(key, 10)
    s = 0.05
    p = {
        "conv1_w": s * jax.random.normal(ks[0], (32, 1, 5, 5), jnp.float32),
        "conv1_b": s * jax.random.normal(ks[1], (32,), jnp.float32),
        "conv2_w": s * jax.random.normal(ks[2], (64, 32, 5, 5), jnp.float32),
        "conv2_b": s * jax.random.normal(ks[3], (64,), jnp.float32),
        "fc1_w": s * jax.random.normal(ks[4], (256, 1024), jnp.float32),  # (out,in)
        "fc1_b": s * jax.random.normal(ks[5], (256,), jnp.float32),
        "fc2_w": s * jax.random.normal(ks[6], (256, 256), jnp.float32),
        "fc2_b": s * jax.random.normal(ks[7], (256,), jnp.float32),
        "fc3_w": s * jax.random.normal(ks[8], (2, 256), jnp.float32),
        "fc3_b": s * jax.random.normal(ks[9], (2,), jnp.float32),
    }
    # nn.PReLU() default: one learnable scalar per PReLU module, init 0.25.
    for i in range(1, 5):
        p[f"alpha{i}"] = jnp.array([0.25], jnp.float32)
    return p


def prepare_params(tp):
    """PyTorch layouts -> kernel layouts (NHWC weights, HWC fc1 rows, bf16)."""
    C2, HP2, WP2 = 64, 4, 4
    # fc1 columns are indexed by torch's CHW flatten; we flatten HWC internally,
    # so permute the rows of fc1_w^T from (c,h,w) order to (h,w,c) order.
    fc1 = tp["fc1_w"].T.reshape(C2, HP2, WP2, 256)
    fc1 = jnp.transpose(fc1, (1, 2, 0, 3)).reshape(C2 * HP2 * WP2, 256)
    return {
        "conv1_w": jnp.transpose(tp["conv1_w"], (2, 3, 1, 0)).astype(jnp.bfloat16),
        "conv1_b": tp["conv1_b"].reshape(1, -1).astype(jnp.float32),
        "conv2_w": jnp.transpose(tp["conv2_w"], (2, 3, 1, 0)).astype(jnp.bfloat16),
        "conv2_b": tp["conv2_b"].reshape(1, -1).astype(jnp.float32),
        "fc1_w": fc1.astype(jnp.bfloat16),
        "fc1_b": tp["fc1_b"].reshape(1, -1).astype(jnp.float32),
        "fc2_w": tp["fc2_w"].T.astype(jnp.bfloat16),
        "fc2_b": tp["fc2_b"].reshape(1, -1).astype(jnp.float32),
        "fc3_w": tp["fc3_w"].T.astype(jnp.bfloat16),
        "fc3_b": tp["fc3_b"].reshape(1, -1).astype(jnp.float32),
        "alpha1": tp["alpha1"].astype(jnp.float32),
        "alpha2": tp["alpha2"].astype(jnp.float32),
        "alpha3": tp["alpha3"].astype(jnp.float32),
        "alpha4": tp["alpha4"].astype(jnp.float32),
    }


# ------------------------------ model ------------------------------


def embedding_net(params, x_nchw):
    # NCHW (PyTorch) -> NHWC internal so channels ride the lane axis.
    x = jnp.transpose(x_nchw, (0, 2, 3, 1)).astype(jnp.bfloat16)
    x = conv_pool_prelu(x, params["conv1_w"], params["conv1_b"], params["alpha1"])
    x = conv_pool_prelu(x, params["conv2_w"], params["conv2_b"], params["alpha2"])
    B = x.shape[0]
    x = x.reshape(B, -1)          # HWC flatten; fc1_w rows permuted to match
    return mlp_head(x, params)    # fused fc1/fc2/fc3 (+ PReLUs), fp32 out


def siamese_net(params, x1, x2):
    # SiameseNet.forward: shared embedding net on both inputs.  Batch the two
    # branches into one pass (one set of kernel launches), then split.
    B = x1.shape[0]
    emb = embedding_net(params, jnp.concatenate([x1, x2], axis=0))
    return emb[:B], emb[B:]


# TODO(synk): SiameseNet.get_dist uses scipy / .item() on the host; it is not a
# kernel path and is left out (the forward pass pair is fully implemented).


if __name__ == "__main__":
    key = jax.random.PRNGKey(0)
    k1, k2 = jax.random.split(key)
    # MNIST-like inputs implied by the embedding net (fc1 expects 64*4*4).
    x1 = jax.random.normal(k1, (2, 1, 28, 28), jnp.float32)
    x2 = jax.random.normal(k2, (2, 1, 28, 28), jnp.float32)
    params = prepare_params(init_torch_params(jax.random.PRNGKey(42)))

    o1, o2 = jax.jit(siamese_net)(params, x1, x2)
    jax.block_until_ready((o1, o2))
    assert o1.shape == (2, 2) and o2.shape == (2, 2)
    assert bool(jnp.all(jnp.isfinite(o1))) and bool(jnp.all(jnp.isfinite(o2)))
    print("KERNEL_OK")
</pallas_src>

<mosaic_0001>
module attributes {stable_mosaic.version = 11 : i64} {
  func.func @_conv_pool_kernel(%arg0: i32, %arg1: memref<4x576x25xbf16, #tpu.memory_space<vmem>>, %arg2: memref<25x32xbf16, #tpu.memory_space<vmem>>, %arg3: memref<1x32xf32, #tpu.memory_space<vmem>>, %arg4: memref<1xf32, #tpu.memory_space<smem>>, %arg5: memref<576x32xbf16, #tpu.memory_space<vmem>>) attributes {dimension_semantics = [#tpu.dimension_semantics<parallel>], iteration_bounds = array<i64: 1>, scalar_prefetch = 0 : i64, scratch_operands = 0 : i64, tpu.core_type = #tpu.core_type<tc>, window_params = [{transform_indices = @transform_0, window_bounds = array<i64: 4, 576, 25>}, {pipeline_mode = #tpu.pipeline_mode<synchronous>, transform_indices = @transform_1, window_bounds = array<i64: 25, 32>}, {pipeline_mode = #tpu.pipeline_mode<synchronous>, transform_indices = @transform_2, window_bounds = array<i64: 1, 32>}, {transform_indices = @transform_3, window_bounds = array<i64: 1>}, {transform_indices = @transform_4, window_bounds = array<i64: 576, 32>}]} {
    %c0 = arith.constant 0 : index
    %c0_0 = arith.constant 0 : index
    %0 = vector.load %arg2[%c0, %c0_0] : memref<25x32xbf16, #tpu.memory_space<vmem>>, vector<25x32xbf16>
    %c0_1 = arith.constant 0 : index
    %c0_2 = arith.constant 0 : index
    %1 = vector.load %arg3[%c0_1, %c0_2] : memref<1x32xf32, #tpu.memory_space<vmem>>, vector<1x32xf32>
    %c0_3 = arith.constant 0 : index
    %2 = memref.load %arg4[%c0_3] : memref<1xf32, #tpu.memory_space<smem>>
    %c0_4 = arith.constant 0 : index
    %c0_5 = arith.constant 0 : index
    %c0_6 = arith.constant 0 : index
    %3 = vector.load %arg1[%c0_4, %c0_5, %c0_6] : memref<4x576x25xbf16, #tpu.memory_space<vmem>>, vector<1x576x25xbf16>
    %4 = vector.shape_cast %3 : vector<1x576x25xbf16> to vector<576x25xbf16>
    %cst = arith.constant dense<0.000000e+00> : vector<576x32xf32>
    %5 = tpu.matmul %4, %0, %cst {dimension_numbers = #tpu.dot_dimension_numbers<[1], [0], [0], [1], [0, 0, 1, 1], [], []>} : vector<576x25xbf16>, vector<25x32xbf16>, vector<576x32xf32> -> vector<576x32xf32>
    %6 = vector.broadcast %1 : vector<1x32xf32> to vector<576x32xf32>
    %7 = arith.addf %5, %6 : vector<576x32xf32>
    %cst_7 = arith.constant 0.000000e+00 : f32
    %8 = vector.broadcast %cst_7 : f32 to vector<576x32xf32>
    %9 = arith.cmpf ogt, %7, %8 : vector<576x32xf32>
    %10 = vector.broadcast %2 : f32 to vector<576x32xf32>
    %11 = arith.mulf %10, %7 : vector<576x32xf32>
    %12 = arith.select %9, %7, %11 : vector<576x32xi1>, vector<576x32xf32>
    %c1 = arith.constant 1 : index
    %c0_8 = arith.constant 0 : index
    %c0_9 = arith.constant 0 : index
    %13 = vector.load %arg1[%c1, %c0_8, %c0_9] : memref<4x576x25xbf16, #tpu.memory_space<vmem>>, vector<1x576x25xbf16>
    %14 = vector.shape_cast %13 : vector<1x576x25xbf16> to vector<576x25xbf16>
    %cst_10 = arith.constant dense<0.000000e+00> : vector<576x32xf32>
    %15 = tpu.matmul %14, %0, %cst_10 {dimension_numbers = #tpu.dot_dimension_numbers<[1], [0], [0], [1], [0, 0, 1, 1], [], []>} : vector<576x25xbf16>, vector<25x32xbf16>, vector<576x32xf32> -> vector<576x32xf32>
    %16 = vector.broadcast %1 : vector<1x32xf32> to vector<576x32xf32>
    %17 = arith.addf %15, %16 : vector<576x32xf32>
    %cst_11 = arith.constant 0.000000e+00 : f32
    %18 = vector.broadcast %cst_11 : f32 to vector<576x32xf32>
    %19 = arith.cmpf ogt, %17, %18 : vector<576x32xf32>
    %20 = vector.broadcast %2 : f32 to vector<576x32xf32>
    %21 = arith.mulf %20, %17 : vector<576x32xf32>
    %22 = arith.select %19, %17, %21 : vector<576x32xi1>, vector<576x32xf32>
    %23 = arith.maximumf %12, %22 : vector<576x32xf32>
    %c2 = arith.constant 2 : index
    %c0_12 = arith.constant 0 : index
    %c0_13 = arith.constant 0 : index
    %24 = vector.load %arg1[%c2, %c0_12, %c0_13] : memref<4x576x25xbf16, #tpu.memory_space<vmem>>, vector<1x576x25xbf16>
    %25 = vector.shape_cast %24 : vector<1x576x25xbf16> to vector<576x25xbf16>
    %cst_14 = arith.constant dense<0.000000e+00> : vector<576x32xf32>
    %26 = tpu.matmul %25, %0, %cst_14 {dimension_numbers = #tpu.dot_dimension_numbers<[1], [0], [0], [1], [0, 0, 1, 1], [], []>} : vector<576x25xbf16>, vector<25x32xbf16>, vector<576x32xf32> -> vector<576x32xf32>
    %27 = vector.broadcast %1 : vector<1x32xf32> to vector<576x32xf32>
    %28 = arith.addf %26, %27 : vector<576x32xf32>
    %cst_15 = arith.constant 0.000000e+00 : f32
    %29 = vector.broadcast %cst_15 : f32 to vector<576x32xf32>
    %30 = arith.cmpf ogt, %28, %29 : vector<576x32xf32>
    %31 = vector.broadcast %2 : f32 to vector<576x32xf32>
    %32 = arith.mulf %31, %28 : vector<576x32xf32>
    %33 = arith.select %30, %28, %32 : vector<576x32xi1>, vector<576x32xf32>
    %c3 = arith.constant 3 : index
    %c0_16 = arith.constant 0 : index
    %c0_17 = arith.constant 0 : index
    %34 = vector.load %arg1[%c3, %c0_16, %c0_17] : memref<4x576x25xbf16, #tpu.memory_space<vmem>>, vector<1x576x25xbf16>
    %35 = vector.shape_cast %34 : vector<1x576x25xbf16> to vector<576x25xbf16>
    %cst_18 = arith.constant dense<0.000000e+00> : vector<576x32xf32>
    %36 = tpu.matmul %35, %0, %cst_18 {dimension_numbers = #tpu.dot_dimension_numbers<[1], [0], [0], [1], [0, 0, 1, 1], [], []>} : vector<576x25xbf16>, vector<25x32xbf16>, vector<576x32xf32> -> vector<576x32xf32>
    %37 = vector.broadcast %1 : vector<1x32xf32> to vector<576x32xf32>
    %38 = arith.addf %36, %37 : vector<576x32xf32>
    %cst_19 = arith.constant 0.000000e+00 : f32
    %39 = vector.broadcast %cst_19 : f32 to vector<576x32xf32>
    %40 = arith.cmpf ogt, %38, %39 : vector<576x32xf32>
    %41 = vector.broadcast %2 : f32 to vector<576x32xf32>
    %42 = arith.mulf %41, %38 : vector<576x32xf32>
    %43 = arith.select %40, %38, %42 : vector<576x32xi1>, vector<576x32xf32>
    %44 = arith.maximumf %33, %43 : vector<576x32xf32>
    %45 = arith.maximumf %23, %44 : vector<576x32xf32>
    %46 = arith.truncf %45 : vector<576x32xf32> to vector<576x32xbf16>
    %c0_20 = arith.constant 0 : index
    %c0_21 = arith.constant 0 : index
    %47 = vector.load %arg5[%c0_20, %c0_21] : memref<576x32xbf16, #tpu.memory_space<vmem>>, vector<576x32xbf16>
    tpu.vector_store %arg5[%c0_20, %c0_21], %46 {strides = array<i32>} : memref<576x32xbf16, #tpu.memory_space<vmem>>, vector<576x32xbf16>,
    return
  }
  func.func @transform_0(%arg0: i32) -> (i32, i32, i32) {
    %c0_i32 = arith.constant 0 : i32
    %c0_i32_0 = arith.constant 0 : i32
    %c0_i32_1 = arith.constant 0 : i32
    return %c0_i32, %arg0, %c0_i32_0 : i32, i32, i32
  }
  func.func @transform_1(%arg0: i32) -> (i32, i32) {
    %c0_i32 = arith.constant 0 : i32
    %c0_i32_0 = arith.constant 0 : i32
    %c0_i32_1 = arith.constant 0 : i32
    return %c0_i32, %c0_i32_0 : i32, i32
  }
  func.func @transform_2(%arg0: i32) -> (i32, i32) {
    %c0_i32 = arith.constant 0 : i32
    %c0_i32_0 = arith.constant 0 : i32
    %c0_i32_1 = arith.constant 0 : i32
    return %c0_i32, %c0_i32_0 : i32, i32
  }
  func.func @transform_3(%arg0: i32) -> i32 {
    %c0_i32 = arith.constant 0 : i32
    %c0_i32_0 = arith.constant 0 : i32
    return %c0_i32 : i32
  }
  func.func @transform_4(%arg0: i32) -> (i32, i32) {
    %c0_i32 = arith.constant 0 : i32
    %c0_i32_0 = arith.constant 0 : i32
    return %arg0, %c0_i32 : i32, i32
  }
}

module attributes {stable_mosaic.version = 11 : i64} {
  func.func @_conv_pool_kernel(%arg0: i32, %arg1: memref<4x64x800xbf16, #tpu.memory_space<vmem>>, %arg2: memref<800x64xbf16, #tpu.memory_space<vmem>>, %arg3: memref<1x64xf32, #tpu.memory_space<vmem>>, %arg4: memref<1xf32, #tpu.memory_space<smem>>, %arg5: memref<64x64xbf16, #tpu.memory_space<vmem>>) attributes {dimension_semantics = [#tpu.dimension_semantics<parallel>], iteration_bounds = array<i64: 1>, scalar_prefetch = 0 : i64, scratch_operands = 0 : i64, tpu.core_type = #tpu.core_type<tc>, window_params = [{transform_indices = @transform_0, window_bounds = array<i64: 4, 64, 800>}, {pipeline_mode = #tpu.pipeline_mode<synchronous>, transform_indices = @transform_1, window_bounds = array<i64: 800, 64>}, {pipeline_mode = #tpu.pipeline_mode<synchronous>, transform_indices = @transform_2, window_bounds = array<i64: 1, 64>}, {transform_indices = @transform_3, window_bounds = array<i64: 1>}, {transform_indices = @transform_4, window_bounds = array<i64: 64, 64>}]} {
    %c0 = arith.constant 0 : index
    %c0_0 = arith.constant 0 : index
    %0 = vector.load %arg2[%c0, %c0_0] : memref<800x64xbf16, #tpu.memory_space<vmem>>, vector<800x64xbf16>
    %c0_1 = arith.constant 0 : index
    %c0_2 = arith.constant 0 : index
    %1 = vector.load %arg3[%c0_1, %c0_2] : memref<1x64xf32, #tpu.memory_space<vmem>>, vector<1x64xf32>
    %c0_3 = arith.constant 0 : index
    %2 = memref.load %arg4[%c0_3] : memref<1xf32, #tpu.memory_space<smem>>
    %c0_4 = arith.constant 0 : index
    %c0_5 = arith.constant 0 : index
    %c0_6 = arith.constant 0 : index
    %3 = vector.load %arg1[%c0_4, %c0_5, %c0_6] : memref<4x64x800xbf16, #tpu.memory_space<vmem>>, vector<1x64x800xbf16>
    %4 = vector.shape_cast %3 : vector<1x64x800xbf16> to vector<64x800xbf16>
    %cst = arith.constant dense<0.000000e+00> : vector<64x64xf32>
    %5 = tpu.matmul %4, %0, %cst {dimension_numbers = #tpu.dot_dimension_numbers<[1], [0], [0], [1], [0, 0, 1, 1], [], []>} : vector<64x800xbf16>, vector<800x64xbf16>, vector<64x64xf32> -> vector<64x64xf32>
    %6 = vector.broadcast %1 : vector<1x64xf32> to vector<64x64xf32>
    %7 = arith.addf %5, %6 : vector<64x64xf32>
    %cst_7 = arith.constant 0.000000e+00 : f32
    %8 = vector.broadcast %cst_7 : f32 to vector<64x64xf32>
    %9 = arith.cmpf ogt, %7, %8 : vector<64x64xf32>
    %10 = vector.broadcast %2 : f32 to vector<64x64xf32>
    %11 = arith.mulf %10, %7 : vector<64x64xf32>
    %12 = arith.select %9, %7, %11 : vector<64x64xi1>, vector<64x64xf32>
    %c1 = arith.constant 1 : index
    %c0_8 = arith.constant 0 : index
    %c0_9 = arith.constant 0 : index
    %13 = vector.load %arg1[%c1, %c0_8, %c0_9] : memref<4x64x800xbf16, #tpu.memory_space<vmem>>, vector<1x64x800xbf16>
    %14 = vector.shape_cast %13 : vector<1x64x800xbf16> to vector<64x800xbf16>
    %cst_10 = arith.constant dense<0.000000e+00> : vector<64x64xf32>
    %15 = tpu.matmul %14, %0, %cst_10 {dimension_numbers = #tpu.dot_dimension_numbers<[1], [0], [0], [1], [0, 0, 1, 1], [], []>} : vector<64x800xbf16>, vector<800x64xbf16>, vector<64x64xf32> -> vector<64x64xf32>
    %16 = vector.broadcast %1 : vector<1x64xf32> to vector<64x64xf32>
    %17 = arith.addf %15, %16 : vector<64x64xf32>
    %cst_11 = arith.constant 0.000000e+00 : f32
    %18 = vector.broadcast %cst_11 : f32 to vector<64x64xf32>
    %19 = arith.cmpf ogt, %17, %18 : vector<64x64xf32>
    %20 = vector.broadcast %2 : f32 to vector<64x64xf32>
    %21 = arith.mulf %20, %17 : vector<64x64xf32>
    %22 = arith.select %19, %17, %21 : vector<64x64xi1>, vector<64x64xf32>
    %23 = arith.maximumf %12, %22 : vector<64x64xf32>
    %c2 = arith.constant 2 : index
    %c0_12 = arith.constant 0 : index
    %c0_13 = arith.constant 0 : index
    %24 = vector.load %arg1[%c2, %c0_12, %c0_13] : memref<4x64x800xbf16, #tpu.memory_space<vmem>>, vector<1x64x800xbf16>
    %25 = vector.shape_cast %24 : vector<1x64x800xbf16> to vector<64x800xbf16>
    %cst_14 = arith.constant dense<0.000000e+00> : vector<64x64xf32>
    %26 = tpu.matmul %25, %0, %cst_14 {dimension_numbers = #tpu.dot_dimension_numbers<[1], [0], [0], [1], [0, 0, 1, 1], [], []>} : vector<64x800xbf16>, vector<800x64xbf16>, vector<64x64xf32> -> vector<64x64xf32>
    %27 = vector.broadcast %1 : vector<1x64xf32> to vector<64x64xf32>
    %28 = arith.addf %26, %27 : vector<64x64xf32>
    %cst_15 = arith.constant 0.000000e+00 : f32
    %29 = vector.broadcast %cst_15 : f32 to vector<64x64xf32>
    %30 = arith.cmpf ogt, %28, %29 : vector<64x64xf32>
    %31 = vector.broadcast %2 : f32 to vector<64x64xf32>
    %32 = arith.mulf %31, %28 : vector<64x64xf32>
    %33 = arith.select %30, %28, %32 : vector<64x64xi1>, vector<64x64xf32>
    %c3 = arith.constant 3 : index
    %c0_16 = arith.constant 0 : index
    %c0_17 = arith.constant 0 : index
    %34 = vector.load %arg1[%c3, %c0_16, %c0_17] : memref<4x64x800xbf16, #tpu.memory_space<vmem>>, vector<1x64x800xbf16>
    %35 = vector.shape_cast %34 : vector<1x64x800xbf16> to vector<64x800xbf16>
    %cst_18 = arith.constant dense<0.000000e+00> : vector<64x64xf32>
    %36 = tpu.matmul %35, %0, %cst_18 {dimension_numbers = #tpu.dot_dimension_numbers<[1], [0], [0], [1], [0, 0, 1, 1], [], []>} : vector<64x800xbf16>, vector<800x64xbf16>, vector<64x64xf32> -> vector<64x64xf32>
    %37 = vector.broadcast %1 : vector<1x64xf32> to vector<64x64xf32>
    %38 = arith.addf %36, %37 : vector<64x64xf32>
    %cst_19 = arith.constant 0.000000e+00 : f32
    %39 = vector.broadcast %cst_19 : f32 to vector<64x64xf32>
    %40 = arith.cmpf ogt, %38, %39 : vector<64x64xf32>
    %41 = vector.broadcast %2 : f32 to vector<64x64xf32>
    %42 = arith.mulf %41, %38 : vector<64x64xf32>
    %43 = arith.select %40, %38, %42 : vector<64x64xi1>, vector<64x64xf32>
    %44 = arith.maximumf %33, %43 : vector<64x64xf32>
    %45 = arith.maximumf %23, %44 : vector<64x64xf32>
    %46 = arith.truncf %45 : vector<64x64xf32> to vector<64x64xbf16>
    %c0_20 = arith.constant 0 : index
    %c0_21 = arith.constant 0 : index
    %47 = vector.load %arg5[%c0_20, %c0_21] : memref<64x64xbf16, #tpu.memory_space<vmem>>, vector<64x64xbf16>
    tpu.vector_store %arg5[%c0_20, %c0_21], %46 {strides = array<i32>} : memref<64x64xbf16, #tpu.memory_space<vmem>>, vector<64x64xbf16>,
    return
  }
  func.func @transform_0(%arg0: i32) -> (i32, i32, i32) {
    %c0_i32 = arith.constant 0 : i32
    %c0_i32_0 = arith.constant 0 : i32
    %c0_i32_1 = arith.constant 0 : i32
    return %c0_i32, %arg0, %c0_i32_0 : i32, i32, i32
  }
  func.func @transform_1(%arg0: i32) -> (i32, i32) {
    %c0_i32 = arith.constant 0 : i32
    %c0_i32_0 = arith.constant 0 : i32
    %c0_i32_1 = arith.constant 0 : i32
    return %c0_i32, %c0_i32_0 : i32, i32
  }
  func.func @transform_2(%arg0: i32) -> (i32, i32) {
    %c0_i32 = arith.constant 0 : i32
    %c0_i32_0 = arith.constant 0 : i32
    %c0_i32_1 = arith.constant 0 : i32
    return %c0_i32, %c0_i32_0 : i32, i32
  }
  func.func @transform_3(%arg0: i32) -> i32 {
    %c0_i32 = arith.constant 0 : i32
    %c0_i32_0 = arith.constant 0 : i32
    return %c0_i32 : i32
  }
  func.func @transform_4(%arg0: i32) -> (i32, i32) {
    %c0_i32 = arith.constant 0 : i32
    %c0_i32_0 = arith.constant 0 : i32
    return %arg0, %c0_i32 : i32, i32
  }
}

module attributes {stable_mosaic.version = 11 : i64} {
  func.func @_mlp_kernel(%arg0: memref<4x1024xbf16, #tpu.memory_space<vmem>>, %arg1: memref<1024x256xbf16, #tpu.memory_space<vmem>>, %arg2: memref<1x256xf32, #tpu.memory_space<vmem>>, %arg3: memref<1xf32, #tpu.memory_space<smem>>, %arg4: memref<256x256xbf16, #tpu.memory_space<vmem>>, %arg5: memref<1x256xf32, #tpu.memory_space<vmem>>, %arg6: memref<1xf32, #tpu.memory_space<smem>>, %arg7: memref<256x2xbf16, #tpu.memory_space<vmem>>, %arg8: memref<1x2xf32, #tpu.memory_space<vmem>>, %arg9: memref<4x2xf32, #tpu.memory_space<vmem>>) attributes {dimension_semantics = [], scalar_prefetch = 0 : i64, scratch_operands = 0 : i64, tpu.core_type = #tpu.core_type<tc>} {
    %c0 = arith.constant 0 : index
    %c0_0 = arith.constant 0 : index
    %0 = vector.load %arg0[%c0, %c0_0] : memref<4x1024xbf16, #tpu.memory_space<vmem>>, vector<4x1024xbf16>
    %c0_1 = arith.constant 0 : index
    %c0_2 = arith.constant 0 : index
    %1 = vector.load %arg1[%c0_1, %c0_2] : memref<1024x256xbf16, #tpu.memory_space<vmem>>, vector<1024x256xbf16>
    %cst = arith.constant dense<0.000000e+00> : vector<4x256xf32>
    %2 = tpu.matmul %0, %1, %cst {dimension_numbers = #tpu.dot_dimension_numbers<[1], [0], [0], [1], [0, 0, 1, 1], [], []>} : vector<4x1024xbf16>, vector<1024x256xbf16>, vector<4x256xf32> -> vector<4x256xf32>
    %c0_3 = arith.constant 0 : index
    %c0_4 = arith.constant 0 : index
    %3 = vector.load %arg2[%c0_3, %c0_4] : memref<1x256xf32, #tpu.memory_space<vmem>>, vector<1x256xf32>
    %4 = vector.broadcast %3 : vector<1x256xf32> to vector<4x256xf32>
    %5 = arith.addf %2, %4 : vector<4x256xf32>
    %cst_5 = arith.constant 0.000000e+00 : f32
    %6 = vector.broadcast %cst_5 : f32 to vector<4x256xf32>
    %7 = arith.cmpf ogt, %5, %6 : vector<4x256xf32>
    %c0_6 = arith.constant 0 : index
    %8 = memref.load %arg3[%c0_6] : memref<1xf32, #tpu.memory_space<smem>>
    %9 = vector.broadcast %8 : f32 to vector<4x256xf32>
    %10 = arith.mulf %9, %5 : vector<4x256xf32>
    %11 = arith.select %7, %5, %10 : vector<4x256xi1>, vector<4x256xf32>
    %12 = arith.truncf %11 : vector<4x256xf32> to vector<4x256xbf16>
    %c0_7 = arith.constant 0 : index
    %c0_8 = arith.constant 0 : index
    %13 = vector.load %arg4[%c0_7, %c0_8] : memref<256x256xbf16, #tpu.memory_space<vmem>>, vector<256x256xbf16>
    %cst_9 = arith.constant dense<0.000000e+00> : vector<4x256xf32>
    %14 = tpu.matmul %12, %13, %cst_9 {dimension_numbers = #tpu.dot_dimension_numbers<[1], [0], [0], [1], [0, 0, 1, 1], [], []>} : vector<4x256xbf16>, vector<256x256xbf16>, vector<4x256xf32> -> vector<4x256xf32>
    %c0_10 = arith.constant 0 : index
    %c0_11 = arith.constant 0 : index
    %15 = vector.load %arg5[%c0_10, %c0_11] : memref<1x256xf32, #tpu.memory_space<vmem>>, vector<1x256xf32>
    %16 = vector.broadcast %15 : vector<1x256xf32> to vector<4x256xf32>
    %17 = arith.addf %14, %16 : vector<4x256xf32>
    %cst_12 = arith.constant 0.000000e+00 : f32
    %18 = vector.broadcast %cst_12 : f32 to vector<4x256xf32>
    %19 = arith.cmpf ogt, %17, %18 : vector<4x256xf32>
    %c0_13 = arith.constant 0 : index
    %20 = memref.load %arg6[%c0_13] : memref<1xf32, #tpu.memory_space<smem>>
    %21 = vector.broadcast %20 : f32 to vector<4x256xf32>
    %22 = arith.mulf %21, %17 : vector<4x256xf32>
    %23 = arith.select %19, %17, %22 : vector<4x256xi1>, vector<4x256xf32>
    %24 = arith.truncf %23 : vector<4x256xf32> to vector<4x256xbf16>
    %c0_14 = arith.constant 0 : index
    %c0_15 = arith.constant 0 : index
    %25 = vector.load %arg7[%c0_14, %c0_15] : memref<256x2xbf16, #tpu.memory_space<vmem>>, vector<256x2xbf16>
    %cst_16 = arith.constant dense<0.000000e+00> : vector<4x2xf32>
    %26 = tpu.matmul %24, %25, %cst_16 {dimension_numbers = #tpu.dot_dimension_numbers<[1], [0], [0], [1], [0, 0, 1, 1], [], []>} : vector<4x256xbf16>, vector<256x2xbf16>, vector<4x2xf32> -> vector<4x2xf32>
    %c0_17 = arith.constant 0 : index
    %c0_18 = arith.constant 0 : index
    %27 = vector.load %arg8[%c0_17, %c0_18] : memref<1x2xf32, #tpu.memory_space<vmem>>, vector<1x2xf32>
    %28 = vector.broadcast %27 : vector<1x2xf32> to vector<4x2xf32>
    %29 = arith.addf %26, %28 : vector<4x2xf32>
    %c0_19 = arith.constant 0 : index
    %c0_20 = arith.constant 0 : index
    %30 = vector.load %arg9[%c0_19, %c0_20] : memref<4x2xf32, #tpu.memory_space<vmem>>, vector<4x2xf32>
    tpu.vector_store %arg9[%c0_19, %c0_20], %29 {strides = array<i32>} : memref<4x2xf32, #tpu.memory_space<vmem>>, vector<4x2xf32>,
    return
  }
}

</mosaic_0001>

<bundles_post_ra>
// kernel: siamese_net.3
= control target key start
LH: loop header
LB: loop body
LE: loop exit
PB: predicated region body
PF: predicated region fallthrough
CT: control target
= control target key end

     0   :  { %vm403_vm0 = vcmask 1043456   ;;  %vm404_vm1 = vcmask 1044480   ;;  %vm294_vm2 = vcmask 203776   ;;  %v5480_v1 = vmov 65535   ;;  %s8238_s1 = inlined_call_operand.vmem [shape: bf16[25,32], index: 1, kind: input, shape index: {}]   ;;  %s8239_s0 = inlined_call_operand.vmem [shape: bf16[4,576,25], index: 0, kind: input, shape index: {}]   ;;  %s8240_s2 = inlined_call_operand.vmem [shape: f32[1,32], index: 2, kind: input, shape index: {}]   ;;  %s8241_s3 = inlined_call_operand.<no memory space> [shape: f32[1], index: 3, kind: input, shape index: {}]   ;;  %s8242_s4 = inlined_call_operand.vmem [shape: bf16[576,32], index: 4, kind: output, shape index: {}]  }
   0x1   :  { %v5331_v0 = vld [vmem:[%s8238_s1] sm:$0xff]   ;;  %v405_v2 = vsel %vm403_vm0, 4294967295, %v5480_v1  ;;  %v5332_v3 = vld [vmem:[%s8238_s1 + $0x8] sm:$0x1f]   ;;  %v5337_v10 = vld [vmem:[%s8239_s0 + $0x10] sm:$0xff]  }
   0x2   :  { %5026 = vmatprep.subr.bf16.mxu0 %v5331_v0  ;;  %5102 = vmatprep.subr.bf16.mxu1 %v5331_v0  ;;  %v406_v4 = vsel %vm404_vm1, %v405_v2, 0  ;;  %v5333_v5 = vld [vmem:[%s8239_s0] sm:$0xff]   ;;  %v5335_v8 = vld [vmem:[%s8239_s0 + $0x8] sm:$0xff]   ;;  %v5338_v11 = vld [vmem:[%s8239_s0 + $0x130] sm:$0xff]  }
   0x3   :  { %5027 = vmatpush3.bf16.msra.mxu0 %v5331_v0  ;;  %5103 = vmatpush3.bf16.msra.mxu1 %v5331_v0  ;;  %v408_v6 = vand.u32 %v5332_v3, %v406_v4  ;;  %v5334_v7 = vld [vmem:[%s8239_s0 + $0x120] sm:$0xff]   ;;  %v5336_v9 = vld [vmem:[%s8239_s0 + $0x128] sm:$0xff]   ;;  %v5339_v12 = vld [vmem:[%s8239_s0 + $0x18] sm:$0xff]  }
   0x4   :  { %5030 = vmatprep.mubr.msk.bf16.mxu0 %vm294_vm2, %v5333_v5  ;;  %5106 = vmatprep.mubr.msk.bf16.mxu1 %vm294_vm2, %v5334_v7  ;;  %v5340_v13 = vld [vmem:[%s8239_s0 + $0x138] sm:$0xff]   ;;  %v5341_v14 = vld [vmem:[%s8239_s0 + $0x20] sm:$0xff]   ;;  %v5343_v16 = vld [vmem:[%s8239_s0 + $0x28] sm:$0xff]  }
   0x5   :  { %5028 = vmatprep.subr.bf16.mxu0 %v408_v6  ;;  %5104 = vmatprep.subr.bf16.mxu1 %v408_v6  ;;  %v5342_v15 = vld [vmem:[%s8239_s0 + $0x140] sm:$0xff]   ;;  %v5344_v17 = vld [vmem:[%s8239_s0 + $0x148] sm:$0xff]   ;;  %v5345_v18 = vld [vmem:[%s8239_s0 + $0x30] sm:$0xff]  }
   0x6   :  { %v5346_v19 = vld [vmem:[%s8239_s0 + $0x150] sm:$0xff]   ;;  %v5347_v20 = vld [vmem:[%s8239_s0 + $0x38] sm:$0xff]   ;;  %v5349_v22 = vld [vmem:[%s8239_s0 + $0x40] sm:$0xff]  }
   0x7   :  { %5029 = vmatpush3.bf16.msra.mxu0 %v408_v6  ;;  %5105 = vmatpush3.bf16.msra.mxu1 %v408_v6  ;;  %v5348_v21 = vld [vmem:[%s8239_s0 + $0x158] sm:$0xff]   ;;  %v5350_v23 = vld [vmem:[%s8239_s0 + $0x160] sm:$0xff]   ;;  %v5351_v24 = vld [vmem:[%s8239_s0 + $0x48] sm:$0xff]  }
   0x8   :  { %5178 = vmatprep.subr.bf16.mxu0 %v5331_v0  ;;  %5254 = vmatprep.subr.bf16.mxu1 %v5331_v0  ;;  %v5352_v25 = vld [vmem:[%s8239_s0 + $0x168] sm:$0xff]   ;;  %v5353_v26 = vld [vmem:[%s8239_s0 + $0x50] sm:$0xff]   ;;  %v5355_v28 = vld [vmem:[%s8239_s0 + $0x58] sm:$0xff]  }
   0x9   :  { %v5354_v27 = vld [vmem:[%s8239_s0 + $0x170] sm:$0xff]   ;;  %v5356_v29 = vld [vmem:[%s8239_s0 + $0x178] sm:$0xff]   ;;  %v5357_v30 = vld [vmem:[%s8239_s0 + $0x60] sm:$0xff]  }
   0xa   :  { %5031 = vmatmul.mubr.msk.bf16.vlgmr.msra.gmra.mrb[0].mxu0 %vm294_vm2, %v5335_v8  ;;  %5107 = vmatmul.mubr.msk.bf16.vlgmr.msra.gmra.mrb[0].mxu1 %vm294_vm2, %v5336_v9  ;;  %v5358_v31 = vld [vmem:[%s8239_s0 + $0x180] sm:$0xff]   ;;  %v5359_v32 = vld [vmem:[%s8239_s0 + $0x68] sm:$0xff]   ;;  %v5361_v34 = vld [vmem:[%s8239_s0 + $0x70] sm:$0xff]  }
   0xb   :  { %5179 = vmatpush3.bf16.msra.mxu0 %v5331_v0  ;;  %5255 = vmatpush3.bf16.msra.mxu1 %v5331_v0  ;;  %v5360_v33 = vld [vmem:[%s8239_s0 + $0x188] sm:$0xff]   ;;  %v5362_v35 = vld [vmem:[%s8239_s0 + $0x190] sm:$0xff]   ;;  %v5363_v36 = vld [vmem:[%s8239_s0 + $0x78] sm:$0xff]  }
   0xc   :  { %5034 = vmatprep.mubr.msk.bf16.mxu0 %vm294_vm2, %v5337_v10  ;;  %5110 = vmatprep.mubr.msk.bf16.mxu1 %vm294_vm2, %v5338_v11  ;;  %v5364_v37 = vld [vmem:[%s8239_s0 + $0x198] sm:$0xff]   ;;  %v5365_v38 = vld [vmem:[%s8239_s0 + $0x80] sm:$0xff]   ;;  %v5367_v40 = vld [vmem:[%s8239_s0 + $0x88] sm:$0xff]  }
   0xd   :  { %5180 = vmatprep.subr.bf16.mxu0 %v408_v6  ;;  %5256 = vmatprep.subr.bf16.mxu1 %v408_v6  ;;  %v5366_v39 = vld [vmem:[%s8239_s0 + $0x1a0] sm:$0xff]   ;;  %v5368_v41 = vld [vmem:[%s8239_s0 + $0x1a8] sm:$0xff]   ;;  %v5369_v42 = vld [vmem:[%s8239_s0 + $0x90] sm:$0xff]  }
   0xe   :  { %v5370_v43 = vld [vmem:[%s8239_s0 + $0x1b0] sm:$0xff]   ;;  %v5371_v44 = vld [vmem:[%s8239_s0 + $0x98] sm:$0xff]   ;;  %v5373_v46 = vld [vmem:[%s8239_s0 + $0xa0] sm:$0xff]  }
   0xf   :  { %5181 = vmatpush3.bf16.msra.mxu0 %v408_v6  ;;  %5257 = vmatpush3.bf16.msra.mxu1 %v408_v6  ;;  %v5372_v45 = vld [vmem:[%s8239_s0 + $0x1b8] sm:$0xff]   ;;  %v5374_v47 = vld [vmem:[%s8239_s0 + $0x1c0] sm:$0xff]   ;;  %v5375_v48 = vld [vmem:[%s8239_s0 + $0xa8] sm:$0xff]  }
  0x10   :  { %v5376_v49 = vld [vmem:[%s8239_s0 + $0x1c8] sm:$0xff]   ;;  %v5377_v50 = vld [vmem:[%s8239_s0 + $0xb0] sm:$0xff]   ;;  %v5379_v52 = vld [vmem:[%s8239_s0 + $0xb8] sm:$0xff]  }
  0x11   :  { %v5378_v51 = vld [vmem:[%s8239_s0 + $0x1d0] sm:$0xff]   ;;  %v5380_v53 = vld [vmem:[%s8239_s0 + $0x1d8] sm:$0xff]   ;;  %v5381_v54 = vld [vmem:[%s8239_s0 + $0xc0] sm:$0xff]  }
  0x12   :  { %5035 = vmatmul.mubr.msk.bf16.gmra.mrb[4].mxu0 %vm294_vm2, %v5339_v12  ;;  %5111 = vmatmul.mubr.msk.bf16.gmra.mrb[4].mxu1 %vm294_vm2, %v5340_v13  ;;  %v5382_v55 = vld [vmem:[%s8239_s0 + $0x1e0] sm:$0xff]   ;;  %v5383_v56 = vld [vmem:[%s8239_s0 + $0xc8] sm:$0xff]   ;;  %v5385_v58 = vld [vmem:[%s8239_s0 + $0xd0] sm:$0xff]  }
  0x13   :  { %5038 = vmatprep.mubr.msk.bf16.mxu0 %vm294_vm2, %v5341_v14  ;;  %5114 = vmatprep.mubr.msk.bf16.mxu1 %vm294_vm2, %v5342_v15  ;;  %v5384_v57 = vld [vmem:[%s8239_s0 + $0x1e8] sm:$0xff]   ;;  %v5386_v59 = vld [vmem:[%s8239_s0 + $0x1f0] sm:$0xff]   ;;  %v5387_v60 = vld [vmem:[%s8239_s0 + $0xd8] sm:$0xff]  }
  0x14   :  { %v5388_v61 = vld [vmem:[%s8239_s0 + $0x1f8] sm:$0xff]   ;;  %v5389_v62 = vld [vmem:[%s8239_s0 + $0xe0] sm:$0xff]   ;;  %v5391_v0 = vld [vmem:[%s8239_s0 + $0xe8] sm:$0xff]  }
  0x15   :  { %v5390_v63 = vld [vmem:[%s8239_s0 + $0x200] sm:$0xff]   ;;  %v5392_v1 = vld [vmem:[%s8239_s0 + $0x208] sm:$0xff]   ;;  %v5393_v2 = vld [vmem:[%s8239_s0 + $0xf0] sm:$0xff]  }
  0x16   :  { %v5394_v3 = vld [vmem:[%s8239_s0 + $0x210] sm:$0xff]   ;;  %v5395_v4 = vld [vmem:[%s8239_s0 + $0xf8] sm:$0xff]   ;;  %v5397_v6 = vld [vmem:[%s8239_s0 + $0x100] sm:$0xff]  }
  0x17   :  { %v5396_v5 = vld [vmem:[%s8239_s0 + $0x218] sm:$0xff]   ;;  %v5398_v7 = vld [vmem:[%s8239_s0 + $0x220] sm:$0xff]   ;;  %v5399_v8 = vld [vmem:[%s8239_s0 + $0x108] sm:$0xff]  }
  0x18   :  { %v5400_v9 = vld [vmem:[%s8239_s0 + $0x228] sm:$0xff]   ;;  %v5401_v10 = vld [vmem:[%s8239_s0 + $0x110] sm:$0xff]   ;;  %v5403_v12 = vld [vmem:[%s8239_s0 + $0x118] sm:$0xff]  }
  0x19   :  { %v5402_v11 = vld [vmem:[%s8239_s0 + $0x230] sm:$0xff]   ;;  %v5404_v13 = vld [vmem:[%s8239_s0 + $0x238] sm:$0xff]   ;;  %v5405_v14 = vld [vmem:[%s8239_s0 + $0x240] sm:$0xff]  }
  0x1a   :  { %5039 = vmatmul.mubr.msk.bf16.gmra.mrb[8].mxu0 %vm294_vm2, %v5343_v16  ;;  %5115 = vmatmul.mubr.msk.bf16.gmra.mrb[8].mxu1 %vm294_vm2, %v5344_v17  ;;  %v5406_v15 = vld [vmem:[%s8239_s0 + $0x360] sm:$0xff]   ;;  %v5407_v16 = vld [vmem:[%s8239_s0 + $0x248] sm:$0xff]  }
  0x1b   :  { %5042 = vmatprep.mubr.msk.bf16.mxu0 %vm294_vm2, %v5345_v18  ;;  %5118 = vmatprep.mubr.msk.bf16.mxu1 %vm294_vm2, %v5346_v19  ;;  %v5408_v17 = vld [vmem:[%s8239_s0 + $0x368] sm:$0xff]   ;;  %v5409_v18 = vld [vmem:[%s8239_s0 + $0x250] sm:$0xff]  }
  0x1c   :  { %v5410_v19 = vld [vmem:[%s8239_s0 + $0x370] sm:$0xff]  }
  0x22   :  { %5043 = vmatmul.mubr.msk.bf16.gmra.mrb[12].mxu0 %vm294_vm2, %v5347_v20  ;;  %5119 = vmatmul.mubr.msk.bf16.gmra.mrb[12].mxu1 %vm294_vm2, %v5348_v21  ;;  %v5411_v20 = vld [vmem:[%s8239_s0 + $0x258] sm:$0xff]  }
  0x23   :  { %5046 = vmatprep.mubr.msk.bf16.mxu0 %vm294_vm2, %v5349_v22  ;;  %5122 = vmatprep.mubr.msk.bf16.mxu1 %vm294_vm2, %v5350_v23  ;;  %v5412_v21 = vld [vmem:[%s8239_s0 + $0x378] sm:$0xff]   ;;  %v5413_v22 = vld [vmem:[%s8239_s0 + $0x260] sm:$0xff]  }
  0x24   :  { %v5414_v23 = vld [vmem:[%s8239_s0 + $0x380] sm:$0xff]  }
  0x2a   :  { %5047 = vmatmul.mubr.msk.bf16.gmra.mrb[16].mxu0 %vm294_vm2, %v5351_v24  ;;  %5123 = vmatmul.mubr.msk.bf16.gmra.mrb[16].mxu1 %vm294_vm2, %v5352_v25  ;;  %v5415_v24 = vld [vmem:[%s8239_s0 + $0x268] sm:$0xff]  }
  0x2b   :  { %5050 = vmatprep.mubr.msk.bf16.mxu0 %vm294_vm2, %v5353_v26  ;;  %5126 = vmatprep.mubr.msk.bf16.mxu1 %vm294_vm2, %v5354_v27  ;;  %v5416_v25 = vld [vmem:[%s8239_s0 + $0x388] sm:$0xff]   ;;  %v5417_v26 = vld [vmem:[%s8239_s0 + $0x270] sm:$0xff]  }
  0x2c   :  { %v5418_v27 = vld [vmem:[%s8239_s0 + $0x390] sm:$0xff]  }
  0x32   :  { %5051 = vmatmul.mubr.msk.bf16.gmra.mrb[20].mxu0 %vm294_vm2, %v5355_v28  ;;  %5127 = vmatmul.mubr.msk.bf16.gmra.mrb[20].mxu1 %vm294_vm2, %v5356_v29  ;;  %v5419_v28 = vld [vmem:[%s8239_s0 + $0x278] sm:$0xff]  }
  0x33   :  { %5054 = vmatprep.mubr.msk.bf16.mxu0 %vm294_vm2, %v5357_v30  ;;  %5130 = vmatprep.mubr.msk.bf16.mxu1 %vm294_vm2, %v5358_v31  ;;  %v5420_v29 = vld [vmem:[%s8239_s0 + $0x398] sm:$0xff]   ;;  %v5421_v30 = vld [vmem:[%s8239_s0 + $0x280] sm:$0xff]  }
  0x34   :  { %v5422_v31 = vld [vmem:[%s8239_s0 + $0x3a0] sm:$0xff]  }
  0x3a   :  { %5055 = vmatmul.mubr.msk.bf16.gmra.mrb[24].mxu0 %vm294_vm2, %v5359_v32  ;;  %5131 = vmatmul.mubr.msk.bf16.gmra.mrb[24].mxu1 %vm294_vm2, %v5360_v33  ;;  %v5423_v32 = vld [vmem:[%s8239_s0 + $0x288] sm:$0xff]  }
  0x3b   :  { %5058 = vmatprep.mubr.msk.bf16.mxu0 %vm294_vm2, %v5361_v34  ;;  %5134 = vmatprep.mubr.msk.bf16.mxu1 %vm294_vm2, %v5362_v35  ;;  %v5424_v33 = vld [vmem:[%s8239_s0 + $0x3a8] sm:$0xff]   ;;  %v5425_v34 = vld [vmem:[%s8239_s0 + $0x290] sm:$0xff]  }
  0x3c   :  { %v5426_v35 = vld [vmem:[%s8239_s0 + $0x3b0] sm:$0xff]  }
  0x42   :  { %5059 = vmatmul.mubr.msk.bf16.gmra.mrb[28].mxu0 %vm294_vm2, %v5363_v36  ;;  %5135 = vmatmul.mubr.msk.bf16.gmra.mrb[28].mxu1 %vm294_vm2, %v5364_v37  ;;  %v5427_v36 = vld [vmem:[%s8239_s0 + $0x298] sm:$0xff]  }
  0x43   :  { %5062 = vmatprep.mubr.msk.bf16.mxu0 %vm294_vm2, %v5365_v38  ;;  %5138 = vmatprep.mubr.msk.bf16.mxu1 %vm294_vm2, %v5366_v39  ;;  %v5428_v37 = vld [vmem:[%s8239_s0 + $0x3b8] sm:$0xff]   ;;  %v5429_v38 = vld [vmem:[%s8239_s0 + $0x2a0] sm:$0xff]  }
  0x44   :  { %v5430_v39 = vld [vmem:[%s8239_s0 + $0x3c0] sm:$0xff]  }
  0x4a   :  { %5063 = vmatmul.mubr.msk.bf16.gmra.mrb[32].mxu0 %vm294_vm2, %v5367_v40  ;;  %5139 = vmatmul.mubr.msk.bf16.gmra.mrb[32].mxu1 %vm294_vm2, %v5368_v41  ;;  %v5431_v40 = vld [vmem:[%s8239_s0 + $0x2a8] sm:$0xff]  }
  0x4b   :  { %5066 = vmatprep.mubr.msk.bf16.mxu0 %vm294_vm2, %v5369_v42  ;;  %5142 = vmatprep.mubr.msk.bf16.mxu1 %vm294_vm2, %v5370_v43  ;;  %v5432_v41 = vld [vmem:[%s8239_s0 + $0x3c8] sm:$0xff]   ;;  %v5433_v42 = vld [vmem:[%s8239_s0 + $0x2b0] sm:$0xff]  }
  0x4c   :  { %v5434_v43 = vld [vmem:[%s8239_s0 + $0x3d0] sm:$0xff]  }
  0x52   :  { %5067 = vmatmul.mubr.msk.bf16.gmra.mrb[36].mxu0 %vm294_vm2, %v5371_v44  ;;  %5143 = vmatmul.mubr.msk.bf16.gmra.mrb[36].mxu1 %vm294_vm2, %v5372_v45  ;;  %v5435_v44 = vld [vmem:[%s8239_s0 + $0x2b8] sm:$0xff]  }
  0x53   :  { %5070 = vmatprep.mubr.msk.bf16.mxu0 %vm294_vm2, %v5373_v46  ;;  %5146 = vmatprep.mubr.msk.bf16.mxu1 %vm294_vm2, %v5374_v47  ;;  %v5436_v45 = vld [vmem:[%s8239_s0 + $0x3d8] sm:$0xff]   ;;  %v5437_v46 = vld [vmem:[%s8239_s0 + $0x2c0] sm:$0xff]  }
  0x54   :  { %v5438_v47 = vld [vmem:[%s8239_s0 + $0x3e0] sm:$0xff]  }
  0x5a   :  { %5071 = vmatmul.mubr.msk.bf16.gmra.mrb[40].mxu0 %vm294_vm2, %v5375_v48  ;;  %5147 = vmatmul.mubr.msk.bf16.gmra.mrb[40].mxu1 %vm294_vm2, %v5376_v49  ;;  %v5439_v48 = vld [vmem:[%s8239_s0 + $0x2c8] sm:$0xff]  }
  0x5b   :  { %5074 = vmatprep.mubr.msk.bf16.mxu0 %vm294_vm2, %v5377_v50  ;;  %5150 = vmatprep.mubr.msk.bf16.mxu1 %vm294_vm2, %v5378_v51  ;;  %v5440_v49 = vld [vmem:[%s8239_s0 + $0x3e8] sm:$0xff]   ;;  %v5441_v50 = vld [vmem:[%s8239_s0 + $0x2d0] sm:$0xff]  }
  0x5c   :  { %v5442_v51 = vld [vmem:[%s8239_s0 + $0x3f0] sm:$0xff]  }
  0x62   :  { %5075 = vmatmul.mubr.msk.bf16.gmra.mrb[44].mxu0 %vm294_vm2, %v5379_v52  ;;  %5151 = vmatmul.mubr.msk.bf16.gmra.mrb[44].mxu1 %vm294_vm2, %v5380_v53  ;;  %v5953_v52 = vld [vmem:[%s8240_s2] ss:$0 sm:$0xff] }
  0x63   :  { %5078 = vmatprep.mubr.msk.bf16.mxu0 %vm294_vm2, %v5381_v54  ;;  %5154 = vmatprep.mubr.msk.bf16.mxu1 %vm294_vm2, %v5382_v55  ;;  %v5960_v54 = vstv %s8241_s3 }
  0x6a   :  { %5079 = vmatmul.mubr.msk.bf16.gmra.mrb[48].mxu0 %vm294_vm2, %v5383_v56  ;;  %5155 = vmatmul.mubr.msk.bf16.gmra.mrb[48].mxu1 %vm294_vm2, %v5384_v57 }
  0x6b   :  { %5082 = vmatprep.mubr.msk.bf16.mxu0 %vm294_vm2, %v5385_v58  ;;  %5158 = vmatprep.mubr.msk.bf16.mxu1 %vm294_vm2, %v5386_v59 }
  0x72   :  { %5083 = vmatmul.mubr.msk.bf16.gmra.mrb[52].mxu0 %vm294_vm2, %v5387_v60  ;;  %5159 = vmatmul.mubr.msk.bf16.gmra.mrb[52].mxu1 %vm294_vm2, %v5388_v61  ;;  %v5443_v60 = vld [vmem:[%s8239_s0 + $0x2d8] sm:$0xff]  }
  0x73   :  { %5086 = vmatprep.mubr.msk.bf16.mxu0 %vm294_vm2, %v5389_v62  ;;  %5162 = vmatprep.mubr.msk.bf16.mxu1 %vm294_vm2, %v5390_v63 }
  0x7a   :  { %5087 = vmatmul.mubr.msk.bf16.gmra.mrb[56].mxu0 %vm294_vm2, %v5391_v0  ;;  %5163 = vmatmul.mubr.msk.bf16.gmra.mrb[56].mxu1 %vm294_vm2, %v5392_v1  ;;  %v5444_v1 = vld [vmem:[%s8239_s0 + $0x3f8] sm:$0xff]  }
  0x7b   :  { %5090 = vmatprep.mubr.msk.bf16.mxu0 %vm294_vm2, %v5393_v2  ;;  %5166 = vmatprep.mubr.msk.bf16.mxu1 %vm294_vm2, %v5394_v3 }
  0x82   :  { %5091 = vmatmul.mubr.msk.bf16.gmra.mrb[60].mxu0 %vm294_vm2, %v5395_v4  ;;  %5167 = vmatmul.mubr.msk.bf16.gmra.mrb[60].mxu1 %vm294_vm2, %v5396_v5 }
  0x83   :  { %5094 = vmatprep.mubr.msk.bf16.mxu0 %vm294_vm2, %v5397_v6  ;;  %5170 = vmatprep.mubr.msk.bf16.mxu1 %vm294_vm2, %v5398_v7  ;;  %v5445_v6 = vld [vmem:[%s8239_s0 + $0x2e0] sm:$0xff]  }
  0x84   :  { %v5446_v7 = vld [vmem:[%s8239_s0 + $0x400] sm:$0xff]  }
  0x8a   :  { %5095 = vmatmul.mubr.msk.bf16.gmra.mrb[64].mxu0 %vm294_vm2, %v5399_v8  ;;  %5171 = vmatmul.mubr.msk.bf16.gmra.mrb[64].mxu1 %vm294_vm2, %v5400_v9 }
  0x8b   :  { %5098 = vmatprep.mubr.msk.bf16.mxu0 %vm294_vm2, %v5401_v10  ;;  %5174 = vmatprep.mubr.msk.bf16.mxu1 %vm294_vm2, %v5402_v11 }
  0x92   :  { %5099 = vmatmul.mubr.msk.bf16.gmra.mrb[68].mxu0 %vm294_vm2, %v5403_v12  ;;  %5175 = vmatmul.mubr.msk.bf16.gmra.mrb[68].mxu1 %vm294_vm2, %v5404_v13 }
  0x93   :  { %5182 = vmatprep.mubr.msk.bf16.mxu0 %vm294_vm2, %v5405_v14  ;;  %5258 = vmatprep.mubr.msk.bf16.mxu1 %vm294_vm2, %v5406_v15 }
  0x9a   :  { %5183 = vmatmul.mubr.msk.bf16.vlgmr.msra.gmra.mrb[72].mxu0 %vm294_vm2, %v5407_v16  ;;  %5259 = vmatmul.mubr.msk.bf16.vlgmr.msra.gmra.mrb[72].mxu1 %vm294_vm2, %v5408_v17 }
  0x9b   :  { %5186 = vmatprep.mubr.msk.bf16.mxu0 %vm294_vm2, %v5409_v18  ;;  %5262 = vmatprep.mubr.msk.bf16.mxu1 %vm294_vm2, %v5410_v19 }
  0xa2   :  { %5187 = vmatmul.mubr.msk.bf16.gmra.mrb[76].mxu0 %vm294_vm2, %v5411_v20  ;;  %5263 = vmatmul.mubr.msk.bf16.gmra.mrb[76].mxu1 %vm294_vm2, %v5412_v21 }
  0xa3   :  { %5190 = vmatprep.mubr.msk.bf16.mxu0 %vm294_vm2, %v5413_v22  ;;  %5266 = vmatprep.mubr.msk.bf16.mxu1 %vm294_vm2, %v5414_v23 }
  0xaa   :  { %5191 = vmatmul.mubr.msk.bf16.gmra.mrb[80].mxu0 %vm294_vm2, %v5415_v24  ;;  %5267 = vmatmul.mubr.msk.bf16.gmra.mrb[80].mxu1 %vm294_vm2, %v5416_v25 }
  0xab   :  { %5194 = vmatprep.mubr.msk.bf16.mxu0 %vm294_vm2, %v5417_v26  ;;  %5270 = vmatprep.mubr.msk.bf16.mxu1 %vm294_vm2, %v5418_v27 }
  0xb2   :  { %5195 = vmatmul.mubr.msk.bf16.gmra.mrb[84].mxu0 %vm294_vm2, %v5419_v28  ;;  %5271 = vmatmul.mubr.msk.bf16.gmra.mrb[84].mxu1 %vm294_vm2, %v5420_v29 }
  0xb3   :  { %5198 = vmatprep.mubr.msk.bf16.mxu0 %vm294_vm2, %v5421_v30  ;;  %5274 = vmatprep.mubr.msk.bf16.mxu1 %vm294_vm2, %v5422_v31  ;;  %v5447_v30 = vld [vmem:[%s8239_s0 + $0x2e8] sm:$0xff]  }
  0xba   :  { %5199 = vmatmul.mubr.msk.bf16.gmra.mrb[88].mxu0 %vm294_vm2, %v5423_v32  ;;  %5275 = vmatmul.mubr.msk.bf16.gmra.mrb[88].mxu1 %vm294_vm2, %v5424_v33 }
  0xbb   :  { %5202 = vmatprep.mubr.msk.bf16.mxu0 %vm294_vm2, %v5425_v34  ;;  %5278 = vmatprep.mubr.msk.bf16.mxu1 %vm294_vm2, %v5426_v35 }
  0xc2   :  { %5203 = vmatmul.mubr.msk.bf16.gmra.mrb[92].mxu0 %vm294_vm2, %v5427_v36  ;;  %5279 = vmatmul.mubr.msk.bf16.gmra.mrb[92].mxu1 %vm294_vm2, %v5428_v37  ;;  %v5448_v36 = vld [vmem:[%s8239_s0 + $0x408] sm:$0xff]   ;;  %v5449_v37 = vld [vmem:[%s8239_s0 + $0x2f0] sm:$0xff]  }
  0xc3   :  { %5206 = vmatprep.mubr.msk.bf16.mxu0 %vm294_vm2, %v5429_v38  ;;  %5282 = vmatprep.mubr.msk.bf16.mxu1 %vm294_vm2, %v5430_v39 }
  0xca   :  { %5207 = vmatmul.mubr.msk.bf16.gmra.mrb[96].mxu0 %vm294_vm2, %v5431_v40  ;;  %5283 = vmatmul.mubr.msk.bf16.gmra.mrb[96].mxu1 %vm294_vm2, %v5432_v41 }
  0xcb   :  { %5210 = vmatprep.mubr.msk.bf16.mxu0 %vm294_vm2, %v5433_v42  ;;  %5286 = vmatprep.mubr.msk.bf16.mxu1 %vm294_vm2, %v5434_v43  ;;  %v5450_v42 = vld [vmem:[%s8239_s0 + $0x410] sm:$0xff]  }
  0xd2   :  { %5211 = vmatmul.mubr.msk.bf16.gmra.mrb[100].mxu0 %vm294_vm2, %v5435_v44  ;;  %5287 = vmatmul.mubr.msk.bf16.gmra.mrb[100].mxu1 %vm294_vm2, %v5436_v45 }
  0xd3   :  { %5214 = vmatprep.mubr.msk.bf16.mxu0 %vm294_vm2, %v5437_v46  ;;  %5290 = vmatprep.mubr.msk.bf16.mxu1 %vm294_vm2, %v5438_v47  ;;  %v5466_v47 = vld [vmem:[%s8239_s0 + $0x450] sm:$0xff]  }
  0xda   :  { %5215 = vmatmul.mubr.msk.bf16.gmra.mrb[104].mxu0 %vm294_vm2, %v5439_v48  ;;  %5291 = vmatmul.mubr.msk.bf16.gmra.mrb[104].mxu1 %vm294_vm2, %v5440_v49 }
  0xdb   :  { %5218 = vmatprep.mubr.msk.bf16.mxu0 %vm294_vm2, %v5441_v50  ;;  %5294 = vmatprep.mubr.msk.bf16.mxu1 %vm294_vm2, %v5442_v51 }
  0xdd   :  { %v5032_v53 = vpop.f32.mrb[0].mxu0  ;;  %v5108_v55 = vpop.f32.mrb[0].mxu1 }
  0xde   :  { %v453_v56 = vadd.f32 %v5032_v53, %v5953_v52  ;;  %v1352_v57 = vadd.f32 %v5108_v55, %v5953_v52  ;;  %v444_v58 = vpop.f32.mrb[1].mxu0  ;;  %v1343_v59 = vpop.f32.mrb[1].mxu1 }
  0xdf   :  { %v445_v61 = vadd.f32 %v5953_v52, %v444_v58  ;;  %v1344_v62 = vadd.f32 %v5953_v52, %v1343_v59  ;;  %v5033_v63 = vpop.f32.mrb[2].mxu0  ;;  %v5109_v0 = vpop.f32.mrb[2].mxu1 }
  0xe0   :  { %vm733_vm3 = vcmp.gt.f32.partialorder %v453_v56, 0.0  ;;  %v806_v2 = vmul.f32 %v5960_v54, %v453_v56  ;;  %vm1632_vm4 = vcmp.gt.f32.partialorder %v1352_v57, 0.0  ;;  %v1704_v3 = vmul.f32 %v1352_v57, %v5960_v54  ;;  %v447_v4 = vpop.f32.mrb[3].mxu0  ;;  %v1346_v5 = vpop.f32.mrb[3].mxu1 }
  0xe1   :  { %vm731_vm5 = vcmp.gt.f32.partialorder %v445_v61, 0.0  ;;  %v804_v8 = vmul.f32 %v5960_v54, %v445_v61  ;;  %vm1630_vm6 = vcmp.gt.f32.partialorder %v1344_v62, 0.0  ;;  %v1702_v9 = vmul.f32 %v1344_v62, %v5960_v54 }
  0xe2   :  { %v5982_v10 = vsel %vm733_vm3, %v453_v56, %v806_v2  ;;  %v5984_v11 = vsel %vm1632_vm4, %v1352_v57, %v1704_v3  ;;  %v456_v12 = vadd.f32 %v5033_v63, %v5953_v52  ;;  %v1355_v13 = vadd.f32 %v5109_v0, %v5953_v52  ;;  %5219 = vmatmul.mubr.msk.bf16.gmra.mrb[108].mxu0 %vm294_vm2, %v5443_v60 }
  0xe3   :  { %v5991_v15 = vsel %vm731_vm5, %v445_v61, %v804_v8  ;;  %v5993_v16 = vsel %vm1630_vm6, %v1344_v62, %v1702_v9  ;;  %v448_v17 = vadd.f32 %v5953_v52, %v447_v4  ;;  %5295 = vmatmul.mubr.msk.bf16.gmra.mrb[108].mxu1 %vm294_vm2, %v5444_v1  ;;  %5222 = vmatprep.mubr.msk.bf16.mxu0 %vm294_vm2, %v5445_v6 }
  0xe4   :  { %vm734_vm7 = vcmp.gt.f32.partialorder %v456_v12, 0.0  ;;  %v807_v19 = vmul.f32 %v5960_v54, %v456_v12  ;;  %vm1633_vm8 = vcmp.gt.f32.partialorder %v1355_v13, 0.0  ;;  %5298 = vmatprep.mubr.msk.bf16.mxu1 %vm294_vm2, %v5446_v7  ;;  %v1705_v20 = vmul.f32 %v1355_v13, %v5960_v54 }
  0xe5   :  { %vm732_vm9 = vcmp.gt.f32.partialorder %v448_v17, 0.0  ;;  %v805_v21 = vmul.f32 %v5960_v54, %v448_v17  ;;  %v1347_v22 = vadd.f32 %v5953_v52, %v1346_v5  ;;  %v5036_v23 = vpop.f32.mrb[4].mxu0  ;;  %v5112_v24 = vpop.f32.mrb[4].mxu1  ;;  %v5451_v5 = vld [vmem:[%s8239_s0 + $0x2f8] sm:$0xff]  }
  0xe6   :  { %v6005_v25 = vsel %vm734_vm7, %v456_v12, %v807_v19  ;;  %v469_v26 = vadd.f32 %v5036_v23, %v5953_v52  ;;  %v1368_v27 = vadd.f32 %v5112_v24, %v5953_v52  ;;  %v460_v28 = vpop.f32.mrb[5].mxu0  ;;  %v1359_v29 = vpop.f32.mrb[5].mxu1  ;;  %v6012_v31 = vsel %vm1633_vm8, %v1355_v13, %v1705_v20  ;;  %v5452_v13 = vld [vmem:[%s8239_s0 + $0x418] sm:$0xff]   ;;  %v5454_v23 = vld [vmem:[%s8239_s0 + $0x420] sm:$0xff]  }
  0xe7   :  { %v6014_v32 = vsel %vm732_vm9, %v448_v17, %v805_v21  ;;  %vm1631_vm10 = vcmp.gt.f32.partialorder %v1347_v22, 0.0  ;;  %v1703_v33 = vmul.f32 %v1347_v22, %v5960_v54  ;;  %v5037_v34 = vpop.f32.mrb[6].mxu0  ;;  %v5113_v35 = vpop.f32.mrb[6].mxu1  ;;  %v461_v45 = vadd.f32 %v5953_v52, %v460_v28  ;;  %v5453_v17 = vld [vmem:[%s8239_s0 + $0x300] sm:$0xff]  }
  0xe8   :  { %vm737_vm11 = vcmp.gt.f32.partialorder %v469_v26, 0.0  ;;  %v810_v39 = vmul.f32 %v5960_v54, %v469_v26  ;;  %vm1636_vm12 = vcmp.gt.f32.partialorder %v1368_v27, 0.0  ;;  %v463_v40 = vpop.f32.mrb[7].mxu0  ;;  %v1362_v41 = vpop.f32.mrb[7].mxu1  ;;  %v1708_v44 = vmul.f32 %v1368_v27, %v5960_v54 }
  0xe9   :  { %v6029_v43 = vsel %vm1631_vm10, %v1347_v22, %v1703_v33  ;;  %v1360_v46 = vadd.f32 %v5953_v52, %v1359_v29  ;;  %v472_v49 = vadd.f32 %v5037_v34, %v5953_v52  ;;  %v1371_v50 = vadd.f32 %v5113_v35, %v5953_v52 }
  0xea   :  { %v6036_v48 = vsel %vm737_vm11, %v469_v26, %v810_v39  ;;  %5223 = vmatmul.mubr.msk.bf16.gmra.mrb[112].mxu0 %vm294_vm2, %v5447_v30  ;;  %v6041_v51 = vsel %vm1636_vm12, %v1368_v27, %v1708_v44  ;;  %vm735_vm13 = vcmp.gt.f32.partialorder %v461_v45, 0.0  ;;  %v808_v53 = vmul.f32 %v5960_v54, %v461_v45 }
  0xeb   :  { %vm1634_vm14 = vcmp.gt.f32.partialorder %v1360_v46, 0.0  ;;  %5299 = vmatmul.mubr.msk.bf16.gmra.mrb[112].mxu1 %vm294_vm2, %v5448_v36  ;;  %5226 = vmatprep.mubr.msk.bf16.mxu0 %vm294_vm2, %v5449_v37  ;;  %v1706_v56 = vmul.f32 %v1360_v46, %v5960_v54  ;;  %vm738_vm15 = vcmp.gt.f32.partialorder %v472_v49, 0.0  ;;  %v811_v57 = vmul.f32 %v5960_v54, %v472_v49 }
  0xec   :  { %5302 = vmatprep.mubr.msk.bf16.mxu1 %vm294_vm2, %v5450_v42  ;;  %v6051_v58 = vsel %vm735_vm13, %v461_v45, %v808_v53  ;;  %vm1637_vm0 = vcmp.gt.f32.partialorder %v1371_v50, 0.0  ;;  %v1709_v59 = vmul.f32 %v1371_v50, %v5960_v54  ;;  %v464_v60 = vadd.f32 %v5953_v52, %v463_v40 }
  0xed   :  { %v5040_v61 = vpop.f32.mrb[8].mxu0  ;;  %v5116_v62 = vpop.f32.mrb[8].mxu1  ;;  %v6055_v63 = vsel %vm1634_vm14, %v1360_v46, %v1706_v56  ;;  %v6057_v0 = vsel %vm738_vm15, %v472_v49, %v811_v57  ;;  %v1363_v1 = vadd.f32 %v5953_v52, %v1362_v41 }
  0xee   :  { %v485_v2 = vadd.f32 %v5040_v61, %v5953_v52  ;;  %v476_v3 = vpop.f32.mrb[9].mxu0  ;;  %v1375_v4 = vpop.f32.mrb[9].mxu1  ;;  %v6066_v7 = vsel %vm1637_vm0, %v1371_v50, %v1709_v59  ;;  %vm736_vm1 = vcmp.gt.f32.partialorder %v464_v60, 0.0  ;;  %v809_v8 = vmul.f32 %v5960_v54, %v464_v60  ;;  %v5455_v59 = vld [vmem:[%s8239_s0 + $0x308] sm:$0xff]  }
  0xef   :  { %v5041_v9 = vpop.f32.mrb[10].mxu0  ;;  %v5117_v12 = vpop.f32.mrb[10].mxu1  ;;  %vm1635_vm3 = vcmp.gt.f32.partialorder %v1363_v1, 0.0  ;;  %v1707_v20 = vmul.f32 %v1363_v1, %v5960_v54  ;;  %v1384_v27 = vadd.f32 %v5116_v62, %v5953_v52  ;;  %v477_v28 = vadd.f32 %v5953_v52, %v476_v3 }
  0xf0   :  { %vm741_vm4 = vcmp.gt.f32.partialorder %v485_v2, 0.0  ;;  %v479_v21 = vpop.f32.mrb[11].mxu0  ;;  %v1378_v22 = vpop.f32.mrb[11].mxu1  ;;  %v6081_v24 = vsel %vm736_vm1, %v464_v60, %v809_v8  ;;  %v814_v26 = vmul.f32 %v5960_v54, %v485_v2  ;;  %v1376_v30 = vadd.f32 %v5953_v52, %v1375_v4  ;;  %v5456_v4 = vld [vmem:[%s8239_s0 + $0x428] sm:$0xff]  }
  0xf1   :  { %v6086_v29 = vsel %vm1635_vm3, %v1363_v1, %v1707_v20  ;;  %v488_v33 = vadd.f32 %v5041_v9, %v5953_v52  ;;  %v1387_v34 = vadd.f32 %v5117_v12, %v5953_v52  ;;  %vm1640_vm5 = vcmp.gt.f32.partialorder %v1384_v27, 0.0 }
  0xf2   :  { %5227 = vmatmul.mubr.msk.bf16.gmra.mrb[116].mxu0 %vm294_vm2, %v5451_v5  ;;  %v6094_v36 = vsel %vm741_vm4, %v485_v2, %v814_v26  ;;  %v1712_v37 = vmul.f32 %v1384_v27, %v5960_v54  ;;  %vm739_vm6 = vcmp.gt.f32.partialorder %v477_v28, 0.0  ;;  %v812_v39 = vmul.f32 %v5960_v54, %v477_v28  ;;  %v5457_v5 = vld [vmem:[%s8239_s0 + $0x310] sm:$0xff]  }
  0xf3   :  { %5303 = vmatmul.mubr.msk.bf16.gmra.mrb[116].mxu1 %vm294_vm2, %v5452_v13  ;;  %5230 = vmatprep.mubr.msk.bf16.mxu0 %vm294_vm2, %v5453_v17  ;;  %vm1638_vm7 = vcmp.gt.f32.partialorder %v1376_v30, 0.0  ;;  %v1710_v40 = vmul.f32 %v1376_v30, %v5960_v54  ;;  %vm742_vm8 = vcmp.gt.f32.partialorder %v488_v33, 0.0  ;;  %v815_v42 = vmul.f32 %v5960_v54, %v488_v33 }
  0xf4   :  { %5306 = vmatprep.mubr.msk.bf16.mxu1 %vm294_vm2, %v5454_v23  ;;  %v6102_v41 = vsel %vm1640_vm5, %v1384_v27, %v1712_v37  ;;  %vm1641_vm9 = vcmp.gt.f32.partialorder %v1387_v34, 0.0  ;;  %v6107_v49 = vsel %vm739_vm6, %v477_v28, %v812_v39  ;;  %v1713_v53 = vmul.f32 %v1387_v34, %v5960_v54 }
  0xf5   :  { %v5044_v44 = vpop.f32.mrb[12].mxu0  ;;  %v5120_v45 = vpop.f32.mrb[12].mxu1  ;;  %v6109_v50 = vsel %vm1638_vm7, %v1376_v30, %v1710_v40  ;;  %v6117_v61 = vsel %vm742_vm8, %v488_v33, %v815_v42  ;;  %v480_v62 = vadd.f32 %v5953_v52, %v479_v21  ;;  %v1379_v1 = vadd.f32 %v5953_v52, %v1378_v22  ;;  %v5458_v21 = vld [vmem:[%s8239_s0 + $0x430] sm:$0xff]   ;;  %v5462_v42 = vld [vmem:[%s8239_s0 + $0x440] sm:$0xff]  }
  0xf6   :  { %v492_v56 = vpop.f32.mrb[13].mxu0  ;;  %v1391_v57 = vpop.f32.mrb[13].mxu1  ;;  %v6128_v8 = vsel %vm1641_vm9, %v1387_v34, %v1713_v53  ;;  %v501_v9 = vadd.f32 %v5044_v44, %v5953_v52  ;;  %v1400_v12 = vadd.f32 %v5120_v45, %v5953_v52 }
  0xf7   :  { %v5045_v2 = vpop.f32.mrb[14].mxu0  ;;  %v5121_v3 = vpop.f32.mrb[14].mxu1  ;;  %8366 = vst [vmem:[#allocation3_spill] sm:$0xff] %v6128_v8  ;;  %v493_v13 = vadd.f32 %v5953_v52, %v492_v56  ;;  %vm740_vm10 = vcmp.gt.f32.partialorder %v480_v62, 0.0  ;;  %v813_v23 = vmul.f32 %v5960_v54, %v480_v62  ;;  %vm1639_vm11 = vcmp.gt.f32.partialorder %v1379_v1, 0.0 }
  0xf8   :  { %v495_v17 = vpop.f32.mrb[15].mxu0  ;;  %v1394_v20 = vpop.f32.mrb[15].mxu1  ;;  %v1711_v26 = vmul.f32 %v1379_v1, %v5960_v54  ;;  %vm745_vm12 = vcmp.gt.f32.partialorder %v501_v9, 0.0  ;;  %v818_v27 = vmul.f32 %v5960_v54, %v501_v9  ;;  %vm1644_vm13 = vcmp.gt.f32.partialorder %v1400_v12, 0.0 }
  0xf9   :  { %v6142_v28 = vsel %vm740_vm10, %v480_v62, %v813_v23  ;;  %v1716_v30 = vmul.f32 %v1400_v12, %v5960_v54  ;;  %vm743_vm14 = vcmp.gt.f32.partialorder %v493_v13, 0.0  ;;  %v816_v33 = vmul.f32 %v5960_v54, %v493_v13  ;;  %v5461_v23 = vld [vmem:[%s8239_s0 + $0x320] sm:$0xff]  }
  0xfa   :  { %5231 = vmatmul.mubr.msk.bf16.gmra.mrb[120].mxu0 %vm294_vm2, %v5455_v59  ;;  %8367 = vst [vmem:[#allocation4_spill] sm:$0xff] %v6142_v28  ;;  %v6148_v34 = vsel %vm1639_vm11, %v1379_v1, %v1711_v26  ;;  %v6150_v37 = vsel %vm745_vm12, %v501_v9, %v818_v27  ;;  %v1392_v39 = vadd.f32 %v5953_v52, %v1391_v57 }
  0xfb   :  { %5307 = vmatmul.mubr.msk.bf16.gmra.mrb[120].mxu1 %vm294_vm2, %v5456_v4  ;;  %5234 = vmatprep.mubr.msk.bf16.mxu0 %vm294_vm2, %v5457_v5  ;;  %8368 = vst [vmem:[#allocation5_spill] sm:$0xff] %v6148_v34  ;;  %8369 = vst [vmem:[#allocation6_spill] sm:$0xff] %v6150_v37  ;;  %v504_v40 = vadd.f32 %v5045_v2, %v5953_v52  ;;  %v6157_v44 = vsel %vm1644_vm13, %v1400_v12, %v1716_v30  ;;  %v5459_v4 = vld [vmem:[%s8239_s0 + $0x318] sm:$0xff]  }
  0xfc   :  { %5310 = vmatprep.mubr.msk.bf16.mxu1 %vm294_vm2, %v5458_v21  ;;  %8370 = vst [vmem:[#allocation7_spill] sm:$0xff] %v6157_v44  ;;  %v6159_v45 = vsel %vm743_vm14, %v493_v13, %v816_v33  ;;  %v1403_v53 = vadd.f32 %v5121_v3, %v5953_v52  ;;  %vm1642_vm15 = vcmp.gt.f32.partialorder %v1392_v39, 0.0  ;;  %v1714_v57 = vmul.f32 %v1392_v39, %v5960_v54  ;;  %v5460_v21 = vld [vmem:[%s8239_s0 + $0x438] sm:$0xff]  }
  0xfd   :  { %8371 = vst [vmem:[#allocation8_spill] sm:$0xff] %v6159_v45  ;;  %v5048_v56 = vpop.f32.mrb[16].mxu0  ;;  %v5124_v59 = vpop.f32.mrb[16].mxu1  ;;  %vm746_vm0 = vcmp.gt.f32.partialorder %v504_v40, 0.0  ;;  %v819_v5 = vmul.f32 %v5960_v54, %v504_v40  ;;  %v496_v9 = vadd.f32 %v5953_v52, %v495_v17  ;;  %v1395_v27 = vadd.f32 %v5953_v52, %v1394_v20 }
  0xfe   :  { %v508_v1 = vpop.f32.mrb[17].mxu0  ;;  %v1407_v2 = vpop.f32.mrb[17].mxu1  ;;  %vm1645_vm1 = vcmp.gt.f32.partialorder %v1403_v53, 0.0  ;;  %v1717_v3 = vmul.f32 %v1403_v53, %v5960_v54  ;;  %v6177_v26 = vsel %vm1642_vm15, %v1392_v39, %v1714_v57  ;;  %v517_v30 = vadd.f32 %v5048_v56, %v5953_v52 }
  0xff   :  { %v5049_v12 = vpop.f32.mrb[18].mxu0  ;;  %v5125_v13 = vpop.f32.mrb[18].mxu1  ;;  %8372 = vst [vmem:[#allocation9_spill] sm:$0xff] %v6177_v26  ;;  %v1416_v33 = vadd.f32 %v5124_v59, %v5953_v52  ;;  %v6188_v60 = vsel %vm746_vm0, %v504_v40, %v819_v5  ;;  %vm744_vm3 = vcmp.gt.f32.partialorder %v496_v9, 0.0  ;;  %v817_v56 = vmul.f32 %v5960_v54, %v496_v9 }
 0x100   :  { %v511_v62 = vpop.f32.mrb[19].mxu0  ;;  %v1410_v17 = vpop.f32.mrb[19].mxu1  ;;  %8373 = vst [vmem:[#allocation10_spill] sm:$0xff] %v6188_v60  ;;  %v6191_v39 = vsel %vm1645_vm1, %v1403_v53, %v1717_v3  ;;  %vm1643_vm4 = vcmp.gt.f32.partialorder %v1395_v27, 0.0  ;;  %v1715_v59 = vmul.f32 %v1395_v27, %v5960_v54  ;;  %vm749_vm5 = vcmp.gt.f32.partialorder %v517_v30, 0.0 }
 0x101   :  { %8374 = vst [vmem:[#allocation11_spill] sm:$0xff] %v6191_v39  ;;  %v822_v57 = vmul.f32 %v5960_v54, %v517_v30  ;;  %vm1648_vm6 = vcmp.gt.f32.partialorder %v1416_v33, 0.0  ;;  %v1720_v40 = vmul.f32 %v1416_v33, %v5960_v54  ;;  %v6202_v53 = vsel %vm744_vm3, %v496_v9, %v817_v56 }
 0x102   :  { %5235 = vmatmul.mubr.msk.bf16.gmra.mrb[124].mxu0 %vm294_vm2, %v5459_v4  ;;  %8375 = vst [vmem:[#allocation12_spill] sm:$0xff] %v6202_v53  ;;  %v6204_v5 = vsel %vm1643_vm4, %v1395_v27, %v1715_v59  ;;  %v509_v3 = vadd.f32 %v5953_v52, %v508_v1  ;;  %v1408_v20 = vadd.f32 %v5953_v52, %v1407_v2  ;;  %v5465_v27 = vld [vmem:[%s8239_s0 + $0x330] sm:$0xff]  }
 0x103   :  { %5311 = vmatmul.mubr.msk.bf16.gmra.mrb[124].mxu1 %vm294_vm2, %v5460_v21  ;;  %5238 = vmatprep.mubr.msk.bf16.mxu0 %vm294_vm2, %v5461_v23  ;;  %8376 = vst [vmem:[#allocation13_spill] sm:$0xff] %v6204_v5  ;;  %v6211_v22 = vsel %vm749_vm5, %v517_v30, %v822_v57  ;;  %v6213_v46 = vsel %vm1648_vm6, %v1416_v33, %v1720_v40  ;;  %v5463_v30 = vld [vmem:[%s8239_s0 + $0x328] sm:$0xff]  }
 0x104   :  { %5314 = vmatprep.mubr.msk.bf16.mxu1 %vm294_vm2, %v5462_v42  ;;  %8377 = vst [vmem:[#allocation14_spill] sm:$0xff] %v6211_v22  ;;  %8378 = vst [vmem:[#allocation15_spill] sm:$0xff] %v6213_v46  ;;  %v520_v21 = vadd.f32 %v5049_v12, %v5953_v52  ;;  %vm747_vm7 = vcmp.gt.f32.partialorder %v509_v3, 0.0  ;;  %v820_v1 = vmul.f32 %v5960_v54, %v509_v3  ;;  %vm1646_vm8 = vcmp.gt.f32.partialorder %v1408_v20, 0.0  ;;  %v5464_v40 = vld [vmem:[%s8239_s0 + $0x448] sm:$0xff]  }
 0x105   :  { %v5052_v23 = vpop.f32.mrb[20].mxu0  ;;  %v5128_v9 = vpop.f32.mrb[20].mxu1  ;;  %v1718_v33 = vmul.f32 %v1408_v20, %v5960_v54  ;;  %v1419_v56 = vadd.f32 %v5125_v13, %v5953_v52  ;;  %v512_v35 = vadd.f32 %v5953_v52, %v511_v62  ;;  %v1411_v19 = vadd.f32 %v5953_v52, %v1410_v17 }
 0x106   :  { %v524_v2 = vpop.f32.mrb[21].mxu0  ;;  %v1423_v42 = vpop.f32.mrb[21].mxu1  ;;  %vm750_vm9 = vcmp.gt.f32.partialorder %v520_v21, 0.0  ;;  %v823_v12 = vmul.f32 %v5960_v54, %v520_v21  ;;  %v6231_v4 = vsel %vm747_vm7, %v509_v3, %v820_v1  ;;  %v533_v6 = vadd.f32 %v5052_v23, %v5953_v52 }
 0x107   :  { %v5053_v59 = vpop.f32.mrb[22].mxu0  ;;  %v5129_v57 = vpop.f32.mrb[22].mxu1  ;;  %8379 = vst [vmem:[#allocation16_spill] sm:$0xff] %v6231_v4  ;;  %v6240_v38 = vsel %vm1646_vm8, %v1408_v20, %v1718_v33  ;;  %vm1649_vm10 = vcmp.gt.f32.partialorder %v1419_v56, 0.0  ;;  %v1721_v3 = vmul.f32 %v1419_v56, %v5960_v54  ;;  %vm748_vm11 = vcmp.gt.f32.partialorder %v512_v35, 0.0 }
 0x108   :  { %v527_v55 = vpop.f32.mrb[23].mxu0  ;;  %v1426_v13 = vpop.f32.mrb[23].mxu1  ;;  %8380 = vst [vmem:[#allocation17_spill] sm:$0xff] %v6240_v38  ;;  %v6242_v18 = vsel %vm750_vm9, %v520_v21, %v823_v12  ;;  %v821_v17 = vmul.f32 %v5960_v54, %v512_v35  ;;  %vm1647_vm12 = vcmp.gt.f32.partialorder %v1411_v19, 0.0  ;;  %v1719_v1 = vmul.f32 %v1411_v19, %v5960_v54  ;;  %v5470_v38 = vld [vmem:[%s8239_s0 + $0x460] sm:$0xff]  }
 0x109   :  { %8381 = vst [vmem:[#allocation18_spill] sm:$0xff] %v6242_v18  ;;  %v6249_v23 = vsel %vm1649_vm10, %v1419_v56, %v1721_v3  ;;  %vm753_vm13 = vcmp.gt.f32.partialorder %v533_v6, 0.0  ;;  %v826_v20 = vmul.f32 %v5960_v54, %v533_v6  ;;  %v1432_v12 = vadd.f32 %v5128_v9, %v5953_v52 }
 0x10a   :  { %5239 = vmatmul.mubr.msk.bf16.gmra.mrb[128].mxu0 %vm294_vm2, %v5463_v30  ;;  %8382 = vst [vmem:[#allocation19_spill] sm:$0xff] %v6249_v23  ;;  %v6257_v33 = vsel %vm748_vm11, %v512_v35, %v821_v17  ;;  %v525_v30 = vadd.f32 %v5953_v52, %v524_v2  ;;  %v6262_v56 = vsel %vm1647_vm12, %v1411_v19, %v1719_v1  ;;  %v5468_v1 = vld [vmem:[%s8239_s0 + $0x458] sm:$0xff]  }
 0x10b   :  { %5315 = vmatmul.mubr.msk.bf16.gmra.mrb[128].mxu1 %vm294_vm2, %v5464_v40  ;;  %5242 = vmatprep.mubr.msk.bf16.mxu0 %vm294_vm2, %v5465_v27  ;;  %8383 = vst [vmem:[#allocation20_spill] sm:$0xff] %v6257_v33  ;;  %8384 = vst [vmem:[#allocation21_spill] sm:$0xff] %v6262_v56  ;;  %v6264_v3 = vsel %vm753_vm13, %v533_v6, %v826_v20  ;;  %v1424_v62 = vadd.f32 %v5953_v52, %v1423_v42  ;;  %vm1652_vm14 = vcmp.gt.f32.partialorder %v1432_v12, 0.0  ;;  %v5469_v20 = vld [vmem:[%s8239_s0 + $0x340] sm:$0xff]  }
 0x10c   :  { %5318 = vmatprep.mubr.msk.bf16.mxu1 %vm294_vm2, %v5466_v47  ;;  %8385 = vst [vmem:[#allocation22_spill] sm:$0xff] %v6264_v3  ;;  %v536_v40 = vadd.f32 %v5053_v59, %v5953_v52  ;;  %v1724_v9 = vmul.f32 %v1432_v12, %v5960_v54  ;;  %vm751_vm15 = vcmp.gt.f32.partialorder %v525_v30, 0.0  ;;  %v5467_v47 = vld [vmem:[%s8239_s0 + $0x338] sm:$0xff]   ;;  %v824_v6 = vmul.f32 %v5960_v54, %v525_v30 }
 0x10d   :  { %v5056_v27 = vpop.f32.mrb[24].mxu0  ;;  %v5132_v14 = vpop.f32.mrb[24].mxu1  ;;  %vm1650_vm0 = vcmp.gt.f32.partialorder %v1424_v62, 0.0  ;;  %v1722_v19 = vmul.f32 %v1424_v62, %v5960_v54  ;;  %v1435_v56 = vadd.f32 %v5129_v57, %v5953_v52  ;;  %v528_v33 = vadd.f32 %v5953_v52, %v527_v55 }
 0x10e   :  { %v540_v2 = vpop.f32.mrb[25].mxu0  ;;  %v1439_v17 = vpop.f32.mrb[25].mxu1  ;;  %vm754_vm1 = vcmp.gt.f32.partialorder %v536_v40, 0.0  ;;  %v6282_v35 = vsel %vm1652_vm14, %v1432_v12, %v1724_v9  ;;  %v827_v21 = vmul.f32 %v5960_v54, %v536_v40  ;;  %v6293_v46 = vsel %vm751_vm15, %v525_v30, %v824_v6 }
 0x10f   :  { %v5057_v42 = vpop.f32.mrb[26].mxu0  ;;  %v5133_v59 = vpop.f32.mrb[26].mxu1  ;;  %8386 = vst [vmem:[#allocation23_spill] sm:$0xff] %v6282_v35  ;;  %8387 = vst [vmem:[#allocation24_spill] sm:$0xff] %v6293_v46  ;;  %v6296_v12 = vsel %vm1650_vm0, %v1424_v62, %v1722_v19  ;;  %v1427_v9 = vadd.f32 %v5953_v52, %v1426_v13  ;;  %vm1653_vm3 = vcmp.gt.f32.partialorder %v1435_v56, 0.0  ;;  %v1725_v22 = vmul.f32 %v1435_v56, %v5960_v54 }
 0x110   :  { %v543_v23 = vpop.f32.mrb[27].mxu0  ;;  %v1442_v18 = vpop.f32.mrb[27].mxu1  ;;  %8388 = vst [vmem:[#allocation25_spill] sm:$0xff] %v6296_v12  ;;  %v6302_v57 = vsel %vm754_vm1, %v536_v40, %v827_v21  ;;  %vm752_vm4 = vcmp.gt.f32.partialorder %v528_v33, 0.0  ;;  %v825_v30 = vmul.f32 %v5960_v54, %v528_v33  ;;  %v549_v21 = vadd.f32 %v5056_v27, %v5953_v52  ;;  %v5474_v12 = vld [vmem:[%s8239_s0 + $0x470] sm:$0xff]  }
 0x111   :  { %8389 = vst [vmem:[#allocation26_spill] sm:$0xff] %v6302_v57  ;;  %vm1651_vm5 = vcmp.gt.f32.partialorder %v1427_v9, 0.0  ;;  %v1723_v62 = vmul.f32 %v1427_v9, %v5960_v54  ;;  %v6310_v13 = vsel %vm1653_vm3, %v1435_v56, %v1725_v22  ;;  %v1448_v40 = vadd.f32 %v5132_v14, %v5953_v52  ;;  %v5473_v56 = vld [vmem:[%s8239_s0 + $0x350] sm:$0xff]  }
 0x112   :  { %5243 = vmatmul.mubr.msk.bf16.gmra.mrb[132].mxu0 %vm294_vm2, %v5467_v47  ;;  %8390 = vst [vmem:[#allocation27_spill] sm:$0xff] %v6310_v13  ;;  %v541_v6 = vadd.f32 %v5953_v52, %v540_v2  ;;  %v6318_v19 = vsel %vm752_vm4, %v528_v33, %v825_v30  ;;  %vm757_vm6 = vcmp.gt.f32.partialorder %v549_v21, 0.0  ;;  %v830_v14 = vmul.f32 %v5960_v54, %v549_v21  ;;  %v5471_v33 = vld [vmem:[%s8239_s0 + $0x348] sm:$0xff]  }
 0x113   :  { %5319 = vmatmul.mubr.msk.bf16.gmra.mrb[132].mxu1 %vm294_vm2, %v5468_v1  ;;  %5246 = vmatprep.mubr.msk.bf16.mxu0 %vm294_vm2, %v5469_v20  ;;  %8391 = vst [vmem:[#allocation28_spill] sm:$0xff] %v6318_v19  ;;  %v6320_v55 = vsel %vm1651_vm5, %v1427_v9, %v1723_v62  ;;  %v1440_v1 = vadd.f32 %v5953_v52, %v1439_v17  ;;  %vm1656_vm7 = vcmp.gt.f32.partialorder %v1448_v40, 0.0  ;;  %v5472_v62 = vld [vmem:[%s8239_s0 + $0x468] sm:$0xff]  }
 0x114   :  { %5322 = vmatprep.mubr.msk.bf16.mxu1 %vm294_vm2, %v5470_v38  ;;  %8392 = vst [vmem:[#allocation29_spill] sm:$0xff] %v6320_v55  ;;  %v1728_v2 = vmul.f32 %v1448_v40, %v5960_v54  ;;  %vm755_vm8 = vcmp.gt.f32.partialorder %v541_v6, 0.0  ;;  %v828_v17 = vmul.f32 %v5960_v54, %v541_v6  ;;  %v6337_v47 = vsel %vm757_vm6, %v549_v21, %v830_v14 }
 0x115   :  { %v5060_v20 = vpop.f32.mrb[28].mxu0  ;;  %v5136_v22 = vpop.f32.mrb[28].mxu1  ;;  %vm1654_vm9 = vcmp.gt.f32.partialorder %v1440_v1, 0.0  ;;  %8393 = vst [vmem:[#allocation30_spill] sm:$0xff] %v6337_v47  ;;  %v1726_v4 = vmul.f32 %v1440_v1, %v5960_v54  ;;  %v552_v55 = vadd.f32 %v5057_v42, %v5953_v52  ;;  %v1451_v19 = vadd.f32 %v5133_v59, %v5953_v52 }
 0x116   :  { %v556_v27 = vpop.f32.mrb[29].mxu0  ;;  %v1455_v38 = vpop.f32.mrb[29].mxu1  ;;  %v6346_v46 = vsel %vm1656_vm7, %v1448_v40, %v1728_v2  ;;  %v6348_v35 = vsel %vm755_vm8, %v541_v6, %v828_v17  ;;  %v544_v21 = vadd.f32 %v5953_v52, %v543_v23  ;;  %v1443_v14 = vadd.f32 %v5953_v52, %v1442_v18 }
 0x117   :  { %v5061_v9 = vpop.f32.mrb[30].mxu0  ;;  %v5137_v30 = vpop.f32.mrb[30].mxu1  ;;  %8394 = vst [vmem:[#allocation31_spill] sm:$0xff] %v6346_v46  ;;  %8395 = vst [vmem:[#allocation32_spill] sm:$0xff] %v6348_v35  ;;  %v6355_v59 = vsel %vm1654_vm9, %v1440_v1, %v1726_v4  ;;  %vm758_vm10 = vcmp.gt.f32.partialorder %v552_v55, 0.0  ;;  %v831_v3 = vmul.f32 %v5960_v54, %v552_v55  ;;  %vm1657_vm11 = vcmp.gt.f32.partialorder %v1451_v19, 0.0 }
 0x118   :  { %v559_v13 = vpop.f32.mrb[31].mxu0  ;;  %v1458_v57 = vpop.f32.mrb[31].mxu1  ;;  %8396 = vst [vmem:[#allocation33_spill] sm:$0xff] %v6355_v59  ;;  %v1729_v6 = vmul.f32 %v1451_v19, %v5960_v54  ;;  %vm756_vm12 = vcmp.gt.f32.partialorder %v544_v21, 0.0  ;;  %v829_v4 = vmul.f32 %v5960_v54, %v544_v21  ;;  %vm1655_vm13 = vcmp.gt.f32.partialorder %v1443_v14, 0.0 }
 0x119   :  { %v6364_v18 = vsel %vm758_vm10, %v552_v55, %v831_v3  ;;  %v1727_v23 = vmul.f32 %v1443_v14, %v5960_v54  ;;  %v1464_v2 = vadd.f32 %v5136_v22, %v5953_v52  ;;  %v557_v17 = vadd.f32 %v5953_v52, %v556_v27 }
 0x11a   :  { %5247 = vmatmul.mubr.msk.bf16.gmra.mrb[136].mxu0 %vm294_vm2, %v5471_v33  ;;  %8397 = vst [vmem:[#allocation34_spill] sm:$0xff] %v6364_v18  ;;  %v6369_v1 = vsel %vm1657_vm11, %v1451_v19, %v1729_v6  ;;  %v565_v33 = vadd.f32 %v5060_v20, %v5953_v52  ;;  %v6376_v55 = vsel %vm756_vm12, %v544_v21, %v829_v4  ;;  %v5475_v20 = vld [vmem:[%s8239_s0 + $0x358] sm:$0xff]  }
 0x11b   :  { %5323 = vmatmul.mubr.msk.bf16.gmra.mrb[136].mxu1 %vm294_vm2, %v5472_v62  ;;  %5250 = vmatprep.mubr.msk.bf16.mxu0 %vm294_vm2, %v5473_v56  ;;  %8398 = vst [vmem:[#allocation35_spill] sm:$0xff] %v6369_v1  ;;  %8399 = vst [vmem:[#allocation36_spill] sm:$0xff] %v6376_v55  ;;  %v6378_v56 = vsel %vm1655_vm13, %v1443_v14, %v1727_v23  ;;  %v1456_v42 = vadd.f32 %v5953_v52, %v1455_v38  ;;  %vm1660_vm15 = vcmp.gt.f32.partialorder %v1464_v2, 0.0  ;;  %v5476_v14 = vld [vmem:[%s8239_s0 + $0x478] sm:$0xff]  }
 0x11c   :  { %5326 = vmatprep.mubr.msk.bf16.mxu1 %vm294_vm2, %v5474_v12  ;;  %8400 = vst [vmem:[#allocation37_spill] sm:$0xff] %v6378_v56  ;;  %vm761_vm14 = vcmp.gt.f32.partialorder %v565_v33, 0.0  ;;  %v834_v27 = vmul.f32 %v5960_v54, %v565_v33  ;;  %v1732_v38 = vmul.f32 %v1464_v2, %v5960_v54  ;;  %vm759_vm0 = vcmp.gt.f32.partialorder %v557_v17, 0.0 }
 0x11d   :  { %v5064_v62 = vpop.f32.mrb[32].mxu0  ;;  %v5140_v40 = vpop.f32.mrb[32].mxu1  ;;  %v832_v4 = vmul.f32 %v5960_v54, %v557_v17  ;;  %vm1658_vm1 = vcmp.gt.f32.partialorder %v1456_v42, 0.0  ;;  %v1730_v22 = vmul.f32 %v1456_v42, %v5960_v54  ;;  %v568_v56 = vadd.f32 %v5061_v9, %v5953_v52 }
 0x11e   :  { %v572_v12 = vpop.f32.mrb[33].mxu0  ;;  %v1471_v19 = vpop.f32.mrb[33].mxu1  ;;  %v6392_v1 = vsel %vm761_vm14, %v565_v33, %v834_v27  ;;  %v1467_v55 = vadd.f32 %v5137_v30, %v5953_v52  ;;  %v6397_v18 = vsel %vm1660_vm15, %v1464_v2, %v1732_v38  ;;  %v560_v35 = vadd.f32 %v5953_v52, %v559_v13 }
 0x11f   :  { %v5065_v6 = vpop.f32.mrb[34].mxu0  ;;  %v5141_v21 = vpop.f32.mrb[34].mxu1  ;;  %8401 = vst [vmem:[#allocation38_spill] sm:$0xff] %v6392_v1  ;;  %8402 = vst [vmem:[#allocation39_spill] sm:$0xff] %v6397_v18  ;;  %v6399_v59 = vsel %vm759_vm0, %v557_v17, %v832_v4  ;;  %v1459_v46 = vadd.f32 %v5953_v52, %v1458_v57  ;;  %v6406_v27 = vsel %vm1658_vm1, %v1456_v42, %v1730_v22  ;;  %vm762_vm3 = vcmp.gt.f32.partialorder %v568_v56, 0.0 }
 0x120   :  { %v575_v23 = vpop.f32.mrb[35].mxu0  ;;  %v1474_v3 = vpop.f32.mrb[35].mxu1  ;;  %8403 = vst [vmem:[#allocation40_spill] sm:$0xff] %v6399_v59  ;;  %8404 = vst [vmem:[#allocation41_spill] sm:$0xff] %v6406_v27  ;;  %v835_v9 = vmul.f32 %v5960_v54, %v568_v56  ;;  %vm1661_vm4 = vcmp.gt.f32.partialorder %v1467_v55, 0.0  ;;  %v1733_v13 = vmul.f32 %v1467_v55, %v5960_v54  ;;  %vm760_vm5 = vcmp.gt.f32.partialorder %v560_v35, 0.0 }
 0x121   :  { %v833_v2 = vmul.f32 %v5960_v54, %v560_v35  ;;  %vm1659_vm6 = vcmp.gt.f32.partialorder %v1459_v46, 0.0  ;;  %v1731_v42 = vmul.f32 %v1459_v46, %v5960_v54  ;;  %v1480_v38 = vadd.f32 %v5140_v40, %v5953_v52 }
 0x122   :  { %5251 = vmatmul.mubr.msk.bf16.gmra.mrb[140].mxu0 %vm294_vm2, %v5475_v20  ;;  %v6413_v57 = vsel %vm762_vm3, %v568_v56, %v835_v9  ;;  %v6417_v22 = vsel %vm1661_vm4, %v1467_v55, %v1733_v13  ;;  %v573_v4 = vadd.f32 %v5953_v52, %v572_v12  ;;  %v1472_v59 = vadd.f32 %v5953_v52, %v1471_v19 }
 0x123   :  { %5327 = vmatmul.mubr.msk.bf16.gmra.mrb[140].mxu1 %vm294_vm2, %v5476_v14  ;;  %8405 = vst [vmem:[#allocation42_spill] sm:$0xff] %v6413_v57  ;;  %8406 = vst [vmem:[#allocation43_spill] sm:$0xff] %v6417_v22  ;;  %v581_v14 = vadd.f32 %v5064_v62, %v5953_v52  ;;  %v6424_v9 = vsel %vm760_vm5, %v560_v35, %v833_v2  ;;  %v6426_v27 = vsel %vm1659_vm6, %v1459_v46, %v1731_v42 }
 0x124   :  { %8407 = vst [vmem:[#allocation44_spill] sm:$0xff] %v6424_v9  ;;  %8408 = vst [vmem:[#allocation45_spill] sm:$0xff] %v6426_v27  ;;  %vm1664_vm7 = vcmp.gt.f32.partialorder %v1480_v38, 0.0  ;;  %v1736_v1 = vmul.f32 %v1480_v38, %v5960_v54  ;;  %vm763_vm8 = vcmp.gt.f32.partialorder %v573_v4, 0.0  ;;  %v836_v35 = vmul.f32 %v5960_v54, %v573_v4 }
 0x125   :  { %v5068_v17 = vpop.f32.mrb[36].mxu0  ;;  %v5144_v20 = vpop.f32.mrb[36].mxu1  ;;  %vm765_vm2 = vcmp.gt.f32.partialorder %v581_v14, 0.0  ;;  %v838_v40 = vmul.f32 %v5960_v54, %v581_v14  ;;  %vm1662_vm9 = vcmp.gt.f32.partialorder %v1472_v59, 0.0  ;;  %v1734_v19 = vmul.f32 %v1472_v59, %v5960_v54 }
 0x126   :  { %v588_v30 = vpop.f32.mrb[37].mxu0  ;;  %v1487_v33 = vpop.f32.mrb[37].mxu1  ;;  %v584_v2 = vadd.f32 %v5065_v6, %v5953_v52  ;;  %v1483_v42 = vadd.f32 %v5141_v21, %v5953_v52  ;;  %v6439_v62 = vsel %vm1664_vm7, %v1480_v38, %v1736_v1  ;;  %v6441_v56 = vsel %vm763_vm8, %v573_v4, %v836_v35 }
 0x127   :  { %v5069_v18 = vpop.f32.mrb[38].mxu0  ;;  %v5145_v55 = vpop.f32.mrb[38].mxu1  ;;  %v6434_v46 = vsel %vm765_vm2, %v581_v14, %v838_v40  ;;  %8410 = vst [vmem:[#allocation47_spill] sm:$0xff] %v6439_v62  ;;  %8411 = vst [vmem:[#allocation48_spill] sm:$0xff] %v6441_v56  ;;  %v576_v27 = vadd.f32 %v5953_v52, %v575_v23  ;;  %v1475_v9 = vadd.f32 %v5953_v52, %v1474_v3 }
 0x128   :  { %v591_v12 = vpop.f32.mrb[39].mxu0  ;;  %v1490_v13 = vpop.f32.mrb[39].mxu1  ;;  %8409 = vst [vmem:[#allocation46_spill] sm:$0xff] %v6434_v46  ;;  %v6447_v57 = vsel %vm1662_vm9, %v1472_v59, %v1734_v19  ;;  %vm766_vm10 = vcmp.gt.f32.partialorder %v584_v2, 0.0  ;;  %v839_v14 = vmul.f32 %v5960_v54, %v584_v2  ;;  %vm1665_vm11 = vcmp.gt.f32.partialorder %v1483_v42, 0.0 }
 0x129   :  { %8412 = vst [vmem:[#allocation49_spill] sm:$0xff] %v6447_v57  ;;  %v1737_v1 = vmul.f32 %v1483_v42, %v5960_v54  ;;  %vm764_vm12 = vcmp.gt.f32.partialorder %v576_v27, 0.0  ;;  %v837_v3 = vmul.f32 %v5960_v54, %v576_v27  ;;  %vm1663_vm13 = vcmp.gt.f32.partialorder %v1475_v9, 0.0 }
 0x12a   :  { %v6453_v23 = vsel %vm766_vm10, %v584_v2, %v839_v14  ;;  %v1735_v59 = vmul.f32 %v1475_v9, %v5960_v54  ;;  %v597_v19 = vadd.f32 %v5068_v17, %v5953_v52  ;;  %v1496_v6 = vadd.f32 %v5144_v20, %v5953_v52 }
 0x12b   :  { %8413 = vst [vmem:[#allocation50_spill] sm:$0xff] %v6453_v23  ;;  %v6457_v35 = vsel %vm1665_vm11, %v1483_v42, %v1737_v1  ;;  %v589_v22 = vadd.f32 %v5953_v52, %v588_v30  ;;  %v6469_v14 = vsel %vm764_vm12, %v576_v27, %v837_v3  ;;  %v1488_v42 = vadd.f32 %v5953_v52, %v1487_v33 }
 0x12c   :  { %8414 = vst [vmem:[#allocation51_spill] sm:$0xff] %v6457_v35  ;;  %8415 = vst [vmem:[#allocation52_spill] sm:$0xff] %v6469_v14  ;;  %v6471_v62 = vsel %vm1663_vm13, %v1475_v9, %v1735_v59  ;;  %vm769_vm14 = vcmp.gt.f32.partialorder %v597_v19, 0.0  ;;  %v842_v30 = vmul.f32 %v5960_v54, %v597_v19  ;;  %vm1668_vm15 = vcmp.gt.f32.partialorder %v1496_v6, 0.0 }
 0x12d   :  { %v5072_v21 = vpop.f32.mrb[40].mxu0  ;;  %v5148_v38 = vpop.f32.mrb[40].mxu1  ;;  %8416 = vst [vmem:[#allocation53_spill] sm:$0xff] %v6471_v62  ;;  %v1740_v46 = vmul.f32 %v1496_v6, %v5960_v54  ;;  %vm767_vm0 = vcmp.gt.f32.partialorder %v589_v22, 0.0  ;;  %v840_v2 = vmul.f32 %v5960_v54, %v589_v22  ;;  %vm1666_vm1 = vcmp.gt.f32.partialorder %v1488_v42, 0.0 }
 0x12e   :  { %v604_v4 = vpop.f32.mrb[41].mxu0  ;;  %v1503_v40 = vpop.f32.mrb[41].mxu1  ;;  %v6479_v27 = vsel %vm769_vm14, %v597_v19, %v842_v30  ;;  %v1738_v9 = vmul.f32 %v1488_v42, %v5960_v54  ;;  %v600_v33 = vadd.f32 %v5069_v18, %v5953_v52  ;;  %v1499_v3 = vadd.f32 %v5145_v55, %v5953_v52  ;;  %v6513_v55 = vld [vmem:[%s8240_s2] ss:$0 sm:$0xff] }
 0x12f   :  { %v6462_v57 = vpop.f32.mrb[42].mxu0  ;;  %v6464_v56 = vpop.f32.mrb[42].mxu1  ;;  %8417 = vst [vmem:[#allocation54_spill] sm:$0xff] %v6479_v27  ;;  %v6484_v59 = vsel %vm1668_vm15, %v1496_v6, %v1740_v46  ;;  %v6486_v20 = vsel %vm767_vm0, %v589_v22, %v840_v2  ;;  %v592_v62 = vadd.f32 %v5953_v52, %v591_v12  ;;  %v1491_v14 = vadd.f32 %v5953_v52, %v1490_v13 }
 0x130   :  { %v607_v1 = vpop.f32.mrb[43].mxu0  ;;  %v1506_v17 = vpop.f32.mrb[43].mxu1  ;;  %8418 = vst [vmem:[#allocation55_spill] sm:$0xff] %v6484_v59  ;;  %8419 = vst [vmem:[#allocation56_spill] sm:$0xff] %v6486_v20  ;;  %v6492_v23 = vsel %vm1666_vm1, %v1488_v42, %v1738_v9  ;;  %vm770_vm3 = vcmp.gt.f32.partialorder %v600_v33, 0.0  ;;  %v843_v19 = vmul.f32 %v5960_v54, %v600_v33  ;;  %vm1669_vm4 = vcmp.gt.f32.partialorder %v1499_v3, 0.0 }
 0x131   :  { %8420 = vst [vmem:[#allocation57_spill] sm:$0xff] %v6492_v23  ;;  %v1741_v22 = vmul.f32 %v1499_v3, %v5960_v54  ;;  %vm768_vm5 = vcmp.gt.f32.partialorder %v592_v62, 0.0  ;;  %v841_v46 = vmul.f32 %v5960_v54, %v592_v62  ;;  %vm1667_vm6 = vcmp.gt.f32.partialorder %v1491_v14, 0.0 }
 0x132   :  { %v6500_v13 = vsel %vm770_vm3, %v600_v33, %v843_v19  ;;  %v1739_v6 = vmul.f32 %v1491_v14, %v5960_v54  ;;  %v613_v35 = vadd.f32 %v6513_v55, %v5072_v21  ;;  %v1512_v33 = vadd.f32 %v6513_v55, %v5148_v38 }
 0x133   :  { %8421 = vst [vmem:[#allocation58_spill] sm:$0xff] %v6500_v13  ;;  %v6508_v9 = vsel %vm1669_vm4, %v1499_v3, %v1741_v22  ;;  %v605_v19 = vadd.f32 %v6513_v55, %v604_v4  ;;  %v6525_v3 = vsel %vm768_vm5, %v592_v62, %v841_v46  ;;  %v1504_v27 = vadd.f32 %v6513_v55, %v1503_v40 }
 0x134   :  { %8422 = vst [vmem:[#allocation59_spill] sm:$0xff] %v6508_v9  ;;  %8423 = vst [vmem:[#allocation60_spill] sm:$0xff] %v6525_v3  ;;  %v6527_v22 = vsel %vm1667_vm6, %v1491_v14, %v1739_v6  ;;  %vm773_vm2 = vcmp.gt.f32.partialorder %v613_v35, 0.0  ;;  %v846_v38 = vmul.f32 %v5960_v54, %v613_v35  ;;  %vm1672_vm7 = vcmp.gt.f32.partialorder %v1512_v33, 0.0 }
 0x135   :  { %v6495_v30 = vpop.f32.mrb[44].mxu0  ;;  %v5152_v18 = vpop.f32.mrb[44].mxu1  ;;  %8424 = vst [vmem:[#allocation61_spill] sm:$0xff] %v6527_v22  ;;  %v1744_v4 = vmul.f32 %v1512_v33, %v5960_v54  ;;  %vm771_vm8 = vcmp.gt.f32.partialorder %v605_v19, 0.0  ;;  %v844_v47 = vmul.f32 %v5960_v54, %v605_v19  ;;  %vm1670_vm9 = vcmp.gt.f32.partialorder %v1504_v27, 0.0 }
 0x136   :  { %v620_v12 = vpop.f32.mrb[45].mxu0  ;;  %v1519_v52 = vpop.f32.mrb[45].mxu1  ;;  %v6535_v59 = vsel %vm773_vm2, %v613_v35, %v846_v38  ;;  %v1742_v62 = vmul.f32 %v1504_v27, %v5960_v54  ;;  %v616_v40 = vadd.f32 %v6513_v55, %v6462_v57  ;;  %v1515_v14 = vadd.f32 %v6513_v55, %v6464_v56 }
 0x137   :  { %v6504_v2 = vpop.f32.mrb[46].mxu0  ;;  %v6506_v42 = vpop.f32.mrb[46].mxu1  ;;  %8425 = vst [vmem:[#allocation62_spill] sm:$0xff] %v6535_v59  ;;  %v6542_v46 = vsel %vm1672_vm7, %v1512_v33, %v1744_v4  ;;  %v6544_v6 = vsel %vm771_vm8, %v605_v19, %v844_v47  ;;  %v608_v21 = vadd.f32 %v6513_v55, %v607_v1  ;;  %v1507_v22 = vadd.f32 %v6513_v55, %v1506_v17 }
 0x138   :  { %v6518_v23 = vpop.f32.mrb[47].mxu0  ;;  %v6520_v20 = vpop.f32.mrb[47].mxu1  ;;  %8426 = vst [vmem:[#allocation63_spill] sm:$0xff] %v6542_v46  ;;  %8427 = vst [vmem:[#allocation64_spill] sm:$0xff] %v6544_v6  ;;  %v6554_v9 = vsel %vm1670_vm9, %v1504_v27, %v1742_v62  ;;  %vm774_vm10 = vcmp.gt.f32.partialorder %v616_v40, 0.0  ;;  %v847_v57 = vmul.f32 %v5960_v54, %v616_v40  ;;  %vm1673_vm11 = vcmp.gt.f32.partialorder %v1515_v14, 0.0 }
 0x139   :  { %8428 = vst [vmem:[#allocation65_spill] sm:$0xff] %v6554_v9  ;;  %v1745_v1 = vmul.f32 %v1515_v14, %v5960_v54  ;;  %vm772_vm12 = vcmp.gt.f32.partialorder %v608_v21, 0.0  ;;  %v845_v27 = vmul.f32 %v5960_v54, %v608_v21  ;;  %vm1671_vm13 = vcmp.gt.f32.partialorder %v1507_v22, 0.0 }
 0x13a   :  { %v6566_v4 = vsel %vm774_vm10, %v616_v40, %v847_v57  ;;  %v1743_v62 = vmul.f32 %v1507_v22, %v5960_v54  ;;  %v629_v9 = vadd.f32 %v6513_v55, %v6495_v30  ;;  %v1528_v6 = vadd.f32 %v6513_v55, %v5152_v18 }
 0x13b   :  { %8429 = vst [vmem:[#allocation66_spill] sm:$0xff] %v6566_v4  ;;  %v6574_v47 = vsel %vm1673_vm11, %v1515_v14, %v1745_v1  ;;  %v621_v59 = vadd.f32 %v6513_v55, %v620_v12  ;;  %v6582_v57 = vsel %vm772_vm12, %v608_v21, %v845_v27  ;;  %v1520_v5 = vadd.f32 %v6513_v55, %v1519_v52 }
 0x13c   :  { %8430 = vst [vmem:[#allocation67_spill] sm:$0xff] %v6574_v47  ;;  %8431 = vst [vmem:[#allocation68_spill] sm:$0xff] %v6582_v57  ;;  %v6584_v13 = vsel %vm1671_vm13, %v1507_v22, %v1743_v62  ;;  %vm777_vm14 = vcmp.gt.f32.partialorder %v629_v9, 0.0  ;;  %v850_v1 = vmul.f32 %v5960_v54, %v629_v9  ;;  %vm1676_vm15 = vcmp.gt.f32.partialorder %v1528_v6, 0.0 }
 0x13d   :  { %v6548_v3 = vpop.f32.mrb[48].mxu0  ;;  %v6550_v35 = vpop.f32.mrb[48].mxu1  ;;  %8432 = vst [vmem:[#allocation69_spill] sm:$0xff] %v6584_v13  ;;  %v1748_v30 = vmul.f32 %v1528_v6, %v5960_v54  ;;  %vm775_vm0 = vcmp.gt.f32.partialorder %v621_v59, 0.0  ;;  %v848_v18 = vmul.f32 %v5960_v54, %v621_v59  ;;  %vm1674_vm1 = vcmp.gt.f32.partialorder %v1520_v5, 0.0 }
 0x13e   :  { %v636_v56 = vpop.f32.mrb[49].mxu0  ;;  %v6557_v33 = vpop.f32.mrb[49].mxu1  ;;  %v6592_v12 = vsel %vm777_vm14, %v629_v9, %v850_v1  ;;  %v1746_v22 = vmul.f32 %v1520_v5, %v5960_v54  ;;  %v632_v52 = vadd.f32 %v6513_v55, %v6504_v2  ;;  %v1531_v21 = vadd.f32 %v6513_v55, %v6506_v42 }
 0x13f   :  { %v6562_v17 = vpop.f32.mrb[50].mxu0  ;;  %v6564_v19 = vpop.f32.mrb[50].mxu1  ;;  %8433 = vst [vmem:[#allocation70_spill] sm:$0xff] %v6592_v12  ;;  %v6603_v14 = vsel %vm1676_vm15, %v1528_v6, %v1748_v30  ;;  %v6605_v40 = vsel %vm775_vm0, %v621_v59, %v848_v18  ;;  %v624_v9 = vadd.f32 %v6513_v55, %v6518_v23  ;;  %v1523_v1 = vadd.f32 %v6513_v55, %v6520_v20 }
 0x140   :  { %v6570_v38 = vpop.f32.mrb[51].mxu0  ;;  %v6572_v46 = vpop.f32.mrb[51].mxu1  ;;  %8434 = vst [vmem:[#allocation71_spill] sm:$0xff] %v6603_v14  ;;  %8435 = vst [vmem:[#allocation72_spill] sm:$0xff] %v6605_v40  ;;  %v6617_v57 = vsel %vm1674_vm1, %v1520_v5, %v1746_v22  ;;  %vm778_vm3 = vcmp.gt.f32.partialorder %v632_v52, 0.0  ;;  %v851_v6 = vmul.f32 %v5960_v54, %v632_v52  ;;  %vm1677_vm4 = vcmp.gt.f32.partialorder %v1531_v21, 0.0 }
 0x141   :  { %8436 = vst [vmem:[#allocation73_spill] sm:$0xff] %v6617_v57  ;;  %v1749_v20 = vmul.f32 %v1531_v21, %v5960_v54  ;;  %vm776_vm5 = vcmp.gt.f32.partialorder %v624_v9, 0.0  ;;  %v849_v22 = vmul.f32 %v5960_v54, %v624_v9  ;;  %vm1675_vm6 = vcmp.gt.f32.partialorder %v1523_v1, 0.0 }
 0x142   :  { %v6631_v5 = vsel %vm778_vm3, %v632_v52, %v851_v6  ;;  %v1747_v42 = vmul.f32 %v1523_v1, %v5960_v54  ;;  %v645_v23 = vadd.f32 %v6513_v55, %v6548_v3  ;;  %v1544_v57 = vadd.f32 %v6513_v55, %v6550_v35 }
 0x143   :  { %8437 = vst [vmem:[#allocation74_spill] sm:$0xff] %v6631_v5  ;;  %v6635_v14 = vsel %vm1677_vm4, %v1531_v21, %v1749_v20  ;;  %v637_v40 = vadd.f32 %v6513_v55, %v636_v56  ;;  %v6644_v52 = vsel %vm776_vm5, %v624_v9, %v849_v22  ;;  %v1536_v4 = vadd.f32 %v6513_v55, %v6557_v33 }
 0x144   :  { %8438 = vst [vmem:[#allocation75_spill] sm:$0xff] %v6635_v14  ;;  %8439 = vst [vmem:[#allocation76_spill] sm:$0xff] %v6644_v52  ;;  %v6646_v6 = vsel %vm1675_vm6, %v1523_v1, %v1747_v42  ;;  %vm781_vm2 = vcmp.gt.f32.partialorder %v645_v23, 0.0  ;;  %v854_v3 = vmul.f32 %v5960_v54, %v645_v23  ;;  %vm1680_vm7 = vcmp.gt.f32.partialorder %v1544_v57, 0.0 }
 0x145   :  { %v6599_v27 = vpop.f32.mrb[52].mxu0  ;;  %v6601_v62 = vpop.f32.mrb[52].mxu1  ;;  %8440 = vst [vmem:[#allocation77_spill] sm:$0xff] %v6646_v6  ;;  %v1752_v35 = vmul.f32 %v1544_v57, %v5960_v54  ;;  %vm779_vm8 = vcmp.gt.f32.partialorder %v637_v40, 0.0  ;;  %v852_v56 = vmul.f32 %v5960_v54, %v637_v40  ;;  %vm1678_vm9 = vcmp.gt.f32.partialorder %v1536_v4, 0.0 }
 0x146   :  { %v6611_v13 = vpop.f32.mrb[53].mxu0  ;;  %v6613_v2 = vpop.f32.mrb[53].mxu1  ;;  %v6659_v42 = vsel %vm781_vm2, %v645_v23, %v854_v3  ;;  %v1750_v33 = vmul.f32 %v1536_v4, %v5960_v54  ;;  %v648_v20 = vadd.f32 %v6513_v55, %v6562_v17  ;;  %v1547_v22 = vadd.f32 %v6513_v55, %v6564_v19 }
 0x147   :  { %v6620_v59 = vpop.f32.mrb[54].mxu0  ;;  %v6622_v30 = vpop.f32.mrb[54].mxu1  ;;  %8441 = vst [vmem:[#allocation78_spill] sm:$0xff] %v6659_v42  ;;  %v6670_v6 = vsel %vm1680_vm7, %v1544_v57, %v1752_v35  ;;  %v6672_v52 = vsel %vm779_vm8, %v637_v40, %v852_v56  ;;  %v640_v23 = vadd.f32 %v6513_v55, %v6570_v38  ;;  %v1539_v3 = vadd.f32 %v6513_v55, %v6572_v46 }
 0x148   :  { %v6627_v18 = vpop.f32.mrb[55].mxu0  ;;  %v6629_v47 = vpop.f32.mrb[55].mxu1  ;;  %8442 = vst [vmem:[#allocation79_spill] sm:$0xff] %v6670_v6  ;;  %8443 = vst [vmem:[#allocation80_spill] sm:$0xff] %v6672_v52  ;;  %v6685_v5 = vsel %vm1678_vm9, %v1536_v4, %v1750_v33  ;;  %vm782_vm10 = vcmp.gt.f32.partialorder %v648_v20, 0.0  ;;  %v855_v40 = vmul.f32 %v5960_v54, %v648_v20  ;;  %vm1681_vm11 = vcmp.gt.f32.partialorder %v1547_v22, 0.0 }
 0x149   :  { %8444 = vst [vmem:[#allocation81_spill] sm:$0xff] %v6685_v5  ;;  %v1753_v38 = vmul.f32 %v1547_v22, %v5960_v54  ;;  %vm780_vm12 = vcmp.gt.f32.partialorder %v640_v23, 0.0  ;;  %v853_v19 = vmul.f32 %v5960_v54, %v640_v23  ;;  %vm1679_vm13 = vcmp.gt.f32.partialorder %v1539_v3, 0.0 }
 0x14a   :  { %v6695_v56 = vsel %vm782_vm10, %v648_v20, %v855_v40  ;;  %v1751_v4 = vmul.f32 %v1539_v3, %v5960_v54  ;;  %v661_v6 = vadd.f32 %v6513_v55, %v6599_v27  ;;  %v1560_v42 = vadd.f32 %v6513_v55, %v6601_v62 }
 0x14b   :  { %8445 = vst [vmem:[#allocation82_spill] sm:$0xff] %v6695_v56  ;;  %v6699_v33 = vsel %vm1681_vm11, %v1547_v22, %v1753_v38  ;;  %v653_v46 = vadd.f32 %v6513_v55, %v6611_v13  ;;  %v6709_v40 = vsel %vm780_vm12, %v640_v23, %v853_v19  ;;  %v1552_v22 = vadd.f32 %v6513_v55, %v6613_v2 }
 0x14c   :  { %8446 = vst [vmem:[#allocation83_spill] sm:$0xff] %v6699_v33  ;;  %8447 = vst [vmem:[#allocation84_spill] sm:$0xff] %v6709_v40  ;;  %v6711_v5 = vsel %vm1679_vm13, %v1539_v3, %v1751_v4  ;;  %vm785_vm14 = vcmp.gt.f32.partialorder %v661_v6, 0.0  ;;  %v858_v27 = vmul.f32 %v5960_v54, %v661_v6  ;;  %vm1684_vm15 = vcmp.gt.f32.partialorder %v1560_v42, 0.0 }
 0x14d   :  { %v6655_v9 = vpop.f32.mrb[56].mxu0  ;;  %v6657_v1 = vpop.f32.mrb[56].mxu1  ;;  %8448 = vst [vmem:[#allocation85_spill] sm:$0xff] %v6711_v5  ;;  %v1756_v20 = vmul.f32 %v1560_v42, %v5960_v54  ;;  %vm783_vm0 = vcmp.gt.f32.partialorder %v653_v46, 0.0  ;;  %v856_v23 = vmul.f32 %v5960_v54, %v653_v46  ;;  %vm1682_vm1 = vcmp.gt.f32.partialorder %v1552_v22, 0.0 }
 0x14e   :  { %v6666_v21 = vpop.f32.mrb[57].mxu0  ;;  %v6668_v12 = vpop.f32.mrb[57].mxu1  ;;  %v6728_v19 = vsel %vm785_vm14, %v661_v6, %v858_v27  ;;  %v1754_v4 = vmul.f32 %v1552_v22, %v5960_v54  ;;  %v664_v38 = vadd.f32 %v6513_v55, %v6620_v59  ;;  %v1563_v5 = vadd.f32 %v6513_v55, %v6622_v30 }
 0x14f   :  { %v6678_v14 = vpop.f32.mrb[58].mxu0  ;;  %v6680_v17 = vpop.f32.mrb[58].mxu1  ;;  %8449 = vst [vmem:[#allocation86_spill] sm:$0xff] %v6728_v19  ;;  %v6739_v56 = vsel %vm1684_vm15, %v1560_v42, %v1756_v20  ;;  %v6741_v52 = vsel %vm783_vm0, %v653_v46, %v856_v23  ;;  %v656_v6 = vadd.f32 %v6513_v55, %v6627_v18  ;;  %v1555_v27 = vadd.f32 %v6513_v55, %v6629_v47 }
 0x150   :  { %v6688_v57 = vpop.f32.mrb[59].mxu0  ;;  %v6690_v35 = vpop.f32.mrb[59].mxu1  ;;  %8450 = vst [vmem:[#allocation87_spill] sm:$0xff] %v6739_v56  ;;  %8451 = vst [vmem:[#allocation88_spill] sm:$0xff] %v6741_v52  ;;  %v6754_v39 = vsel %vm1682_vm1, %v1552_v22, %v1754_v4  ;;  %vm786_vm3 = vcmp.gt.f32.partialorder %v664_v38, 0.0  ;;  %v859_v42 = vmul.f32 %v5960_v54, %v664_v38  ;;  %vm1685_vm4 = vcmp.gt.f32.partialorder %v1563_v5, 0.0 }
 0x151   :  { %8452 = vst [vmem:[#allocation89_spill] sm:$0xff] %v6754_v39  ;;  %v1757_v18 = vmul.f32 %v1563_v5, %v5960_v54  ;;  %vm784_vm5 = vcmp.gt.f32.partialorder %v656_v6, 0.0  ;;  %v857_v20 = vmul.f32 %v5960_v54, %v656_v6  ;;  %vm1683_vm6 = vcmp.gt.f32.partialorder %v1555_v27, 0.0 }
 0x152   :  { %v6760_v47 = vsel %vm786_vm3, %v664_v38, %v859_v42  ;;  %v1755_v23 = vmul.f32 %v1555_v27, %v5960_v54  ;;  %v677_v22 = vadd.f32 %v6513_v55, %v6655_v9  ;;  %v1576_v4 = vadd.f32 %v6513_v55, %v6657_v1 }
 0x153   :  { %8453 = vst [vmem:[#allocation90_spill] sm:$0xff] %v6760_v47  ;;  %v6764_v30 = vsel %vm1685_vm4, %v1563_v5, %v1757_v18  ;;  %v669_v46 = vadd.f32 %v6513_v55, %v6666_v21  ;;  %v6774_v42 = vsel %vm784_vm5, %v656_v6, %v857_v20  ;;  %v1568_v5 = vadd.f32 %v6513_v55, %v6668_v12 }
 0x154   :  { %8454 = vst [vmem:[#allocation91_spill] sm:$0xff] %v6764_v30  ;;  %8455 = vst [vmem:[#allocation92_spill] sm:$0xff] %v6774_v42  ;;  %v6776_v39 = vsel %vm1683_vm6, %v1555_v27, %v1755_v23  ;;  %vm789_vm2 = vcmp.gt.f32.partialorder %v677_v22, 0.0  ;;  %v862_v21 = vmul.f32 %v5960_v54, %v677_v22  ;;  %vm1688_vm7 = vcmp.gt.f32.partialorder %v1576_v4, 0.0 }
 0x155   :  { %v6718_v62 = vpop.f32.mrb[60].mxu0  ;;  %v6720_v13 = vpop.f32.mrb[60].mxu1  ;;  %8456 = vst [vmem:[#allocation93_spill] sm:$0xff] %v6776_v39  ;;  %v1760_v27 = vmul.f32 %v1576_v4, %v5960_v54  ;;  %vm787_vm8 = vcmp.gt.f32.partialorder %v669_v46, 0.0  ;;  %v860_v12 = vmul.f32 %v5960_v54, %v669_v46  ;;  %vm1686_vm9 = vcmp.gt.f32.partialorder %v1568_v5, 0.0 }
 0x156   :  { %v6724_v3 = vpop.f32.mrb[61].mxu0  ;;  %v6726_v2 = vpop.f32.mrb[61].mxu1  ;;  %v6797_v38 = vsel %vm789_vm2, %v677_v22, %v862_v21  ;;  %v1758_v9 = vmul.f32 %v1568_v5, %v5960_v54  ;;  %v680_v39 = vadd.f32 %v6513_v55, %v6678_v14  ;;  %v1579_v42 = vadd.f32 %v6513_v55, %v6680_v17 }
 0x157   :  { %v6735_v40 = vpop.f32.mrb[62].mxu0  ;;  %v6737_v33 = vpop.f32.mrb[62].mxu1  ;;  %8457 = vst [vmem:[#allocation94_spill] sm:$0xff] %v6797_v38  ;;  %v6808_v56 = vsel %vm1688_vm7, %v1576_v4, %v1760_v27  ;;  %v6810_v19 = vsel %vm787_vm8, %v669_v46, %v860_v12  ;;  %v672_v22 = vadd.f32 %v6513_v55, %v6688_v57  ;;  %v1571_v21 = vadd.f32 %v6513_v55, %v6690_v35 }
 0x158   :  { %v6747_v53 = vpop.f32.mrb[63].mxu0  ;;  %v6749_v59 = vpop.f32.mrb[63].mxu1  ;;  %8458 = vst [vmem:[#allocation95_spill] sm:$0xff] %v6808_v56  ;;  %8459 = vst [vmem:[#allocation96_spill] sm:$0xff] %v6810_v19  ;;  %v6818_v60 = vsel %vm1686_vm9, %v1568_v5, %v1758_v9  ;;  %vm790_vm10 = vcmp.gt.f32.partialorder %v680_v39, 0.0  ;;  %v863_v17 = vmul.f32 %v5960_v54, %v680_v39  ;;  %vm1689_vm11 = vcmp.gt.f32.partialorder %v1579_v42, 0.0 }
 0x159   :  { %8460 = vst [vmem:[#allocation97_spill] sm:$0xff] %v6818_v60  ;;  %v1761_v46 = vmul.f32 %v1579_v42, %v5960_v54  ;;  %vm788_vm12 = vcmp.gt.f32.partialorder %v672_v22, 0.0  ;;  %v861_v57 = vmul.f32 %v5960_v54, %v672_v22  ;;  %vm1687_vm13 = vcmp.gt.f32.partialorder %v1571_v21, 0.0 }
 0x15a   :  { %v6824_v27 = vsel %vm790_vm10, %v680_v39, %v863_v17  ;;  %v1759_v35 = vmul.f32 %v1571_v21, %v5960_v54  ;;  %v693_v5 = vadd.f32 %v6513_v55, %v6718_v62  ;;  %v1592_v9 = vadd.f32 %v6513_v55, %v6720_v13 }
 0x15b   :  { %8461 = vst [vmem:[#allocation98_spill] sm:$0xff] %v6824_v27  ;;  %v6828_v12 = vsel %vm1689_vm11, %v1579_v42, %v1761_v46  ;;  %v685_v4 = vadd.f32 %v6513_v55, %v6724_v3  ;;  %v6842_v60 = vsel %vm788_vm12, %v672_v22, %v861_v57  ;;  %v1584_v62 = vadd.f32 %v6513_v55, %v6726_v2 }
 0x15c   :  { %8462 = vst [vmem:[#allocation99_spill] sm:$0xff] %v6828_v12  ;;  %8463 = vst [vmem:[#allocation100_spill] sm:$0xff] %v6842_v60  ;;  %v6844_v42 = vsel %vm1687_vm13, %v1571_v21, %v1759_v35  ;;  %vm793_vm14 = vcmp.gt.f32.partialorder %v693_v5, 0.0  ;;  %v866_v19 = vmul.f32 %v5960_v54, %v693_v5  ;;  %vm1692_vm15 = vcmp.gt.f32.partialorder %v1592_v9, 0.0 }
 0x15d   :  { %v6780_v18 = vpop.f32.mrb[64].mxu0  ;;  %v6782_v52 = vpop.f32.mrb[64].mxu1  ;;  %8464 = vst [vmem:[#allocation101_spill] sm:$0xff] %v6844_v42  ;;  %v1764_v21 = vmul.f32 %v1592_v9, %v5960_v54  ;;  %vm791_vm0 = vcmp.gt.f32.partialorder %v685_v4, 0.0  ;;  %v864_v2 = vmul.f32 %v5960_v54, %v685_v4  ;;  %vm1690_vm1 = vcmp.gt.f32.partialorder %v1584_v62, 0.0 }
 0x15e   :  { %v6787_v1 = vpop.f32.mrb[65].mxu0  ;;  %v6789_v6 = vpop.f32.mrb[65].mxu1  ;;  %v6865_v17 = vsel %vm793_vm14, %v693_v5, %v866_v19  ;;  %v1762_v3 = vmul.f32 %v1584_v62, %v5960_v54  ;;  %v696_v42 = vadd.f32 %v6513_v55, %v6735_v40  ;;  %v1595_v60 = vadd.f32 %v6513_v55, %v6737_v33 }
 0x15f   :  { %v6793_v20 = vpop.f32.mrb[66].mxu0  ;;  %v6795_v23 = vpop.f32.mrb[66].mxu1  ;;  %8465 = vst [vmem:[#allocation102_spill] sm:$0xff] %v6865_v17  ;;  %v6872_v12 = vsel %vm1692_vm15, %v1592_v9, %v1764_v21  ;;  %v6874_v27 = vsel %vm791_vm0, %v685_v4, %v864_v2  ;;  %v688_v38 = vadd.f32 %v6513_v55, %v6747_v53  ;;  %v1587_v26 = vadd.f32 %v6513_v55, %v6749_v59 }
 0x160   :  { %v6804_v30 = vpop.f32.mrb[67].mxu0  ;;  %v6806_v47 = vpop.f32.mrb[67].mxu1  ;;  %8466 = vst [vmem:[#allocation103_spill] sm:$0xff] %v6872_v12  ;;  %8467 = vst [vmem:[#allocation104_spill] sm:$0xff] %v6874_v27  ;;  %v6882_v5 = vsel %vm1690_vm1, %v1584_v62, %v1762_v3  ;;  %vm794_vm3 = vcmp.gt.f32.partialorder %v696_v42, 0.0  ;;  %v867_v40 = vmul.f32 %v5960_v54, %v696_v42  ;;  %vm1693_vm4 = vcmp.gt.f32.partialorder %v1595_v60, 0.0 }
 0x161   :  { %8468 = vst [vmem:[#allocation105_spill] sm:$0xff] %v6882_v5  ;;  %v1765_v4 = vmul.f32 %v1595_v60, %v5960_v54  ;;  %vm792_vm5 = vcmp.gt.f32.partialorder %v688_v38, 0.0  ;;  %v865_v53 = vmul.f32 %v5960_v54, %v688_v38  ;;  %vm1691_vm6 = vcmp.gt.f32.partialorder %v1587_v26, 0.0 }
 0x162   :  { %v6888_v9 = vsel %vm794_vm3, %v696_v42, %v867_v40  ;;  %v1763_v59 = vmul.f32 %v1587_v26, %v5960_v54  ;;  %v709_v2 = vadd.f32 %v6513_v55, %v6780_v18  ;;  %v1608_v33 = vadd.f32 %v6513_v55, %v6782_v52 }
 0x163   :  { %8469 = vst [vmem:[#allocation106_spill] sm:$0xff] %v6888_v9  ;;  %v6896_v3 = vsel %vm1693_vm4, %v1595_v60, %v1765_v4  ;;  %v701_v42 = vadd.f32 %v6513_v55, %v6787_v1  ;;  %v6910_v27 = vsel %vm792_vm5, %v688_v38, %v865_v53  ;;  %v1600_v18 = vadd.f32 %v6513_v55, %v6789_v6 }
 0x164   :  { %8470 = vst [vmem:[#allocation107_spill] sm:$0xff] %v6896_v3  ;;  %8471 = vst [vmem:[#allocation108_spill] sm:$0xff] %v6910_v27  ;;  %v6912_v60 = vsel %vm1691_vm6, %v1587_v26, %v1763_v59  ;;  %vm797_vm2 = vcmp.gt.f32.partialorder %v709_v2, 0.0  ;;  %v870_v12 = vmul.f32 %v5960_v54, %v709_v2  ;;  %vm1696_vm7 = vcmp.gt.f32.partialorder %v1608_v33, 0.0 }
 0x165   :  { %v6836_v14 = vpop.f32.mrb[68].mxu0  ;;  %v6838_v39 = vpop.f32.mrb[68].mxu1  ;;  %8472 = vst [vmem:[#allocation109_spill] sm:$0xff] %v6912_v60  ;;  %v1768_v26 = vmul.f32 %v1608_v33, %v5960_v54  ;;  %vm795_vm8 = vcmp.gt.f32.partialorder %v701_v42, 0.0  ;;  %v868_v6 = vmul.f32 %v5960_v54, %v701_v42  ;;  %vm1694_vm9 = vcmp.gt.f32.partialorder %v1600_v18, 0.0 }
 0x166   :  { %v6848_v46 = vpop.f32.mrb[69].mxu0  ;;  %v6850_v13 = vpop.f32.mrb[69].mxu1  ;;  %v6929_v53 = vsel %vm797_vm2, %v709_v2, %v870_v12  ;;  %v1766_v59 = vmul.f32 %v1600_v18, %v5960_v54  ;;  %v712_v1 = vadd.f32 %v6513_v55, %v6793_v20  ;;  %v1611_v5 = vadd.f32 %v6513_v55, %v6795_v23 }
 0x167   :  { %v6855_v56 = vpop.f32.mrb[70].mxu0  ;;  %v6857_v22 = vpop.f32.mrb[70].mxu1  ;;  %8473 = vst [vmem:[#allocation110_spill] sm:$0xff] %v6929_v53  ;;  %v6936_v60 = vsel %vm1696_vm7, %v1608_v33, %v1768_v26  ;;  %v6938_v27 = vsel %vm795_vm8, %v701_v42, %v868_v6  ;;  %v704_v3 = vadd.f32 %v6513_v55, %v6804_v30  ;;  %v1603_v9 = vadd.f32 %v6513_v55, %v6806_v47 }
 0x168   :  { %v6861_v57 = vpop.f32.mrb[71].mxu0  ;;  %v6863_v35 = vpop.f32.mrb[71].mxu1  ;;  %8474 = vst [vmem:[#allocation111_spill] sm:$0xff] %v6936_v60  ;;  %8475 = vst [vmem:[#allocation112_spill] sm:$0xff] %v6938_v27  ;;  %v6946_v2 = vsel %vm1694_vm9, %v1600_v18, %v1766_v59  ;;  %vm798_vm10 = vcmp.gt.f32.partialorder %v712_v1, 0.0  ;;  %v871_v20 = vmul.f32 %v5960_v54, %v712_v1  ;;  %vm1697_vm11 = vcmp.gt.f32.partialorder %v1611_v5, 0.0 }
 0x169   :  { %8476 = vst [vmem:[#allocation113_spill] sm:$0xff] %v6946_v2  ;;  %v1769_v33 = vmul.f32 %v1611_v5, %v5960_v54  ;;  %vm796_vm12 = vcmp.gt.f32.partialorder %v704_v3, 0.0  ;;  %v869_v26 = vmul.f32 %v5960_v54, %v704_v3  ;;  %vm1695_vm13 = vcmp.gt.f32.partialorder %v1603_v9, 0.0 }
 0x16a   :  { %v6956_v47 = vsel %vm798_vm10, %v712_v1, %v871_v20  ;;  %v1767_v18 = vmul.f32 %v1603_v9, %v5960_v54  ;;  %v725_v12 = vadd.f32 %v6513_v55, %v6836_v14  ;;  %v1624_v2 = vadd.f32 %v6513_v55, %v6838_v39 }
 0x16b   :  { %8477 = vst [vmem:[#allocation114_spill] sm:$0xff] %v6956_v47  ;;  %v6964_v23 = vsel %vm1697_vm11, %v1611_v5, %v1769_v33  ;;  %v717_v1 = vadd.f32 %v6513_v55, %v6848_v46  ;;  %v6979_v53 = vsel %vm796_vm12, %v704_v3, %v869_v26  ;;  %v1616_v14 = vadd.f32 %v6513_v55, %v6850_v13 }
 0x16c   :  { %8478 = vst [vmem:[#allocation115_spill] sm:$0xff] %v6964_v23  ;;  %8479 = vst [vmem:[#allocation116_spill] sm:$0xff] %v6979_v53  ;;  %v6981_v5 = vsel %vm1695_vm13, %v1603_v9, %v1767_v18  ;;  %vm801_vm14 = vcmp.gt.f32.partialorder %v725_v12, 0.0  ;;  %v874_v45 = vmul.f32 %v5960_v54, %v725_v12  ;;  %vm1700_vm15 = vcmp.gt.f32.partialorder %v1624_v2, 0.0 }
 0x16d   :  { %v6892_v21 = vpop.f32.mrb[72].mxu0  ;;  %v6894_v62 = vpop.f32.mrb[72].mxu1  ;;  %8480 = vst [vmem:[#allocation117_spill] sm:$0xff] %v6981_v5  ;;  %v1772_v60 = vmul.f32 %v1624_v2, %v5960_v54  ;;  %vm799_vm0 = vcmp.gt.f32.partialorder %v717_v1, 0.0  ;;  %v872_v9 = vmul.f32 %v5960_v54, %v717_v1  ;;  %vm1698_vm1 = vcmp.gt.f32.partialorder %v1616_v14, 0.0 }
 0x16e   :  { %v6904_v40 = vpop.f32.mrb[73].mxu0  ;;  %v6906_v19 = vpop.f32.mrb[73].mxu1  ;;  %v6994_v3 = vsel %vm801_vm14, %v725_v12, %v874_v45  ;;  %v1770_v13 = vmul.f32 %v1616_v14, %v5960_v54  ;;  %v728_v26 = vadd.f32 %v6513_v55, %v6855_v56  ;;  %v1627_v18 = vadd.f32 %v6513_v55, %v6857_v22 }
 0x16f   :  { %v6916_v4 = vpop.f32.mrb[74].mxu0  ;;  %v6918_v52 = vpop.f32.mrb[74].mxu1  ;;  %8481 = vst [vmem:[#allocation118_spill] sm:$0xff] %v6994_v3  ;;  %v7001_v46 = vsel %vm1700_vm15, %v1624_v2, %v1772_v60  ;;  %v7003_v5 = vsel %vm799_vm0, %v717_v1, %v872_v9  ;;  %v720_v53 = vadd.f32 %v6513_v55, %v6861_v57  ;;  %v1619_v23 = vadd.f32 %v6513_v55, %v6863_v35 }
 0x170   :  { %v6923_v17 = vpop.f32.mrb[75].mxu0  ;;  %v6925_v38 = vpop.f32.mrb[75].mxu1  ;;  %8482 = vst [vmem:[#allocation119_spill] sm:$0xff] %v7001_v46  ;;  %8483 = vst [vmem:[#allocation120_spill] sm:$0xff] %v7003_v5  ;;  %v7011_v12 = vsel %vm1698_vm1, %v1616_v14, %v1770_v13  ;;  %vm802_vm3 = vcmp.gt.f32.partialorder %v728_v26, 0.0  ;;  %v875_v56 = vmul.f32 %v5960_v54, %v728_v26  ;;  %vm1701_vm4 = vcmp.gt.f32.partialorder %v1627_v18, 0.0 }
 0x171   :  { %8484 = vst [vmem:[#allocation121_spill] sm:$0xff] %v7011_v12  ;;  %v1773_v57 = vmul.f32 %v1627_v18, %v5960_v54  ;;  %vm800_vm5 = vcmp.gt.f32.partialorder %v720_v53, 0.0  ;;  %v873_v14 = vmul.f32 %v5960_v54, %v720_v53  ;;  %vm1699_vm6 = vcmp.gt.f32.partialorder %v1619_v23, 0.0 }
 0x172   :  { %v7025_v1 = vsel %vm802_vm3, %v728_v26, %v875_v56  ;;  %v1771_v9 = vmul.f32 %v1619_v23, %v5960_v54  ;;  %v2322_v12 = vadd.f32 %v6513_v55, %v6892_v21  ;;  %v3220_v5 = vadd.f32 %v6513_v55, %v6894_v62 }
 0x173   :  { %8485 = vst [vmem:[#allocation122_spill] sm:$0xff] %v7025_v1  ;;  %v7033_v60 = vsel %vm1701_vm4, %v1627_v18, %v1773_v57  ;;  %v7045_v3 = vsel %vm800_vm5, %v720_v53, %v873_v14  ;;  %vm4146_vm2 = vcmask 257024   ;;  %v2314_v18 = vadd.f32 %v6513_v55, %v6904_v40 }
 0x174   :  { %8486 = vst [vmem:[#allocation123_spill] sm:$0xff] %v7033_v60  ;;  %8487 = vst [vmem:[#allocation124_spill] sm:$0xff] %v7045_v3  ;;  %v7047_v44 = vsel %vm1699_vm6, %v1619_v23, %v1771_v9  ;;  %vm2602_vm7 = vcmp.gt.f32.partialorder %v2322_v12, 0.0  ;;  %v2674_v62 = vmul.f32 %v2322_v12, %v5960_v54  ;;  %vm3500_vm8 = vcmp.gt.f32.partialorder %v3220_v5, 0.0 }
 0x175   :  { %v6952_v42 = vpop.f32.mrb[76].mxu0  ;;  %v6954_v30 = vpop.f32.mrb[76].mxu1  ;;  %8488 = vst [vmem:[#allocation125_spill] sm:$0xff] %v7047_v44  ;;  %v3572_v57 = vmul.f32 %v3220_v5, %v5960_v54  ;;  %vm2600_vm9 = vcmp.gt.f32.partialorder %v2314_v18, 0.0  ;;  %v2672_v56 = vmul.f32 %v2314_v18, %v5960_v54  ;;  %v3212_v53 = vadd.f32 %v6513_v55, %v6906_v19 }
 0x176   :  { %v6960_v6 = vpop.f32.mrb[77].mxu0  ;;  %v6962_v59 = vpop.f32.mrb[77].mxu1  ;;  %v2746_v23 = vsel %vm2602_vm7, %v2322_v12, %v2674_v62  ;;  %v2325_v14 = vadd.f32 %v6513_v55, %v6916_v4  ;;  %v3223_v40 = vadd.f32 %v6513_v55, %v6918_v52  ;;  %v2317_v9 = vadd.f32 %v6513_v55, %v6923_v17 }
 0x177   :  { %v6972_v20 = vpop.f32.mrb[78].mxu0  ;;  %v6974_v27 = vpop.f32.mrb[78].mxu1  ;;  %v3644_v21 = vsel %vm3500_vm8, %v3220_v5, %v3572_v57  ;;  %v2744_v44 = vsel %vm2600_vm9, %v2314_v18, %v2672_v56  ;;  %vm3498_vm10 = vcmp.gt.f32.partialorder %v3212_v53, 0.0  ;;  %v3570_v3 = vmul.f32 %v3212_v53, %v5960_v54 }
 0x178   :  { %v6985_v33 = vpop.f32.mrb[79].mxu0  ;;  %v6987_v39 = vpop.f32.mrb[79].mxu1  ;;  %v3716_v19 = vmax.f32 %v2746_v23, %v3644_v21  ;;  %vm2603_vm11 = vcmp.gt.f32.partialorder %v2325_v14, 0.0  ;;  %v2675_v12 = vmul.f32 %v2325_v14, %v5960_v54  ;;  %vm3501_vm12 = vcmp.gt.f32.partialorder %v3223_v40, 0.0 }
 0x179   :  { %v3642_v62 = vsel %vm3498_vm10, %v3212_v53, %v3570_v3  ;;  %v3573_v17 = vmul.f32 %v3223_v40, %v5960_v54  ;;  %vm2601_vm13 = vcmp.gt.f32.partialorder %v2317_v9, 0.0  ;;  %v2673_v5 = vmul.f32 %v2317_v9, %v5960_v54 }
 0x17a   :  { %v8491_v21 = vmax.f32 %v5982_v10, %v5984_v11  ;;  %v3714_v23 = vmax.f32 %v2744_v44, %v3642_v62  ;;  %v2747_v37 = vsel %vm2603_vm11, %v2325_v14, %v2675_v12  ;;  %v3215_v34 = vadd.f32 %v6513_v55, %v6925_v38 }
 0x17b   :  { %v3645_v53 = vsel %vm3501_vm12, %v3223_v40, %v3573_v17  ;;  %v2745_v8 = vsel %vm2601_vm13, %v2317_v9, %v2673_v5  ;;  %v8492_v11 = vmax.f32 %v5991_v15, %v5993_v16  ;;  %v2330_v16 = vadd.f32 %v6513_v55, %v6960_v6 }
 0x17c   :  { %v3788_v57 = vmax.f32 %v8491_v21, %v3716_v19  ;;  %v3717_v14 = vmax.f32 %v2747_v37, %v3645_v53  ;;  %vm3499_vm14 = vcmp.gt.f32.partialorder %v3215_v34, 0.0  ;;  %v3571_v38 = vmul.f32 %v3215_v34, %v5960_v54 }
 0x17d   :  { %v7014_v47 = vpop.f32.mrb[80].mxu0  ;;  %v7016_v22 = vpop.f32.mrb[80].mxu1  ;;  %v3786_v44 = vmax.f32 %v8492_v11, %v3714_v23  ;;  %v3228_v12 = vadd.f32 %v6513_v55, %v6962_v59  ;;  %v2341_v62 = vadd.f32 %v6513_v55, %v6972_v20  ;;  %vm2604_vm1 = vcmp.gt.f32.partialorder %v2330_v16, 0.0 }
 0x17e   :  { %v7021_v35 = vpop.f32.mrb[81].mxu0  ;;  %v7023_v2 = vpop.f32.mrb[81].mxu1  ;;  %v4804_v10 = vpack.c.bf16 %v3788_v57, %v3788_v57  ;;  %v3643_v37 = vsel %vm3499_vm14, %v3215_v34, %v3571_v38  ;;  %v2676_v20 = vmul.f32 %v2330_v16, %v5960_v54 }
 0x17f   :  { %v7029_v13 = vpop.f32.mrb[82].mxu0  ;;  %v7031_v45 = vpop.f32.mrb[82].mxu1  ;;  %vm3502_vm3 = vcmp.gt.f32.partialorder %v3228_v12, 0.0  ;;  %v3574_v21 = vmul.f32 %v3228_v12, %v5960_v54  ;;  %vm2607_vm4 = vcmp.gt.f32.partialorder %v2341_v62, 0.0  ;;  %v2679_v53 = vmul.f32 %v2341_v62, %v5960_v54 }
 0x180   :  { %v7039_v46 = vpop.f32.mrb[83].mxu0  ;;  %v7041_v26 = vpop.f32.mrb[83].mxu1  ;;  %4149 = vst.msk [vmem:[%s8242_s4 + $0x8] sm:$0xf] %vm4146_vm2, %v4804_v10  ;;  %v3239_v10 = vadd.f32 %v6513_v55, %v6974_v27 }
 0x182   :  { %vm3505_vm5 = vcmp.gt.f32.partialorder %v3239_v10, 0.0  ;;  %v3577_v27 = vmul.f32 %v3239_v10, %v5960_v54 }
 0x185   :  { %v7065_v60 = vpop.f32.mrb[84].mxu0  ;;  %v7067_v1 = vpop.f32.mrb[84].mxu1 }
 0x186   :  { %v7070_v4 = vpop.f32.mrb[85].mxu0  ;;  %v7072_v52 = vpop.f32.mrb[85].mxu1 }
 0x187   :  { %v7076_v56 = vpop.f32.mrb[86].mxu0  ;;  %v7078_v18 = vpop.f32.mrb[86].mxu1 }
 0x188   :  { %8489 = vst [vmem:[#allocation126_spill] sm:$0xff] %v7076_v56  ;;  %8490 = vst [vmem:[#allocation127_spill] sm:$0xff] %v7078_v18  ;;  %v7085_v28 = vpop.f32.mrb[87].mxu0  ;;  %v7087_v3 = vpop.f32.mrb[87].mxu1  ;;  %v2338_v56 = vadd.f32 %v6513_v55, %v6952_v42  ;;  %v3236_v18 = vadd.f32 %v6513_v55, %v6954_v30  ;;  %v4802_v42 = vpack.c.bf16 %v3786_v44, %v3786_v44 }
 0x189   :  { %v8493_v30 = vmax.f32 %v6005_v25, %v6012_v31  ;;  %v3715_v31 = vmax.f32 %v2745_v8, %v3643_v37  ;;  %v8494_v8 = vmax.f32 %v6014_v32, %v6029_v43  ;;  %v2333_v32 = vadd.f32 %v6513_v55, %v6985_v33 }
 0x18a   :  { %vm2606_vm15 = vcmp.gt.f32.partialorder %v2338_v56, 0.0  ;;  %v2678_v19 = vmul.f32 %v2338_v56, %v5960_v54  ;;  %vm3504_vm0 = vcmp.gt.f32.partialorder %v3236_v18, 0.0  ;;  %v3576_v15 = vmul.f32 %v3236_v18, %v5960_v54  ;;  %4147 = vst.msk [vmem:[%s8242_s4] sm:$0xf] %vm4146_vm2, %v4802_v42 }
 0x18b   :  { %v3789_v40 = vmax.f32 %v8493_v30, %v3717_v14  ;;  %v8495_v14 = vmax.f32 %v6036_v48, %v6041_v51  ;;  %v3646_v42 = vsel %vm3502_vm3, %v3228_v12, %v3574_v21  ;;  %vm2605_vm6 = vcmp.gt.f32.partialorder %v2333_v32, 0.0 }
 0x18c   :  { %v2750_v9 = vsel %vm2606_vm15, %v2338_v56, %v2678_v19  ;;  %v3648_v6 = vsel %vm3504_vm0, %v3236_v18, %v3576_v15  ;;  %v3787_v18 = vmax.f32 %v8494_v8, %v3715_v31  ;;  %v2748_v19 = vsel %vm2604_vm1, %v2330_v16, %v2676_v20 }
 0x18d   :  { %v7113_v17 = vpop.f32.mrb[88].mxu0  ;;  %v7115_v5 = vpop.f32.mrb[88].mxu1  ;;  %v4805_v25 = vpack.c.bf16 %v3789_v40, %v3789_v40  ;;  %v3720_v59 = vmax.f32 %v2750_v9, %v3648_v6  ;;  %v3718_v30 = vmax.f32 %v2748_v19, %v3646_v42  ;;  %v2751_v40 = vsel %vm2607_vm4, %v2341_v62, %v2679_v53 }
 0x18e   :  { %v7121_v34 = vpop.f32.mrb[89].mxu0  ;;  %v7123_v56 = vpop.f32.mrb[89].mxu1  ;;  %v4803_v43 = vpack.c.bf16 %v3787_v18, %v3787_v18  ;;  %v2677_v37 = vmul.f32 %v2333_v32, %v5960_v54  ;;  %v8496_v48 = vmax.f32 %v6051_v58, %v6055_v63  ;;  %v3231_v33 = vadd.f32 %v6513_v55, %v6987_v39 }
 0x18f   :  { %v7127_v57 = vpop.f32.mrb[90].mxu0  ;;  %v7129_v23 = vpop.f32.mrb[90].mxu1  ;;  %4150 = vst.msk [vmem:[%s8242_s4 + $0xc] sm:$0xf] %vm4146_vm2, %v4805_v25  ;;  %v3792_v38 = vmax.f32 %v8495_v14, %v3720_v59  ;;  %v2354_v16 = vadd.f32 %v6513_v55, %v7014_v47  ;;  %v3252_v9 = vadd.f32 %v6513_v55, %v7016_v22  ;;  %v3649_v12 = vsel %vm3505_vm5, %v3239_v10, %v3577_v27 }
 0x190   :  { %v7141_v11 = vpop.f32.mrb[91].mxu0  ;;  %v7143_v44 = vpop.f32.mrb[91].mxu1  ;;  %4148 = vst.msk [vmem:[%s8242_s4 + $0x4] sm:$0xf] %vm4146_vm2, %v4803_v43  ;;  %v3790_v51 = vmax.f32 %v8496_v48, %v3718_v30  ;;  %v2749_v62 = vsel %vm2605_vm6, %v2333_v32, %v2677_v37  ;;  %v2346_v58 = vadd.f32 %v6513_v55, %v7021_v35  ;;  %v3244_v63 = vadd.f32 %v6513_v55, %v7023_v2 }
 0x191   :  { %v4808_v15 = vpack.c.bf16 %v3792_v38, %v3792_v38  ;;  %v3721_v31 = vmax.f32 %v2751_v40, %v3649_v12  ;;  %vm3503_vm7 = vcmp.gt.f32.partialorder %v3231_v33, 0.0  ;;  %v3575_v22 = vmul.f32 %v3231_v33, %v5960_v54 }
 0x192   :  { %v4806_v47 = vpack.c.bf16 %v3790_v51, %v3790_v51  ;;  %vm2610_vm8 = vcmp.gt.f32.partialorder %v2354_v16, 0.0  ;;  %v2682_v20 = vmul.f32 %v2354_v16, %v5960_v54  ;;  %vm3508_vm9 = vcmp.gt.f32.partialorder %v3252_v9, 0.0 }
 0x193   :  { %4153 = vst.msk [vmem:[%s8242_s4 + $0x18] sm:$0xf] %vm4146_vm2, %v4808_v15  ;;  %v3580_v35 = vmul.f32 %v3252_v9, %v5960_v54  ;;  %v8497_v8 = vmax.f32 %v6057_v0, %v6066_v7  ;;  %v3647_v53 = vsel %vm3503_vm7, %v3231_v33, %v3575_v22  ;;  %vm2608_vm10 = vcmp.gt.f32.partialorder %v2346_v58, 0.0 }
 0x194   :  { %4151 = vst.msk [vmem:[%s8242_s4 + $0x10] sm:$0xf] %vm4146_vm2, %v4806_v47  ;;  %v2680_v10 = vmul.f32 %v2346_v58, %v5960_v54  ;;  %v3719_v19 = vmax.f32 %v2749_v62, %v3647_v53  ;;  %v2754_v42 = vsel %vm2610_vm8, %v2354_v16, %v2682_v20  ;;  %vm3506_vm11 = vcmp.gt.f32.partialorder %v3244_v63, 0.0 }
 0x195   :  { %v7174_v39 = vpop.f32.mrb[92].mxu0  ;;  %v7176_v25 = vpop.f32.mrb[92].mxu1  ;;  %v3793_v18 = vmax.f32 %v8497_v8, %v3721_v31  ;;  %v3652_v32 = vsel %vm3508_vm9, %v3252_v9, %v3580_v35  ;;  %v3578_v15 = vmul.f32 %v3244_v63, %v5960_v54  ;;  %v8498_v0 = vmax.f32 %v6081_v24, %v6086_v29 }
 0x196   :  { %v7179_v6 = vpop.f32.mrb[93].mxu0  ;;  %v7181_v59 = vpop.f32.mrb[93].mxu1  ;;  %v3724_v30 = vmax.f32 %v2754_v42, %v3652_v32  ;;  %v2752_v40 = vsel %vm2608_vm10, %v2346_v58, %v2680_v10  ;;  %v2357_v27 = vadd.f32 %v6513_v55, %v7029_v13  ;;  %v3255_v37 = vadd.f32 %v6513_v55, %v7031_v45  ;;  %v7258_v10 = vld [vmem:[%s8240_s2] ss:$0 sm:$0xff] }
 0x197   :  { %v7185_v2 = vpop.f32.mrb[94].mxu0  ;;  %v7187_v21 = vpop.f32.mrb[94].mxu1  ;;  %v4809_v43 = vpack.c.bf16 %v3793_v18, %v3793_v18  ;;  %v3791_v7 = vmax.f32 %v8498_v0, %v3719_v19  ;;  %v2349_v48 = vadd.f32 %v6513_v55, %v7039_v46  ;;  %v8499_v51 = vmax.f32 %v6094_v36, %v6102_v41 }
 0x198   :  { %v7197_v14 = vpop.f32.mrb[95].mxu0  ;;  %v7199_v38 = vpop.f32.mrb[95].mxu1  ;;  %v3650_v24 = vsel %vm3506_vm11, %v3244_v63, %v3578_v15  ;;  %v3247_v29 = vadd.f32 %v6513_v55, %v7041_v26  ;;  %v2370_v13 = vadd.f32 %v6513_v55, %v7065_v60  ;;  %vm2611_vm12 = vcmp.gt.f32.partialorder %v2357_v27, 0.0 }
 0x199   :  { %4154 = vst.msk [vmem:[%s8242_s4 + $0x1c] sm:$0xf] %vm4146_vm2, %v4809_v43  ;;  %v3796_v33 = vmax.f32 %v8499_v51, %v3724_v30  ;;  %v4807_v45 = vpack.c.bf16 %v3791_v7, %v3791_v7  ;;  %v3722_v16 = vmax.f32 %v2752_v40, %v3650_v24  ;;  %v2683_v46 = vmul.f32 %v2357_v27, %v5960_v54  ;;  %v8501_v40 = vld [vmem:[#allocation3_spill] sm:$0xff] }
 0x19a   :  { %vm3509_vm13 = vcmp.gt.f32.partialorder %v3255_v37, 0.0  ;;  %v3581_v36 = vmul.f32 %v3255_v37, %v5960_v54  ;;  %vm2609_vm14 = vcmp.gt.f32.partialorder %v2349_v48, 0.0  ;;  %v8500_v55 = vmax.f32 %v6107_v49, %v6109_v50 }
 0x19b   :  { %v4812_v62 = vpack.c.bf16 %v3796_v33, %v3796_v33  ;;  %4152 = vst.msk [vmem:[%s8242_s4 + $0x14] sm:$0xf] %vm4146_vm2, %v4807_v45  ;;  %v2755_v58 = vsel %vm2611_vm12, %v2357_v27, %v2683_v46  ;;  %v2681_v63 = vmul.f32 %v2349_v48, %v5960_v54  ;;  %vm3507_vm15 = vcmp.gt.f32.partialorder %v3247_v29, 0.0 }
 0x19c   :  { %v3794_v60 = vmax.f32 %v8500_v55, %v3722_v16  ;;  %v3653_v22 = vsel %vm3509_vm13, %v3255_v37, %v3581_v36  ;;  %v3579_v20 = vmul.f32 %v3247_v29, %v5960_v54  ;;  %vm2614_vm0 = vcmp.gt.f32.partialorder %v2370_v13, 0.0  ;;  %v8503_v37 = vld [vmem:[#allocation4_spill] sm:$0xff]  ;;  %v8507_v36 = vld [vmem:[#allocation127_spill] sm:$0xff] }
 0x19d   :  { %v7223_v9 = vpop.f32.mrb[96].mxu0  ;;  %v7225_v12 = vpop.f32.mrb[96].mxu1  ;;  %4157 = vst.msk [vmem:[%s8242_s4 + $0x28] sm:$0xf] %vm4146_vm2, %v4812_v62  ;;  %v2686_v49 = vmul.f32 %v2370_v13, %v5960_v54  ;;  %v3725_v18 = vmax.f32 %v2755_v58, %v3653_v22  ;;  %v2753_v53 = vsel %vm2609_vm14, %v2349_v48, %v2681_v63  ;;  %v3268_v19 = vadd.f32 %v7258_v10, %v7067_v1  ;;  %v8504_v48 = vld [vmem:[#allocation5_spill] sm:$0xff] }
 0x19e   :  { %v7228_v41 = vpop.f32.mrb[97].mxu0  ;;  %v7230_v26 = vpop.f32.mrb[97].mxu1  ;;  %v4810_v8 = vpack.c.bf16 %v3794_v60, %v3794_v60  ;;  %v3651_v42 = vsel %vm3507_vm15, %v3247_v29, %v3579_v20  ;;  %v2362_v43 = vadd.f32 %v7258_v10, %v7070_v4  ;;  %v3260_v30 = vadd.f32 %v7258_v10, %v7072_v52  ;;  %v8506_v29 = vld [vmem:[#allocation126_spill] sm:$0xff] }
 0x19f   :  { %v7240_v47 = vpop.f32.mrb[98].mxu0  ;;  %v7242_v31 = vpop.f32.mrb[98].mxu1  ;;  %v2758_v32 = vsel %vm2614_vm0, %v2370_v13, %v2686_v49  ;;  %v8502_v15 = vmax.f32 %v6117_v61, %v8501_v40  ;;  %v3723_v7 = vmax.f32 %v2753_v53, %v3651_v42  ;;  %vm3512_vm1 = vcmp.gt.f32.partialorder %v3268_v19, 0.0  ;;  %v8509_v53 = vld [vmem:[#allocation7_spill] sm:$0xff] }
 0x1a0   :  { %v7250_v50 = vpop.f32.mrb[99].mxu0  ;;  %v7252_v35 = vpop.f32.mrb[99].mxu1  ;;  %4155 = vst.msk [vmem:[%s8242_s4 + $0x20] sm:$0xf] %vm4146_vm2, %v4810_v8  ;;  %v3584_v1 = vmul.f32 %v3268_v19, %v5960_v54  ;;  %vm2612_vm3 = vcmp.gt.f32.partialorder %v2362_v43, 0.0  ;;  %v2684_v27 = vmul.f32 %v2362_v43, %v5960_v54  ;;  %vm3510_vm4 = vcmp.gt.f32.partialorder %v3260_v30, 0.0 }
 0x1a1   :  { %v3797_v0 = vmax.f32 %v8502_v15, %v3725_v18  ;;  %v3582_v4 = vmul.f32 %v3260_v30, %v5960_v54  ;;  %v8505_v51 = vmax.f32 %v8503_v37, %v8504_v48  ;;  %v2373_v61 = vadd.f32 %v7258_v10, %v8506_v29  ;;  %v8508_v18 = vld [vmem:[#allocation6_spill] sm:$0xff]  ;;  %v8511_v15 = vld [vmem:[#allocation8_spill] sm:$0xff] }
 0x1a2   :  { %v3656_v24 = vsel %vm3512_vm1, %v3268_v19, %v3584_v1  ;;  %v2756_v46 = vsel %vm2612_vm3, %v2362_v43, %v2684_v27  ;;  %v3271_v55 = vadd.f32 %v7258_v10, %v8507_v36  ;;  %v8510_v19 = vmax.f32 %v8508_v18, %v8509_v53 }
 0x1a3   :  { %v4813_v52 = vpack.c.bf16 %v3797_v0, %v3797_v0  ;;  %v3795_v33 = vmax.f32 %v8505_v51, %v3723_v7  ;;  %v3728_v16 = vmax.f32 %v2758_v32, %v3656_v24  ;;  %v3654_v62 = vsel %vm3510_vm4, %v3260_v30, %v3582_v4  ;;  %v8512_v0 = vld [vmem:[#allocation9_spill] sm:$0xff] }
 0x1a4   :  { %v3726_v22 = vmax.f32 %v2756_v46, %v3654_v62  ;;  %vm2615_vm5 = vcmp.gt.f32.partialorder %v2373_v61, 0.0  ;;  %v2687_v20 = vmul.f32 %v2373_v61, %v5960_v54  ;;  %vm3513_vm6 = vcmp.gt.f32.partialorder %v3271_v55, 0.0 }
 0x1a5   :  { %v7281_v13 = vpop.f32.mrb[100].mxu0  ;;  %v7283_v45 = vpop.f32.mrb[100].mxu1  ;;  %4158 = vst.msk [vmem:[%s8242_s4 + $0x2c] sm:$0xf] %vm4146_vm2, %v4813_v52  ;;  %v4811_v63 = vpack.c.bf16 %v3795_v33, %v3795_v33  ;;  %v3800_v42 = vmax.f32 %v8510_v19, %v3728_v16  ;;  %v3585_v32 = vmul.f32 %v3271_v55, %v5960_v54  ;;  %v2365_v43 = vadd.f32 %v7258_v10, %v7085_v28  ;;  %v8515_v16 = vld [vmem:[#allocation11_spill] sm:$0xff] }
 0x1a6   :  { %v7287_v60 = vpop.f32.mrb[101].mxu0  ;;  %v7289_v58 = vpop.f32.mrb[101].mxu1  ;;  %v8513_v7 = vmax.f32 %v8511_v15, %v8512_v0  ;;  %v2759_v27 = vsel %vm2615_vm5, %v2373_v61, %v2687_v20  ;;  %v3263_v4 = vadd.f32 %v7258_v10, %v7087_v3  ;;  %v2386_v28 = vadd.f32 %v7258_v10, %v7113_v17  ;;  %v8514_v61 = vld [vmem:[#allocation10_spill] sm:$0xff]  ;;  %v8517_v15 = vld [vmem:[#allocation12_spill] sm:$0xff]  ;;  %v8518_v0 = vld [vmem:[#allocation13_spill] sm:$0xff] }
 0x1a7   :  { %v7296_v49 = vpop.f32.mrb[102].mxu0  ;;  %v7298_v8 = vpop.f32.mrb[102].mxu1  ;;  %4156 = vst.msk [vmem:[%s8242_s4 + $0x24] sm:$0xf] %vm4146_vm2, %v4811_v63  ;;  %v4816_v52 = vpack.c.bf16 %v3800_v42, %v3800_v42  ;;  %v3657_v37 = vsel %vm3513_vm6, %v3271_v55, %v3585_v32  ;;  %vm2613_vm7 = vcmp.gt.f32.partialorder %v2365_v43, 0.0  ;;  %v2685_v48 = vmul.f32 %v2365_v43, %v5960_v54 }
 0x1a8   :  { %v7306_v30 = vpop.f32.mrb[103].mxu0  ;;  %v7308_v40 = vpop.f32.mrb[103].mxu1  ;;  %v3798_v1 = vmax.f32 %v8513_v7, %v3726_v22  ;;  %v3729_v33 = vmax.f32 %v2759_v27, %v3657_v37  ;;  %vm3511_vm8 = vcmp.gt.f32.partialorder %v3263_v4, 0.0  ;;  %v3583_v24 = vmul.f32 %v3263_v4, %v5960_v54 }
 0x1a9   :  { %4161 = vst.msk [vmem:[%s8242_s4 + $0x38] sm:$0xf] %vm4146_vm2, %v4816_v52  ;;  %v2757_v29 = vsel %vm2613_vm7, %v2365_v43, %v2685_v48  ;;  %vm2618_vm9 = vcmp.gt.f32.partialorder %v2386_v28, 0.0  ;;  %v2690_v3 = vmul.f32 %v2386_v28, %v5960_v54  ;;  %v3284_v17 = vadd.f32 %v7258_v10, %v7115_v5 }
 0x1aa   :  { %v4814_v51 = vpack.c.bf16 %v3798_v1, %v3798_v1  ;;  %v8516_v46 = vmax.f32 %v8514_v61, %v8515_v16  ;;  %v3655_v36 = vsel %vm3511_vm8, %v3263_v4, %v3583_v24  ;;  %v2378_v55 = vadd.f32 %v7258_v10, %v7121_v34  ;;  %v8521_v61 = vld [vmem:[#allocation15_spill] sm:$0xff] }
 0x1ab   :  { %v3276_v63 = vadd.f32 %v7258_v10, %v7123_v56  ;;  %v3727_v5 = vmax.f32 %v2757_v29, %v3655_v36  ;;  %v2762_v18 = vsel %vm2618_vm9, %v2386_v28, %v2690_v3  ;;  %vm3516_vm10 = vcmp.gt.f32.partialorder %v3284_v17, 0.0 }
 0x1ac   :  { %4159 = vst.msk [vmem:[%s8242_s4 + $0x30] sm:$0xf] %vm4146_vm2, %v4814_v51  ;;  %v3801_v62 = vmax.f32 %v8516_v46, %v3729_v33  ;;  %v3588_v53 = vmul.f32 %v3284_v17, %v5960_v54  ;;  %vm2616_vm11 = vcmp.gt.f32.partialorder %v2378_v55, 0.0  ;;  %v2688_v34 = vmul.f32 %v2378_v55, %v5960_v54 }
 0x1ad   :  { %v7341_v22 = vpop.f32.mrb[104].mxu0  ;;  %v7343_v20 = vpop.f32.mrb[104].mxu1  ;;  %vm3514_vm12 = vcmp.gt.f32.partialorder %v3276_v63, 0.0  ;;  %v8519_v7 = vmax.f32 %v8517_v15, %v8518_v0  ;;  %v3586_v4 = vmul.f32 %v3276_v63, %v5960_v54  ;;  %v2389_v28 = vadd.f32 %v7258_v10, %v7127_v57 }
 0x1ae   :  { %v7346_v19 = vpop.f32.mrb[105].mxu0  ;;  %v7348_v42 = vpop.f32.mrb[105].mxu1  ;;  %v4817_v32 = vpack.c.bf16 %v3801_v62, %v3801_v62  ;;  %v3660_v27 = vsel %vm3516_vm10, %v3284_v17, %v3588_v53  ;;  %v2760_v51 = vsel %vm2616_vm11, %v2378_v55, %v2688_v34  ;;  %v3287_v33 = vadd.f32 %v7258_v10, %v7129_v23  ;;  %v8520_v17 = vld [vmem:[#allocation14_spill] sm:$0xff] }
 0x1af   :  { %v7351_v43 = vpop.f32.mrb[106].mxu0  ;;  %v7353_v56 = vpop.f32.mrb[106].mxu1  ;;  %v3799_v1 = vmax.f32 %v8519_v7, %v3727_v5  ;;  %v3732_v48 = vmax.f32 %v2762_v18, %v3660_v27  ;;  %v2381_v24 = vadd.f32 %v7258_v10, %v7141_v11  ;;  %v3658_v3 = vsel %vm3514_vm12, %v3276_v63, %v3586_v4  ;;  %v8523_v5 = vld [vmem:[#allocation16_spill] sm:$0xff]  ;;  %v8524_v18 = vld [vmem:[#allocation17_spill] sm:$0xff] }
 0x1b0   :  { %v7361_v52 = vpop.f32.mrb[107].mxu0  ;;  %v7363_v37 = vpop.f32.mrb[107].mxu1  ;;  %4162 = vst.msk [vmem:[%s8242_s4 + $0x3c] sm:$0xf] %vm4146_vm2, %v4817_v32  ;;  %vm2619_vm13 = vcmp.gt.f32.partialorder %v2389_v28, 0.0  ;;  %v2691_v57 = vmul.f32 %v2389_v28, %v5960_v54  ;;  %v8522_v16 = vmax.f32 %v8520_v17, %v8521_v61  ;;  %v3730_v62 = vmax.f32 %v2760_v51, %v3658_v3 }
 0x1b1   :  { %v4815_v29 = vpack.c.bf16 %v3799_v1, %v3799_v1  ;;  %vm3517_vm14 = vcmp.gt.f32.partialorder %v3287_v33, 0.0  ;;  %v3589_v36 = vmul.f32 %v3287_v33, %v5960_v54  ;;  %vm2617_vm15 = vcmp.gt.f32.partialorder %v2381_v24, 0.0 }
 0x1b2   :  { %v3804_v46 = vmax.f32 %v8522_v16, %v3732_v48  ;;  %v2763_v23 = vsel %vm2619_vm13, %v2389_v28, %v2691_v57  ;;  %v2689_v11 = vmul.f32 %v2381_v24, %v5960_v54  ;;  %v3279_v55 = vadd.f32 %v7258_v10, %v7143_v44 }
 0x1b3   :  { %4160 = vst.msk [vmem:[%s8242_s4 + $0x34] sm:$0xf] %vm4146_vm2, %v4815_v29  ;;  %v8525_v53 = vmax.f32 %v8523_v5, %v8524_v18  ;;  %v3661_v34 = vsel %vm3517_vm14, %v3287_v33, %v3589_v36  ;;  %v2402_v15 = vadd.f32 %v7258_v10, %v7174_v39  ;;  %v3300_v48 = vadd.f32 %v7258_v10, %v7176_v25  ;;  %v8527_v29 = vld [vmem:[#allocation19_spill] sm:$0xff] }
 0x1b4   :  { %v4820_v63 = vpack.c.bf16 %v3804_v46, %v3804_v46  ;;  %v3733_v7 = vmax.f32 %v2763_v23, %v3661_v34  ;;  %v2761_v1 = vsel %vm2617_vm15, %v2381_v24, %v2689_v11  ;;  %vm3515_vm0 = vcmp.gt.f32.partialorder %v3279_v55, 0.0  ;;  %v8526_v24 = vld [vmem:[#allocation18_spill] sm:$0xff] }
 0x1b5   :  { %v3802_v32 = vmax.f32 %v8525_v53, %v3730_v62  ;;  %v7390_v0 = vpop.f32.mrb[108].mxu0  ;;  %v3587_v27 = vmul.f32 %v3279_v55, %v5960_v54  ;;  %vm2622_vm1 = vcmp.gt.f32.partialorder %v2402_v15, 0.0  ;;  %v2694_v39 = vmul.f32 %v2402_v15, %v5960_v54 }
 0x1b6   :  { %v7393_v4 = vpop.f32.mrb[108].mxu1  ;;  %v7395_v28 = vpop.f32.mrb[109].mxu0  ;;  %4165 = vst.msk [vmem:[%s8242_s4 + $0x48] sm:$0xf] %vm4146_vm2, %v4820_v63  ;;  %v8528_v3 = vmax.f32 %v8526_v24, %v8527_v29  ;;  %v2394_v61 = vadd.f32 %v7258_v10, %v7179_v6  ;;  %v3292_v16 = vadd.f32 %v7258_v10, %v7181_v59  ;;  %vm3520_vm3 = vcmp.gt.f32.partialorder %v3300_v48, 0.0  ;;  %v8530_v63 = vld [vmem:[#allocation21_spill] sm:$0xff] }
 0x1b7   :  { %v4818_v44 = vpack.c.bf16 %v3802_v32, %v3802_v32  ;;  %v7404_v51 = vpop.f32.mrb[109].mxu1  ;;  %v7406_v33 = vpop.f32.mrb[110].mxu0  ;;  %v3659_v17 = vsel %vm3515_vm0, %v3279_v55, %v3587_v27  ;;  %v2766_v36 = vsel %vm2622_vm1, %v2402_v15, %v2694_v39  ;;  %v3592_v23 = vmul.f32 %v3300_v48, %v5960_v54  ;;  %v8529_v55 = vld [vmem:[#allocation20_spill] sm:$0xff]  ;;  %v8533_v29 = vld [vmem:[#allocation23_spill] sm:$0xff] }
 0x1b8   :  { %v3805_v57 = vmax.f32 %v8528_v3, %v3733_v7  ;;  %v7415_v46 = vpop.f32.mrb[110].mxu1  ;;  %v7417_v62 = vpop.f32.mrb[111].mxu0  ;;  %v3731_v25 = vmax.f32 %v2761_v1, %v3659_v17  ;;  %vm2620_vm4 = vcmp.gt.f32.partialorder %v2394_v61, 0.0  ;;  %v2692_v59 = vmul.f32 %v2394_v61, %v5960_v54 }
 0x1b9   :  { %4163 = vst.msk [vmem:[%s8242_s4 + $0x40] sm:$0xf] %vm4146_vm2, %v4818_v44  ;;  %v7424_v11 = vpop.f32.mrb[111].mxu1  ;;  %vm3518_vm5 = vcmp.gt.f32.partialorder %v3292_v16, 0.0  ;;  %v8531_v5 = vmax.f32 %v8529_v55, %v8530_v63  ;;  %v3664_v53 = vsel %vm3520_vm3, %v3300_v48, %v3592_v23  ;;  %v3590_v32 = vmul.f32 %v3292_v16, %v5960_v54  ;;  %v8535_v55 = vld [vmem:[#allocation24_spill] sm:$0xff]  ;;  %v8536_v63 = vld [vmem:[#allocation25_spill] sm:$0xff] }
 0x1ba   :  { %v4821_v6 = vpack.c.bf16 %v3805_v57, %v3805_v57  ;;  %v2405_v34 = vadd.f32 %v7258_v10, %v7185_v2  ;;  %v3736_v15 = vmax.f32 %v2766_v36, %v3664_v53  ;;  %v2764_v7 = vsel %vm2620_vm4, %v2394_v61, %v2692_v59  ;;  %v8532_v2 = vld [vmem:[#allocation22_spill] sm:$0xff] }
 0x1bb   :  { %v3803_v18 = vmax.f32 %v8531_v5, %v3731_v25  ;;  %v3303_v1 = vadd.f32 %v7258_v10, %v7187_v21  ;;  %v2397_v27 = vadd.f32 %v7258_v10, %v7197_v14  ;;  %v3662_v39 = vsel %vm3518_vm5, %v3292_v16, %v3590_v32 }
 0x1bc   :  { %4166 = vst.msk [vmem:[%s8242_s4 + $0x4c] sm:$0xf] %vm4146_vm2, %v4821_v6  ;;  %vm2623_vm6 = vcmp.gt.f32.partialorder %v2405_v34, 0.0  ;;  %v2695_v48 = vmul.f32 %v2405_v34, %v5960_v54  ;;  %v8534_v3 = vmax.f32 %v8532_v2, %v8533_v29  ;;  %v3734_v17 = vmax.f32 %v2764_v7, %v3662_v39  ;;  %v8538_v2 = vld [vmem:[#allocation26_spill] sm:$0xff]  ;;  %v8539_v29 = vld [vmem:[#allocation27_spill] sm:$0xff] }
 0x1bd   :  { %v4819_v44 = vpack.c.bf16 %v3803_v18, %v3803_v18  ;;  %v7442_v24 = vpop.f32.mrb[112].mxu0  ;;  %vm3521_vm7 = vcmp.gt.f32.partialorder %v3303_v1, 0.0  ;;  %v3593_v61 = vmul.f32 %v3303_v1, %v5960_v54  ;;  %vm2621_vm8 = vcmp.gt.f32.partialorder %v2397_v27, 0.0 }
 0x1be   :  { %v3808_v57 = vmax.f32 %v8534_v3, %v3736_v15  ;;  %v7448_v25 = vpop.f32.mrb[112].mxu1  ;;  %v7450_v21 = vpop.f32.mrb[113].mxu0  ;;  %v2767_v14 = vsel %vm2623_vm6, %v2405_v34, %v2695_v48  ;;  %v2693_v16 = vmul.f32 %v2397_v27, %v5960_v54  ;;  %v3295_v36 = vadd.f32 %v7258_v10, %v7199_v38 }
 0x1bf   :  { %4164 = vst.msk [vmem:[%s8242_s4 + $0x44] sm:$0xf] %vm4146_vm2, %v4819_v44  ;;  %v7459_v23 = vpop.f32.mrb[113].mxu1  ;;  %v7461_v6 = vpop.f32.mrb[114].mxu0  ;;  %v8537_v5 = vmax.f32 %v8535_v55, %v8536_v63  ;;  %v3665_v53 = vsel %vm3521_vm7, %v3303_v1, %v3593_v61  ;;  %v2418_v32 = vadd.f32 %v7258_v10, %v7223_v9  ;;  %v3316_v48 = vadd.f32 %v7258_v10, %v7225_v12  ;;  %v8542_v63 = vld [vmem:[#allocation29_spill] sm:$0xff] }
 0x1c0   :  { %v4824_v59 = vpack.c.bf16 %v3808_v57, %v3808_v57  ;;  %v7468_v34 = vpop.f32.mrb[114].mxu1  ;;  %v7470_v15 = vpop.f32.mrb[115].mxu0  ;;  %v3737_v7 = vmax.f32 %v2767_v14, %v3665_v53  ;;  %v2765_v44 = vsel %vm2621_vm8, %v2397_v27, %v2693_v16  ;;  %vm3519_vm9 = vcmp.gt.f32.partialorder %v3295_v36, 0.0 }
 0x1c1   :  { %v3806_v18 = vmax.f32 %v8537_v5, %v3734_v17  ;;  %v3591_v38 = vmul.f32 %v3295_v36, %v5960_v54  ;;  %v7473_v39 = vpop.f32.mrb[115].mxu1  ;;  %vm2626_vm10 = vcmp.gt.f32.partialorder %v2418_v32, 0.0  ;;  %v2698_v9 = vmul.f32 %v2418_v32, %v5960_v54 }
 0x1c2   :  { %4169 = vst.msk [vmem:[%s8242_s4 + $0x58] sm:$0xf] %vm4146_vm2, %v4824_v59  ;;  %v8540_v27 = vmax.f32 %v8538_v2, %v8539_v29  ;;  %v2410_v17 = vadd.f32 %v7258_v10, %v7228_v41  ;;  %v3308_v61 = vadd.f32 %v7258_v10, %v7230_v26  ;;  %vm3524_vm11 = vcmp.gt.f32.partialorder %v3316_v48, 0.0  ;;  %v8541_v41 = vld [vmem:[#allocation28_spill] sm:$0xff] }
 0x1c3   :  { %v4822_v1 = vpack.c.bf16 %v3806_v18, %v3806_v18  ;;  %v3663_v57 = vsel %vm3519_vm9, %v3295_v36, %v3591_v38  ;;  %v2770_v16 = vsel %vm2626_vm10, %v2418_v32, %v2698_v9  ;;  %v3596_v12 = vmul.f32 %v3316_v48, %v5960_v54 }
 0x1c4   :  { %v3809_v3 = vmax.f32 %v8540_v27, %v3737_v7  ;;  %v3735_v14 = vmax.f32 %v2765_v44, %v3663_v57  ;;  %vm2624_vm12 = vcmp.gt.f32.partialorder %v2410_v17, 0.0  ;;  %v2696_v36 = vmul.f32 %v2410_v17, %v5960_v54 }
 0x1c5   :  { %4167 = vst.msk [vmem:[%s8242_s4 + $0x50] sm:$0xf] %vm4146_vm2, %v4822_v1  ;;  %vm3522_vm13 = vcmp.gt.f32.partialorder %v3308_v61, 0.0  ;;  %v7495_v55 = vpop.f32.mrb[116].mxu0  ;;  %v8543_v26 = vmax.f32 %v8541_v41, %v8542_v63  ;;  %v3668_v18 = vsel %vm3524_vm11, %v3316_v48, %v3596_v12  ;;  %v3594_v53 = vmul.f32 %v3308_v61, %v5960_v54 }
 0x1c6   :  { %v4825_v59 = vpack.c.bf16 %v3809_v3, %v3809_v3  ;;  %v2421_v32 = vadd.f32 %v7258_v10, %v7240_v47  ;;  %v7503_v7 = vpop.f32.mrb[116].mxu1  ;;  %v7505_v44 = vpop.f32.mrb[117].mxu0  ;;  %v3740_v38 = vmax.f32 %v2770_v16, %v3668_v18  ;;  %v2768_v1 = vsel %vm2624_vm12, %v2410_v17, %v2696_v36  ;;  %v8544_v17 = vld [vmem:[#allocation30_spill] sm:$0xff]  ;;  %v8545_v16 = vld [vmem:[#allocation31_spill] sm:$0xff]  ;;  %v8548_v18 = vld [vmem:[#allocation33_spill] sm:$0xff] }
 0x1c7   :  { %v3807_v5 = vmax.f32 %v8543_v26, %v3735_v14  ;;  %v3319_v9 = vadd.f32 %v7258_v10, %v7242_v31  ;;  %v2413_v48 = vadd.f32 %v7258_v10, %v7250_v50  ;;  %v7515_v2 = vpop.f32.mrb[117].mxu1  ;;  %v7517_v47 = vpop.f32.mrb[118].mxu0  ;;  %v3666_v27 = vsel %vm3522_vm13, %v3308_v61, %v3594_v53 }
 0x1c8   :  { %4170 = vst.msk [vmem:[%s8242_s4 + $0x5c] sm:$0xf] %vm4146_vm2, %v4825_v59  ;;  %vm2627_vm14 = vcmp.gt.f32.partialorder %v2421_v32, 0.0  ;;  %v2699_v3 = vmul.f32 %v2421_v32, %v5960_v54  ;;  %v7521_v57 = vpop.f32.mrb[118].mxu1  ;;  %v7523_v14 = vpop.f32.mrb[119].mxu0  ;;  %v8546_v31 = vmax.f32 %v8544_v17, %v8545_v16  ;;  %v3738_v59 = vmax.f32 %v2768_v1, %v3666_v27 }
 0x1c9   :  { %v4823_v29 = vpack.c.bf16 %v3807_v5, %v3807_v5  ;;  %vm3525_vm15 = vcmp.gt.f32.partialorder %v3319_v9, 0.0  ;;  %v3597_v50 = vmul.f32 %v3319_v9, %v5960_v54  ;;  %v7529_v36 = vpop.f32.mrb[119].mxu1  ;;  %vm2625_vm0 = vcmp.gt.f32.partialorder %v2413_v48, 0.0  ;;  %v8547_v5 = vld [vmem:[#allocation32_spill] sm:$0xff] }
 0x1ca   :  { %v3812_v12 = vmax.f32 %v8546_v31, %v3740_v38  ;;  %v2771_v61 = vsel %vm2627_vm14, %v2421_v32, %v2699_v3  ;;  %v2697_v41 = vmul.f32 %v2413_v48, %v5960_v54  ;;  %v3311_v63 = vadd.f32 %v7258_v10, %v7252_v35  ;;  %v8551_v31 = vld [vmem:[#allocation35_spill] sm:$0xff] }
 0x1cb   :  { %4168 = vst.msk [vmem:[%s8242_s4 + $0x54] sm:$0xf] %vm4146_vm2, %v4823_v29  ;;  %v8549_v53 = vmax.f32 %v8547_v5, %v8548_v18  ;;  %v3669_v1 = vsel %vm3525_vm15, %v3319_v9, %v3597_v50  ;;  %v2434_v27 = vadd.f32 %v7258_v10, %v7281_v13  ;;  %v3332_v9 = vadd.f32 %v7258_v10, %v7283_v45  ;;  %v8550_v13 = vld [vmem:[#allocation34_spill] sm:$0xff] }
 0x1cc   :  { %v4828_v26 = vpack.c.bf16 %v3812_v12, %v3812_v12  ;;  %v3741_v17 = vmax.f32 %v2771_v61, %v3669_v1  ;;  %v2769_v16 = vsel %vm2625_vm0, %v2413_v48, %v2697_v41  ;;  %vm3523_vm1 = vcmp.gt.f32.partialorder %v3311_v63, 0.0 }
 0x1cd   :  { %v3810_v38 = vmax.f32 %v8549_v53, %v3738_v59  ;;  %v3595_v32 = vmul.f32 %v3311_v63, %v5960_v54  ;;  %vm2630_vm3 = vcmp.gt.f32.partialorder %v2434_v27, 0.0  ;;  %v2702_v29 = vmul.f32 %v2434_v27, %v5960_v54  ;;  %v7551_v3 = vpop.f32.mrb[120].mxu0 }
 0x1ce   :  { %4173 = vst.msk [vmem:[%s8242_s4 + $0x68] sm:$0xf] %vm4146_vm2, %v4828_v26  ;;  %v8552_v48 = vmax.f32 %v8550_v13, %v8551_v31  ;;  %v2426_v50 = vadd.f32 %v7258_v10, %v7287_v60  ;;  %v3324_v61 = vadd.f32 %v7258_v10, %v7289_v58  ;;  %v7560_v41 = vpop.f32.mrb[120].mxu1  ;;  %v7562_v26 = vpop.f32.mrb[121].mxu0  ;;  %vm3528_vm4 = vcmp.gt.f32.partialorder %v3332_v9, 0.0 }
 0x1cf   :  { %v4826_v35 = vpack.c.bf16 %v3810_v38, %v3810_v38  ;;  %v3667_v59 = vsel %vm3523_vm1, %v3311_v63, %v3595_v32  ;;  %v2774_v5 = vsel %vm2630_vm3, %v2434_v27, %v2702_v29  ;;  %v3600_v63 = vmul.f32 %v3332_v9, %v5960_v54  ;;  %v7569_v18 = vpop.f32.mrb[121].mxu1  ;;  %v7571_v60 = vpop.f32.mrb[122].mxu0  ;;  %v8555_v32 = vld [vmem:[#allocation37_spill] sm:$0xff] }
 0x1d0   :  { %v3813_v12 = vmax.f32 %v8552_v48, %v3741_v17  ;;  %v3739_v45 = vmax.f32 %v2769_v16, %v3667_v59  ;;  %vm2628_vm5 = vcmp.gt.f32.partialorder %v2426_v50, 0.0  ;;  %v2700_v58 = vmul.f32 %v2426_v50, %v5960_v54  ;;  %v7574_v38 = vpop.f32.mrb[122].mxu1  ;;  %v7576_v1 = vpop.f32.mrb[123].mxu0  ;;  %v8554_v17 = vld [vmem:[#allocation36_spill] sm:$0xff] }
 0x1d1   :  { %4171 = vst.msk [vmem:[%s8242_s4 + $0x60] sm:$0xf] %vm4146_vm2, %v4826_v35  ;;  %vm3526_vm6 = vcmp.gt.f32.partialorder %v3324_v61, 0.0  ;;  %8553 = vst [vmem:[#allocation3_spill] sm:$0xff] %v7576_v1  ;;  %v8556_v16 = vmax.f32 %v8554_v17, %v8555_v32  ;;  %v3672_v35 = vsel %vm3528_vm4, %v3332_v9, %v3600_v63  ;;  %v3598_v29 = vmul.f32 %v3324_v61, %v5960_v54  ;;  %v7584_v31 = vpop.f32.mrb[123].mxu1  ;;  %v8558_v17 = vld [vmem:[#allocation38_spill] sm:$0xff] }
 0x1d2   :  { %v4829_v53 = vpack.c.bf16 %v3813_v12, %v3813_v12  ;;  %v2437_v13 = vadd.f32 %v7258_v10, %v7296_v49  ;;  %8557 = vst [vmem:[#allocation4_spill] sm:$0xff] %v7584_v31  ;;  %v3744_v48 = vmax.f32 %v2774_v5, %v3672_v35  ;;  %v2772_v12 = vsel %vm2628_vm5, %v2426_v50, %v2700_v58  ;;  %v8559_v32 = vld [vmem:[#allocation39_spill] sm:$0xff]  ;;  %v8561_v58 = vld [vmem:[#allocation40_spill] sm:$0xff] }
 0x1d3   :  { %v3811_v27 = vmax.f32 %v8556_v16, %v3739_v45  ;;  %v3335_v59 = vadd.f32 %v7258_v10, %v7298_v8  ;;  %v2429_v9 = vadd.f32 %v7258_v10, %v7306_v30  ;;  %v3670_v63 = vsel %vm3526_vm6, %v3324_v61, %v3598_v29 }
 0x1d4   :  { %4174 = vst.msk [vmem:[%s8242_s4 + $0x6c] sm:$0xf] %vm4146_vm2, %v4829_v53  ;;  %vm2631_vm7 = vcmp.gt.f32.partialorder %v2437_v13, 0.0  ;;  %v2703_v49 = vmul.f32 %v2437_v13, %v5960_v54  ;;  %v8560_v16 = vmax.f32 %v8558_v17, %v8559_v32  ;;  %v3742_v1 = vmax.f32 %v2772_v12, %v3670_v63 }
 0x1d5   :  { %v4827_v45 = vpack.c.bf16 %v3811_v27, %v3811_v27  ;;  %vm3529_vm8 = vcmp.gt.f32.partialorder %v3335_v59, 0.0  ;;  %v3601_v5 = vmul.f32 %v3335_v59, %v5960_v54  ;;  %vm2629_vm9 = vcmp.gt.f32.partialorder %v2429_v9, 0.0  ;;  %v7606_v61 = vpop.f32.mrb[124].mxu0  ;;  %v8562_v27 = vld [vmem:[#allocation41_spill] sm:$0xff] }
 0x1d6   :  { %v3816_v31 = vmax.f32 %v8560_v16, %v3744_v48  ;;  %v2775_v8 = vsel %vm2631_vm7, %v2437_v13, %v2703_v49  ;;  %v2701_v30 = vmul.f32 %v2429_v9, %v5960_v54  ;;  %v3327_v50 = vadd.f32 %v7258_v10, %v7308_v40  ;;  %v7613_v63 = vpop.f32.mrb[124].mxu1  ;;  %v7615_v13 = vpop.f32.mrb[125].mxu0  ;;  %v8564_v16 = vld [vmem:[#allocation42_spill] sm:$0xff] }
 0x1d7   :  { %4172 = vst.msk [vmem:[%s8242_s4 + $0x64] sm:$0xf] %vm4146_vm2, %v4827_v45  ;;  %v8563_v35 = vmax.f32 %v8561_v58, %v8562_v27  ;;  %v3673_v48 = vsel %vm3529_vm8, %v3335_v59, %v3601_v5  ;;  %v2450_v12 = vadd.f32 %v7258_v10, %v7341_v22  ;;  %v7618_v17 = vpop.f32.mrb[125].mxu1  ;;  %v3348_v59 = vadd.f32 %v7258_v10, %v7343_v20  ;;  %v8565_v5 = vld [vmem:[#allocation43_spill] sm:$0xff] }
 0x1d8   :  { %v4832_v53 = vpack.c.bf16 %v3816_v31, %v3816_v31  ;;  %v3745_v45 = vmax.f32 %v2775_v8, %v3673_v48  ;;  %v2773_v49 = vsel %vm2629_vm9, %v2429_v9, %v2701_v30  ;;  %vm3527_vm10 = vcmp.gt.f32.partialorder %v3327_v50, 0.0  ;;  %v7620_v31 = vpop.f32.mrb[126].mxu0  ;;  %v7629_v9 = vpop.f32.mrb[126].mxu1 }
 0x1d9   :  { %v3814_v29 = vmax.f32 %v8563_v35, %v3742_v1  ;;  %v3599_v40 = vmul.f32 %v3327_v50, %v5960_v54  ;;  %vm2634_vm11 = vcmp.gt.f32.partialorder %v2450_v12, 0.0  ;;  %v2706_v22 = vmul.f32 %v2450_v12, %v5960_v54  ;;  %v7631_v32 = vpop.f32.mrb[127].mxu0  ;;  %v7640_v35 = vpop.f32.mrb[127].mxu1 }
 0x1da   :  { %4177 = vst.msk [vmem:[%s8242_s4 + $0x78] sm:$0xf] %vm4146_vm2, %v4832_v53  ;;  %v8566_v8 = vmax.f32 %v8564_v16, %v8565_v5  ;;  %v2442_v27 = vadd.f32 %v7258_v10, %v7346_v19  ;;  %v3340_v53 = vadd.f32 %v7258_v10, %v7348_v42  ;;  %vm3532_vm12 = vcmp.gt.f32.partialorder %v3348_v59, 0.0  ;;  %v8567_v19 = vld [vmem:[#allocation44_spill] sm:$0xff] }
 0x1db   :  { %v4830_v1 = vpack.c.bf16 %v3814_v29, %v3814_v29  ;;  %v3671_v58 = vsel %vm3527_vm10, %v3327_v50, %v3599_v40  ;;  %v2778_v29 = vsel %vm2634_vm11, %v2450_v12, %v2706_v22  ;;  %v3604_v48 = vmul.f32 %v3348_v59, %v5960_v54  ;;  %v8568_v40 = vld [vmem:[#allocation45_spill] sm:$0xff] }
 0x1dc   :  { %v3817_v30 = vmax.f32 %v8566_v8, %v3745_v45  ;;  %v3743_v20 = vmax.f32 %v2773_v49, %v3671_v58  ;;  %vm2632_vm13 = vcmp.gt.f32.partialorder %v2442_v27, 0.0  ;;  %v2704_v50 = vmul.f32 %v2442_v27, %v5960_v54 }
 0x1dd   :  { %4175 = vst.msk [vmem:[%s8242_s4 + $0x70] sm:$0xf] %vm4146_vm2, %v4830_v1  ;;  %vm3530_vm14 = vcmp.gt.f32.partialorder %v3340_v53, 0.0  ;;  %v8569_v42 = vmax.f32 %v8567_v19, %v8568_v40  ;;  %v3676_v5 = vsel %vm3532_vm12, %v3348_v59, %v3604_v48  ;;  %v3602_v8 = vmul.f32 %v3340_v53, %v5960_v54  ;;  %v7662_v58 = vpop.f32.mrb[128].mxu0 }
 0x1de   :  { %v4833_v45 = vpack.c.bf16 %v3817_v30, %v3817_v30  ;;  %v2453_v1 = vadd.f32 %v7258_v10, %v7351_v43  ;;  %v3748_v12 = vmax.f32 %v2778_v29, %v3676_v5  ;;  %v2776_v49 = vsel %vm2632_vm13, %v2442_v27, %v2704_v50  ;;  %v7665_v48 = vpop.f32.mrb[128].mxu1  ;;  %v7667_v19 = vpop.f32.mrb[129].mxu0  ;;  %v8571_v29 = vld [vmem:[#allocation47_spill] sm:$0xff] }
 0x1df   :  { %v3815_v16 = vmax.f32 %v8569_v42, %v3743_v20  ;;  %v3351_v22 = vadd.f32 %v7258_v10, %v7353_v56  ;;  %v2445_v30 = vadd.f32 %v7258_v10, %v7361_v52  ;;  %v3674_v20 = vsel %vm3530_vm14, %v3340_v53, %v3602_v8  ;;  %v7673_v52 = vpop.f32.mrb[129].mxu1  ;;  %v7675_v42 = vpop.f32.mrb[130].mxu0 }
 0x1e0   :  { %4178 = vst.msk [vmem:[%s8242_s4 + $0x7c] sm:$0xf] %vm4146_vm2, %v4833_v45  ;;  %vm2635_vm15 = vcmp.gt.f32.partialorder %v2453_v1, 0.0  ;;  %v2707_v43 = vmul.f32 %v2453_v1, %v5960_v54  ;;  %v8570_v45 = vld [vmem:[#allocation46_spill] sm:$0xff]  ;;  %v3746_v40 = vmax.f32 %v2776_v49, %v3674_v20  ;;  %8573 = vst [vmem:[#allocation5_spill] sm:$0xff] %v7673_v52  ;;  %v3343_v5 = vadd.f32 %v7258_v10, %v7363_v37  ;;  %v7684_v8 = vpop.f32.mrb[130].mxu1 }
 0x1e1   :  { %v4831_v59 = vpack.c.bf16 %v3815_v16, %v3815_v16  ;;  %v8572_v27 = vmax.f32 %v8570_v45, %v8571_v29  ;;  %vm3533_vm0 = vcmp.gt.f32.partialorder %v3351_v22, 0.0  ;;  %v3605_v56 = vmul.f32 %v3351_v22, %v5960_v54  ;;  %8574 = vst [vmem:[#allocation126_spill] sm:$0xff] %v7675_v42  ;;  %v8575_v20 = vld [vmem:[#allocation48_spill] sm:$0xff]  ;;  %v8576_v45 = vld [vmem:[#allocation49_spill] sm:$0xff] }
 0x1e2   :  { %v2779_v53 = vsel %vm2635_vm15, %v2453_v1, %v2707_v43  ;;  %vm2633_vm1 = vcmp.gt.f32.partialorder %v2445_v30, 0.0  ;;  %v2705_v16 = vmul.f32 %v2445_v30, %v5960_v54  ;;  %v8577_v29 = vmax.f32 %v8575_v20, %v8576_v45  ;;  %v7693_v1 = vpop.f32.mrb[131].mxu1 }
 0x1e3   :  { %v3820_v50 = vmax.f32 %v8572_v27, %v3748_v12  ;;  %4176 = vst.msk [vmem:[%s8242_s4 + $0x74] sm:$0xf] %vm4146_vm2, %v4831_v59  ;;  %v7686_v12 = vpop.f32.mrb[131].mxu0  ;;  %v3677_v42 = vsel %vm3533_vm0, %v3351_v22, %v3605_v56  ;;  %v2466_v59 = vadd.f32 %v7258_v10, %v7390_v0  ;;  %vm3531_vm3 = vcmp.gt.f32.partialorder %v3343_v5, 0.0  ;;  %v8578_v0 = vld [vmem:[#allocation50_spill] sm:$0xff]  ;;  %v8579_v56 = vld [vmem:[#allocation51_spill] sm:$0xff] }
 0x1e4   :  { %v3818_v27 = vmax.f32 %v8577_v29, %v3746_v40  ;;  %v3749_v43 = vmax.f32 %v2779_v53, %v3677_v42  ;;  %v2777_v52 = vsel %vm2633_vm1, %v2445_v30, %v2705_v16  ;;  %v3603_v37 = vmul.f32 %v3343_v5, %v5960_v54 }
 0x1e5   :  { %v4836_v49 = vpack.c.bf16 %v3820_v50, %v3820_v50  ;;  %vm2638_vm4 = vcmp.gt.f32.partialorder %v2466_v59, 0.0  ;;  %v2710_v40 = vmul.f32 %v2466_v59, %v5960_v54  ;;  %v3364_v22 = vadd.f32 %v7258_v10, %v7393_v4  ;;  %v7715_v29 = vpop.f32.mrb[132].mxu0 }
 0x1e6   :  { %v4834_v50 = vpack.c.bf16 %v3818_v27, %v3818_v27  ;;  %v8580_v20 = vmax.f32 %v8578_v0, %v8579_v56  ;;  %v3675_v30 = vsel %vm3531_vm3, %v3343_v5, %v3603_v37  ;;  %v2458_v53 = vadd.f32 %v7258_v10, %v7395_v28  ;;  %v7718_v28 = vpop.f32.mrb[132].mxu1  ;;  %v8582_v37 = vld [vmem:[#allocation53_spill] sm:$0xff] }
 0x1e7   :  { %4181 = vst.msk [vmem:[%s8242_s4 + $0x88] sm:$0xf] %vm4146_vm2, %v4836_v49  ;;  %v3356_v16 = vadd.f32 %v7258_v10, %v7404_v51  ;;  %v3747_v49 = vmax.f32 %v2777_v52, %v3675_v30  ;;  %v2782_v45 = vsel %vm2638_vm4, %v2466_v59, %v2710_v40  ;;  %vm3536_vm5 = vcmp.gt.f32.partialorder %v3364_v22, 0.0  ;;  %v7720_v51 = vpop.f32.mrb[133].mxu0  ;;  %v7728_v56 = vpop.f32.mrb[133].mxu1 }
 0x1e8   :  { %v3821_v42 = vmax.f32 %v8580_v20, %v3749_v43  ;;  %4179 = vst.msk [vmem:[%s8242_s4 + $0x80] sm:$0xf] %vm4146_vm2, %v4834_v50  ;;  %v3608_v4 = vmul.f32 %v3364_v22, %v5960_v54  ;;  %vm2636_vm6 = vcmp.gt.f32.partialorder %v2458_v53, 0.0  ;;  %v2708_v5 = vmul.f32 %v2458_v53, %v5960_v54  ;;  %v8581_v43 = vld [vmem:[#allocation52_spill] sm:$0xff]  ;;  %v7730_v20 = vpop.f32.mrb[134].mxu0 }
 0x1e9   :  { %vm3534_vm7 = vcmp.gt.f32.partialorder %v3356_v16, 0.0  ;;  %v8583_v0 = vmax.f32 %v8581_v43, %v8582_v37  ;;  %v3606_v59 = vmul.f32 %v3356_v16, %v5960_v54  ;;  %v2469_v40 = vadd.f32 %v7258_v10, %v7406_v33  ;;  %8584 = vst [vmem:[#allocation127_spill] sm:$0xff] %v7730_v20  ;;  %v7742_v33 = vpop.f32.mrb[135].mxu0 }
 0x1ea   :  { %v4837_v27 = vpack.c.bf16 %v3821_v42, %v3821_v42  ;;  %v3680_v52 = vsel %vm3536_vm5, %v3364_v22, %v3608_v4  ;;  %v2780_v30 = vsel %vm2636_vm6, %v2458_v53, %v2708_v5  ;;  %v2461_v22 = vadd.f32 %v7258_v10, %v7417_v62  ;;  %v7740_v4 = vpop.f32.mrb[134].mxu1  ;;  %8585 = vst [vmem:[#allocation6_spill] sm:$0xff] %v7742_v33  ;;  %v8588_v53 = vld [vmem:[#allocation55_spill] sm:$0xff] }
 0x1eb   :  { %v3819_v50 = vmax.f32 %v8583_v0, %v3747_v49  ;;  %v3752_v42 = vmax.f32 %v2782_v45, %v3680_v52  ;;  %v3367_v49 = vadd.f32 %v7258_v10, %v7415_v46  ;;  %v3678_v37 = vsel %vm3534_vm7, %v3356_v16, %v3606_v59  ;;  %v7746_v20 = vpop.f32.mrb[135].mxu1  ;;  %v8587_v45 = vld [vmem:[#allocation54_spill] sm:$0xff] }
 0x1ec   :  { %4182 = vst.msk [vmem:[%s8242_s4 + $0x8c] sm:$0xf] %vm4146_vm2, %v4837_v27  ;;  %vm2639_vm8 = vcmp.gt.f32.partialorder %v2469_v40, 0.0  ;;  %v2711_v0 = vmul.f32 %v2469_v40, %v5960_v54  ;;  %8586 = vst [vmem:[#allocation7_spill] sm:$0xff] %v7746_v20  ;;  %v8589_v27 = vmax.f32 %v8587_v45, %v8588_v53  ;;  %v3750_v46 = vmax.f32 %v2780_v30, %v3678_v37  ;;  %v8590_v20 = vld [vmem:[#allocation56_spill] sm:$0xff]  ;;  %v8591_v45 = vld [vmem:[#allocation57_spill] sm:$0xff] }
 0x1ed   :  { %v4835_v43 = vpack.c.bf16 %v3819_v50, %v3819_v50  ;;  %vm3537_vm9 = vcmp.gt.f32.partialorder %v3367_v49, 0.0  ;;  %v3609_v62 = vmul.f32 %v3367_v49, %v5960_v54  ;;  %vm2637_vm10 = vcmp.gt.f32.partialorder %v2461_v22, 0.0 }
 0x1ee   :  { %v3824_v5 = vmax.f32 %v8589_v27, %v3752_v42  ;;  %v2783_v50 = vsel %vm2639_vm8, %v2469_v40, %v2711_v0  ;;  %v2709_v16 = vmul.f32 %v2461_v22, %v5960_v54  ;;  %v3359_v52 = vadd.f32 %v7258_v10, %v7424_v11  ;;  %v8593_v0 = vld [vmem:[#allocation58_spill] sm:$0xff] }
 0x1ef   :  { %4180 = vst.msk [vmem:[%s8242_s4 + $0x84] sm:$0xf] %vm4146_vm2, %v4835_v43  ;;  %v8592_v42 = vmax.f32 %v8590_v20, %v8591_v45  ;;  %v3681_v37 = vsel %vm3537_vm9, %v3367_v49, %v3609_v62  ;;  %v2482_v53 = vadd.f32 %v7258_v10, %v7442_v24  ;;  %v7765_v43 = vpop.f32.mrb[136].mxu0  ;;  %v3380_v49 = vadd.f32 %v7258_v10, %v7448_v25  ;;  %v7774_v24 = vpop.f32.mrb[136].mxu1 }
 0x1f0   :  { %v4840_v59 = vpack.c.bf16 %v3824_v5, %v3824_v5  ;;  %v3753_v27 = vmax.f32 %v2783_v50, %v3681_v37  ;;  %v2781_v33 = vsel %vm2637_vm10, %v2461_v22, %v2709_v16  ;;  %vm3535_vm11 = vcmp.gt.f32.partialorder %v3359_v52, 0.0  ;;  %v7776_v22 = vpop.f32.mrb[137].mxu0  ;;  %v8594_v5 = vld [vmem:[#allocation59_spill] sm:$0xff]  ;;  %v7785_v45 = vpop.f32.mrb[137].mxu1 }
 0x1f1   :  { %v3822_v30 = vmax.f32 %v8592_v42, %v3750_v46  ;;  %v3607_v40 = vmul.f32 %v3359_v52, %v5960_v54  ;;  %vm2642_vm12 = vcmp.gt.f32.partialorder %v2482_v53, 0.0  ;;  %v2714_v20 = vmul.f32 %v2482_v53, %v5960_v54  ;;  %v7787_v42 = vpop.f32.mrb[138].mxu0  ;;  %v7794_v37 = vpop.f32.mrb[138].mxu1 }
 0x1f2   :  { %4185 = vst.msk [vmem:[%s8242_s4 + $0x98] sm:$0xf] %vm4146_vm2, %v4840_v59  ;;  %v8595_v46 = vmax.f32 %v8593_v0, %v8594_v5  ;;  %v2474_v16 = vadd.f32 %v7258_v10, %v7450_v21  ;;  %v3372_v59 = vadd.f32 %v7258_v10, %v7459_v23  ;;  %vm3540_vm13 = vcmp.gt.f32.partialorder %v3380_v49, 0.0  ;;  %8596 = vst [vmem:[#allocation8_spill] sm:$0xff] %v7794_v37  ;;  %v7796_v21 = vpop.f32.mrb[139].mxu0  ;;  %v8599_v0 = vld [vmem:[#allocation60_spill] sm:$0xff] }
 0x1f3   :  { %v4838_v11 = vpack.c.bf16 %v3822_v30, %v3822_v30  ;;  %v3679_v50 = vsel %vm3535_vm11, %v3359_v52, %v3607_v40  ;;  %v2786_v30 = vsel %vm2642_vm12, %v2482_v53, %v2714_v20  ;;  %v3612_v52 = vmul.f32 %v3380_v49, %v5960_v54  ;;  %8597 = vst [vmem:[#allocation9_spill] sm:$0xff] %v7796_v21  ;;  %v7799_v40 = vpop.f32.mrb[139].mxu1  ;;  %v8600_v5 = vld [vmem:[#allocation61_spill] sm:$0xff] }
 0x1f4   :  { %v3825_v62 = vmax.f32 %v8595_v46, %v3753_v27  ;;  %v3751_v25 = vmax.f32 %v2781_v33, %v3679_v50  ;;  %vm2640_vm14 = vcmp.gt.f32.partialorder %v2474_v16, 0.0  ;;  %v2712_v23 = vmul.f32 %v2474_v16, %v5960_v54  ;;  %8598 = vst [vmem:[#allocation10_spill] sm:$0xff] %v7799_v40 }
 0x1f5   :  { %4183 = vst.msk [vmem:[%s8242_s4 + $0x90] sm:$0xf] %vm4146_vm2, %v4838_v11  ;;  %vm3538_vm15 = vcmp.gt.f32.partialorder %v3372_v59, 0.0  ;;  %v8601_v46 = vmax.f32 %v8599_v0, %v8600_v5  ;;  %v3684_v33 = vsel %vm3540_vm13, %v3380_v49, %v3612_v52  ;;  %v3610_v53 = vmul.f32 %v3372_v59, %v5960_v54  ;;  %v8602_v5 = vld [vmem:[#allocation62_spill] sm:$0xff] }
 0x1f6   :  { %v4841_v27 = vpack.c.bf16 %v3825_v62, %v3825_v62  ;;  %v2485_v20 = vadd.f32 %v7258_v10, %v7461_v6  ;;  %v3756_v62 = vmax.f32 %v2786_v30, %v3684_v33  ;;  %v2784_v50 = vsel %vm2640_vm14, %v2474_v16, %v2712_v23  ;;  %v8603_v6 = vld [vmem:[#allocation63_spill] sm:$0xff]  ;;  %v7820_v16 = vpop.f32.mrb[140].mxu0  ;;  %v8605_v33 = vld [vmem:[#allocation64_spill] sm:$0xff] }
 0x1f7   :  { %v3823_v11 = vmax.f32 %v8601_v46, %v3751_v25  ;;  %v3383_v40 = vadd.f32 %v7258_v10, %v7468_v34  ;;  %v2477_v0 = vadd.f32 %v7258_v10, %v7470_v15  ;;  %v3682_v49 = vsel %vm3538_vm15, %v3372_v59, %v3610_v53  ;;  %v7831_v23 = vpop.f32.mrb[141].mxu0  ;;  %v8606_v53 = vld [vmem:[#allocation65_spill] sm:$0xff] }
 0x1f8   :  { %4186 = vst.msk [vmem:[%s8242_s4 + $0x9c] sm:$0xf] %vm4146_vm2, %v4841_v27  ;;  %vm2643_vm0 = vcmp.gt.f32.partialorder %v2485_v20, 0.0  ;;  %v2715_v52 = vmul.f32 %v2485_v20, %v5960_v54  ;;  %v8604_v46 = vmax.f32 %v8602_v5, %v8603_v6  ;;  %v3754_v37 = vmax.f32 %v2784_v50, %v3682_v49  ;;  %v7829_v27 = vpop.f32.mrb[140].mxu1 }
 0x1f9   :  { %v4839_v25 = vpack.c.bf16 %v3823_v11, %v3823_v11  ;;  %vm3541_vm1 = vcmp.gt.f32.partialorder %v3383_v40, 0.0  ;;  %v3613_v30 = vmul.f32 %v3383_v40, %v5960_v54  ;;  %vm2641_vm3 = vcmp.gt.f32.partialorder %v2477_v0, 0.0 }
 0x1fa   :  { %v3828_v21 = vmax.f32 %v8604_v46, %v3756_v62  ;;  %v2787_v34 = vsel %vm2643_vm0, %v2485_v20, %v2715_v52  ;;  %v2713_v15 = vmul.f32 %v2477_v0, %v5960_v54  ;;  %v3375_v59 = vadd.f32 %v7258_v10, %v7473_v39  ;;  %v7838_v20 = vpop.f32.mrb[141].mxu1  ;;  %v7840_v52 = vpop.f32.mrb[142].mxu0 }
 0x1fb   :  { %4184 = vst.msk [vmem:[%s8242_s4 + $0x94] sm:$0xf] %vm4146_vm2, %v4839_v25  ;;  %v8607_v62 = vmax.f32 %v8605_v33, %v8606_v53  ;;  %v3685_v49 = vsel %vm3541_vm1, %v3383_v40, %v3613_v30  ;;  %v2498_v25 = vadd.f32 %v7258_v10, %v7495_v55  ;;  %v7843_v46 = vpop.f32.mrb[142].mxu1  ;;  %v3396_v40 = vadd.f32 %v7258_v10, %v7503_v7  ;;  %v8609_v30 = vld [vmem:[#allocation66_spill] sm:$0xff] }
 0x1fc   :  { %v4844_v11 = vpack.c.bf16 %v3828_v21, %v3828_v21  ;;  %v3757_v5 = vmax.f32 %v2787_v34, %v3685_v49  ;;  %v2785_v6 = vsel %vm2641_vm3, %v2477_v0, %v2713_v15  ;;  %vm3539_vm4 = vcmp.gt.f32.partialorder %v3375_v59, 0.0  ;;  %v7845_v21 = vpop.f32.mrb[143].mxu0  ;;  %v7854_v0 = vpop.f32.mrb[143].mxu1  ;;  %v8610_v34 = vld [vmem:[#allocation67_spill] sm:$0xff] }
 0x1fd   :  { %v3826_v50 = vmax.f32 %v8607_v62, %v3754_v37  ;;  %v3611_v39 = vmul.f32 %v3375_v59, %v5960_v54  ;;  %vm2646_vm5 = vcmp.gt.f32.partialorder %v2498_v25, 0.0  ;;  %v2718_v55 = vmul.f32 %v2498_v25, %v5960_v54  ;;  %8608 = vst [vmem:[#allocation11_spill] sm:$0xff] %v7854_v0 }
 0x1fe   :  { %4189 = vst.msk [vmem:[%s8242_s4 + $0xa8] sm:$0xf] %vm4146_vm2, %v4844_v11  ;;  %v8611_v15 = vmax.f32 %v8609_v30, %v8610_v34  ;;  %v2490_v62 = vadd.f32 %v7258_v10, %v7505_v44  ;;  %v3388_v11 = vadd.f32 %v7258_v10, %v7515_v2  ;;  %vm3544_vm6 = vcmp.gt.f32.partialorder %v3396_v40, 0.0  ;;  %v8613_v44 = vld [vmem:[#allocation69_spill] sm:$0xff] }
 0x1ff   :  { %v4842_v37 = vpack.c.bf16 %v3826_v50, %v3826_v50  ;;  %v3683_v53 = vsel %vm3539_vm4, %v3375_v59, %v3611_v39  ;;  %v2790_v7 = vsel %vm2646_vm5, %v2498_v25, %v2718_v55  ;;  %v3616_v49 = vmul.f32 %v3396_v40, %v5960_v54 }
 0x200   :  { %v3829_v33 = vmax.f32 %v8611_v15, %v3757_v5  ;;  %v3755_v50 = vmax.f32 %v2785_v6, %v3683_v53  ;;  %vm2644_vm7 = vcmp.gt.f32.partialorder %v2490_v62, 0.0  ;;  %v2716_v59 = vmul.f32 %v2490_v62, %v5960_v54  ;;  %v8612_v5 = vld [vmem:[#allocation68_spill] sm:$0xff] }
 0x201   :  { %4187 = vst.msk [vmem:[%s8242_s4 + $0xa0] sm:$0xf] %vm4146_vm2, %v4842_v37  ;;  %vm3542_vm8 = vcmp.gt.f32.partialorder %v3388_v11, 0.0  ;;  %v8614_v39 = vmax.f32 %v8612_v5, %v8613_v44  ;;  %v3688_v2 = vsel %vm3544_vm6, %v3396_v40, %v3616_v49  ;;  %v3614_v34 = vmul.f32 %v3388_v11, %v5960_v54 }
 0x202   :  { %v4845_v0 = vpack.c.bf16 %v3829_v33, %v3829_v33  ;;  %v2501_v37 = vadd.f32 %v7258_v10, %v7517_v47  ;;  %v3760_v25 = vmax.f32 %v2790_v7, %v3688_v2  ;;  %v2788_v6 = vsel %vm2644_vm7, %v2490_v62, %v2716_v59  ;;  %v8616_v47 = vld [vmem:[#allocation71_spill] sm:$0xff]  ;;  %v8618_v7 = vld [vmem:[#allocation72_spill] sm:$0xff]  ;;  %v8619_v59 = vld [vmem:[#allocation73_spill] sm:$0xff] }
 0x203   :  { %v3827_v30 = vmax.f32 %v8614_v39, %v3755_v50  ;;  %v3399_v55 = vadd.f32 %v7258_v10, %v7521_v57  ;;  %v2493_v15 = vadd.f32 %v7258_v10, %v7523_v14  ;;  %v3686_v40 = vsel %vm3542_vm8, %v3388_v11, %v3614_v34  ;;  %v8615_v50 = vld [vmem:[#allocation70_spill] sm:$0xff] }
 0x204   :  { %4190 = vst.msk [vmem:[%s8242_s4 + $0xac] sm:$0xf] %vm4146_vm2, %v4845_v0  ;;  %vm2647_vm9 = vcmp.gt.f32.partialorder %v2501_v37, 0.0  ;;  %v2719_v53 = vmul.f32 %v2501_v37, %v5960_v54  ;;  %v8617_v49 = vmax.f32 %v8615_v50, %v8616_v47  ;;  %v3758_v44 = vmax.f32 %v2788_v6, %v3686_v40 }
 0x205   :  { %v4843_v33 = vpack.c.bf16 %v3827_v30, %v3827_v30  ;;  %vm3545_vm10 = vcmp.gt.f32.partialorder %v3399_v55, 0.0  ;;  %v3617_v0 = vmul.f32 %v3399_v55, %v5960_v54  ;;  %vm2645_vm11 = vcmp.gt.f32.partialorder %v2493_v15, 0.0 }
 0x206   :  { %v3832_v5 = vmax.f32 %v8617_v49, %v3760_v25  ;;  %v2791_v57 = vsel %vm2647_vm9, %v2501_v37, %v2719_v53  ;;  %v2717_v14 = vmul.f32 %v2493_v15, %v5960_v54  ;;  %v3391_v62 = vadd.f32 %v7258_v10, %v7529_v36 }
 0x207   :  { %4188 = vst.msk [vmem:[%s8242_s4 + $0xa4] sm:$0xf] %vm4146_vm2, %v4843_v33  ;;  %v8620_v39 = vmax.f32 %v8618_v7, %v8619_v59  ;;  %v3689_v2 = vsel %vm3545_vm10, %v3399_v55, %v3617_v0  ;;  %v2514_v34 = vadd.f32 %v7258_v10, %v7551_v3  ;;  %v7909_v55 = vld [vmem:[%s8240_s2] ss:$0 sm:$0xff]  ;;  %v8621_v3 = vld [vmem:[#allocation74_spill] sm:$0xff] }
 0x208   :  { %v4848_v11 = vpack.c.bf16 %v3832_v5, %v3832_v5  ;;  %v3761_v25 = vmax.f32 %v2791_v57, %v3689_v2  ;;  %v2789_v6 = vsel %vm2645_vm11, %v2493_v15, %v2717_v14  ;;  %vm3543_vm12 = vcmp.gt.f32.partialorder %v3391_v62, 0.0  ;;  %v8622_v15 = vld [vmem:[#allocation75_spill] sm:$0xff]  ;;  %v8624_v14 = vld [vmem:[#allocation76_spill] sm:$0xff] }
 0x209   :  { %v3830_v30 = vmax.f32 %v8620_v39, %v3758_v44  ;;  %v3615_v37 = vmul.f32 %v3391_v62, %v5960_v54  ;;  %vm2650_vm13 = vcmp.gt.f32.partialorder %v2514_v34, 0.0  ;;  %v2722_v33 = vmul.f32 %v2514_v34, %v5960_v54 }
 0x20a   :  { %4193 = vst.msk [vmem:[%s8242_s4 + $0xb8] sm:$0xf] %vm4146_vm2, %v4848_v11  ;;  %v3412_v10 = vadd.f32 %v7909_v55, %v7560_v41  ;;  %v8623_v40 = vmax.f32 %v8621_v3, %v8622_v15  ;;  %v2506_v47 = vadd.f32 %v7909_v55, %v7562_v26  ;;  %v3404_v49 = vadd.f32 %v7909_v55, %v7569_v18  ;;  %v8625_v26 = vld [vmem:[#allocation77_spill] sm:$0xff] }
 0x20b   :  { %v4846_v36 = vpack.c.bf16 %v3830_v30, %v3830_v30  ;;  %v3687_v50 = vsel %vm3543_vm12, %v3391_v62, %v3615_v37  ;;  %v2794_v44 = vsel %vm2650_vm13, %v2514_v34, %v2722_v33  ;;  %v8626_v62 = vmax.f32 %v8624_v14, %v8625_v26  ;;  %v8627_v34 = vld [vmem:[#allocation3_spill] sm:$0xff]  ;;  %v8628_v33 = vld [vmem:[#allocation78_spill] sm:$0xff] }
 0x20c   :  { %v3833_v53 = vmax.f32 %v8623_v40, %v3761_v25  ;;  %v3759_v5 = vmax.f32 %v2789_v6, %v3687_v50  ;;  %vm3548_vm14 = vcmp.gt.f32.partialorder %v3412_v10, 0.0  ;;  %v3620_v41 = vmul.f32 %v3412_v10, %v5960_v54  ;;  %v8631_v50 = vld [vmem:[#allocation4_spill] sm:$0xff] }
 0x20d   :  { %4191 = vst.msk [vmem:[%s8242_s4 + $0xb0] sm:$0xf] %vm4146_vm2, %v4846_v36  ;;  %vm2648_vm15 = vcmp.gt.f32.partialorder %v2506_v47, 0.0  ;;  %v2720_v57 = vmul.f32 %v2506_v47, %v5960_v54  ;;  %vm3546_vm0 = vcmp.gt.f32.partialorder %v3404_v49, 0.0  ;;  %v3618_v7 = vmul.f32 %v3404_v49, %v5960_v54 }
 0x20e   :  { %v4849_v0 = vpack.c.bf16 %v3833_v53, %v3833_v53  ;;  %v3831_v11 = vmax.f32 %v8626_v62, %v3759_v5  ;;  %v3692_v18 = vsel %vm3548_vm14, %v3412_v10, %v3620_v41  ;;  %v2517_v59 = vadd.f32 %v7909_v55, %v7571_v60  ;;  %v8629_v60 = vld [vmem:[#allocation79_spill] sm:$0xff]  ;;  %v8632_v5 = vld [vmem:[#allocation80_spill] sm:$0xff] }
 0x20f   :  { %v3764_v39 = vmax.f32 %v2794_v44, %v3692_v18  ;;  %v2792_v30 = vsel %vm2648_vm15, %v2506_v47, %v2720_v57  ;;  %v3415_v2 = vadd.f32 %v7909_v55, %v7574_v38  ;;  %v2509_v25 = vadd.f32 %v7909_v55, %v8627_v34  ;;  %v8633_v44 = vld [vmem:[#allocation81_spill] sm:$0xff] }
 0x210   :  { %4194 = vst.msk [vmem:[%s8242_s4 + $0xbc] sm:$0xf] %vm4146_vm2, %v4849_v0  ;;  %v4847_v6 = vpack.c.bf16 %v3831_v11, %v3831_v11  ;;  %v3690_v37 = vsel %vm3546_vm0, %v3404_v49, %v3618_v7  ;;  %vm2651_vm1 = vcmp.gt.f32.partialorder %v2517_v59, 0.0  ;;  %v2723_v36 = vmul.f32 %v2517_v59, %v5960_v54 }
 0x211   :  { %v8630_v10 = vmax.f32 %v8628_v33, %v8629_v60  ;;  %v3762_v15 = vmax.f32 %v2792_v30, %v3690_v37  ;;  %vm3549_vm3 = vcmp.gt.f32.partialorder %v3415_v2, 0.0  ;;  %v3621_v40 = vmul.f32 %v3415_v2, %v5960_v54  ;;  %v8636_v30 = vld [vmem:[#allocation83_spill] sm:$0xff] }
 0x212   :  { %4192 = vst.msk [vmem:[%s8242_s4 + $0xb4] sm:$0xf] %vm4146_vm2, %v4847_v6  ;;  %v2795_v38 = vsel %vm2651_vm1, %v2517_v59, %v2723_v36  ;;  %vm2649_vm4 = vcmp.gt.f32.partialorder %v2509_v25, 0.0  ;;  %v2721_v53 = vmul.f32 %v2509_v25, %v5960_v54  ;;  %v3407_v47 = vadd.f32 %v7909_v55, %v8631_v50 }
 0x213   :  { %v3836_v3 = vmax.f32 %v8630_v10, %v3764_v39  ;;  %v8634_v41 = vmax.f32 %v8632_v5, %v8633_v44  ;;  %v3693_v57 = vsel %vm3549_vm3, %v3415_v2, %v3621_v40  ;;  %v2530_v14 = vadd.f32 %v7909_v55, %v7606_v61  ;;  %v8635_v39 = vld [vmem:[#allocation82_spill] sm:$0xff]  ;;  %v8638_v10 = vld [vmem:[#allocation84_spill] sm:$0xff] }
 0x214   :  { %v3765_v26 = vmax.f32 %v2795_v38, %v3693_v57  ;;  %v2793_v62 = vsel %vm2649_vm4, %v2509_v25, %v2721_v53  ;;  %vm3547_vm5 = vcmp.gt.f32.partialorder %v3407_v47, 0.0  ;;  %v3619_v11 = vmul.f32 %v3407_v47, %v5960_v54 }
 0x215   :  { %v4852_v49 = vpack.c.bf16 %v3836_v3, %v3836_v3  ;;  %v3834_v0 = vmax.f32 %v8634_v41, %v3762_v15  ;;  %vm2654_vm6 = vcmp.gt.f32.partialorder %v2530_v14, 0.0  ;;  %v2726_v7 = vmul.f32 %v2530_v14, %v5960_v54 }
 0x216   :  { %v3428_v59 = vadd.f32 %v7909_v55, %v7613_v63  ;;  %v8637_v61 = vmax.f32 %v8635_v39, %v8636_v30  ;;  %v3691_v34 = vsel %vm3547_vm5, %v3407_v47, %v3619_v11  ;;  %v2522_v25 = vadd.f32 %v7909_v55, %v7615_v13  ;;  %v8639_v13 = vld [vmem:[#allocation85_spill] sm:$0xff] }
 0x217   :  { %4197 = vst.msk [vmem:[%s8242_s4 + $0xc8] sm:$0xf] %vm4146_vm2, %v4852_v49  ;;  %v4850_v18 = vpack.c.bf16 %v3834_v0, %v3834_v0  ;;  %v3420_v6 = vadd.f32 %v7909_v55, %v7618_v17  ;;  %v3763_v37 = vmax.f32 %v2793_v62, %v3691_v34  ;;  %v2798_v36 = vsel %vm2654_vm6, %v2530_v14, %v2726_v7  ;;  %v8641_v0 = vld [vmem:[#allocation86_spill] sm:$0xff]  ;;  %v8644_v7 = vld [vmem:[#allocation88_spill] sm:$0xff] }
 0x218   :  { %v3837_v2 = vmax.f32 %v8637_v61, %v3765_v26  ;;  %vm3552_vm7 = vcmp.gt.f32.partialorder %v3428_v59, 0.0  ;;  %v3624_v63 = vmul.f32 %v3428_v59, %v5960_v54  ;;  %vm2652_vm8 = vcmp.gt.f32.partialorder %v2522_v25, 0.0 }
 0x219   :  { %4195 = vst.msk [vmem:[%s8242_s4 + $0xc0] sm:$0xf] %vm4146_vm2, %v4850_v18  ;;  %v2724_v60 = vmul.f32 %v2522_v25, %v5960_v54  ;;  %vm3550_vm9 = vcmp.gt.f32.partialorder %v3420_v6, 0.0  ;;  %v8640_v3 = vmax.f32 %v8638_v10, %v8639_v13  ;;  %v3622_v40 = vmul.f32 %v3420_v6, %v5960_v54 }
 0x21a   :  { %v4853_v33 = vpack.c.bf16 %v3837_v2, %v3837_v2  ;;  %v3696_v17 = vsel %vm3552_vm7, %v3428_v59, %v3624_v63  ;;  %v2533_v38 = vadd.f32 %v7909_v55, %v7620_v31  ;;  %v3431_v47 = vadd.f32 %v7909_v55, %v7629_v9  ;;  %v8642_v31 = vld [vmem:[#allocation87_spill] sm:$0xff]  ;;  %v8645_v59 = vld [vmem:[#allocation89_spill] sm:$0xff]  ;;  %v8647_v63 = vld [vmem:[#allocation90_spill] sm:$0xff] }
 0x21b   :  { %v3835_v15 = vmax.f32 %v8640_v3, %v3763_v37  ;;  %v3768_v53 = vmax.f32 %v2798_v36, %v3696_v17  ;;  %v2796_v50 = vsel %vm2652_vm8, %v2522_v25, %v2724_v60  ;;  %v2525_v49 = vadd.f32 %v7909_v55, %v7631_v32  ;;  %v8650_v3 = vld [vmem:[#allocation5_spill] sm:$0xff] }
 0x21c   :  { %4198 = vst.msk [vmem:[%s8242_s4 + $0xcc] sm:$0xf] %vm4146_vm2, %v4853_v33  ;;  %v3694_v44 = vsel %vm3550_vm9, %v3420_v6, %v3622_v40  ;;  %vm2655_vm10 = vcmp.gt.f32.partialorder %v2533_v38, 0.0  ;;  %v2727_v41 = vmul.f32 %v2533_v38, %v5960_v54  ;;  %v8643_v57 = vmax.f32 %v8641_v0, %v8642_v31  ;;  %v8648_v33 = vld [vmem:[#allocation91_spill] sm:$0xff] }
 0x21d   :  { %v4851_v5 = vpack.c.bf16 %v3835_v15, %v3835_v15  ;;  %v3766_v26 = vmax.f32 %v2796_v50, %v3694_v44  ;;  %vm3553_vm11 = vcmp.gt.f32.partialorder %v3431_v47, 0.0  ;;  %v3625_v62 = vmul.f32 %v3431_v47, %v5960_v54  ;;  %v8651_v50 = vld [vmem:[#allocation92_spill] sm:$0xff] }
 0x21e   :  { %v3840_v14 = vmax.f32 %v8643_v57, %v3768_v53  ;;  %v2799_v9 = vsel %vm2655_vm10, %v2533_v38, %v2727_v41  ;;  %vm2653_vm12 = vcmp.gt.f32.partialorder %v2525_v49, 0.0  ;;  %v2725_v32 = vmul.f32 %v2525_v49, %v5960_v54  ;;  %v8654_v41 = vld [vmem:[#allocation126_spill] sm:$0xff] }
 0x21f   :  { %4196 = vst.msk [vmem:[%s8242_s4 + $0xc4] sm:$0xf] %vm4146_vm2, %v4851_v5  ;;  %v3423_v11 = vadd.f32 %v7909_v55, %v7640_v35  ;;  %v8646_v39 = vmax.f32 %v8644_v7, %v8645_v59  ;;  %v3697_v61 = vsel %vm3553_vm11, %v3431_v47, %v3625_v62  ;;  %v2546_v2 = vadd.f32 %v7909_v55, %v7662_v58 }
 0x220   :  { %v4856_v18 = vpack.c.bf16 %v3840_v14, %v3840_v14  ;;  %v3769_v34 = vmax.f32 %v2799_v9, %v3697_v61  ;;  %v2797_v25 = vsel %vm2653_vm12, %v2525_v49, %v2725_v32  ;;  %v3444_v36 = vadd.f32 %v7909_v55, %v7665_v48 }
 0x221   :  { %v3838_v30 = vmax.f32 %v8646_v39, %v3766_v26  ;;  %vm3551_vm13 = vcmp.gt.f32.partialorder %v3423_v11, 0.0  ;;  %v3623_v6 = vmul.f32 %v3423_v11, %v5960_v54  ;;  %vm2658_vm14 = vcmp.gt.f32.partialorder %v2546_v2, 0.0 }
 0x222   :  { %4201 = vst.msk [vmem:[%s8242_s4 + $0xd8] sm:$0xf] %vm4146_vm2, %v4856_v18  ;;  %v2730_v37 = vmul.f32 %v2546_v2, %v5960_v54  ;;  %v8649_v58 = vmax.f32 %v8647_v63, %v8648_v33  ;;  %v2538_v13 = vadd.f32 %v7909_v55, %v7667_v19  ;;  %v3436_v15 = vadd.f32 %v7909_v55, %v8650_v3  ;;  %v8652_v19 = vld [vmem:[#allocation93_spill] sm:$0xff]  ;;  %v8656_v18 = vld [vmem:[#allocation95_spill] sm:$0xff] }
 0x223   :  { %v4854_v35 = vpack.c.bf16 %v3838_v30, %v3838_v30  ;;  %v3695_v10 = vsel %vm3551_vm13, %v3423_v11, %v3623_v6  ;;  %vm3556_vm15 = vcmp.gt.f32.partialorder %v3444_v36, 0.0  ;;  %v3628_v48 = vmul.f32 %v3444_v36, %v5960_v54  ;;  %v8655_v11 = vld [vmem:[#allocation94_spill] sm:$0xff]  ;;  %v8662_v3 = vld [vmem:[#allocation99_spill] sm:$0xff] }
 0x224   :  { %v3841_v60 = vmax.f32 %v8649_v58, %v3769_v34  ;;  %v3767_v17 = vmax.f32 %v2797_v25, %v3695_v10  ;;  %v2802_v40 = vsel %vm2658_vm14, %v2546_v2, %v2730_v37  ;;  %vm2656_vm0 = vcmp.gt.f32.partialorder %v2538_v13, 0.0  ;;  %v8658_v34 = vld [vmem:[#allocation96_spill] sm:$0xff]  ;;  %v8659_v25 = vld [vmem:[#allocation97_spill] sm:$0xff] }
 0x225   :  { %4199 = vst.msk [vmem:[%s8242_s4 + $0xd0] sm:$0xf] %vm4146_vm2, %v4854_v35  ;;  %v2728_v53 = vmul.f32 %v2538_v13, %v5960_v54  ;;  %vm3554_vm1 = vcmp.gt.f32.partialorder %v3436_v15, 0.0  ;;  %v8653_v47 = vmax.f32 %v8651_v50, %v8652_v19  ;;  %v3700_v5 = vsel %vm3556_vm15, %v3444_v36, %v3628_v48 }
 0x226   :  { %v4857_v38 = vpack.c.bf16 %v3841_v60, %v3841_v60  ;;  %v3626_v44 = vmul.f32 %v3436_v15, %v5960_v54  ;;  %v2549_v0 = vadd.f32 %v7909_v55, %v8654_v41  ;;  %v3772_v31 = vmax.f32 %v2802_v40, %v3700_v5  ;;  %v8667_v41 = vld [vmem:[#allocation127_spill] sm:$0xff] }
 0x227   :  { %v3839_v49 = vmax.f32 %v8653_v47, %v3767_v17  ;;  %v2800_v57 = vsel %vm2656_vm0, %v2538_v13, %v2728_v53  ;;  %v3447_v14 = vadd.f32 %v7909_v55, %v7684_v8  ;;  %v2541_v26 = vadd.f32 %v7909_v55, %v7686_v12  ;;  %v8661_v13 = vld [vmem:[#allocation98_spill] sm:$0xff]  ;;  %v8664_v47 = vld [vmem:[#allocation100_spill] sm:$0xff] }
 0x228   :  { %4202 = vst.msk [vmem:[%s8242_s4 + $0xdc] sm:$0xf] %vm4146_vm2, %v4857_v38  ;;  %v3698_v9 = vsel %vm3554_vm1, %v3436_v15, %v3626_v44  ;;  %vm2659_vm3 = vcmp.gt.f32.partialorder %v2549_v0, 0.0  ;;  %v2731_v32 = vmul.f32 %v2549_v0, %v5960_v54  ;;  %v8657_v7 = vmax.f32 %v8655_v11, %v8656_v18  ;;  %v8669_v18 = vld [vmem:[#allocation102_spill] sm:$0xff] }
 0x229   :  { %v4855_v62 = vpack.c.bf16 %v3839_v49, %v3839_v49  ;;  %v3770_v39 = vmax.f32 %v2800_v57, %v3698_v9  ;;  %vm3557_vm4 = vcmp.gt.f32.partialorder %v3447_v14, 0.0  ;;  %v3629_v30 = vmul.f32 %v3447_v14, %v5960_v54 }
 0x22a   :  { %v3844_v59 = vmax.f32 %v8657_v7, %v3772_v31  ;;  %v2803_v8 = vsel %vm2659_vm3, %v2549_v0, %v2731_v32  ;;  %vm2657_vm5 = vcmp.gt.f32.partialorder %v2541_v26, 0.0  ;;  %v2729_v12 = vmul.f32 %v2541_v26, %v5960_v54  ;;  %v8670_v7 = vld [vmem:[#allocation103_spill] sm:$0xff] }
 0x22b   :  { %4200 = vst.msk [vmem:[%s8242_s4 + $0xd4] sm:$0xf] %vm4146_vm2, %v4855_v62  ;;  %v3439_v61 = vadd.f32 %v7909_v55, %v7693_v1  ;;  %v8660_v6 = vmax.f32 %v8658_v34, %v8659_v25  ;;  %v3701_v37 = vsel %vm3557_vm4, %v3447_v14, %v3629_v30  ;;  %v2562_v36 = vadd.f32 %v7909_v55, %v7715_v29  ;;  %v8673_v25 = vld [vmem:[#allocation104_spill] sm:$0xff] }
 0x22c   :  { %v4860_v2 = vpack.c.bf16 %v3844_v59, %v3844_v59  ;;  %v3773_v63 = vmax.f32 %v2803_v8, %v3701_v37  ;;  %v2801_v33 = vsel %vm2657_vm5, %v2541_v26, %v2729_v12  ;;  %v3460_v10 = vadd.f32 %v7909_v55, %v7718_v28  ;;  %v8668_v26 = vld [vmem:[#allocation6_spill] sm:$0xff] }
 0x22d   :  { %v3842_v35 = vmax.f32 %v8660_v6, %v3770_v39  ;;  %vm3555_vm6 = vcmp.gt.f32.partialorder %v3439_v61, 0.0  ;;  %v3627_v58 = vmul.f32 %v3439_v61, %v5960_v54  ;;  %vm2662_vm7 = vcmp.gt.f32.partialorder %v2562_v36, 0.0  ;;  %v8674_v6 = vld [vmem:[#allocation105_spill] sm:$0xff] }
 0x22e   :  { %4205 = vst.msk [vmem:[%s8242_s4 + $0xe8] sm:$0xf] %vm4146_vm2, %v4860_v2  ;;  %v2734_v60 = vmul.f32 %v2562_v36, %v5960_v54  ;;  %v8663_v29 = vmax.f32 %v8661_v13, %v8662_v3  ;;  %v2554_v40 = vadd.f32 %v7909_v55, %v7720_v51  ;;  %v3452_v48 = vadd.f32 %v7909_v55, %v7728_v56  ;;  %v8665_v51 = vld [vmem:[#allocation101_spill] sm:$0xff]  ;;  %v8676_v3 = vld [vmem:[#allocation106_spill] sm:$0xff] }
 0x22f   :  { %v4858_v1 = vpack.c.bf16 %v3842_v35, %v3842_v35  ;;  %v3699_v17 = vsel %vm3555_vm6, %v3439_v61, %v3627_v58  ;;  %vm3560_vm8 = vcmp.gt.f32.partialorder %v3460_v10, 0.0  ;;  %v3632_v28 = vmul.f32 %v3460_v10, %v5960_v54  ;;  %v8672_v61 = vld [vmem:[#allocation7_spill] sm:$0xff] }
 0x230   :  { %v3845_v15 = vmax.f32 %v8663_v29, %v3773_v63  ;;  %v3771_v38 = vmax.f32 %v2801_v33, %v3699_v17  ;;  %v2806_v53 = vsel %vm2662_vm7, %v2562_v36, %v2734_v60  ;;  %vm2660_vm9 = vcmp.gt.f32.partialorder %v2554_v40, 0.0  ;;  %v8677_v29 = vld [vmem:[#allocation107_spill] sm:$0xff] }
 0x231   :  { %4203 = vst.msk [vmem:[%s8242_s4 + $0xe0] sm:$0xf] %vm4146_vm2, %v4858_v1  ;;  %v2732_v19 = vmul.f32 %v2554_v40, %v5960_v54  ;;  %vm3558_vm10 = vcmp.gt.f32.partialorder %v3452_v48, 0.0  ;;  %v8666_v49 = vmax.f32 %v8664_v47, %v8665_v51  ;;  %v3704_v56 = vsel %vm3560_vm8, %v3460_v10, %v3632_v28 }
 0x232   :  { %v4861_v50 = vpack.c.bf16 %v3845_v15, %v3845_v15  ;;  %v3630_v44 = vmul.f32 %v3452_v48, %v5960_v54  ;;  %v2565_v0 = vadd.f32 %v7909_v55, %v8667_v41  ;;  %v3776_v31 = vmax.f32 %v2806_v53, %v3704_v56  ;;  %v8682_v41 = vld [vmem:[#allocation8_spill] sm:$0xff] }
 0x233   :  { %v3843_v5 = vmax.f32 %v8666_v49, %v3771_v38  ;;  %v2804_v57 = vsel %vm2660_vm9, %v2554_v40, %v2732_v19  ;;  %v3463_v14 = vadd.f32 %v7909_v55, %v7740_v4  ;;  %v2557_v62 = vadd.f32 %v7909_v55, %v8668_v26  ;;  %v8679_v19 = vld [vmem:[#allocation108_spill] sm:$0xff] }
 0x234   :  { %4206 = vst.msk [vmem:[%s8242_s4 + $0xec] sm:$0xf] %vm4146_vm2, %v4861_v50  ;;  %v3702_v32 = vsel %vm3558_vm10, %v3452_v48, %v3630_v44  ;;  %vm2663_vm11 = vcmp.gt.f32.partialorder %v2565_v0, 0.0  ;;  %v2735_v11 = vmul.f32 %v2565_v0, %v5960_v54  ;;  %v8671_v59 = vmax.f32 %v8669_v18, %v8670_v7 }
 0x235   :  { %v4859_v9 = vpack.c.bf16 %v3843_v5, %v3843_v5  ;;  %v3774_v30 = vmax.f32 %v2804_v57, %v3702_v32  ;;  %vm3561_vm12 = vcmp.gt.f32.partialorder %v3463_v14, 0.0  ;;  %v3633_v8 = vmul.f32 %v3463_v14, %v5960_v54 }
 0x236   :  { %v3848_v39 = vmax.f32 %v8671_v59, %v3776_v31  ;;  %v2807_v4 = vsel %vm2663_vm11, %v2565_v0, %v2735_v11  ;;  %vm2661_vm13 = vcmp.gt.f32.partialorder %v2557_v62, 0.0  ;;  %v2733_v12 = vmul.f32 %v2557_v62, %v5960_v54  ;;  %v8683_v31 = vld [vmem:[#allocation9_spill] sm:$0xff] }
 0x237   :  { %4204 = vst.msk [vmem:[%s8242_s4 + $0xe4] sm:$0xf] %vm4146_vm2, %v4859_v9  ;;  %v3455_v2 = vadd.f32 %v7909_v55, %v8672_v61  ;;  %v8675_v35 = vmax.f32 %v8673_v25, %v8674_v6  ;;  %v3705_v36 = vsel %vm3561_vm12, %v3463_v14, %v3633_v8  ;;  %v2578_v63 = vadd.f32 %v7909_v55, %v7765_v43  ;;  %v8684_v9 = vld [vmem:[#allocation110_spill] sm:$0xff]  ;;  %v8689_v61 = vld [vmem:[#allocation113_spill] sm:$0xff] }
 0x238   :  { %v4864_v34 = vpack.c.bf16 %v3848_v39, %v3848_v39  ;;  %v3777_v33 = vmax.f32 %v2807_v4, %v3705_v36  ;;  %v2805_v58 = vsel %vm2661_vm13, %v2557_v62, %v2733_v12  ;;  %v3476_v13 = vadd.f32 %v7909_v55, %v7774_v24  ;;  %v8688_v12 = vld [vmem:[#allocation112_spill] sm:$0xff] }
 0x239   :  { %v3846_v37 = vmax.f32 %v8675_v35, %v3774_v30  ;;  %vm3559_vm14 = vcmp.gt.f32.partialorder %v3455_v2, 0.0  ;;  %v3631_v1 = vmul.f32 %v3455_v2, %v5960_v54  ;;  %vm2666_vm15 = vcmp.gt.f32.partialorder %v2578_v63, 0.0  ;;  %v8687_v30 = vld [vmem:[#allocation10_spill] sm:$0xff] }
 0x23a   :  { %4209 = vst.msk [vmem:[%s8242_s4 + $0xf8] sm:$0xf] %vm4146_vm2, %v4864_v34  ;;  %v2738_v10 = vmul.f32 %v2578_v63, %v5960_v54  ;;  %v8678_v43 = vmax.f32 %v8676_v3, %v8677_v29  ;;  %v2570_v40 = vadd.f32 %v7909_v55, %v7776_v22  ;;  %v3468_v48 = vadd.f32 %v7909_v55, %v7785_v45  ;;  %v8680_v22 = vld [vmem:[#allocation109_spill] sm:$0xff] }
 0x23b   :  { %v4862_v60 = vpack.c.bf16 %v3846_v37, %v3846_v37  ;;  %v3703_v17 = vsel %vm3559_vm14, %v3455_v2, %v3631_v1  ;;  %vm3564_vm0 = vcmp.gt.f32.partialorder %v3476_v13, 0.0  ;;  %v3636_v24 = vmul.f32 %v3476_v13, %v5960_v54  ;;  %v8691_v1 = vld [vmem:[#allocation114_spill] sm:$0xff] }
 0x23c   :  { %v3849_v15 = vmax.f32 %v8678_v43, %v3777_v33  ;;  %v3775_v38 = vmax.f32 %v2805_v58, %v3703_v17  ;;  %v2810_v53 = vsel %vm2666_vm15, %v2578_v63, %v2738_v10  ;;  %vm2664_vm1 = vcmp.gt.f32.partialorder %v2570_v40, 0.0 }
 0x23d   :  { %4207 = vst.msk [vmem:[%s8242_s4 + $0xf0] sm:$0xf] %vm4146_vm2, %v4862_v60  ;;  %v2736_v50 = vmul.f32 %v2570_v40, %v5960_v54  ;;  %vm3562_vm3 = vcmp.gt.f32.partialorder %v3468_v48, 0.0  ;;  %v8681_v47 = vmax.f32 %v8679_v19, %v8680_v22  ;;  %v3708_v45 = vsel %vm3564_vm0, %v3476_v13, %v3636_v24  ;;  %v8692_v60 = vld [vmem:[#allocation115_spill] sm:$0xff] }
 0x23e   :  { %v4865_v28 = vpack.c.bf16 %v3849_v15, %v3849_v15  ;;  %v3634_v49 = vmul.f32 %v3468_v48, %v5960_v54  ;;  %v2581_v5 = vadd.f32 %v7909_v55, %v7787_v42  ;;  %v3780_v56 = vmax.f32 %v2810_v53, %v3708_v45  ;;  %v8685_v42 = vld [vmem:[#allocation111_spill] sm:$0xff] }
 0x23f   :  { %v3847_v51 = vmax.f32 %v8681_v47, %v3775_v38  ;;  %v2808_v44 = vsel %vm2664_vm1, %v2570_v40, %v2736_v50  ;;  %v3479_v0 = vadd.f32 %v7909_v55, %v8682_v41  ;;  %v2573_v57 = vadd.f32 %v7909_v55, %v8683_v31  ;;  %v8700_v31 = vld [vmem:[#allocation11_spill] sm:$0xff] }
 0x240   :  { %4210 = vst.msk [vmem:[%s8242_s4 + $0xfc] sm:$0xf] %vm4146_vm2, %v4865_v28  ;;  %v3706_v26 = vsel %vm3562_vm3, %v3468_v48, %v3634_v49  ;;  %vm2667_vm4 = vcmp.gt.f32.partialorder %v2581_v5, 0.0  ;;  %v2739_v62 = vmul.f32 %v2581_v5, %v5960_v54  ;;  %v8686_v32 = vmax.f32 %v8684_v9, %v8685_v42  ;;  %v8694_v48 = vld [vmem:[#allocation116_spill] sm:$0xff] }
 0x241   :  { %v4863_v14 = vpack.c.bf16 %v3847_v51, %v3847_v51  ;;  %v3778_v18 = vmax.f32 %v2808_v44, %v3706_v26  ;;  %vm3565_vm5 = vcmp.gt.f32.partialorder %v3479_v0, 0.0  ;;  %v3637_v7 = vmul.f32 %v3479_v0, %v5960_v54  ;;  %v8701_v26 = vld [vmem:[#allocation120_spill] sm:$0xff] }
 0x242   :  { %v3852_v11 = vmax.f32 %v8686_v32, %v3780_v56  ;;  %v2811_v59 = vsel %vm2667_vm4, %v2581_v5, %v2739_v62  ;;  %vm2665_vm6 = vcmp.gt.f32.partialorder %v2573_v57, 0.0  ;;  %v2737_v39 = vmul.f32 %v2573_v57, %v5960_v54  ;;  %v8697_v5 = vld [vmem:[#allocation118_spill] sm:$0xff]  ;;  %v8702_v62 = vld [vmem:[#allocation121_spill] sm:$0xff] }
 0x243   :  { %4208 = vst.msk [vmem:[%s8242_s4 + $0xf4] sm:$0xf] %vm4146_vm2, %v4863_v14  ;;  %v3471_v8 = vadd.f32 %v7909_v55, %v8687_v30  ;;  %v8690_v2 = vmax.f32 %v8688_v12, %v8689_v61  ;;  %v3709_v25 = vsel %vm3565_vm5, %v3479_v0, %v3637_v7  ;;  %v2594_v6 = vadd.f32 %v7909_v55, %v7820_v16  ;;  %v8705_v30 = vld [vmem:[#allocation123_spill] sm:$0xff] }
 0x244   :  { %v4868_v4 = vpack.c.bf16 %v3852_v11, %v3852_v11  ;;  %v3781_v35 = vmax.f32 %v2811_v59, %v3709_v25  ;;  %v2809_v37 = vsel %vm2665_vm6, %v2573_v57, %v2737_v39  ;;  %v3492_v58 = vadd.f32 %v7909_v55, %v7829_v27  ;;  %v8704_v39 = vld [vmem:[#allocation122_spill] sm:$0xff] }
 0x245   :  { %v3850_v34 = vmax.f32 %v8690_v2, %v3778_v18  ;;  %vm3563_vm7 = vcmp.gt.f32.partialorder %v3471_v8, 0.0  ;;  %v3635_v36 = vmul.f32 %v3471_v8, %v5960_v54  ;;  %vm2670_vm8 = vcmp.gt.f32.partialorder %v2594_v6, 0.0  ;;  %v8707_v2 = vld [vmem:[#allocation124_spill] sm:$0xff] }
 0x246   :  { %4213 = vst.msk [vmem:[%s8242_s4 + $0x108] sm:$0xf] %vm4146_vm2, %v4868_v4  ;;  %v2742_v33 = vmul.f32 %v2594_v6, %v5960_v54  ;;  %v8693_v16 = vmax.f32 %v8691_v1, %v8692_v60  ;;  %v2586_v3 = vadd.f32 %v7909_v55, %v7831_v23  ;;  %v3484_v29 = vadd.f32 %v7909_v55, %v7838_v20  ;;  %v8695_v23 = vld [vmem:[#allocation117_spill] sm:$0xff] }
 0x247   :  { %v4866_v63 = vpack.c.bf16 %v3850_v34, %v3850_v34  ;;  %v3707_v13 = vsel %vm3563_vm7, %v3471_v8, %v3635_v36  ;;  %vm3568_vm9 = vcmp.gt.f32.partialorder %v3492_v58, 0.0  ;;  %v3640_v27 = vmul.f32 %v3492_v58, %v5960_v54 }
 0x248   :  { %v3853_v10 = vmax.f32 %v8693_v16, %v3781_v35  ;;  %v3779_v43 = vmax.f32 %v2809_v37, %v3707_v13  ;;  %v2814_v15 = vsel %vm2670_vm8, %v2594_v6, %v2742_v33  ;;  %vm2668_vm10 = vcmp.gt.f32.partialorder %v2586_v3, 0.0 }
 0x249   :  { %4211 = vst.msk [vmem:[%s8242_s4 + $0x100] sm:$0xf] %vm4146_vm2, %v4866_v63  ;;  %v2740_v40 = vmul.f32 %v2586_v3, %v5960_v54  ;;  %vm3566_vm11 = vcmp.gt.f32.partialorder %v3484_v29, 0.0  ;;  %v8696_v38 = vmax.f32 %v8694_v48, %v8695_v23  ;;  %v3712_v20 = vsel %vm3568_vm9, %v3492_v58, %v3640_v27 }
 0x24a   :  { %v4869_v17 = vpack.c.bf16 %v3853_v10, %v3853_v10  ;;  %v3638_v24 = vmul.f32 %v3484_v29, %v5960_v54  ;;  %v2597_v28 = vadd.f32 %v7909_v55, %v7840_v52  ;;  %v3784_v50 = vmax.f32 %v2814_v15, %v3712_v20  ;;  %v8698_v52 = vld [vmem:[#allocation119_spill] sm:$0xff] }
 0x24b   :  { %v3851_v53 = vmax.f32 %v8696_v38, %v3779_v43  ;;  %v2812_v19 = vsel %vm2668_vm10, %v2586_v3, %v2740_v40  ;;  %v3495_v22 = vadd.f32 %v7909_v55, %v7843_v46  ;;  %v2589_v47 = vadd.f32 %v7909_v55, %v7845_v21 }
 0x24c   :  { %4214 = vst.msk [vmem:[%s8242_s4 + $0x10c] sm:$0xf] %vm4146_vm2, %v4869_v17  ;;  %v3710_v45 = vsel %vm3566_vm11, %v3484_v29, %v3638_v24  ;;  %vm2671_vm12 = vcmp.gt.f32.partialorder %v2597_v28, 0.0  ;;  %v2743_v49 = vmul.f32 %v2597_v28, %v5960_v54  ;;  %v8699_v56 = vmax.f32 %v8697_v5, %v8698_v52 }
 0x24d   :  { %v4867_v51 = vpack.c.bf16 %v3851_v53, %v3851_v53  ;;  %v3782_v41 = vmax.f32 %v2812_v19, %v3710_v45  ;;  %vm3569_vm13 = vcmp.gt.f32.partialorder %v3495_v22, 0.0  ;;  %v3641_v0 = vmul.f32 %v3495_v22, %v5960_v54 }
 0x24e   :  { %v3856_v44 = vmax.f32 %v8699_v56, %v3784_v50  ;;  %v2815_v46 = vsel %vm2671_vm12, %v2597_v28, %v2743_v49  ;;  %vm2669_vm14 = vcmp.gt.f32.partialorder %v2589_v47, 0.0  ;;  %v2741_v21 = vmul.f32 %v2589_v47, %v5960_v54 }
 0x24f   :  { %4212 = vst.msk [vmem:[%s8242_s4 + $0x104] sm:$0xf] %vm4146_vm2, %v4867_v51  ;;  %v3487_v57 = vadd.f32 %v7909_v55, %v8700_v31  ;;  %v8703_v9 = vmax.f32 %v8701_v26, %v8702_v62  ;;  %v3713_v32 = vsel %vm3569_vm13, %v3495_v22, %v3641_v0  ;;  %v8706_v55 = vmax.f32 %v8704_v39, %v8705_v30 }
 0x250   :  { %v4872_v14 = vpack.c.bf16 %v3856_v44, %v3856_v44  ;;  %v3785_v11 = vmax.f32 %v2815_v46, %v3713_v32  ;;  %v2813_v18 = vsel %vm2669_vm14, %v2589_v47, %v2741_v21 }
 0x251   :  { %v3854_v42 = vmax.f32 %v8703_v9, %v3782_v41  ;;  %vm3567_vm15 = vcmp.gt.f32.partialorder %v3487_v57, 0.0  ;;  %v3639_v7 = vmul.f32 %v3487_v57, %v5960_v54  ;;  %v8708_v54 = vld [vmem:[#allocation125_spill] sm:$0xff] }
 0x252   :  { %4217 = vst.msk [vmem:[%s8242_s4 + $0x118] sm:$0xf] %vm4146_vm2, %v4872_v14  ;;  %v3857_v8 = vmax.f32 %v8706_v55, %v3785_v11  ;;  %v8709_v34 = vmax.f32 %v8707_v2, %v8708_v54 }
 0x253   :  { %v4870_v59 = vpack.c.bf16 %v3854_v42, %v3854_v42  ;;  %v3711_v4 = vsel %vm3567_vm15, %v3487_v57, %v3639_v7 }
 0x254   :  { %v3783_v12 = vmax.f32 %v2813_v18, %v3711_v4  ;;  %v4873_v61 = vpack.c.bf16 %v3857_v8, %v3857_v8 }
 0x255   :  { %4215 = vst.msk [vmem:[%s8242_s4 + $0x110] sm:$0xf] %vm4146_vm2, %v4870_v59 }
 0x256   :  { %v3855_v25 = vmax.f32 %v8709_v34, %v3783_v12  ;;  %4218 = vst.msk [vmem:[%s8242_s4 + $0x11c] sm:$0xf] %vm4146_vm2, %v4873_v61 }
 0x258   :  { %v4871_v6 = vpack.c.bf16 %v3855_v25, %v3855_v25 }
 0x25a   :  { %4216 = vst.msk [vmem:[%s8242_s4 + $0x114] sm:$0xf] %vm4146_vm2, %v4871_v6 }

// kernel: siamese_net.5
= control target key start
LH: loop header
LB: loop body
LE: loop exit
PB: predicated region body
PF: predicated region fallthrough
CT: control target
= control target key end

     0   :  { %v167_v9 = vlaneseq  ;;  %v1941_v10 = vmov 1983009808   ;;  %vm1465_vm4 = vcmask 11264   ;;  %s2580_s1 = inlined_call_operand.vmem [shape: bf16[1024,256], index: 1, kind: input, shape index: {}]   ;;  %s2581_s0 = inlined_call_operand.vmem [shape: bf16[4,1024], index: 0, kind: input, shape index: {}]   ;;  %s2582_s4 = inlined_call_operand.vmem [shape: bf16[256,256], index: 4, kind: input, shape index: {}]   ;;  %s2583_s7 = inlined_call_operand.vmem [shape: bf16[256,2], index: 7, kind: input, shape index: {}]   ;;  %s2584_s2 = inlined_call_operand.vmem [shape: f32[1,256], index: 2, kind: input, shape index: {}]   ;;  %s2585_s3 = inlined_call_operand.<no memory space> [shape: f32[1], index: 3, kind: input, shape index: {}]   ;;  %s2586_s5 = inlined_call_operand.vmem [shape: f32[1,256], index: 5, kind: input, shape index: {}]   ;;  %s2587_s6 = inlined_call_operand.<no memory space> [shape: f32[1], index: 6, kind: input, shape index: {}]   ;;  %s2588_s8 = inlined_call_operand.vmem [shape: f32[1,2], index: 8, kind: input, shape index: {}]   ;;  %s2589_s9 = inlined_call_operand.vmem [shape: f32[4,2], index: 9, kind: output, shape index: {}]  }
   0x1   :  { %v1683_v0 = vld [vmem:[%s2580_s1 + $0x104] ss:$8 sps:$4 sm:$0xff]   ;;  %v1685_v1 = vld [vmem:[%s2580_s1 + $0x100] ss:$8 sps:$4 sm:$0xff]   ;;  %v1686_v2 = vld [vmem:[%s2580_s1 + $0x114] ss:$8 sps:$4 sm:$0xff]   ;;  %v181_v11 = vunpack.c.l.s4 %v1941_v10 }
   0x2   :  { %902 = vmatprep.subr.bf16.mxu0 %v1683_v0  ;;  %v1688_v3 = vld [vmem:[%s2580_s1 + $0x110] ss:$8 sps:$4 sm:$0xff]   ;;  %v1689_v4 = vld [vmem:[%s2580_s1 + $0x124] ss:$8 sps:$4 sm:$0xff]   ;;  %v1691_v5 = vld [vmem:[%s2580_s1 + $0x120] ss:$8 sps:$4 sm:$0xff]  }
   0x3   :  { %903 = vmatpush1.bf16.msra.mxu0 %v1685_v1  ;;  %v1692_v6 = vld [vmem:[%s2580_s1 + $0x134] ss:$8 sps:$4 sm:$0xff]   ;;  %v1694_v7 = vld [vmem:[%s2580_s1 + $0x130] ss:$8 sps:$4 sm:$0xff]   ;;  %v1695_v8 = vld [vmem:[%s2580_s1 + $0x144] ss:$8 sps:$4 sm:$0xff]   ;;  %v182_v15 = vunpack.c.0.s8 %v181_v11 }
   0x4   :  { %904 = vmatprep.subr.bf16.mxu0 %v1686_v2  ;;  %v1697_v12 = vld [vmem:[%s2580_s1 + $0x140] ss:$8 sps:$4 sm:$0xff]   ;;  %v1698_v13 = vld [vmem:[%s2580_s1 + $0x154] ss:$8 sps:$4 sm:$0xff]   ;;  %v2025_v14 = vshrl.u32 %v167_v9, 7 }
   0x5   :  { %v1700_v16 = vld [vmem:[%s2580_s1 + $0x150] ss:$8 sps:$4 sm:$0xff]   ;;  %v1701_v17 = vld [vmem:[%s2580_s1 + $0x164] ss:$8 sps:$4 sm:$0xff]   ;;  %v1703_v21 = vld [vmem:[%s2580_s1 + $0x160] ss:$8 sps:$4 sm:$0xff]  }
   0x6   :  { %v2034_v18 = vsub.s32 %v182_v15, %v2025_v14  ;;  %v35_v19 = vld [vmem:[%s2581_s0] sm:$0xff]  ;;  %v1704_v22 = vld [vmem:[%s2580_s1 + $0x174] ss:$8 sps:$4 sm:$0xff]   ;;  %v1706_v25 = vld [vmem:[%s2580_s1 + $0x170] ss:$8 sps:$4 sm:$0xff]  }
   0x7   :  { %905 = vmatpush1.bf16.msra.mxu0 %v1688_v3  ;;  %v179_v20 = vcombine.high %v35_v19, %v35_v19  ;;  %v1707_v26 = vld [vmem:[%s2580_s1 + $0x184] ss:$8 sps:$4 sm:$0xff]   ;;  %v1709_v27 = vld [vmem:[%s2580_s1 + $0x180] ss:$8 sps:$4 sm:$0xff]   ;;  %v1710_v28 = vld [vmem:[%s2580_s1 + $0x194] ss:$8 sps:$4 sm:$0xff]  }
   0x8   :  { %906 = vmatprep.subr.bf16.mxu0 %v1689_v4  ;;  %v1712_v29 = vld [vmem:[%s2580_s1 + $0x190] ss:$8 sps:$4 sm:$0xff]   ;;  %v1713_v30 = vld [vmem:[%s2580_s1 + $0x1a4] ss:$8 sps:$4 sm:$0xff]   ;;  %v1715_v31 = vld [vmem:[%s2580_s1 + $0x1a0] ss:$8 sps:$4 sm:$0xff]   ;;  %v2131_v51 = vrot.slane %v35_v19, %v2034_v18 }
   0x9   :  { %v2046_v23 = vrot.slane %v179_v20, %v2034_v18  ;;  %v1716_v32 = vld [vmem:[%s2580_s1 + $0x1b4] ss:$8 sps:$4 sm:$0xff]   ;;  %v1777_v33 = vld [vmem:[%s2580_s1 + $0x4] ss:$8 sps:$4 sm:$0xff]   ;;  %v1779_v34 = vld [vmem:[%s2580_s1] ss:$8 sps:$4 sm:$0xff]  }
   0xa   :  { %v1718_v35 = vld [vmem:[%s2580_s1 + $0x1b0] ss:$8 sps:$4 sm:$0xff]   ;;  %v1719_v36 = vld [vmem:[%s2580_s1 + $0x1c4] ss:$8 sps:$4 sm:$0xff]   ;;  %861 = vmatprep.subr.bf16.mxu1 %v1777_v33  ;;  %v1783_v37 = vld [vmem:[%s2580_s1 + $0x14] ss:$8 sps:$4 sm:$0xff]   ;;  %v194_v54 = vcombine.high %v2131_v51, %v2131_v51 }
   0xb   :  { %907 = vmatpush1.bf16.msra.mxu0 %v1691_v5  ;;  %v195_v24 = vcombine.high %v2046_v23, %v2046_v23  ;;  %862 = vmatpush1.bf16.msra.mxu1 %v1779_v34  ;;  %v1785_v38 = vld [vmem:[%s2580_s1 + $0x10] ss:$8 sps:$4 sm:$0xff]   ;;  %v1721_v39 = vld [vmem:[%s2580_s1 + $0x1c0] ss:$8 sps:$4 sm:$0xff]   ;;  %v1722_v40 = vld [vmem:[%s2580_s1 + $0x1d4] ss:$8 sps:$4 sm:$0xff]  }
   0xc   :  { %908 = vmatprep.subr.bf16.mxu0 %v1692_v6  ;;  %863 = vmatprep.subr.bf16.mxu1 %v1783_v37  ;;  %v1789_v41 = vld [vmem:[%s2580_s1 + $0x24] ss:$8 sps:$4 sm:$0xff]   ;;  %v1791_v42 = vld [vmem:[%s2580_s1 + $0x20] ss:$8 sps:$4 sm:$0xff]   ;;  %v1795_v43 = vld [vmem:[%s2580_s1 + $0x34] ss:$8 sps:$4 sm:$0xff]  }
   0xd   :  { %934 = vmatprep.mubr.bf16.mxu0 %v195_v24  ;;  %v1724_v44 = vld [vmem:[%s2580_s1 + $0x1d0] ss:$8 sps:$4 sm:$0xff]   ;;  %v1725_v45 = vld [vmem:[%s2580_s1 + $0x1e4] ss:$8 sps:$4 sm:$0xff]   ;;  %v1727_v48 = vld [vmem:[%s2580_s1 + $0x1e0] ss:$8 sps:$4 sm:$0xff]   ;;  %893 = vmatprep.mubr.bf16.mxu1 %v194_v54 }
   0xe   :  { %v1797_v46 = vld [vmem:[%s2580_s1 + $0x30] ss:$8 sps:$4 sm:$0xff]   ;;  %v1801_v47 = vld [vmem:[%s2580_s1 + $0x44] ss:$8 sps:$4 sm:$0xff]   ;;  %v1728_v49 = vld [vmem:[%s2580_s1 + $0x1f4] ss:$8 sps:$4 sm:$0xff]  }
   0xf   :  { %909 = vmatpush1.bf16.msra.mxu0 %v1694_v7  ;;  %864 = vmatpush1.bf16.msra.mxu1 %v1785_v38  ;;  %v2128_v50 = vld [vmem:[%s2581_s0 + $0x8] sm:$0xff]  ;;  %v1807_v53 = vld [vmem:[%s2580_s1 + $0x54] ss:$8 sps:$4 sm:$0xff]   ;;  %v1730_v55 = vld [vmem:[%s2580_s1 + $0x1f0] ss:$8 sps:$4 sm:$0xff]  }
  0x10   :  { %910 = vmatprep.subr.bf16.mxu0 %v1695_v8  ;;  %865 = vmatprep.subr.bf16.mxu1 %v1789_v41  ;;  %v1803_v52 = vld [vmem:[%s2580_s1 + $0x40] ss:$8 sps:$4 sm:$0xff]   ;;  %v2146_v56 = vrot.slane %v2128_v50, %v2034_v18  ;;  %v1734_v57 = vld [vmem:[%s2580_s1 + $0x204] ss:$8 sps:$4 sm:$0xff]   ;;  %v1809_v58 = vld [vmem:[%s2580_s1 + $0x50] ss:$8 sps:$4 sm:$0xff]  }
  0x11   :  { %v1813_v59 = vld [vmem:[%s2580_s1 + $0x64] ss:$8 sps:$4 sm:$0xff]   ;;  %v1732_v60 = vld [vmem:[%s2580_s1 + $0x200] ss:$8 sps:$4 sm:$0xff]   ;;  %v1737_v62 = vld [vmem:[%s2580_s1 + $0x214] ss:$8 sps:$4 sm:$0xff]  }
  0x12   :  { %v211_v61 = vcombine.high %v2146_v56, %v2146_v56  ;;  %v1815_v63 = vld [vmem:[%s2580_s1 + $0x60] ss:$8 sps:$4 sm:$0xff]   ;;  %v1819_v0 = vld [vmem:[%s2580_s1 + $0x74] ss:$8 sps:$4 sm:$0xff]   ;;  %v1735_v1 = vld [vmem:[%s2580_s1 + $0x210] ss:$8 sps:$4 sm:$0xff]  }
  0x13   :  { %911 = vmatpush1.bf16.msra.mxu0 %v1697_v12  ;;  %866 = vmatpush1.bf16.msra.mxu1 %v1791_v42  ;;  %v1740_v2 = vld [vmem:[%s2580_s1 + $0x224] ss:$8 sps:$4 sm:$0xff]   ;;  %v1821_v3 = vld [vmem:[%s2580_s1 + $0x70] ss:$8 sps:$4 sm:$0xff]   ;;  %v1738_v5 = vld [vmem:[%s2580_s1 + $0x220] ss:$8 sps:$4 sm:$0xff]  }
  0x14   :  { %912 = vmatprep.subr.bf16.mxu0 %v1698_v13  ;;  %867 = vmatprep.subr.bf16.mxu1 %v1795_v43  ;;  %v1825_v4 = vld [vmem:[%s2580_s1 + $0x84] ss:$8 sps:$4 sm:$0xff]   ;;  %v1743_v6 = vld [vmem:[%s2580_s1 + $0x234] ss:$8 sps:$4 sm:$0xff]   ;;  %v1827_v7 = vld [vmem:[%s2580_s1 + $0x80] ss:$8 sps:$4 sm:$0xff]  }
  0x15   :  { %v1831_v8 = vld [vmem:[%s2580_s1 + $0x94] ss:$8 sps:$4 sm:$0xff]   ;;  %v1741_v9 = vld [vmem:[%s2580_s1 + $0x230] ss:$8 sps:$4 sm:$0xff]   ;;  %v1746_v10 = vld [vmem:[%s2580_s1 + $0x244] ss:$8 sps:$4 sm:$0xff]  }
  0x16   :  { %v1833_v11 = vld [vmem:[%s2580_s1 + $0x90] ss:$8 sps:$4 sm:$0xff]   ;;  %v1837_v12 = vld [vmem:[%s2580_s1 + $0xa4] ss:$8 sps:$4 sm:$0xff]   ;;  %v1744_v13 = vld [vmem:[%s2580_s1 + $0x240] ss:$8 sps:$4 sm:$0xff]  }
  0x17   :  { %913 = vmatpush1.bf16.msra.mxu0 %v1700_v16  ;;  %868 = vmatpush1.bf16.msra.mxu1 %v1797_v46  ;;  %v1749_v15 = vld [vmem:[%s2580_s1 + $0x254] ss:$8 sps:$4 sm:$0xff]   ;;  %v1839_v16 = vld [vmem:[%s2580_s1 + $0xa0] ss:$8 sps:$4 sm:$0xff]   ;;  %v1747_v19 = vld [vmem:[%s2580_s1 + $0x250] ss:$8 sps:$4 sm:$0xff]  }
  0x18   :  { %914 = vmatprep.subr.bf16.mxu0 %v1701_v17  ;;  %869 = vmatprep.subr.bf16.mxu1 %v1801_v47  ;;  %v1843_v17 = vld [vmem:[%s2580_s1 + $0xb4] ss:$8 sps:$4 sm:$0xff]   ;;  %v1752_v20 = vld [vmem:[%s2580_s1 + $0x264] ss:$8 sps:$4 sm:$0xff]   ;;  %v1863_v33 = vld [vmem:[%s2580_s1 + $0xe0] ss:$8 sps:$4 sm:$0xff]  }
  0x19   :  { %v1755_v24 = vld [vmem:[%s2580_s1 + $0x274] ss:$8 sps:$4 sm:$0xff]   ;;  %v1869_v37 = vld [vmem:[%s2580_s1 + $0xf0] ss:$8 sps:$4 sm:$0xff]   ;;  %v1879_v38 = vld [vmem:[%s2582_s4 + $0x4] ss:$8 sps:$4 sm:$0xff]  }
  0x1a   :  { %v1867_v34 = vld [vmem:[%s2580_s1 + $0xf4] ss:$8 sps:$4 sm:$0xff]   ;;  %v1877_v41 = vld [vmem:[%s2582_s4] ss:$8 sps:$4 sm:$0xff]   ;;  %v1765_v43 = vld [vmem:[%s2580_s1 + $0x2b0] ss:$8 sps:$4 sm:$0xff]  }
  0x1b   :  { %915 = vmatpush1.bf16.msra.mxu0 %v1703_v21  ;;  %870 = vmatpush1.bf16.msra.mxu1 %v1803_v52  ;;  %v1845_v21 = vld [vmem:[%s2580_s1 + $0xb0] ss:$8 sps:$4 sm:$0xff]   ;;  %v1882_v42 = vld [vmem:[%s2582_s4 + $0x14] ss:$8 sps:$4 sm:$0xff]   ;;  %v1885_v46 = vld [vmem:[%s2582_s4 + $0x24] ss:$8 sps:$4 sm:$0xff]  }
  0x1c   :  { %916 = vmatprep.subr.bf16.mxu0 %v1704_v22  ;;  %871 = vmatprep.subr.bf16.mxu1 %v1807_v53  ;;  %v1849_v22 = vld [vmem:[%s2580_s1 + $0xc4] ss:$8 sps:$4 sm:$0xff]   ;;  %v1768_v47 = vld [vmem:[%s2580_s1 + $0x2c0] ss:$8 sps:$4 sm:$0xff]   ;;  %v1771_v52 = vld [vmem:[%s2580_s1 + $0x2d0] ss:$8 sps:$4 sm:$0xff]  }
  0x1d   :  { %v1776_v53 = vld [vmem:[%s2580_s1 + $0x2e4] ss:$8 sps:$4 sm:$0xff]   ;;  %v1886_v54 = vld [vmem:[%s2582_s4 + $0x30] ss:$8 sps:$4 sm:$0xff]  }
  0x1f   :  { %917 = vmatpush1.bf16.msra.mxu0 %v1706_v25  ;;  %872 = vmatpush1.bf16.msra.mxu1 %v1809_v58  ;;  %v1851_v25 = vld [vmem:[%s2580_s1 + $0xc0] ss:$8 sps:$4 sm:$0xff]   ;;  %v196_v58 = vcombine.high %v2128_v50, %v2128_v50  ;;  %v1780_v50 = vld [vmem:[%s2580_s1 + $0x2f0] ss:$8 sps:$4 sm:$0xff]  }
  0x20   :  { %918 = vmatprep.subr.bf16.mxu0 %v1707_v26  ;;  %873 = vmatprep.subr.bf16.mxu1 %v1813_v59  ;;  %v1855_v26 = vld [vmem:[%s2580_s1 + $0xd4] ss:$8 sps:$4 sm:$0xff]  }
  0x21   :  { %v1782_v59 = vld [vmem:[%s2580_s1 + $0x2f4] ss:$8 sps:$4 sm:$0xff]  }
  0x23   :  { %919 = vmatpush1.bf16.msra.mxu0 %v1709_v27  ;;  %874 = vmatpush1.bf16.msra.mxu1 %v1815_v63  ;;  %v1753_v27 = vld [vmem:[%s2580_s1 + $0x270] ss:$8 sps:$4 sm:$0xff]   ;;  %v1788_v63 = vld [vmem:[%s2580_s1 + $0x304] ss:$8 sps:$4 sm:$0xff]  }
  0x24   :  { %920 = vmatprep.subr.bf16.mxu0 %v1710_v28  ;;  %875 = vmatprep.subr.bf16.mxu1 %v1819_v0  ;;  %v1758_v28 = vld [vmem:[%s2580_s1 + $0x284] ss:$8 sps:$4 sm:$0xff]   ;;  %v1892_v0 = vld [vmem:[%s2582_s4 + $0x50] ss:$8 sps:$4 sm:$0xff]  }
  0x27   :  { %921 = vmatpush1.bf16.msra.mxu0 %v1712_v29  ;;  %876 = vmatpush1.bf16.msra.mxu1 %v1821_v3  ;;  %v1857_v29 = vld [vmem:[%s2580_s1 + $0xd0] ss:$8 sps:$4 sm:$0xff]   ;;  %v1794_v3 = vld [vmem:[%s2580_s1 + $0x314] ss:$8 sps:$4 sm:$0xff]  }
  0x28   :  { %922 = vmatprep.subr.bf16.mxu0 %v1713_v30  ;;  %877 = vmatprep.subr.bf16.mxu1 %v1825_v4  ;;  %v1861_v30 = vld [vmem:[%s2580_s1 + $0xe4] ss:$8 sps:$4 sm:$0xff]   ;;  %v1895_v4 = vld [vmem:[%s2582_s4 + $0x60] ss:$8 sps:$4 sm:$0xff]  }
  0x2b   :  { %923 = vmatpush1.bf16.msra.mxu0 %v1715_v31  ;;  %878 = vmatpush1.bf16.msra.mxu1 %v1827_v7  ;;  %v1756_v31 = vld [vmem:[%s2580_s1 + $0x280] ss:$8 sps:$4 sm:$0xff]   ;;  %v1800_v7 = vld [vmem:[%s2580_s1 + $0x324] ss:$8 sps:$4 sm:$0xff]  }
  0x2c   :  { %924 = vmatprep.subr.bf16.mxu0 %v1716_v32  ;;  %879 = vmatprep.subr.bf16.mxu1 %v1831_v8  ;;  %v1761_v32 = vld [vmem:[%s2580_s1 + $0x294] ss:$8 sps:$4 sm:$0xff]   ;;  %v1903_v8 = vld [vmem:[%s2582_s4 + $0x84] ss:$8 sps:$4 sm:$0xff]  }
  0x2f   :  { %925 = vmatpush1.bf16.msra.mxu0 %v1718_v35  ;;  %880 = vmatpush1.bf16.msra.mxu1 %v1833_v11  ;;  %v1759_v35 = vld [vmem:[%s2580_s1 + $0x290] ss:$8 sps:$4 sm:$0xff]   ;;  %v1901_v11 = vld [vmem:[%s2582_s4 + $0x80] ss:$8 sps:$4 sm:$0xff]  }
  0x30   :  { %926 = vmatprep.subr.bf16.mxu0 %v1719_v36  ;;  %881 = vmatprep.subr.bf16.mxu1 %v1837_v12  ;;  %v1764_v36 = vld [vmem:[%s2580_s1 + $0x2a4] ss:$8 sps:$4 sm:$0xff]   ;;  %v1906_v12 = vld [vmem:[%s2582_s4 + $0x94] ss:$8 sps:$4 sm:$0xff]  }
  0x33   :  { %927 = vmatpush1.bf16.msra.mxu0 %v1721_v39  ;;  %882 = vmatpush1.bf16.msra.mxu1 %v1839_v16  ;;  %v1762_v39 = vld [vmem:[%s2580_s1 + $0x2a0] ss:$8 sps:$4 sm:$0xff]   ;;  %v1904_v16 = vld [vmem:[%s2582_s4 + $0x90] ss:$8 sps:$4 sm:$0xff]  }
  0x34   :  { %928 = vmatprep.subr.bf16.mxu0 %v1722_v40  ;;  %883 = vmatprep.subr.bf16.mxu1 %v1843_v17  ;;  %v1767_v40 = vld [vmem:[%s2580_s1 + $0x2b4] ss:$8 sps:$4 sm:$0xff]   ;;  %v1909_v17 = vld [vmem:[%s2582_s4 + $0xa4] ss:$8 sps:$4 sm:$0xff]  }
  0x37   :  { %929 = vmatpush1.bf16.msra.mxu0 %v1724_v44  ;;  %884 = vmatpush1.bf16.msra.mxu1 %v1845_v21  ;;  %v1770_v44 = vld [vmem:[%s2580_s1 + $0x2c4] ss:$8 sps:$4 sm:$0xff]   ;;  %v1907_v21 = vld [vmem:[%s2582_s4 + $0xa0] ss:$8 sps:$4 sm:$0xff]  }
  0x38   :  { %930 = vmatprep.subr.bf16.mxu0 %v1725_v45  ;;  %885 = vmatprep.subr.bf16.mxu1 %v1849_v22  ;;  %v1880_v45 = vld [vmem:[%s2582_s4 + $0x10] ss:$8 sps:$4 sm:$0xff]   ;;  %v1912_v22 = vld [vmem:[%s2582_s4 + $0xb4] ss:$8 sps:$4 sm:$0xff]  }
  0x3b   :  { %931 = vmatpush1.bf16.msra.mxu0 %v1727_v48  ;;  %886 = vmatpush1.bf16.msra.mxu1 %v1851_v25  ;;  %v1773_v48 = vld [vmem:[%s2580_s1 + $0x2d4] ss:$8 sps:$4 sm:$0xff]   ;;  %v1910_v25 = vld [vmem:[%s2582_s4 + $0xb0] ss:$8 sps:$4 sm:$0xff]  }
  0x3c   :  { %932 = vmatprep.subr.bf16.mxu0 %v1728_v49  ;;  %887 = vmatprep.subr.bf16.mxu1 %v1855_v26  ;;  %v1883_v49 = vld [vmem:[%s2582_s4 + $0x20] ss:$8 sps:$4 sm:$0xff]   ;;  %v1915_v26 = vld [vmem:[%s2582_s4 + $0xc4] ss:$8 sps:$4 sm:$0xff]  }
  0x3f   :  { %933 = vmatpush1.bf16.msra.mxu0 %v1730_v55  ;;  %888 = vmatpush1.bf16.msra.mxu1 %v1857_v29  ;;  %v1891_v55 = vld [vmem:[%s2582_s4 + $0x44] ss:$8 sps:$4 sm:$0xff]   ;;  %v1913_v29 = vld [vmem:[%s2582_s4 + $0xc0] ss:$8 sps:$4 sm:$0xff]  }
  0x40   :  { %943 = vmatprep.subr.bf16.mxu0 %v1734_v57  ;;  %889 = vmatprep.subr.bf16.mxu1 %v1861_v30  ;;  %v1774_v57 = vld [vmem:[%s2580_s1 + $0x2e0] ss:$8 sps:$4 sm:$0xff]   ;;  %v1828_v30 = vld [vmem:[%s2580_s1 + $0x370] ss:$8 sps:$4 sm:$0xff]  }
  0x42   :  { %935 = vmatmul.mubr.bf16.vlgmr.msra.gmra.mrb[0].mxu0 %v2046_v23  ;;  %v1750_v23 = vld [vmem:[%s2580_s1 + $0x260] ss:$8 sps:$4 sm:$0xff]  }
  0x43   :  { %944 = vmatpush1.bf16.msra.mxu0 %v1732_v60  ;;  %975 = vmatprep.mubr.bf16.mxu0 %v211_v61  ;;  %v1889_v60 = vld [vmem:[%s2582_s4 + $0x40] ss:$8 sps:$4 sm:$0xff]   ;;  %v1894_v61 = vld [vmem:[%s2582_s4 + $0x54] ss:$8 sps:$4 sm:$0xff]  }
  0x44   :  { %945 = vmatprep.subr.bf16.mxu0 %v1737_v62  ;;  %890 = vmatpush1.bf16.msra.mxu1 %v1863_v33  ;;  %v2347_v62 = vrot.slane %v196_v58, %v2034_v18  ;;  %v1786_v18 = vld [vmem:[%s2580_s1 + $0x300] ss:$8 sps:$4 sm:$0xff]   ;;  %v1842_v33 = vld [vmem:[%s2580_s1 + $0x394] ss:$8 sps:$4 sm:$0xff]  }
  0x45   :  { %891 = vmatprep.subr.bf16.mxu1 %v1867_v34  ;;  %v1840_v34 = vld [vmem:[%s2580_s1 + $0x390] ss:$8 sps:$4 sm:$0xff]  }
  0x47   :  { %946 = vmatpush1.bf16.msra.mxu0 %v1735_v1  ;;  %v1897_v1 = vld [vmem:[%s2582_s4 + $0x64] ss:$8 sps:$4 sm:$0xff]  }
  0x48   :  { %947 = vmatprep.subr.bf16.mxu0 %v1740_v2  ;;  %892 = vmatpush1.bf16.msra.mxu1 %v1869_v37  ;;  %v212_v2 = vcombine.high %v2347_v62, %v2347_v62  ;;  %v1854_v37 = vld [vmem:[%s2580_s1 + $0x3b4] ss:$8 sps:$4 sm:$0xff]  }
  0x49   :  { %1239 = vmatprep.subr.bf16.mxu1 %v1879_v38  ;;  %v1852_v38 = vld [vmem:[%s2580_s1 + $0x3b0] ss:$8 sps:$4 sm:$0xff]  }
  0x4b   :  { %948 = vmatpush1.bf16.msra.mxu0 %v1738_v5  ;;  %894 = vmatmul.mubr.bf16.vlgmr.msra.gmra.mrb[0].mxu1 %v2131_v51  ;;  %v1888_v51 = vld [vmem:[%s2582_s4 + $0x34] ss:$8 sps:$4 sm:$0xff]  }
  0x4c   :  { %949 = vmatprep.subr.bf16.mxu0 %v1743_v6  ;;  %1240 = vmatpush1.bf16.msra.mxu1 %v1877_v41  ;;  %v1900_v5 = vld [vmem:[%s2582_s4 + $0x74] ss:$8 sps:$4 sm:$0xff]   ;;  %v1792_v6 = vld [vmem:[%s2580_s1 + $0x310] ss:$8 sps:$4 sm:$0xff]  }
  0x4d   :  { %1241 = vmatprep.subr.bf16.mxu1 %v1882_v42  ;;  %v1866_v41 = vld [vmem:[%s2580_s1 + $0x3d4] ss:$8 sps:$4 sm:$0xff]   ;;  %v1864_v42 = vld [vmem:[%s2580_s1 + $0x3d0] ss:$8 sps:$4 sm:$0xff]  }
  0x4f   :  { %950 = vmatpush1.bf16.msra.mxu0 %v1741_v9  ;;  %v1798_v9 = vld [vmem:[%s2580_s1 + $0x320] ss:$8 sps:$4 sm:$0xff]  }
  0x50   :  { %951 = vmatprep.subr.bf16.mxu0 %v1746_v10  ;;  %1242 = vmatpush1.bf16.msra.mxu1 %v1880_v45  ;;  %v1806_v10 = vld [vmem:[%s2580_s1 + $0x334] ss:$8 sps:$4 sm:$0xff]  }
  0x51   :  { %1243 = vmatprep.subr.bf16.mxu1 %v1885_v46  ;;  %v1875_v45 = vld [vmem:[%s2580_s1 + $0x3f4] ss:$8 sps:$4 sm:$0xff]   ;;  %v1873_v46 = vld [vmem:[%s2580_s1 + $0x3f0] ss:$8 sps:$4 sm:$0xff]  }
  0x53   :  { %952 = vmatpush1.bf16.msra.mxu0 %v1744_v13  ;;  %v1804_v13 = vld [vmem:[%s2580_s1 + $0x330] ss:$8 sps:$4 sm:$0xff]  }
  0x54   :  { %953 = vmatprep.subr.bf16.mxu0 %v1749_v15  ;;  %1244 = vmatpush1.bf16.msra.mxu1 %v1883_v49  ;;  %v1812_v15 = vld [vmem:[%s2580_s1 + $0x344] ss:$8 sps:$4 sm:$0xff]  }
  0x55   :  { %1245 = vmatprep.subr.bf16.mxu1 %v1888_v51  ;;  %v1921_v49 = vld [vmem:[%s2582_s4 + $0xe4] ss:$8 sps:$4 sm:$0xff]   ;;  %v1919_v51 = vld [vmem:[%s2582_s4 + $0xe0] ss:$8 sps:$4 sm:$0xff]  }
  0x57   :  { %954 = vmatpush1.bf16.msra.mxu0 %v1747_v19  ;;  %v1810_v19 = vld [vmem:[%s2580_s1 + $0x340] ss:$8 sps:$4 sm:$0xff]  }
  0x58   :  { %955 = vmatprep.subr.bf16.mxu0 %v1752_v20  ;;  %1246 = vmatpush1.bf16.msra.mxu1 %v1886_v54  ;;  %v1818_v20 = vld [vmem:[%s2580_s1 + $0x354] ss:$8 sps:$4 sm:$0xff]   ;;  %v1925_v54 = vld [vmem:[%s2583_s7 + $0x40] sm:$0xff]  }
  0x59   :  { %1247 = vmatprep.subr.bf16.mxu1 %v1891_v55 }
  0x5b   :  { %956 = vmatpush1.bf16.msra.mxu0 %v1750_v23  ;;  %v1816_v23 = vld [vmem:[%s2580_s1 + $0x350] ss:$8 sps:$4 sm:$0xff]  }
  0x5c   :  { %957 = vmatprep.subr.bf16.mxu0 %v1755_v24  ;;  %1248 = vmatpush1.bf16.msra.mxu1 %v1889_v60  ;;  %v1824_v24 = vld [vmem:[%s2580_s1 + $0x364] ss:$8 sps:$4 sm:$0xff]   ;;  %v169_v60 = vsub.s32 0, %v2025_v14 }
  0x5d   :  { %1249 = vmatprep.subr.bf16.mxu1 %v1894_v61  ;;  %v165_v61 = vld [vmem:[%s2584_s2] sm:$0x3] }
  0x5f   :  { %958 = vmatpush1.bf16.msra.mxu0 %v1753_v27  ;;  %v1822_v27 = vld [vmem:[%s2580_s1 + $0x360] ss:$8 sps:$4 sm:$0xff]  }
  0x60   :  { %959 = vmatprep.subr.bf16.mxu0 %v1758_v28  ;;  %1250 = vmatpush1.bf16.msra.mxu1 %v1892_v0  ;;  %v1830_v28 = vld [vmem:[%s2580_s1 + $0x374] ss:$8 sps:$4 sm:$0xff]  }
  0x61   :  { %1251 = vmatprep.subr.bf16.mxu1 %v1897_v1 }
  0x63   :  { %960 = vmatpush1.bf16.msra.mxu0 %v1756_v31  ;;  %v1836_v31 = vld [vmem:[%s2580_s1 + $0x384] ss:$8 sps:$4 sm:$0xff]  }
  0x64   :  { %961 = vmatprep.subr.bf16.mxu0 %v1761_v32  ;;  %1252 = vmatpush1.bf16.msra.mxu1 %v1895_v4  ;;  %v1834_v32 = vld [vmem:[%s2580_s1 + $0x380] ss:$8 sps:$4 sm:$0xff]  }
  0x65   :  { %1253 = vmatprep.subr.bf16.mxu1 %v1900_v5 }
  0x67   :  { %962 = vmatpush1.bf16.msra.mxu0 %v1759_v35  ;;  %v1848_v35 = vld [vmem:[%s2580_s1 + $0x3a4] ss:$8 sps:$4 sm:$0xff]  }
  0x68   :  { %963 = vmatprep.subr.bf16.mxu0 %v1764_v36  ;;  %v1846_v36 = vld [vmem:[%s2580_s1 + $0x3a0] ss:$8 sps:$4 sm:$0xff]  }
  0x6b   :  { %964 = vmatpush1.bf16.msra.mxu0 %v1762_v39  ;;  %v1860_v39 = vld [vmem:[%s2580_s1 + $0x3c4] ss:$8 sps:$4 sm:$0xff]  }
  0x6c   :  { %965 = vmatprep.subr.bf16.mxu0 %v1767_v40  ;;  %v1858_v40 = vld [vmem:[%s2580_s1 + $0x3c0] ss:$8 sps:$4 sm:$0xff]  }
  0x6f   :  { %966 = vmatpush1.bf16.msra.mxu0 %v1765_v43  ;;  %v1872_v43 = vld [vmem:[%s2580_s1 + $0x3e4] ss:$8 sps:$4 sm:$0xff]  }
  0x70   :  { %967 = vmatprep.subr.bf16.mxu0 %v1770_v44  ;;  %v1870_v44 = vld [vmem:[%s2580_s1 + $0x3e0] ss:$8 sps:$4 sm:$0xff]  }
  0x73   :  { %968 = vmatpush1.bf16.msra.mxu0 %v1768_v47  ;;  %v1916_v47 = vld [vmem:[%s2582_s4 + $0xd0] ss:$8 sps:$4 sm:$0xff]  }
  0x74   :  { %969 = vmatprep.subr.bf16.mxu0 %v1773_v48  ;;  %v1918_v48 = vld [vmem:[%s2582_s4 + $0xd4] ss:$8 sps:$4 sm:$0xff]  }
  0x77   :  { %970 = vmatpush1.bf16.msra.mxu0 %v1771_v52  ;;  %v1924_v52 = vld [vmem:[%s2582_s4 + $0xf4] ss:$8 sps:$4 sm:$0xff]  }
  0x78   :  { %971 = vmatprep.subr.bf16.mxu0 %v1776_v53  ;;  %v1922_v53 = vld [vmem:[%s2582_s4 + $0xf0] ss:$8 sps:$4 sm:$0xff]  }
  0x7b   :  { %972 = vmatpush1.bf16.msra.mxu0 %v1774_v57 }
  0x7c   :  { %973 = vmatprep.subr.bf16.mxu0 %v1782_v59 }
  0x7f   :  { %974 = vmatpush1.bf16.msra.mxu0 %v1780_v50  ;;  %v173_v50 = vsub.s32 1, %v2025_v14 }
  0x80   :  { %984 = vmatprep.subr.bf16.mxu0 %v1788_v63 }
  0x81   :  { %v174_v63 = vrot.slane %v165_v61, %v173_v50 }
  0x82   :  { %976 = vmatmul.mubr.bf16.vlgmr.msra.gmra.mrb[0].mxu0 %v2146_v56  ;;  %v1898_v56 = vld [vmem:[%s2582_s4 + $0x70] ss:$8 sps:$4 sm:$0xff]  }
  0x83   :  { %985 = vmatpush1.bf16.msra.mxu0 %v1786_v18  ;;  %1016 = vmatprep.mubr.bf16.mxu0 %v212_v2  ;;  %v1028_v2 = vstv %s2585_s3 }
  0x84   :  { %986 = vmatprep.subr.bf16.mxu0 %v1794_v3  ;;  %1254 = vmatpush1.bf16.msra.mxu1 %v1898_v56 }
  0x85   :  { %1255 = vmatprep.subr.bf16.mxu1 %v1903_v8 }
  0x87   :  { %987 = vmatpush1.bf16.msra.mxu0 %v1792_v6 }
  0x88   :  { %988 = vmatprep.subr.bf16.mxu0 %v1800_v7  ;;  %1256 = vmatpush1.bf16.msra.mxu1 %v1901_v11  ;;  %v1926_v11 = vld [vmem:[%s2583_s7] sm:$0xff]  }
  0x89   :  { %1257 = vmatprep.subr.bf16.mxu1 %v1906_v12 }
  0x8b   :  { %989 = vmatpush1.bf16.msra.mxu0 %v1798_v9 }
  0x8c   :  { %990 = vmatprep.subr.bf16.mxu0 %v1806_v10  ;;  %1258 = vmatpush1.bf16.msra.mxu1 %v1904_v16  ;;  %v1929_v16 = vld [vmem:[%s2583_s7 + $0x50] sm:$0xff]  }
  0x8d   :  { %1259 = vmatprep.subr.bf16.mxu1 %v1909_v17  ;;  %v1930_v17 = vld [vmem:[%s2583_s7 + $0x10] sm:$0xff]  }
  0x8f   :  { %991 = vmatpush1.bf16.msra.mxu0 %v1804_v13  ;;  %v1927_v13 = vld [vmem:[%s2583_s7 + $0x48] sm:$0xff]  }
  0x90   :  { %992 = vmatprep.subr.bf16.mxu0 %v1812_v15  ;;  %1260 = vmatpush1.bf16.msra.mxu1 %v1907_v21  ;;  %v1928_v15 = vld [vmem:[%s2583_s7 + $0x8] sm:$0xff]   ;;  %v1933_v21 = vld [vmem:[%s2583_s7 + $0x60] sm:$0xff]  }
  0x91   :  { %1261 = vmatprep.subr.bf16.mxu1 %v1912_v22  ;;  %v1934_v22 = vld [vmem:[%s2583_s7 + $0x20] sm:$0xff]  }
  0x93   :  { %993 = vmatpush1.bf16.msra.mxu0 %v1810_v19  ;;  %v1931_v19 = vld [vmem:[%s2583_s7 + $0x58] sm:$0xff]  }
  0x94   :  { %994 = vmatprep.subr.bf16.mxu0 %v1818_v20  ;;  %1262 = vmatpush1.bf16.msra.mxu1 %v1910_v25  ;;  %v1932_v20 = vld [vmem:[%s2583_s7 + $0x18] sm:$0xff]   ;;  %v1937_v25 = vld [vmem:[%s2583_s7 + $0x70] sm:$0xff]  }
  0x95   :  { %1263 = vmatprep.subr.bf16.mxu1 %v1915_v26  ;;  %v1938_v26 = vld [vmem:[%s2583_s7 + $0x30] sm:$0xff]  }
  0x97   :  { %995 = vmatpush1.bf16.msra.mxu0 %v1816_v23  ;;  %v1935_v23 = vld [vmem:[%s2583_s7 + $0x68] sm:$0xff]  }
  0x98   :  { %996 = vmatprep.subr.bf16.mxu0 %v1824_v24  ;;  %1264 = vmatpush1.bf16.msra.mxu1 %v1913_v29  ;;  %v1936_v24 = vld [vmem:[%s2583_s7 + $0x28] sm:$0xff]   ;;  %v1067_v29 = vld [vmem:[%s2586_s5] sm:$0x3] }
  0x99   :  { %1265 = vmatprep.subr.bf16.mxu1 %v1918_v48 }
  0x9b   :  { %997 = vmatpush1.bf16.msra.mxu0 %v1822_v27  ;;  %v1939_v27 = vld [vmem:[%s2583_s7 + $0x78] sm:$0xff]  }
  0x9c   :  { %998 = vmatprep.subr.bf16.mxu0 %v1830_v28  ;;  %1266 = vmatpush1.bf16.msra.mxu1 %v1916_v47  ;;  %v1940_v28 = vld [vmem:[%s2583_s7 + $0x38] sm:$0xff]  }
  0x9d   :  { %1267 = vmatprep.subr.bf16.mxu1 %v1921_v49 }
  0x9f   :  { %999 = vmatpush1.bf16.msra.mxu0 %v1828_v30  ;;  %v1072_v30 = vrot.slane %v1067_v29, %v169_v60 }
  0xa0   :  { %1000 = vmatprep.subr.bf16.mxu0 %v1836_v31  ;;  %1268 = vmatpush1.bf16.msra.mxu1 %v1919_v51  ;;  %v1076_v31 = vrot.slane %v1067_v29, %v173_v50 }
  0xa1   :  { %1269 = vmatprep.subr.bf16.mxu1 %v1924_v52 }
  0xa3   :  { %1001 = vmatpush1.bf16.msra.mxu0 %v1834_v32 }
  0xa4   :  { %1002 = vmatprep.subr.bf16.mxu0 %v1842_v33  ;;  %1270 = vmatpush1.bf16.msra.mxu1 %v1922_v53  ;;  %v1283_v33 = vstv %s2587_s6 }
  0xa5   :  { %1648 = vmatprep.subr.bf16.mxu1 %v1925_v54 }
  0xa7   :  { %1003 = vmatpush1.bf16.msra.mxu0 %v1840_v34 }
  0xa8   :  { %1004 = vmatprep.subr.bf16.mxu0 %v1848_v35 }
  0xab   :  { %1005 = vmatpush1.bf16.msra.mxu0 %v1846_v36 }
  0xac   :  { %1006 = vmatprep.subr.bf16.mxu0 %v1854_v37 }
  0xaf   :  { %1007 = vmatpush1.bf16.msra.mxu0 %v1852_v38 }
  0xb0   :  { %1008 = vmatprep.subr.bf16.mxu0 %v1860_v39 }
  0xb3   :  { %1009 = vmatpush1.bf16.msra.mxu0 %v1858_v40 }
  0xb4   :  { %1010 = vmatprep.subr.bf16.mxu0 %v1866_v41 }
  0xb7   :  { %1011 = vmatpush1.bf16.msra.mxu0 %v1864_v42 }
  0xb8   :  { %1012 = vmatprep.subr.bf16.mxu0 %v1872_v43 }
  0xbb   :  { %1013 = vmatpush1.bf16.msra.mxu0 %v1870_v44 }
  0xbc   :  { %1014 = vmatprep.subr.bf16.mxu0 %v1875_v45 }
  0xbf   :  { %1015 = vmatpush1.bf16.msra.mxu0 %v1873_v46  ;;  %v1631_v46 = vld [vmem:[%s2588_s8] ss:$0 sm:$0xff] }
  0xc2   :  { %1017 = vmatmul.mubr.bf16.vlgmr.msra.gmra.mrb[0].mxu0 %v2347_v62  ;;  %v170_v62 = vrot.slane %v165_v61, %v169_v60 }
 0x11e   :  { %v895_v55 = vpop.f32.mrb[0].mxu1 }
 0x11f   :  { %v897_v57 = vpop.f32.mrb[1].mxu1  ;;  %v896_v0 = vadd.f32 %v895_v55, %v170_v62 }
 0x120   :  { %v899_v58 = vpop.f32.mrb[2].mxu1  ;;  %v898_v1 = vadd.f32 %v897_v57, %v174_v63 }
 0x121   :  { %v900_v59 = vpop.f32.mrb[3].mxu1 }
 0x195   :  { %v1018_v18 = vpop.f32.mrb[0].mxu0 }
 0x196   :  { %v1671_v3 = vadd.f32 %v1018_v18, %v896_v0  ;;  %v1020_v4 = vpop.f32.mrb[1].mxu0 }
 0x197   :  { %v1673_v5 = vadd.f32 %v1020_v4, %v898_v1  ;;  %v1022_v6 = vpop.f32.mrb[2].mxu0 }
 0x198   :  { %vm1025_vm0 = vcmp.gt.f32.partialorder %v1671_v3, 0.0  ;;  %v1029_v7 = vmul.f32 %v1671_v3, %v1028_v2  ;;  %v1023_v56 = vpop.f32.mrb[3].mxu0 }
 0x199   :  { %vm1026_vm1 = vcmp.gt.f32.partialorder %v1673_v5, 0.0  ;;  %v1030_v8 = vmul.f32 %v1673_v5, %v1028_v2 }
 0x19a   :  { %v1031_v9 = vsel %vm1025_vm0, %v1671_v3, %v1029_v7 }
 0x19b   :  { %v1032_v14 = vsel %vm1026_vm1, %v1673_v5, %v1030_v8  ;;  %v1033_v12 = vpack.c.bf16 %v1031_v9, %v1031_v9 }
 0x19c   :  { %v1034_v10 = vpack.c.bf16 %v1032_v14, %v1032_v14 }
 0x19e   :  { %1271 = vmatprep.mubr.bf16.mxu1 %v1034_v10 }
 0x19f   :  { %1272 = vmatmul.mubr.bf16.vlgmr.msra.gmra.mrb[4].mxu1 %v1033_v12 }
 0x1a0   :  { %1649 = vmatpush3.bf16.msra.mxu1 %v1926_v11 }
 0x1a1   :  { %1650 = vmatprep.subr.bf16.mxu1 %v1927_v13 }
 0x1a4   :  { %1651 = vmatpush3.bf16.msra.mxu1 %v1928_v15 }
 0x1a5   :  { %1652 = vmatprep.subr.bf16.mxu1 %v1929_v16 }
 0x1a8   :  { %1653 = vmatpush3.bf16.msra.mxu1 %v1930_v17 }
 0x1a9   :  { %1654 = vmatprep.subr.bf16.mxu1 %v1931_v19 }
 0x1ac   :  { %1655 = vmatpush3.bf16.msra.mxu1 %v1932_v20 }
 0x1ad   :  { %1656 = vmatprep.subr.bf16.mxu1 %v1933_v21 }
 0x1b0   :  { %1657 = vmatpush3.bf16.msra.mxu1 %v1934_v22 }
 0x1b1   :  { %1658 = vmatprep.subr.bf16.mxu1 %v1935_v23 }
 0x1b4   :  { %1659 = vmatpush3.bf16.msra.mxu1 %v1936_v24 }
 0x1b5   :  { %1660 = vmatprep.subr.bf16.mxu1 %v1937_v25 }
 0x1b8   :  { %1661 = vmatpush3.bf16.msra.mxu1 %v1938_v26 }
 0x1b9   :  { %1662 = vmatprep.subr.bf16.mxu1 %v1939_v27 }
 0x1bc   :  { %1663 = vmatpush3.bf16.msra.mxu1 %v1940_v28 }
 0x272   :  { %v1273_v32 = vpop.f32.mrb[4].mxu1 }
 0x273   :  { %v1274_v34 = vadd.f32 %v1273_v32, %v1072_v30  ;;  %v1275_v35 = vpop.f32.mrb[5].mxu1 }
 0x274   :  { %v1276_v36 = vadd.f32 %v1275_v35, %v1076_v31  ;;  %v1277_v37 = vpop.f32.mrb[6].mxu1 }
 0x275   :  { %vm1280_vm2 = vcmp.gt.f32.partialorder %v1274_v34, 0.0  ;;  %v1284_v38 = vmul.f32 %v1283_v33, %v1274_v34  ;;  %v1278_v39 = vpop.f32.mrb[7].mxu1 }
 0x276   :  { %vm1281_vm3 = vcmp.gt.f32.partialorder %v1276_v36, 0.0  ;;  %v1285_v40 = vmul.f32 %v1283_v33, %v1276_v36 }
 0x277   :  { %v1286_v41 = vsel %vm1280_vm2, %v1274_v34, %v1284_v38 }
 0x278   :  { %v1287_v42 = vsel %vm1281_vm3, %v1276_v36, %v1285_v40  ;;  %v1288_v44 = vpack.c.bf16 %v1286_v41, %v1286_v41 }
 0x279   :  { %v1289_v43 = vpack.c.bf16 %v1287_v42, %v1287_v42 }
 0x27b   :  { %1457 = vmatprep.mubr.bf16.mxu1 %v1289_v43 }
 0x27c   :  { %1458 = vmatmul.mubr.bf16.vlgmr.msra.gmra.mrb[8].mxu1 %v1288_v44 }
 0x34f   :  { %v1664_v45 = vpop.f32.mrb[8].mxu1 }
 0x350   :  { %v1665_v47 = vpop.f32.mrb[9].mxu1 }
 0x351   :  { %v1666_v48 = vadd.f32 %v1665_v47, %v1664_v45  ;;  %v1667_v49 = vpop.f32.mrb[10].mxu1 }
 0x352   :  { %v1668_v51 = vpop.f32.mrb[11].mxu1 }
 0x353   :  { %v1460_v52 = vadd.f32 %v1666_v48, %v1631_v46 }
 0x355   :  { %1466 = vst.msk [vmem:[%s2589_s9] sm:$0xf] %vm1465_vm4, %v1460_v52 }

// kernel: siamese_net.4
= control target key start
LH: loop header
LB: loop body
LE: loop exit
PB: predicated region body
PF: predicated region fallthrough
CT: control target
= control target key end

     0   :  { %vm599_vm0 = vcmask 261120   ;;  %s4720_s1 = inlined_call_operand.vmem [shape: bf16[800,64], index: 1, kind: input, shape index: {}]   ;;  %s4721_s0 = inlined_call_operand.vmem [shape: bf16[4,64,800], index: 0, kind: input, shape index: {}]   ;;  %s4722_s2 = inlined_call_operand.vmem [shape: f32[1,64], index: 2, kind: input, shape index: {}]   ;;  %s4723_s3 = inlined_call_operand.<no memory space> [shape: f32[1], index: 3, kind: input, shape index: {}]   ;;  %s4724_s4 = inlined_call_operand.vmem [shape: bf16[64,64], index: 4, kind: output, shape index: {}]  }
   0x1   :  { %v3504_v0 = vld [vmem:[%s4720_s1 + $0x40] sm:$0xff]   ;;  %v3527_v4 = vld [vmem:[%s4720_s1 + $0x48] sm:$0xff]   ;;  %v3551_v8 = vld [vmem:[%s4720_s1 + $0x50] sm:$0xff]  }
   0x2   :  { %v3509_v1 = vld [vmem:[%s4720_s1 + $0xc0] sm:$0xff]   ;;  %2664 = vmatprep.subr.bf16.mxu0 %v3504_v0  ;;  %v3533_v5 = vld [vmem:[%s4720_s1 + $0xc8] sm:$0xff]   ;;  %v3557_v9 = vld [vmem:[%s4720_s1 + $0xd0] sm:$0xff]  }
   0x3   :  { %v3515_v2 = vld [vmem:[%s4720_s1] sm:$0xff]   ;;  %2704 = vmatprep.subr.bf16.mxu1 %v3509_v1  ;;  %v3539_v6 = vld [vmem:[%s4720_s1 + $0x8] sm:$0xff]   ;;  %v3563_v10 = vld [vmem:[%s4720_s1 + $0x10] sm:$0xff]  }
   0x4   :  { %v3521_v3 = vld [vmem:[%s4720_s1 + $0x80] sm:$0xff]   ;;  %2665 = vmatpush3.bf16.msra.mxu0 %v3515_v2  ;;  %v3545_v7 = vld [vmem:[%s4720_s1 + $0x88] sm:$0xff]   ;;  %v3569_v11 = vld [vmem:[%s4720_s1 + $0x90] sm:$0xff]  }
   0x5   :  { %2705 = vmatpush3.bf16.msra.mxu1 %v3521_v3  ;;  %2666 = vmatprep.subr.bf16.mxu0 %v3527_v4  ;;  %v3575_v12 = vld [vmem:[%s4720_s1 + $0x58] sm:$0xff]   ;;  %v3599_v16 = vld [vmem:[%s4720_s1 + $0x60] sm:$0xff]   ;;  %v3623_v20 = vld [vmem:[%s4720_s1 + $0x68] sm:$0xff]  }
   0x6   :  { %2706 = vmatprep.subr.bf16.mxu1 %v3533_v5  ;;  %v3581_v13 = vld [vmem:[%s4720_s1 + $0xd8] sm:$0xff]   ;;  %v3605_v17 = vld [vmem:[%s4720_s1 + $0xe0] sm:$0xff]   ;;  %v3629_v21 = vld [vmem:[%s4720_s1 + $0xe8] sm:$0xff]  }
   0x7   :  { %v3587_v14 = vld [vmem:[%s4720_s1 + $0x18] sm:$0xff]   ;;  %v3611_v18 = vld [vmem:[%s4720_s1 + $0x20] sm:$0xff]   ;;  %v3635_v22 = vld [vmem:[%s4720_s1 + $0x28] sm:$0xff]  }
   0x8   :  { %2667 = vmatpush3.bf16.msra.mxu0 %v3539_v6  ;;  %v3593_v15 = vld [vmem:[%s4720_s1 + $0x98] sm:$0xff]   ;;  %v3617_v19 = vld [vmem:[%s4720_s1 + $0xa0] sm:$0xff]   ;;  %v3641_v23 = vld [vmem:[%s4720_s1 + $0xa8] sm:$0xff]  }
   0x9   :  { %2707 = vmatpush3.bf16.msra.mxu1 %v3545_v7  ;;  %2668 = vmatprep.subr.bf16.mxu0 %v3551_v8  ;;  %v3647_v24 = vld [vmem:[%s4720_s1 + $0x70] sm:$0xff]   ;;  %v3671_v28 = vld [vmem:[%s4720_s1 + $0x78] sm:$0xff]   ;;  %v3266_v33 = vld [vmem:[%s4721_s0 + $0x4] ss:$28 sps:$4 sm:$0xff]  }
   0xa   :  { %2708 = vmatprep.subr.bf16.mxu1 %v3557_v9  ;;  %v3653_v25 = vld [vmem:[%s4720_s1 + $0xf0] sm:$0xff]   ;;  %v3677_v29 = vld [vmem:[%s4720_s1 + $0xf8] sm:$0xff]   ;;  %v3267_v34 = vld [vmem:[%s4721_s0 + $0x8] ss:$28 sps:$4 sm:$0xff]   ;;  %644 = vmatprep.mubr.bf16.mxu0 %v3266_v33 }
   0xb   :  { %v3659_v26 = vld [vmem:[%s4720_s1 + $0x30] sm:$0xff]   ;;  %v3683_v30 = vld [vmem:[%s4720_s1 + $0x38] sm:$0xff]   ;;  %v3269_v35 = vld [vmem:[%s4721_s0 + $0xc] ss:$28 sps:$4 sm:$0xff]  }
   0xc   :  { %2669 = vmatpush3.bf16.msra.mxu0 %v3563_v10  ;;  %v3665_v27 = vld [vmem:[%s4720_s1 + $0xb0] sm:$0xff]   ;;  %v3689_v31 = vld [vmem:[%s4720_s1 + $0xb8] sm:$0xff]   ;;  %v3708_v36 = vld [vmem:[%s4720_s1 + $0x140] sm:$0xff]   ;;  %709 = vmatprep.mubr.bf16.mxu1 %v3269_v35 }
   0xd   :  { %2709 = vmatpush3.bf16.msra.mxu1 %v3569_v11  ;;  %2670 = vmatprep.subr.bf16.mxu0 %v3575_v12  ;;  %v3264_v32 = vld [vmem:[%s4721_s0] ss:$28 sps:$4 sm:$0xff]   ;;  %v3719_v38 = vld [vmem:[%s4720_s1 + $0x148] sm:$0xff]   ;;  %v3279_v43 = vld [vmem:[%s4721_s0 + $0x38] ss:$28 sps:$4 sm:$0xff]  }
   0xe   :  { %2710 = vmatprep.subr.bf16.mxu1 %v3581_v13  ;;  %v3713_v37 = vld [vmem:[%s4720_s1 + $0x100] sm:$0xff]   ;;  %v3725_v39 = vld [vmem:[%s4720_s1 + $0x108] sm:$0xff]   ;;  %v3274_v40 = vld [vmem:[%s4721_s0 + $0x3c] ss:$28 sps:$4 sm:$0xff]  }
   0xf   :  { %v3276_v41 = vld [vmem:[%s4721_s0 + $0x44] ss:$28 sps:$4 sm:$0xff]   ;;  %v3750_v45 = vld [vmem:[%s4720_s1 + $0x150] sm:$0xff]   ;;  %v3762_v47 = vld [vmem:[%s4720_s1 + $0x158] sm:$0xff]  }
  0x10   :  { %2671 = vmatpush3.bf16.msra.mxu0 %v3587_v14  ;;  %v3737_v42 = vld [vmem:[%s4720_s1 + $0x180] sm:$0xff]   ;;  %v3756_v46 = vld [vmem:[%s4720_s1 + $0x110] sm:$0xff]   ;;  %v3768_v48 = vld [vmem:[%s4720_s1 + $0x118] sm:$0xff]  }
  0x11   :  { %2711 = vmatpush3.bf16.msra.mxu1 %v3593_v15  ;;  %2672 = vmatprep.subr.bf16.mxu0 %v3599_v16  ;;  %v3280_v44 = vld [vmem:[%s4721_s0 + $0x40] ss:$28 sps:$4 sm:$0xff]   ;;  %v3285_v49 = vld [vmem:[%s4721_s0 + $0x74] ss:$28 sps:$4 sm:$0xff]   ;;  %v3798_v55 = vld [vmem:[%s4720_s1 + $0x168] sm:$0xff]  }
  0x12   :  { %2712 = vmatprep.subr.bf16.mxu1 %v3605_v17  ;;  %v3287_v50 = vld [vmem:[%s4721_s0 + $0x7c] ss:$28 sps:$4 sm:$0xff]   ;;  %v3289_v51 = vld [vmem:[%s4721_s0 + $0x70] ss:$28 sps:$4 sm:$0xff]   ;;  %v3786_v53 = vld [vmem:[%s4720_s1 + $0x160] sm:$0xff]  }
  0x13   :  { %v3290_v52 = vld [vmem:[%s4721_s0 + $0x78] ss:$28 sps:$4 sm:$0xff]   ;;  %v3792_v54 = vld [vmem:[%s4720_s1 + $0x120] sm:$0xff]   ;;  %v3803_v56 = vld [vmem:[%s4720_s1 + $0x128] sm:$0xff]  }
  0x14   :  { %2673 = vmatpush3.bf16.msra.mxu0 %v3611_v18  ;;  %v3295_v57 = vld [vmem:[%s4721_s0 + $0xac] ss:$28 sps:$4 sm:$0xff]   ;;  %v3297_v58 = vld [vmem:[%s4721_s0 + $0xb4] ss:$28 sps:$4 sm:$0xff]   ;;  %v3847_v33 = vld [vmem:[%s4720_s1 + $0x138] sm:$0xff]  }
  0x15   :  { %2713 = vmatpush3.bf16.msra.mxu1 %v3617_v19  ;;  %2674 = vmatprep.subr.bf16.mxu0 %v3623_v20  ;;  %v3816_v59 = vld [vmem:[%s4720_s1 + $0x188] sm:$0xff]   ;;  %v3828_v62 = vld [vmem:[%s4720_s1 + $0x170] sm:$0xff]  }
  0x16   :  { %2714 = vmatprep.subr.bf16.mxu1 %v3629_v21  ;;  %v3300_v60 = vld [vmem:[%s4721_s0 + $0xa8] ss:$28 sps:$4 sm:$0xff]   ;;  %v3301_v61 = vld [vmem:[%s4721_s0 + $0xb0] ss:$28 sps:$4 sm:$0xff]   ;;  %v3309_v35 = vld [vmem:[%s4721_s0 + $0x18] ss:$28 sps:$4 sm:$0xff]  }
  0x17   :  { %v3835_v63 = vld [vmem:[%s4720_s1 + $0x130] sm:$0xff]  }
  0x18   :  { %2675 = vmatpush3.bf16.msra.mxu0 %v3635_v22 }
  0x19   :  { %2715 = vmatpush3.bf16.msra.mxu1 %v3641_v23  ;;  %2676 = vmatprep.subr.bf16.mxu0 %v3647_v24 }
  0x1a   :  { %2716 = vmatprep.subr.bf16.mxu1 %v3653_v25 }
  0x1c   :  { %2677 = vmatpush3.bf16.msra.mxu0 %v3659_v26 }
  0x1d   :  { %2717 = vmatpush3.bf16.msra.mxu1 %v3665_v27  ;;  %2678 = vmatprep.subr.bf16.mxu0 %v3671_v28 }
  0x1e   :  { %2718 = vmatprep.subr.bf16.mxu1 %v3677_v29 }
  0x20   :  { %2679 = vmatpush3.bf16.msra.mxu0 %v3683_v30 }
  0x21   :  { %2719 = vmatpush3.bf16.msra.mxu1 %v3689_v31  ;;  %2744 = vmatprep.subr.bf16.mxu0 %v3708_v36 }
  0x22   :  { %3168 = vmatprep.subr.bf16.mxu1 %v3737_v42 }
  0x23   :  { %645 = vmatmul.mubr.bf16.vlgmr.msra.gmra.mrb[0].mxu0 %v3264_v32  ;;  %v3841_v32 = vld [vmem:[%s4720_s1 + $0x178] sm:$0xff]  }
  0x24   :  { %710 = vmatmul.mubr.bf16.vlgmr.msra.gmra.mrb[0].mxu1 %v3267_v34  ;;  %2745 = vmatpush3.bf16.msra.mxu0 %v3713_v37  ;;  %v3308_v34 = vld [vmem:[%s4721_s0 + $0x14] ss:$28 sps:$4 sm:$0xff]  }
  0x25   :  { %2746 = vmatprep.subr.bf16.mxu0 %v3719_v38  ;;  %652 = vmatprep.mubr.bf16.mxu0 %v3274_v40  ;;  %v3306_v40 = vld [vmem:[%s4721_s0 + $0x10] ss:$28 sps:$4 sm:$0xff]  }
  0x26   :  { %717 = vmatprep.mubr.bf16.mxu1 %v3276_v41  ;;  %3169 = vmatpush3.bf16.msra.mxu1 %v3737_v42  ;;  %v3310_v41 = vld [vmem:[%s4721_s0 + $0x50] ss:$28 sps:$4 sm:$0xff]  }
  0x27   :  { %3170 = vmatprep.subr.bf16.mxu1 %v3816_v59 }
  0x28   :  { %2747 = vmatpush3.bf16.msra.mxu0 %v3725_v39 }
  0x29   :  { %2748 = vmatprep.subr.bf16.mxu0 %v3750_v45 }
  0x2a   :  { %3171 = vmatpush3.bf16.msra.mxu1 %v3816_v59 }
  0x2b   :  { %653 = vmatmul.mubr.bf16.gmra.mrb[4].mxu0 %v3279_v43  ;;  %2830 = vmatprep.subr.bf16.mxu1 %v3509_v1  ;;  %v3311_v43 = vld [vmem:[%s4721_s0 + $0x4c] ss:$28 sps:$4 sm:$0xff]  }
  0x2c   :  { %718 = vmatmul.mubr.bf16.gmra.mrb[4].mxu1 %v3280_v44  ;;  %2749 = vmatpush3.bf16.msra.mxu0 %v3756_v46  ;;  %v3317_v44 = vld [vmem:[%s4721_s0 + $0x88] ss:$28 sps:$4 sm:$0xff]  }
  0x2d   :  { %2750 = vmatprep.subr.bf16.mxu0 %v3762_v47  ;;  %660 = vmatprep.mubr.bf16.mxu0 %v3285_v49  ;;  %v3313_v49 = vld [vmem:[%s4721_s0 + $0x48] ss:$28 sps:$4 sm:$0xff]  }
  0x2e   :  { %725 = vmatprep.mubr.bf16.mxu1 %v3287_v50  ;;  %v3318_v50 = vld [vmem:[%s4721_s0 + $0xc0] ss:$28 sps:$4 sm:$0xff]  }
  0x30   :  { %2751 = vmatpush3.bf16.msra.mxu0 %v3768_v48 }
  0x31   :  { %2752 = vmatprep.subr.bf16.mxu0 %v3786_v53 }
  0x33   :  { %661 = vmatmul.mubr.bf16.gmra.mrb[8].mxu0 %v3289_v51  ;;  %v3314_v51 = vld [vmem:[%s4721_s0 + $0x84] ss:$28 sps:$4 sm:$0xff]  }
  0x34   :  { %726 = vmatmul.mubr.bf16.gmra.mrb[8].mxu1 %v3290_v52  ;;  %2753 = vmatpush3.bf16.msra.mxu0 %v3792_v54  ;;  %v3324_v52 = vld [vmem:[%s4721_s0 + $0xec] ss:$28 sps:$4 sm:$0xff]  }
  0x35   :  { %2754 = vmatprep.subr.bf16.mxu0 %v3798_v55  ;;  %668 = vmatprep.mubr.bf16.mxu0 %v3295_v57  ;;  %v3316_v57 = vld [vmem:[%s4721_s0 + $0x80] ss:$28 sps:$4 sm:$0xff]  }
  0x36   :  { %733 = vmatprep.mubr.bf16.mxu1 %v3297_v58  ;;  %v3319_v58 = vld [vmem:[%s4721_s0 + $0xbc] ss:$28 sps:$4 sm:$0xff]  }
  0x38   :  { %2755 = vmatpush3.bf16.msra.mxu0 %v3803_v56 }
  0x39   :  { %2756 = vmatprep.subr.bf16.mxu0 %v3828_v62 }
  0x3b   :  { %669 = vmatmul.mubr.bf16.gmra.mrb[12].mxu0 %v3300_v60  ;;  %v3321_v60 = vld [vmem:[%s4721_s0 + $0xb8] ss:$28 sps:$4 sm:$0xff]  }
  0x3c   :  { %734 = vmatmul.mubr.bf16.gmra.mrb[12].mxu1 %v3301_v61  ;;  %2757 = vmatpush3.bf16.msra.mxu0 %v3835_v63  ;;  %v3327_v61 = vld [vmem:[%s4721_s0 + $0xe4] ss:$28 sps:$4 sm:$0xff]  }
  0x3d   :  { %2758 = vmatprep.subr.bf16.mxu0 %v3841_v32  ;;  %774 = vmatprep.mubr.bf16.mxu0 %v3308_v34  ;;  %v3322_v34 = vld [vmem:[%s4721_s0 + $0xe8] ss:$28 sps:$4 sm:$0xff]  }
  0x3e   :  { %3172 = vmatprep.mubr.msk.bf16.mxu1 %vm599_vm0, %v3309_v35  ;;  %v3325_v35 = vld [vmem:[%s4721_s0 + $0xe0] ss:$28 sps:$4 sm:$0xff]  }
  0x40   :  { %2759 = vmatpush3.bf16.msra.mxu0 %v3847_v33 }
  0x41   :  { %2790 = vmatprep.subr.bf16.mxu0 %v3504_v0 }
  0x43   :  { %775 = vmatmul.mubr.bf16.vlgmr.msra.gmra.mrb[16].mxu0 %v3306_v40  ;;  %v3328_v40 = vld [vmem:[%s4721_s0 + $0x124] ss:$28 sps:$4 sm:$0xff]  }
  0x44   :  { %3173 = vmatmul.mubr.msk.bf16.vlgmr.msra.gmra.mrb[16].mxu1 %vm599_vm0, %v3310_v41  ;;  %2791 = vmatpush3.bf16.msra.mxu0 %v3515_v2  ;;  %v3330_v41 = vld [vmem:[%s4721_s0 + $0x11c] ss:$28 sps:$4 sm:$0xff]  }
  0x45   :  { %2831 = vmatpush3.bf16.msra.mxu1 %v3521_v3  ;;  %2792 = vmatprep.subr.bf16.mxu0 %v3527_v4 }
  0x46   :  { %2832 = vmatprep.subr.bf16.mxu1 %v3533_v5  ;;  %782 = vmatprep.mubr.bf16.mxu0 %v3311_v43  ;;  %v3332_v43 = vld [vmem:[%s4721_s0 + $0x120] ss:$28 sps:$4 sm:$0xff]  }
  0x47   :  { %3176 = vmatprep.mubr.msk.bf16.mxu1 %vm599_vm0, %v3317_v44  ;;  %v3333_v44 = vld [vmem:[%s4721_s0 + $0x118] ss:$28 sps:$4 sm:$0xff]  }
  0x48   :  { %2793 = vmatpush3.bf16.msra.mxu0 %v3539_v6 }
  0x49   :  { %2833 = vmatpush3.bf16.msra.mxu1 %v3545_v7  ;;  %2794 = vmatprep.subr.bf16.mxu0 %v3551_v8 }
  0x4a   :  { %2834 = vmatprep.subr.bf16.mxu1 %v3557_v9 }
  0x4b   :  { %783 = vmatmul.mubr.bf16.gmra.mrb[20].mxu0 %v3313_v49  ;;  %v3334_v49 = vld [vmem:[%s4721_s0 + $0x15c] ss:$28 sps:$4 sm:$0xff]  }
  0x4c   :  { %3177 = vmatmul.mubr.msk.bf16.gmra.mrb[20].mxu1 %vm599_vm0, %v3318_v50  ;;  %2795 = vmatpush3.bf16.msra.mxu0 %v3563_v10  ;;  %v3336_v50 = vld [vmem:[%s4721_s0 + $0x154] ss:$28 sps:$4 sm:$0xff]  }
  0x4d   :  { %2835 = vmatpush3.bf16.msra.mxu1 %v3569_v11  ;;  %2796 = vmatprep.subr.bf16.mxu0 %v3575_v12 }
  0x4e   :  { %2836 = vmatprep.subr.bf16.mxu1 %v3581_v13  ;;  %790 = vmatprep.mubr.bf16.mxu0 %v3314_v51  ;;  %v3338_v51 = vld [vmem:[%s4721_s0 + $0x158] ss:$28 sps:$4 sm:$0xff]  }
  0x4f   :  { %1179 = vmatprep.mubr.bf16.mxu1 %v3324_v52  ;;  %v3339_v52 = vld [vmem:[%s4721_s0 + $0x150] ss:$28 sps:$4 sm:$0xff]  }
  0x50   :  { %2797 = vmatpush3.bf16.msra.mxu0 %v3587_v14 }
  0x51   :  { %2837 = vmatpush3.bf16.msra.mxu1 %v3593_v15  ;;  %2798 = vmatprep.subr.bf16.mxu0 %v3599_v16 }
  0x52   :  { %2838 = vmatprep.subr.bf16.mxu1 %v3605_v17 }
  0x53   :  { %791 = vmatmul.mubr.bf16.gmra.mrb[24].mxu0 %v3316_v57  ;;  %v3340_v57 = vld [vmem:[%s4721_s0 + $0x194] ss:$28 sps:$4 sm:$0xff]  }
  0x54   :  { %2799 = vmatpush3.bf16.msra.mxu0 %v3611_v18  ;;  %798 = vmatprep.mubr.bf16.mxu0 %v3319_v58  ;;  %v3344_v58 = vld [vmem:[%s4721_s0 + $0x190] ss:$28 sps:$4 sm:$0xff]  }
  0x55   :  { %2839 = vmatpush3.bf16.msra.mxu1 %v3617_v19  ;;  %2800 = vmatprep.subr.bf16.mxu0 %v3623_v20 }
  0x56   :  { %2840 = vmatprep.subr.bf16.mxu1 %v3629_v21 }
  0x58   :  { %2801 = vmatpush3.bf16.msra.mxu0 %v3635_v22 }
  0x59   :  { %2841 = vmatpush3.bf16.msra.mxu1 %v3641_v23  ;;  %2802 = vmatprep.subr.bf16.mxu0 %v3647_v24 }
  0x5a   :  { %2842 = vmatprep.subr.bf16.mxu1 %v3653_v25 }
  0x5b   :  { %799 = vmatmul.mubr.bf16.gmra.mrb[28].mxu0 %v3321_v60  ;;  %v3345_v60 = vld [vmem:[%s4721_s0 + $0x188] ss:$28 sps:$4 sm:$0xff]  }
  0x5c   :  { %2803 = vmatpush3.bf16.msra.mxu0 %v3659_v26  ;;  %1114 = vmatprep.mubr.bf16.mxu0 %v3327_v61  ;;  %v3346_v61 = vld [vmem:[%s4721_s0 + $0xf8] ss:$28 sps:$4 sm:$0xff]  }
  0x5d   :  { %2843 = vmatpush3.bf16.msra.mxu1 %v3665_v27  ;;  %2804 = vmatprep.subr.bf16.mxu0 %v3671_v28 }
  0x5e   :  { %2844 = vmatprep.subr.bf16.mxu1 %v3677_v29 }
  0x60   :  { %2805 = vmatpush3.bf16.msra.mxu0 %v3683_v30 }
  0x61   :  { %2845 = vmatpush3.bf16.msra.mxu1 %v3689_v31  ;;  %2870 = vmatprep.subr.bf16.mxu0 %v3708_v36 }
  0x62   :  { %3180 = vmatprep.subr.bf16.mxu1 %v3737_v42 }
  0x63   :  { %1115 = vmatmul.mubr.bf16.vlgmr.msra.gmra.mrb[32].mxu0 %v3325_v35  ;;  %v3347_v35 = vld [vmem:[%s4721_s0 + $0xf0] ss:$28 sps:$4 sm:$0xff]  }
  0x64   :  { %1180 = vmatmul.mubr.bf16.vlgmr.msra.gmra.mrb[24].mxu1 %v3322_v34  ;;  %2871 = vmatpush3.bf16.msra.mxu0 %v3713_v37  ;;  %v3349_v34 = vld [vmem:[%s4721_s0 + $0xf4] ss:$28 sps:$4 sm:$0xff]  }
  0x65   :  { %1187 = vmatprep.mubr.bf16.mxu1 %v3328_v40  ;;  %2872 = vmatprep.subr.bf16.mxu0 %v3719_v38  ;;  %v3350_v40 = vld [vmem:[%s4721_s0 + $0x130] ss:$28 sps:$4 sm:$0xff]  }
  0x66   :  { %1122 = vmatprep.mubr.bf16.mxu0 %v3330_v41  ;;  %3181 = vmatpush3.bf16.msra.mxu1 %v3737_v42  ;;  %v3351_v41 = vld [vmem:[%s4721_s0 + $0x12c] ss:$28 sps:$4 sm:$0xff]  }
  0x67   :  { %3182 = vmatprep.subr.bf16.mxu1 %v3816_v59 }
  0x68   :  { %2873 = vmatpush3.bf16.msra.mxu0 %v3725_v39 }
  0x69   :  { %2874 = vmatprep.subr.bf16.mxu0 %v3750_v45 }
  0x6a   :  { %3183 = vmatpush3.bf16.msra.mxu1 %v3816_v59 }
  0x6b   :  { %1123 = vmatmul.mubr.bf16.gmra.mrb[36].mxu0 %v3333_v44  ;;  %2956 = vmatprep.subr.bf16.mxu1 %v3509_v1  ;;  %v3342_v1 = vld [vmem:[%s4721_s0 + $0x18c] ss:$28 sps:$4 sm:$0xff]   ;;  %v3358_v44 = vld [vmem:[%s4721_s0 + $0x1a0] ss:$28 sps:$4 sm:$0xff]  }
  0x6c   :  { %1188 = vmatmul.mubr.bf16.gmra.mrb[28].mxu1 %v3332_v43  ;;  %2875 = vmatpush3.bf16.msra.mxu0 %v3756_v46  ;;  %v3357_v43 = vld [vmem:[%s4721_s0 + $0x168] ss:$28 sps:$4 sm:$0xff]  }
  0x6d   :  { %1195 = vmatprep.mubr.bf16.mxu1 %v3334_v49  ;;  %2876 = vmatprep.subr.bf16.mxu0 %v3762_v47  ;;  %v3393_v49 = vld [vmem:[%s4721_s0 + $0x208] ss:$28 sps:$4 sm:$0xff]  }
  0x6e   :  { %1130 = vmatprep.mubr.bf16.mxu0 %v3336_v50  ;;  %v3398_v50 = vld [vmem:[%s4721_s0 + $0x280] ss:$28 sps:$4 sm:$0xff]  }
  0x70   :  { %2877 = vmatpush3.bf16.msra.mxu0 %v3768_v48 }
  0x71   :  { %2878 = vmatprep.subr.bf16.mxu0 %v3786_v53 }
  0x73   :  { %1131 = vmatmul.mubr.bf16.gmra.mrb[40].mxu0 %v3339_v52  ;;  %v3449_v52 = vld [vmem:[%s4720_s1 + $0x8] sm:$0xff]  }
  0x74   :  { %1196 = vmatmul.mubr.bf16.gmra.mrb[32].mxu1 %v3338_v51  ;;  %2879 = vmatpush3.bf16.msra.mxu0 %v3792_v54  ;;  %v3448_v51 = vld [vmem:[%s4720_s1 + $0x88] sm:$0xff]  }
  0x75   :  { %1203 = vmatprep.mubr.bf16.mxu1 %v3340_v57  ;;  %2880 = vmatprep.subr.bf16.mxu0 %v3798_v55  ;;  %v3450_v57 = vld [vmem:[%s4720_s1 + $0xd0] sm:$0xff]  }
  0x76   :  { %1138 = vmatprep.mubr.bf16.mxu0 %v3342_v1  ;;  %v3451_v1 = vld [vmem:[%s4720_s1 + $0x50] sm:$0xff]  }
  0x78   :  { %2881 = vmatpush3.bf16.msra.mxu0 %v3803_v56 }
  0x79   :  { %2882 = vmatprep.subr.bf16.mxu0 %v3828_v62 }
  0x7b   :  { %1139 = vmatmul.mubr.bf16.gmra.mrb[44].mxu0 %v3345_v60  ;;  %v3404_v60 = vld [vmem:[%s4721_s0 + $0x2ac] ss:$28 sps:$4 sm:$0xff]  }
  0x7c   :  { %1204 = vmatmul.mubr.bf16.gmra.mrb[36].mxu1 %v3344_v58  ;;  %2883 = vmatpush3.bf16.msra.mxu0 %v3835_v63  ;;  %v3394_v58 = vld [vmem:[%s4721_s0 + $0x244] ss:$28 sps:$4 sm:$0xff]  }
  0x7d   :  { %3184 = vmatprep.mubr.msk.bf16.mxu1 %vm599_vm0, %v3346_v61  ;;  %2884 = vmatprep.subr.bf16.mxu0 %v3841_v32  ;;  %v3452_v61 = vld [vmem:[%s4720_s1 + $0x90] sm:$0xff]  }
  0x7e   :  { %1244 = vmatprep.mubr.bf16.mxu0 %v3349_v34  ;;  %v3453_v34 = vld [vmem:[%s4720_s1 + $0x10] sm:$0xff]  }
  0x80   :  { %2885 = vmatpush3.bf16.msra.mxu0 %v3847_v33 }
  0x81   :  { %2916 = vmatprep.subr.bf16.mxu0 %v3504_v0  ;;  %v3353_v0 = vld [vmem:[%s4721_s0 + $0x128] ss:$28 sps:$4 sm:$0xff]  }
  0x83   :  { %1245 = vmatmul.mubr.bf16.vlgmr.msra.gmra.mrb[48].mxu0 %v3347_v35  ;;  %v3454_v35 = vld [vmem:[%s4720_s1 + $0xd8] sm:$0xff]  }
  0x84   :  { %3185 = vmatmul.mubr.msk.bf16.vlgmr.msra.gmra.mrb[40].mxu1 %vm599_vm0, %v3350_v40  ;;  %2917 = vmatpush3.bf16.msra.mxu0 %v3515_v2  ;;  %v3354_v2 = vld [vmem:[%s4721_s0 + $0x164] ss:$28 sps:$4 sm:$0xff]   ;;  %v3455_v40 = vld [vmem:[%s4720_s1 + $0x58] sm:$0xff]  }
  0x85   :  { %2957 = vmatpush3.bf16.msra.mxu1 %v3521_v3  ;;  %2918 = vmatprep.subr.bf16.mxu0 %v3527_v4  ;;  %v3364_v3 = vld [vmem:[%s4721_s0 + $0x1cc] ss:$28 sps:$4 sm:$0xff]   ;;  %v3356_v4 = vld [vmem:[%s4721_s0 + $0x160] ss:$28 sps:$4 sm:$0xff]  }
  0x86   :  { %2958 = vmatprep.subr.bf16.mxu1 %v3533_v5  ;;  %1252 = vmatprep.mubr.bf16.mxu0 %v3351_v41  ;;  %v3359_v5 = vld [vmem:[%s4721_s0 + $0x19c] ss:$28 sps:$4 sm:$0xff]  }
  0x87   :  { %3188 = vmatprep.mubr.msk.bf16.mxu1 %vm599_vm0, %v3357_v43  ;;  %v3396_v41 = vld [vmem:[%s4721_s0 + $0x240] ss:$28 sps:$4 sm:$0xff]  }
  0x88   :  { %2919 = vmatpush3.bf16.msra.mxu0 %v3539_v6  ;;  %v3361_v6 = vld [vmem:[%s4721_s0 + $0x198] ss:$28 sps:$4 sm:$0xff]  }
  0x89   :  { %2959 = vmatpush3.bf16.msra.mxu1 %v3545_v7  ;;  %2920 = vmatprep.subr.bf16.mxu0 %v3551_v8  ;;  %v3367_v7 = vld [vmem:[%s4721_s0 + $0x1c4] ss:$28 sps:$4 sm:$0xff]   ;;  %v3456_v43 = vld [vmem:[%s4720_s1 + $0x98] sm:$0xff]  }
  0x8a   :  { %2960 = vmatprep.subr.bf16.mxu1 %v3557_v9  ;;  %v3362_v8 = vld [vmem:[%s4721_s0 + $0x1c8] ss:$28 sps:$4 sm:$0xff]   ;;  %v3365_v9 = vld [vmem:[%s4721_s0 + $0x1c0] ss:$28 sps:$4 sm:$0xff]  }
  0x8b   :  { %1253 = vmatmul.mubr.bf16.gmra.mrb[52].mxu0 %v3353_v0  ;;  %v3457_v0 = vld [vmem:[%s4720_s1 + $0x18] sm:$0xff]  }
  0x8c   :  { %3189 = vmatmul.mubr.msk.bf16.gmra.mrb[44].mxu1 %vm599_vm0, %v3358_v44  ;;  %2921 = vmatpush3.bf16.msra.mxu0 %v3563_v10  ;;  %v3368_v10 = vld [vmem:[%s4721_s0 + $0x204] ss:$28 sps:$4 sm:$0xff]  }
  0x8d   :  { %2961 = vmatpush3.bf16.msra.mxu1 %v3569_v11  ;;  %2922 = vmatprep.subr.bf16.mxu0 %v3575_v12  ;;  %v3371_v11 = vld [vmem:[%s4721_s0 + $0x1fc] ss:$28 sps:$4 sm:$0xff]   ;;  %v3458_v44 = vld [vmem:[%s4720_s1 + $0xe0] sm:$0xff]  }
  0x8e   :  { %2962 = vmatprep.subr.bf16.mxu1 %v3581_v13  ;;  %1260 = vmatprep.mubr.bf16.mxu0 %v3354_v2  ;;  %v3370_v12 = vld [vmem:[%s4721_s0 + $0x200] ss:$28 sps:$4 sm:$0xff]   ;;  %v3373_v13 = vld [vmem:[%s4721_s0 + $0x1f8] ss:$28 sps:$4 sm:$0xff]  }
  0x8f   :  { %1656 = vmatprep.mubr.bf16.mxu1 %v3364_v3  ;;  %v3459_v2 = vld [vmem:[%s4720_s1 + $0x60] sm:$0xff]   ;;  %v3399_v3 = vld [vmem:[%s4721_s0 + $0x27c] ss:$28 sps:$4 sm:$0xff]  }
  0x90   :  { %2923 = vmatpush3.bf16.msra.mxu0 %v3587_v14  ;;  %v3374_v14 = vld [vmem:[%s4721_s0 + $0x23c] ss:$28 sps:$4 sm:$0xff]  }
  0x91   :  { %2963 = vmatpush3.bf16.msra.mxu1 %v3593_v15  ;;  %2924 = vmatprep.subr.bf16.mxu0 %v3599_v16  ;;  %v3377_v15 = vld [vmem:[%s4721_s0 + $0x234] ss:$28 sps:$4 sm:$0xff]   ;;  %v3442_v16 = vld [vmem:[%s4720_s1 + $0xc0] sm:$0xff]  }
  0x92   :  { %2964 = vmatprep.subr.bf16.mxu1 %v3605_v17  ;;  %v3376_v17 = vld [vmem:[%s4721_s0 + $0x238] ss:$28 sps:$4 sm:$0xff]  }
  0x93   :  { %1261 = vmatmul.mubr.bf16.gmra.mrb[56].mxu0 %v3356_v4  ;;  %v3460_v4 = vld [vmem:[%s4720_s1 + $0xa0] sm:$0xff]  }
  0x94   :  { %2925 = vmatpush3.bf16.msra.mxu0 %v3611_v18  ;;  %1268 = vmatprep.mubr.bf16.mxu0 %v3359_v5  ;;  %v3379_v18 = vld [vmem:[%s4721_s0 + $0x230] ss:$28 sps:$4 sm:$0xff]   ;;  %v3461_v5 = vld [vmem:[%s4720_s1 + $0x20] sm:$0xff]  }
  0x95   :  { %2965 = vmatpush3.bf16.msra.mxu1 %v3617_v19  ;;  %2926 = vmatprep.subr.bf16.mxu0 %v3623_v20  ;;  %v3380_v19 = vld [vmem:[%s4721_s0 + $0x274] ss:$28 sps:$4 sm:$0xff]   ;;  %v3383_v20 = vld [vmem:[%s4721_s0 + $0x26c] ss:$28 sps:$4 sm:$0xff]  }
  0x96   :  { %2966 = vmatprep.subr.bf16.mxu1 %v3629_v21  ;;  %v3382_v21 = vld [vmem:[%s4721_s0 + $0x270] ss:$28 sps:$4 sm:$0xff]  }
  0x98   :  { %2927 = vmatpush3.bf16.msra.mxu0 %v3635_v22  ;;  %v3385_v22 = vld [vmem:[%s4721_s0 + $0x268] ss:$28 sps:$4 sm:$0xff]  }
  0x99   :  { %2967 = vmatpush3.bf16.msra.mxu1 %v3641_v23  ;;  %2928 = vmatprep.subr.bf16.mxu0 %v3647_v24  ;;  %v3386_v23 = vld [vmem:[%s4721_s0 + $0x1d8] ss:$28 sps:$4 sm:$0xff]  }
  0x9a   :  { %2968 = vmatprep.subr.bf16.mxu1 %v3653_v25  ;;  %v3390_v24 = vld [vmem:[%s4721_s0 + $0x1d4] ss:$28 sps:$4 sm:$0xff]  }
  0x9b   :  { %1269 = vmatmul.mubr.bf16.gmra.mrb[60].mxu0 %v3361_v6  ;;  %v3387_v25 = vld [vmem:[%s4721_s0 + $0x210] ss:$28 sps:$4 sm:$0xff]  }
  0x9c   :  { %2929 = vmatpush3.bf16.msra.mxu0 %v3659_v26  ;;  %1591 = vmatprep.mubr.bf16.mxu0 %v3367_v7  ;;  %v3388_v26 = vld [vmem:[%s4721_s0 + $0x1d0] ss:$28 sps:$4 sm:$0xff]  }
  0x9d   :  { %2969 = vmatpush3.bf16.msra.mxu1 %v3665_v27  ;;  %2930 = vmatprep.subr.bf16.mxu0 %v3671_v28  ;;  %v3443_v27 = vld [vmem:[%s4720_s1 + $0x40] sm:$0xff]   ;;  %v3391_v28 = vld [vmem:[%s4721_s0 + $0x20c] ss:$28 sps:$4 sm:$0xff]  }
  0x9e   :  { %2970 = vmatprep.subr.bf16.mxu1 %v3677_v29  ;;  %v3397_v29 = vld [vmem:[%s4721_s0 + $0x248] ss:$28 sps:$4 sm:$0xff]  }
  0x9f   :  { %v3462_v6 = vld [vmem:[%s4720_s1 + $0xe8] sm:$0xff]  }
  0xa0   :  { %2931 = vmatpush3.bf16.msra.mxu0 %v3683_v30  ;;  %v3444_v30 = vld [vmem:[%s4720_s1 + $0x80] sm:$0xff]   ;;  %v3463_v7 = vld [vmem:[%s4720_s1 + $0x68] sm:$0xff]  }
  0xa1   :  { %2971 = vmatpush3.bf16.msra.mxu1 %v3689_v31  ;;  %2996 = vmatprep.subr.bf16.mxu0 %v3708_v36  ;;  %v3445_v31 = vld [vmem:[%s4720_s1] sm:$0xff]  }
  0xa2   :  { %3192 = vmatprep.subr.bf16.mxu1 %v3737_v42 }
  0xa3   :  { %1592 = vmatmul.mubr.bf16.vlgmr.msra.gmra.mrb[64].mxu0 %v3365_v9  ;;  %v3464_v9 = vld [vmem:[%s4720_s1 + $0xa8] sm:$0xff]  }
  0xa4   :  { %1657 = vmatmul.mubr.bf16.vlgmr.msra.gmra.mrb[48].mxu1 %v3362_v8  ;;  %2997 = vmatpush3.bf16.msra.mxu0 %v3713_v37  ;;  %v3401_v8 = vld [vmem:[%s4721_s0 + $0x278] ss:$28 sps:$4 sm:$0xff]  }
  0xa5   :  { %1664 = vmatprep.mubr.bf16.mxu1 %v3368_v10  ;;  %2998 = vmatprep.subr.bf16.mxu0 %v3719_v38  ;;  %v3465_v10 = vld [vmem:[%s4720_s1 + $0x28] sm:$0xff]  }
  0xa6   :  { %3193 = vmatpush3.bf16.msra.mxu1 %v3737_v42  ;;  %1599 = vmatprep.mubr.bf16.mxu0 %v3371_v11  ;;  %v3446_v42 = vld [vmem:[%s4720_s1 + $0xc8] sm:$0xff]   ;;  %v3466_v11 = vld [vmem:[%s4720_s1 + $0xf0] sm:$0xff]  }
  0xa7   :  { %3194 = vmatprep.subr.bf16.mxu1 %v3816_v59 }
  0xa8   :  { %2999 = vmatpush3.bf16.msra.mxu0 %v3725_v39 }
  0xa9   :  { %3000 = vmatprep.subr.bf16.mxu0 %v3750_v45 }
  0xaa   :  { %3195 = vmatpush3.bf16.msra.mxu1 %v3816_v59  ;;  %v3447_v59 = vld [vmem:[%s4720_s1 + $0x48] sm:$0xff]  }
  0xab   :  { %3082 = vmatprep.subr.bf16.mxu1 %v3442_v16  ;;  %1600 = vmatmul.mubr.bf16.gmra.mrb[68].mxu0 %v3373_v13  ;;  %v3407_v13 = vld [vmem:[%s4721_s0 + $0x2a4] ss:$28 sps:$4 sm:$0xff]   ;;  %v3470_v16 = vld [vmem:[%s4720_s1 + $0xf8] sm:$0xff]  }
  0xac   :  { %1665 = vmatmul.mubr.bf16.gmra.mrb[52].mxu1 %v3370_v12  ;;  %3001 = vmatpush3.bf16.msra.mxu0 %v3756_v46  ;;  %v3467_v12 = vld [vmem:[%s4720_s1 + $0x70] sm:$0xff]  }
  0xad   :  { %1672 = vmatprep.mubr.bf16.mxu1 %v3374_v14  ;;  %3002 = vmatprep.subr.bf16.mxu0 %v3762_v47  ;;  %v3468_v14 = vld [vmem:[%s4720_s1 + $0xb0] sm:$0xff]  }
  0xae   :  { %1607 = vmatprep.mubr.bf16.mxu0 %v3377_v15  ;;  %v3469_v15 = vld [vmem:[%s4720_s1 + $0x30] sm:$0xff]  }
  0xb0   :  { %3003 = vmatpush3.bf16.msra.mxu0 %v3768_v48 }
  0xb1   :  { %3004 = vmatprep.subr.bf16.mxu0 %v3786_v53 }
  0xb3   :  { %1608 = vmatmul.mubr.bf16.gmra.mrb[72].mxu0 %v3379_v18  ;;  %v3402_v18 = vld [vmem:[%s4721_s0 + $0x2a8] ss:$28 sps:$4 sm:$0xff]  }
  0xb4   :  { %1673 = vmatmul.mubr.bf16.gmra.mrb[56].mxu1 %v3376_v17  ;;  %3005 = vmatpush3.bf16.msra.mxu0 %v3792_v54  ;;  %v3471_v17 = vld [vmem:[%s4720_s1 + $0x78] sm:$0xff]  }
  0xb5   :  { %1680 = vmatprep.mubr.bf16.mxu1 %v3380_v19  ;;  %3006 = vmatprep.subr.bf16.mxu0 %v3798_v55  ;;  %v3405_v19 = vld [vmem:[%s4721_s0 + $0x2a0] ss:$28 sps:$4 sm:$0xff]  }
  0xb6   :  { %1615 = vmatprep.mubr.bf16.mxu0 %v3383_v20  ;;  %v3472_v20 = vld [vmem:[%s4720_s1 + $0xb8] sm:$0xff]  }
  0xb8   :  { %3007 = vmatpush3.bf16.msra.mxu0 %v3803_v56 }
  0xb9   :  { %3008 = vmatprep.subr.bf16.mxu0 %v3828_v62 }
  0xbb   :  { %1616 = vmatmul.mubr.bf16.gmra.mrb[76].mxu0 %v3385_v22  ;;  %v3408_v22 = vld [vmem:[%s4721_s0 + $0x2e4] ss:$28 sps:$4 sm:$0xff]  }
  0xbc   :  { %1681 = vmatmul.mubr.bf16.gmra.mrb[60].mxu1 %v3382_v21  ;;  %3009 = vmatpush3.bf16.msra.mxu0 %v3835_v63  ;;  %v3473_v21 = vld [vmem:[%s4720_s1 + $0x38] sm:$0xff]  }
  0xbd   :  { %3196 = vmatprep.mubr.msk.bf16.mxu1 %vm599_vm0, %v3386_v23  ;;  %3010 = vmatprep.subr.bf16.mxu0 %v3841_v32  ;;  %v3411_v23 = vld [vmem:[%s4721_s0 + $0x2dc] ss:$28 sps:$4 sm:$0xff]  }
  0xbe   :  { %1721 = vmatprep.mubr.bf16.mxu0 %v3390_v24  ;;  %v3413_v24 = vld [vmem:[%s4721_s0 + $0x2d8] ss:$28 sps:$4 sm:$0xff]  }
  0xc0   :  { %3011 = vmatpush3.bf16.msra.mxu0 %v3847_v33 }
  0xc1   :  { %3042 = vmatprep.subr.bf16.mxu0 %v3443_v27 }
  0xc3   :  { %1722 = vmatmul.mubr.bf16.vlgmr.msra.gmra.mrb[80].mxu0 %v3388_v26 }
  0xc4   :  { %3197 = vmatmul.mubr.msk.bf16.vlgmr.msra.gmra.mrb[64].mxu1 %vm599_vm0, %v3387_v25  ;;  %3043 = vmatpush3.bf16.msra.mxu0 %v3445_v31 }
  0xc5   :  { %3083 = vmatpush3.bf16.msra.mxu1 %v3444_v30  ;;  %3044 = vmatprep.subr.bf16.mxu0 %v3447_v59  ;;  %v3425_v30 = vld [vmem:[%s4721_s0 + $0x348] ss:$28 sps:$4 sm:$0xff]  }
  0xc6   :  { %3084 = vmatprep.subr.bf16.mxu1 %v3446_v42  ;;  %1729 = vmatprep.mubr.bf16.mxu0 %v3391_v28 }
  0xc7   :  { %3200 = vmatprep.mubr.msk.bf16.mxu1 %vm599_vm0, %v3397_v29 }
  0xc8   :  { %3045 = vmatpush3.bf16.msra.mxu0 %v3449_v52  ;;  %v3428_v52 = vld [vmem:[%s4721_s0 + $0x35c] ss:$28 sps:$4 sm:$0xff]  }
  0xc9   :  { %3085 = vmatpush3.bf16.msra.mxu1 %v3448_v51  ;;  %3046 = vmatprep.subr.bf16.mxu0 %v3451_v1 }
  0xca   :  { %3086 = vmatprep.subr.bf16.mxu1 %v3450_v57 }
  0xcb   :  { %1730 = vmatmul.mubr.bf16.gmra.mrb[84].mxu0 %v3393_v49 }
  0xcc   :  { %3201 = vmatmul.mubr.msk.bf16.gmra.mrb[68].mxu1 %vm599_vm0, %v3398_v50  ;;  %3047 = vmatpush3.bf16.msra.mxu0 %v3453_v34 }
  0xcd   :  { %3087 = vmatpush3.bf16.msra.mxu1 %v3452_v61  ;;  %3048 = vmatprep.subr.bf16.mxu0 %v3455_v40 }
  0xce   :  { %3088 = vmatprep.subr.bf16.mxu1 %v3454_v35  ;;  %1737 = vmatprep.mubr.bf16.mxu0 %v3394_v58  ;;  %v3426_v35 = vld [vmem:[%s4721_s0 + $0x358] ss:$28 sps:$4 sm:$0xff]  }
  0xcf   :  { %2125 = vmatprep.mubr.bf16.mxu1 %v3404_v60 }
  0xd0   :  { %3049 = vmatpush3.bf16.msra.mxu0 %v3457_v0 }
  0xd1   :  { %3089 = vmatpush3.bf16.msra.mxu1 %v3456_v43  ;;  %3050 = vmatprep.subr.bf16.mxu0 %v3459_v2 }
  0xd2   :  { %3090 = vmatprep.subr.bf16.mxu1 %v3458_v44  ;;  %v3432_v44 = vld [vmem:[%s4721_s0 + $0x2b8] ss:$28 sps:$4 sm:$0xff]  }
  0xd3   :  { %1738 = vmatmul.mubr.bf16.gmra.mrb[88].mxu0 %v3396_v41 }
  0xd4   :  { %3051 = vmatpush3.bf16.msra.mxu0 %v3461_v5  ;;  %1745 = vmatprep.mubr.bf16.mxu0 %v3399_v3  ;;  %v3474_v3 = vld [vmem:[%s4720_s1 + $0x180] sm:$0xff]  }
  0xd5   :  { %3091 = vmatpush3.bf16.msra.mxu1 %v3460_v4  ;;  %3052 = vmatprep.subr.bf16.mxu0 %v3463_v7 }
  0xd6   :  { %3092 = vmatprep.subr.bf16.mxu1 %v3462_v6 }
  0xd8   :  { %3053 = vmatpush3.bf16.msra.mxu0 %v3465_v10  ;;  %v3475_v10 = vld [vmem:[%s4720_s1 + $0x188] sm:$0xff]  }
  0xd9   :  { %3093 = vmatpush3.bf16.msra.mxu1 %v3464_v9  ;;  %3054 = vmatprep.subr.bf16.mxu0 %v3467_v12 }
  0xda   :  { %3094 = vmatprep.subr.bf16.mxu1 %v3466_v11 }
  0xdb   :  { %1746 = vmatmul.mubr.bf16.gmra.mrb[92].mxu0 %v3401_v8 }
  0xdc   :  { %3055 = vmatpush3.bf16.msra.mxu0 %v3469_v15  ;;  %2060 = vmatprep.mubr.bf16.mxu0 %v3407_v13 }
  0xdd   :  { %3095 = vmatpush3.bf16.msra.mxu1 %v3468_v14  ;;  %3056 = vmatprep.subr.bf16.mxu0 %v3471_v17 }
  0xde   :  { %3096 = vmatprep.subr.bf16.mxu1 %v3470_v16  ;;  %v3433_v16 = vld [vmem:[%s4721_s0 + $0x2f0] ss:$28 sps:$4 sm:$0xff]  }
  0xe0   :  { %3057 = vmatpush3.bf16.msra.mxu0 %v3473_v21 }
  0xe1   :  { %3097 = vmatpush3.bf16.msra.mxu1 %v3472_v20  ;;  %3122 = vmatprep.subr.bf16.mxu0 %v3708_v36 }
  0xe2   :  { %3216 = vmatprep.subr.bf16.mxu1 %v3708_v36  ;;  %v3410_v36 = vld [vmem:[%s4721_s0 + $0x2e0] ss:$28 sps:$4 sm:$0xff]  }
  0xe3   :  { %2061 = vmatmul.mubr.bf16.vlgmr.msra.gmra.mrb[96].mxu0 %v3405_v19 }
  0xe4   :  { %2126 = vmatmul.mubr.bf16.vlgmr.msra.gmra.mrb[72].mxu1 %v3402_v18  ;;  %3123 = vmatpush3.bf16.msra.mxu0 %v3713_v37  ;;  %v3436_v18 = vld [vmem:[%s4721_s0 + $0x2e8] ss:$28 sps:$4 sm:$0xff]  }
  0xe5   :  { %3224 = vmatpush3.bf16.msra.mxu1 %v3713_v37  ;;  %2133 = vmatprep.mubr.bf16.mxu1 %v3408_v22  ;;  %v3414_v37 = vld [vmem:[%s4721_s0 + $0x31c] ss:$28 sps:$4 sm:$0xff]   ;;  %v3437_v22 = vld [vmem:[%s4721_s0 + $0x328] ss:$28 sps:$4 sm:$0xff]  }
  0xe6   :  { %3217 = vmatprep.subr.bf16.mxu1 %v3719_v38  ;;  %3124 = vmatprep.subr.bf16.mxu0 %v3719_v38  ;;  %v3417_v38 = vld [vmem:[%s4721_s0 + $0x314] ss:$28 sps:$4 sm:$0xff]  }
  0xe7   :  { %2068 = vmatprep.mubr.bf16.mxu0 %v3411_v23  ;;  %v3439_v23 = vld [vmem:[%s4721_s0 + $0x324] ss:$28 sps:$4 sm:$0xff]  }
  0xe8   :  { %3125 = vmatpush3.bf16.msra.mxu0 %v3725_v39 }
  0xe9   :  { %3225 = vmatpush3.bf16.msra.mxu1 %v3725_v39  ;;  %3126 = vmatprep.subr.bf16.mxu0 %v3750_v45  ;;  %v3416_v39 = vld [vmem:[%s4721_s0 + $0x318] ss:$28 sps:$4 sm:$0xff]  }
  0xea   :  { %3218 = vmatprep.subr.bf16.mxu1 %v3750_v45  ;;  %v3419_v45 = vld [vmem:[%s4721_s0 + $0x310] ss:$28 sps:$4 sm:$0xff]  }
  0xeb   :  { %2069 = vmatmul.mubr.bf16.gmra.mrb[100].mxu0 %v3413_v24 }
  0xec   :  { %2134 = vmatmul.mubr.bf16.gmra.mrb[76].mxu1 %v3410_v36  ;;  %3127 = vmatpush3.bf16.msra.mxu0 %v3756_v46 }
  0xed   :  { %3226 = vmatpush3.bf16.msra.mxu1 %v3756_v46  ;;  %2141 = vmatprep.mubr.bf16.mxu1 %v3414_v37  ;;  %v3420_v46 = vld [vmem:[%s4721_s0 + $0x354] ss:$28 sps:$4 sm:$0xff]  }
  0xee   :  { %3219 = vmatprep.subr.bf16.mxu1 %v3762_v47  ;;  %3128 = vmatprep.subr.bf16.mxu0 %v3762_v47  ;;  %v3423_v47 = vld [vmem:[%s4721_s0 + $0x34c] ss:$28 sps:$4 sm:$0xff]  }
  0xef   :  { %2076 = vmatprep.mubr.bf16.mxu0 %v3417_v38 }
  0xf0   :  { %3129 = vmatpush3.bf16.msra.mxu0 %v3768_v48 }
  0xf1   :  { %3227 = vmatpush3.bf16.msra.mxu1 %v3768_v48  ;;  %3130 = vmatprep.subr.bf16.mxu0 %v3786_v53 }
  0xf2   :  { %3220 = vmatprep.subr.bf16.mxu1 %v3786_v53  ;;  %v4333_v53 = vld [vmem:[%s4722_s2] ss:$0 sm:$0xff] }
  0xf3   :  { %2077 = vmatmul.mubr.bf16.gmra.mrb[104].mxu0 %v3419_v45 }
  0xf4   :  { %2142 = vmatmul.mubr.bf16.gmra.mrb[80].mxu1 %v3416_v39  ;;  %3131 = vmatpush3.bf16.msra.mxu0 %v3792_v54 }
  0xf5   :  { %3228 = vmatpush3.bf16.msra.mxu1 %v3792_v54  ;;  %2149 = vmatprep.mubr.bf16.mxu1 %v3420_v46  ;;  %v3422_v54 = vld [vmem:[%s4721_s0 + $0x350] ss:$28 sps:$4 sm:$0xff]  }
  0xf6   :  { %3221 = vmatprep.subr.bf16.mxu1 %v3798_v55  ;;  %v2680_v48 = vpop.f32.mrb[0].mxu0  ;;  %3132 = vmatprep.subr.bf16.mxu0 %v3798_v55 }
  0xf7   :  { %v2681_v25 = vpop.f32.mrb[1].mxu0  ;;  %v2720_v26 = vpop.f32.mrb[0].mxu1  ;;  %2084 = vmatprep.mubr.bf16.mxu0 %v3423_v47 }
  0xf8   :  { %v2682_v27 = vadd.f32 %v2681_v25, %v2680_v48  ;;  %v2683_v28 = vpop.f32.mrb[2].mxu0  ;;  %v2721_v29 = vpop.f32.mrb[1].mxu1  ;;  %3133 = vmatpush3.bf16.msra.mxu0 %v3803_v56 }
  0xf9   :  { %3229 = vmatpush3.bf16.msra.mxu1 %v3803_v56  ;;  %v2684_v31 = vpop.f32.mrb[3].mxu0  ;;  %v2722_v42 = vadd.f32 %v2721_v29, %v2720_v26  ;;  %v2723_v55 = vpop.f32.mrb[2].mxu1  ;;  %3134 = vmatprep.subr.bf16.mxu0 %v3828_v62  ;;  %v3431_v56 = vld [vmem:[%s4721_s0 + $0x2b4] ss:$28 sps:$4 sm:$0xff]   ;;  %v3441_v29 = vld [vmem:[%s4721_s0 + $0x320] ss:$28 sps:$4 sm:$0xff]  }
  0xfa   :  { %v647_v59 = vadd.f32 %v2682_v27, %v4333_v53  ;;  %3222 = vmatprep.subr.bf16.mxu1 %v3828_v62  ;;  %v2685_v49 = vadd.f32 %v2684_v31, %v2683_v28  ;;  %v2724_v50 = vpop.f32.mrb[3].mxu1  ;;  %v3438_v28 = vld [vmem:[%s4721_s0 + $0x360] ss:$28 sps:$4 sm:$0xff]  }
  0xfb   :  { %v2725_v51 = vadd.f32 %v2724_v50, %v2723_v55  ;;  %2085 = vmatmul.mubr.bf16.gmra.mrb[108].mxu0 %v3425_v30 }
  0xfc   :  { %2150 = vmatmul.mubr.bf16.gmra.mrb[84].mxu1 %v3422_v54  ;;  %v650_v57 = vadd.f32 %v2685_v49, %v4333_v53  ;;  %v4354_v1 = vadd.f32 %v2722_v42, %v647_v59  ;;  %3135 = vmatpush3.bf16.msra.mxu0 %v3835_v63 }
  0xfd   :  { %3230 = vmatpush3.bf16.msra.mxu1 %v3835_v63  ;;  %3136 = vmatprep.subr.bf16.mxu0 %v3841_v32  ;;  %v3429_v63 = vld [vmem:[%s4721_s0 + $0x2b0] ss:$28 sps:$4 sm:$0xff]  }
  0xfe   :  { %v4358_v62 = vadd.f32 %v2725_v51, %v650_v57  ;;  %3223 = vmatprep.subr.bf16.mxu1 %v3841_v32  ;;  %v2686_v58 = vpop.f32.mrb[4].mxu0  ;;  %2214 = vmatprep.mubr.bf16.mxu1 %v3428_v52 }
  0xff   :  { %v2687_v60 = vpop.f32.mrb[5].mxu0  ;;  %v2726_v61 = vpop.f32.mrb[4].mxu1  ;;  %2190 = vmatprep.mubr.bf16.mxu0 %v3431_v56 }
 0x100   :  { %v2688_v34 = vadd.f32 %v2687_v60, %v2686_v58  ;;  %v2689_v40 = vpop.f32.mrb[6].mxu0  ;;  %v2727_v41 = vpop.f32.mrb[5].mxu1  ;;  %3137 = vmatpush3.bf16.msra.mxu0 %v3847_v33 }
 0x101   :  { %3231 = vmatpush3.bf16.msra.mxu1 %v3847_v33  ;;  %v2690_v32 = vpop.f32.mrb[7].mxu0  ;;  %v2728_v43 = vadd.f32 %v2727_v41, %v2726_v61  ;;  %v2729_v0 = vpop.f32.mrb[6].mxu1  ;;  %v3434_v33 = vld [vmem:[%s4721_s0 + $0x2ec] ss:$28 sps:$4 sm:$0xff]  }
 0x102   :  { %v655_v2 = vadd.f32 %v2688_v34, %v4333_v53  ;;  %3204 = vmatprep.subr.bf16.mxu1 %v3474_v3  ;;  %v2691_v4 = vadd.f32 %v2690_v32, %v2689_v40  ;;  %v2730_v5 = vpop.f32.mrb[7].mxu1 }
 0x103   :  { %v2731_v6 = vadd.f32 %v2730_v5, %v2729_v0  ;;  %2191 = vmatmul.mubr.bf16.vlgmr.msra.gmra.mrb[112].mxu0 %v3429_v63 }
 0x104   :  { %2215 = vmatmul.mubr.bf16.vlgmr.msra.gmra.mrb[88].mxu1 %v3426_v35  ;;  %v658_v7 = vadd.f32 %v2691_v4, %v4333_v53  ;;  %v4381_v8 = vadd.f32 %v2728_v43, %v655_v2  ;;  %2198 = vmatprep.mubr.bf16.mxu0 %v3434_v33 }
 0x105   :  { %3205 = vmatpush3.bf16.msra.mxu1 %v3474_v3  ;;  %3208 = vmatprep.mubr.msk.bf16.mxu1 %vm599_vm0, %v3432_v44 }
 0x106   :  { %v4384_v9 = vadd.f32 %v2731_v6, %v658_v7  ;;  %3206 = vmatprep.subr.bf16.mxu1 %v3475_v10  ;;  %v2692_v11 = vpop.f32.mrb[8].mxu0 }
 0x107   :  { %v2693_v12 = vpop.f32.mrb[9].mxu0  ;;  %v2732_v13 = vpop.f32.mrb[8].mxu1 }
 0x108   :  { %v2694_v14 = vadd.f32 %v2693_v12, %v2692_v11  ;;  %v2695_v15 = vpop.f32.mrb[10].mxu0  ;;  %v2733_v17 = vpop.f32.mrb[9].mxu1 }
 0x109   :  { %3207 = vmatpush3.bf16.msra.mxu1 %v3475_v10  ;;  %v2696_v19 = vpop.f32.mrb[11].mxu0  ;;  %v2734_v20 = vadd.f32 %v2733_v17, %v2732_v13  ;;  %v2735_v21 = vpop.f32.mrb[10].mxu1 }
 0x10a   :  { %v663_v36 = vadd.f32 %v2694_v14, %v4333_v53  ;;  %v2697_v24 = vadd.f32 %v2696_v19, %v2695_v15  ;;  %v2736_v37 = vpop.f32.mrb[11].mxu1 }
 0x10b   :  { %v2737_v38 = vadd.f32 %v2736_v37, %v2735_v21  ;;  %2199 = vmatmul.mubr.bf16.gmra.mrb[116].mxu0 %v3436_v18 }
 0x10c   :  { %3209 = vmatmul.mubr.msk.bf16.vlgmr.msra.gmra.mrb[92].mxu1 %vm599_vm0, %v3433_v16  ;;  %v666_v39 = vadd.f32 %v2697_v24, %v4333_v53  ;;  %v728_v45 = vadd.f32 %v2734_v20, %v663_v36  ;;  %2206 = vmatprep.mubr.bf16.mxu0 %v3439_v23 }
 0x10d   :  { %3212 = vmatprep.mubr.msk.bf16.mxu1 %vm599_vm0, %v3437_v22 }
 0x10e   :  { %v731_v46 = vadd.f32 %v2737_v38, %v666_v39  ;;  %v2698_v47 = vpop.f32.mrb[12].mxu0 }
 0x10f   :  { %v2699_v48 = vpop.f32.mrb[13].mxu0  ;;  %v2738_v25 = vpop.f32.mrb[12].mxu1 }
 0x110   :  { %v2700_v26 = vadd.f32 %v2699_v48, %v2698_v47  ;;  %v2701_v27 = vpop.f32.mrb[14].mxu0  ;;  %v2739_v54 = vpop.f32.mrb[13].mxu1 }
 0x111   :  { %v2702_v30 = vpop.f32.mrb[15].mxu0  ;;  %v2740_v31 = vadd.f32 %v2739_v54, %v2738_v25  ;;  %v2741_v42 = vpop.f32.mrb[14].mxu1 }
 0x112   :  { %v671_v55 = vadd.f32 %v2700_v26, %v4333_v53  ;;  %v2703_v59 = vadd.f32 %v2702_v30, %v2701_v27  ;;  %v2742_v49 = vpop.f32.mrb[15].mxu1 }
 0x113   :  { %v2743_v50 = vadd.f32 %v2742_v49, %v2741_v42  ;;  %2207 = vmatmul.mubr.bf16.gmra.mrb[120].mxu0 %v3441_v29 }
 0x114   :  { %3213 = vmatmul.mubr.msk.bf16.gmra.mrb[96].mxu1 %vm599_vm0, %v3438_v28  ;;  %v674_v51 = vadd.f32 %v2703_v59, %v4333_v53  ;;  %v736_v52 = vadd.f32 %v2740_v31, %v671_v55 }
 0x116   :  { %v739_v56 = vadd.f32 %v2743_v50, %v674_v51  ;;  %v2760_v57 = vpop.f32.mrb[16].mxu0 }
 0x117   :  { %v3174_v58 = vpop.f32.mrb[16].mxu1  ;;  %v2761_v60 = vpop.f32.mrb[17].mxu0 }
 0x118   :  { %v841_v61 = vpop.f32.mrb[17].mxu1  ;;  %v2762_v34 = vadd.f32 %v2761_v60, %v2760_v57  ;;  %v2763_v35 = vpop.f32.mrb[18].mxu0 }
 0x119   :  { %v3175_v40 = vpop.f32.mrb[18].mxu1  ;;  %v2764_v41 = vpop.f32.mrb[19].mxu0 }
 0x11a   :  { %v844_v63 = vpop.f32.mrb[19].mxu1  ;;  %v2765_v32 = vadd.f32 %v2764_v41, %v2763_v35  ;;  %v777_v43 = vadd.f32 %v2762_v34, %v4354_v1 }
 0x11c   :  { %v4415_v0 = vadd.f32 %v841_v61, %v777_v43  ;;  %v780_v44 = vadd.f32 %v2765_v32, %v4358_v62 }
 0x11e   :  { %v4418_v2 = vadd.f32 %v844_v63, %v780_v44  ;;  %v2766_v3 = vpop.f32.mrb[20].mxu0  ;;  %vm872_vm1 = vcmp.gt.f32.partialorder %v4415_v0, 0.0 }
 0x11f   :  { %v3178_v4 = vpop.f32.mrb[20].mxu1  ;;  %v2767_v5 = vpop.f32.mrb[21].mxu0 }
 0x120   :  { %v857_v33 = vpop.f32.mrb[21].mxu1  ;;  %v2768_v6 = vadd.f32 %v2767_v5, %v2766_v3  ;;  %v2769_v7 = vpop.f32.mrb[22].mxu0  ;;  %vm873_vm3 = vcmp.gt.f32.partialorder %v4418_v2, 0.0 }
 0x121   :  { %v3179_v10 = vpop.f32.mrb[22].mxu1  ;;  %v2770_v11 = vpop.f32.mrb[23].mxu0 }
 0x122   :  { %v860_v12 = vpop.f32.mrb[23].mxu1  ;;  %v785_v13 = vadd.f32 %v2768_v6, %v4381_v8  ;;  %v2771_v14 = vadd.f32 %v2770_v11, %v2769_v7 }
 0x124   :  { %v4421_v15 = vadd.f32 %v3174_v58, %v785_v13  ;;  %v788_v1 = vadd.f32 %v2771_v14, %v4384_v9 }
 0x126   :  { %v4424_v16 = vadd.f32 %v3175_v40, %v788_v1  ;;  %v2772_v62 = vpop.f32.mrb[24].mxu0  ;;  %vm874_vm5 = vcmp.gt.f32.partialorder %v4421_v15, 0.0 }
 0x127   :  { %v2773_v17 = vpop.f32.mrb[25].mxu0 }
 0x128   :  { %v2774_v18 = vadd.f32 %v2773_v17, %v2772_v62  ;;  %v2775_v19 = vpop.f32.mrb[26].mxu0  ;;  %vm875_vm7 = vcmp.gt.f32.partialorder %v4424_v16, 0.0 }
 0x129   :  { %v2776_v20 = vpop.f32.mrb[27].mxu0 }
 0x12a   :  { %v2777_v21 = vadd.f32 %v2776_v20, %v2775_v19  ;;  %v793_v22 = vadd.f32 %v2774_v18, %v728_v45 }
 0x12c   :  { %v4426_v23 = vadd.f32 %v857_v33, %v793_v22  ;;  %v796_v36 = vadd.f32 %v2777_v21, %v731_v46 }
 0x12e   :  { %v4428_v24 = vadd.f32 %v860_v12, %v796_v36  ;;  %v2778_v8 = vpop.f32.mrb[28].mxu0  ;;  %vm876_vm9 = vcmp.gt.f32.partialorder %v4426_v23, 0.0 }
 0x12f   :  { %v2779_v37 = vpop.f32.mrb[29].mxu0 }
 0x130   :  { %v2780_v38 = vadd.f32 %v2779_v37, %v2778_v8  ;;  %v2781_v39 = vpop.f32.mrb[30].mxu0  ;;  %vm877_vm11 = vcmp.gt.f32.partialorder %v4428_v24, 0.0 }
 0x131   :  { %v2782_v47 = vpop.f32.mrb[31].mxu0 }
 0x132   :  { %v801_v9 = vadd.f32 %v2780_v38, %v736_v52  ;;  %v2783_v48 = vadd.f32 %v2782_v47, %v2781_v39 }
 0x134   :  { %v4430_v25 = vadd.f32 %v3178_v4, %v801_v9  ;;  %v804_v26 = vadd.f32 %v2783_v48, %v739_v56 }
 0x136   :  { %v4432_v27 = vadd.f32 %v3179_v10, %v804_v26  ;;  %v2806_v28 = vpop.f32.mrb[32].mxu0  ;;  %vm878_vm13 = vcmp.gt.f32.partialorder %v4430_v25, 0.0 }
 0x137   :  { %v2846_v54 = vpop.f32.mrb[24].mxu1  ;;  %v2807_v45 = vpop.f32.mrb[33].mxu0 }
 0x138   :  { %v2847_v29 = vpop.f32.mrb[25].mxu1  ;;  %v2808_v30 = vadd.f32 %v2807_v45, %v2806_v28  ;;  %v2809_v46 = vpop.f32.mrb[34].mxu0  ;;  %vm879_vm14 = vcmp.gt.f32.partialorder %v4432_v27, 0.0 }
 0x139   :  { %v2849_v31 = vpop.f32.mrb[26].mxu1  ;;  %v2810_v42 = vpop.f32.mrb[35].mxu0  ;;  %v2848_v55 = vadd.f32 %v2847_v29, %v2846_v54 }
 0x13a   :  { %v2850_v59 = vpop.f32.mrb[27].mxu1  ;;  %v1117_v49 = vadd.f32 %v2808_v30, %v4333_v53  ;;  %v2811_v50 = vadd.f32 %v2810_v42, %v2809_v46 }
 0x13b   :  { %v2851_v51 = vadd.f32 %v2850_v59, %v2849_v31 }
 0x13c   :  { %v1120_v52 = vadd.f32 %v2811_v50, %v4333_v53  ;;  %v1182_v57 = vadd.f32 %v2848_v55, %v1117_v49 }
 0x13e   :  { %v4436_v56 = vadd.f32 %v2851_v51, %v1120_v52  ;;  %v2812_v58 = vpop.f32.mrb[36].mxu0  ;;  %v4459_v52 = vstv %s4723_s3 }
 0x13f   :  { %v2852_v60 = vpop.f32.mrb[28].mxu1  ;;  %v2813_v61 = vpop.f32.mrb[37].mxu0 }
 0x140   :  { %v2853_v34 = vpop.f32.mrb[29].mxu1  ;;  %v2814_v35 = vadd.f32 %v2813_v61, %v2812_v58  ;;  %v2815_v40 = vpop.f32.mrb[38].mxu0 }
 0x141   :  { %v2854_v41 = vadd.f32 %v2853_v34, %v2852_v60  ;;  %v2855_v63 = vpop.f32.mrb[30].mxu1  ;;  %v2816_v32 = vpop.f32.mrb[39].mxu0 }
 0x142   :  { %v2856_v43 = vpop.f32.mrb[31].mxu1  ;;  %v1125_v44 = vadd.f32 %v2814_v35, %v4333_v53  ;;  %v2817_v3 = vadd.f32 %v2816_v32, %v2815_v40 }
 0x143   :  { %v2857_v4 = vadd.f32 %v2856_v43, %v2855_v63  ;;  %v881_v63 = vmul.f32 %v4459_v52, %v4415_v0 }
 0x144   :  { %v1128_v5 = vadd.f32 %v2817_v3, %v4333_v53  ;;  %v4440_v33 = vadd.f32 %v2854_v41, %v1125_v44  ;;  %v882_v44 = vmul.f32 %v4459_v52, %v4418_v2 }
 0x146   :  { %v4442_v6 = vadd.f32 %v2857_v4, %v1128_v5  ;;  %v2818_v7 = vpop.f32.mrb[40].mxu0 }
 0x147   :  { %v2858_v10 = vpop.f32.mrb[32].mxu1  ;;  %v2819_v11 = vpop.f32.mrb[41].mxu0 }
 0x148   :  { %v2859_v12 = vpop.f32.mrb[33].mxu1  ;;  %v2820_v13 = vadd.f32 %v2819_v11, %v2818_v7  ;;  %v2821_v14 = vpop.f32.mrb[42].mxu0 }
 0x149   :  { %v2860_v1 = vadd.f32 %v2859_v12, %v2858_v10  ;;  %v2861_v62 = vpop.f32.mrb[34].mxu1  ;;  %v2822_v17 = vpop.f32.mrb[43].mxu0 }
 0x14a   :  { %v2862_v18 = vpop.f32.mrb[35].mxu1  ;;  %v1133_v19 = vadd.f32 %v2820_v13, %v4333_v53  ;;  %v2823_v20 = vadd.f32 %v2822_v17, %v2821_v14 }
 0x14b   :  { %v2863_v21 = vadd.f32 %v2862_v18, %v2861_v62 }
 0x14c   :  { %v1136_v22 = vadd.f32 %v2823_v20, %v4333_v53  ;;  %v4446_v36 = vadd.f32 %v2860_v1, %v1133_v19 }
 0x14e   :  { %v4448_v8 = vadd.f32 %v2863_v21, %v1136_v22  ;;  %v2824_v37 = vpop.f32.mrb[44].mxu0  ;;  %v883_v22 = vmul.f32 %v4459_v52, %v4421_v15 }
 0x14f   :  { %v2864_v38 = vpop.f32.mrb[36].mxu1  ;;  %v2825_v39 = vpop.f32.mrb[45].mxu0 }
 0x150   :  { %v2865_v47 = vpop.f32.mrb[37].mxu1  ;;  %v2826_v9 = vadd.f32 %v2825_v39, %v2824_v37  ;;  %v2827_v48 = vpop.f32.mrb[46].mxu0 }
 0x151   :  { %v2866_v26 = vadd.f32 %v2865_v47, %v2864_v38  ;;  %v2867_v28 = vpop.f32.mrb[38].mxu1  ;;  %v2828_v54 = vpop.f32.mrb[47].mxu0 }
 0x152   :  { %v2868_v45 = vpop.f32.mrb[39].mxu1  ;;  %v1141_v29 = vadd.f32 %v2826_v9, %v4333_v53  ;;  %v2829_v30 = vadd.f32 %v2828_v54, %v2827_v48  ;;  %v4497_v48 = vsel %vm874_vm5, %v4421_v15, %v883_v22  ;;  %vm2360_vm5 = vcmask 519168  }
 0x153   :  { %v2869_v46 = vadd.f32 %v2868_v45, %v2867_v28 }
 0x154   :  { %v1144_v31 = vadd.f32 %v2829_v30, %v4333_v53  ;;  %v4452_v42 = vadd.f32 %v2866_v26, %v1141_v29 }
 0x156   :  { %v4454_v55 = vadd.f32 %v2869_v46, %v1144_v31  ;;  %v2886_v59 = vpop.f32.mrb[48].mxu0 }
 0x157   :  { %v3186_v49 = vpop.f32.mrb[40].mxu1  ;;  %v2887_v50 = vpop.f32.mrb[49].mxu0 }
 0x158   :  { %v1311_v51 = vpop.f32.mrb[41].mxu1  ;;  %v2888_v58 = vadd.f32 %v2887_v50, %v2886_v59  ;;  %v2889_v60 = vpop.f32.mrb[50].mxu0 }
 0x159   :  { %v3187_v61 = vpop.f32.mrb[42].mxu1  ;;  %v2890_v34 = vpop.f32.mrb[51].mxu0 }
 0x15a   :  { %v1314_v35 = vpop.f32.mrb[43].mxu1  ;;  %v2891_v40 = vadd.f32 %v2890_v34, %v2889_v60  ;;  %v1247_v41 = vadd.f32 %v2888_v58, %v1182_v57  ;;  %v4471_v57 = vsel %vm872_vm1, %v4415_v0, %v881_v63  ;;  %v4482_v0 = vsel %vm873_vm3, %v4418_v2, %v882_v44 }
 0x15b   :  { %v884_v2 = vmul.f32 %v4459_v52, %v4424_v16 }
 0x15c   :  { %v1312_v32 = vadd.f32 %v1311_v51, %v1247_v41  ;;  %v1250_v43 = vadd.f32 %v2891_v40, %v4436_v56 }
 0x15d   :  { %v4506_v46 = vsel %vm875_vm7, %v4424_v16, %v884_v2  ;;  %v886_v16 = vmul.f32 %v4459_v52, %v4428_v24 }
 0x15e   :  { %vm1342_vm2 = vcmp.gt.f32.partialorder %v1312_v32, 0.0  ;;  %v1350_v3 = vmul.f32 %v1312_v32, %v4459_v52  ;;  %v1315_v4 = vadd.f32 %v1314_v35, %v1250_v43  ;;  %v2892_v5 = vpop.f32.mrb[52].mxu0 }
 0x15f   :  { %v4468_v7 = vpop.f32.mrb[44].mxu1  ;;  %v2893_v10 = vpop.f32.mrb[53].mxu0  ;;  %v4530_v44 = vsel %vm877_vm11, %v4428_v24, %v886_v16  ;;  %v888_v24 = vmul.f32 %v4459_v52, %v4432_v27 }
 0x160   :  { %v1327_v11 = vpop.f32.mrb[45].mxu1  ;;  %v4474_v12 = vsel %vm1342_vm2, %v1312_v32, %v1350_v3  ;;  %vm1343_vm4 = vcmp.gt.f32.partialorder %v1315_v4, 0.0  ;;  %v1351_v56 = vmul.f32 %v1315_v4, %v4459_v52  ;;  %v2894_v13 = vadd.f32 %v2893_v10, %v2892_v5  ;;  %v2895_v14 = vpop.f32.mrb[54].mxu0 }
 0x161   :  { %v4477_v1 = vpop.f32.mrb[46].mxu1  ;;  %v1366_v62 = vmax.f32 %v4471_v57, %v4474_v12  ;;  %v2896_v17 = vpop.f32.mrb[55].mxu0  ;;  %v887_v5 = vmul.f32 %v4459_v52, %v4430_v25  ;;  %v4554_v2 = vsel %vm879_vm14, %v4432_v27, %v888_v24 }
 0x162   :  { %v1330_v18 = vpop.f32.mrb[47].mxu1  ;;  %v4484_v19 = vsel %vm1343_vm4, %v1315_v4, %v1351_v56  ;;  %v1255_v20 = vadd.f32 %v2894_v13, %v4440_v33  ;;  %v2897_v21 = vadd.f32 %v2896_v17, %v2895_v14 }
 0x163   :  { %v1367_v37 = vmax.f32 %v4482_v0, %v4484_v19 }
 0x164   :  { %v1320_v38 = vadd.f32 %v3186_v49, %v1255_v20  ;;  %v1258_v39 = vadd.f32 %v2897_v21, %v4442_v6  ;;  %v885_v49 = vmul.f32 %v4459_v52, %v4426_v23 }
 0x166   :  { %vm1344_vm6 = vcmp.gt.f32.partialorder %v1320_v38, 0.0  ;;  %v1352_v47 = vmul.f32 %v1320_v38, %v4459_v52  ;;  %v1323_v9 = vadd.f32 %v3187_v61, %v1258_v39  ;;  %v2898_v33 = vpop.f32.mrb[56].mxu0 }
 0x167   :  { %v2899_v26 = vpop.f32.mrb[57].mxu0 }
 0x168   :  { %v4500_v28 = vsel %vm1344_vm6, %v1320_v38, %v1352_v47  ;;  %vm1345_vm8 = vcmp.gt.f32.partialorder %v1323_v9, 0.0  ;;  %v1353_v54 = vmul.f32 %v1323_v9, %v4459_v52  ;;  %v2900_v6 = vadd.f32 %v2899_v26, %v2898_v33  ;;  %v2901_v45 = vpop.f32.mrb[58].mxu0 }
 0x169   :  { %v1368_v29 = vmax.f32 %v4497_v48, %v4500_v28  ;;  %v2902_v30 = vpop.f32.mrb[59].mxu0 }
 0x16a   :  { %v4508_v31 = vsel %vm1345_vm8, %v1323_v9, %v1353_v54  ;;  %v2903_v15 = vadd.f32 %v2902_v30, %v2901_v45  ;;  %v1263_v59 = vadd.f32 %v2900_v6, %v4446_v36  ;;  %v4521_v36 = vsel %vm876_vm9, %v4426_v23, %v885_v49 }
 0x16b   :  { %v1369_v50 = vmax.f32 %v4506_v46, %v4508_v31 }
 0x16c   :  { %v1328_v51 = vadd.f32 %v1327_v11, %v1263_v59  ;;  %v1266_v58 = vadd.f32 %v2903_v15, %v4448_v8 }
 0x16e   :  { %vm1346_vm10 = vcmp.gt.f32.partialorder %v1328_v51, 0.0  ;;  %v1354_v60 = vmul.f32 %v1328_v51, %v4459_v52  ;;  %v1331_v61 = vadd.f32 %v1330_v18, %v1266_v58  ;;  %v2904_v34 = vpop.f32.mrb[60].mxu0  ;;  %v4548_v18 = vsel %vm878_vm13, %v4430_v25, %v887_v5 }
 0x16f   :  { %v2905_v35 = vpop.f32.mrb[61].mxu0 }
 0x170   :  { %v4524_v40 = vsel %vm1346_vm10, %v1328_v51, %v1354_v60  ;;  %vm1347_vm12 = vcmp.gt.f32.partialorder %v1331_v61, 0.0  ;;  %v1355_v41 = vmul.f32 %v1331_v61, %v4459_v52  ;;  %v2906_v8 = vadd.f32 %v2905_v35, %v2904_v34  ;;  %v2907_v63 = vpop.f32.mrb[62].mxu0 }
 0x171   :  { %v1370_v32 = vmax.f32 %v4521_v36, %v4524_v40  ;;  %v2908_v43 = vpop.f32.mrb[63].mxu0 }
 0x172   :  { %v4532_v3 = vsel %vm1347_vm12, %v1331_v61, %v1355_v41  ;;  %v1271_v23 = vadd.f32 %v2906_v8, %v4452_v42  ;;  %v2909_v4 = vadd.f32 %v2908_v43, %v2907_v63 }
 0x174   :  { %v1336_v11 = vadd.f32 %v4468_v7, %v1271_v23  ;;  %v1274_v56 = vadd.f32 %v2909_v4, %v4454_v55 }
 0x176   :  { %vm1348_vm15 = vcmp.gt.f32.partialorder %v1336_v11, 0.0  ;;  %v1356_v42 = vmul.f32 %v1336_v11, %v4459_v52  ;;  %v1339_v13 = vadd.f32 %v4477_v1, %v1274_v56  ;;  %v2932_v14 = vpop.f32.mrb[64].mxu0 }
 0x177   :  { %v2972_v17 = vpop.f32.mrb[48].mxu1  ;;  %v2933_v20 = vpop.f32.mrb[65].mxu0 }
 0x178   :  { %v2973_v21 = vpop.f32.mrb[49].mxu1  ;;  %v4550_v7 = vsel %vm1348_vm15, %v1336_v11, %v1356_v42  ;;  %vm1349_vm0 = vcmp.gt.f32.partialorder %v1339_v13, 0.0  ;;  %v1357_v55 = vmul.f32 %v1339_v13, %v4459_v52  ;;  %v2934_v22 = vadd.f32 %v2933_v20, %v2932_v14  ;;  %v2935_v38 = vpop.f32.mrb[66].mxu0 }
 0x179   :  { %v2975_v39 = vpop.f32.mrb[50].mxu1  ;;  %v2936_v47 = vpop.f32.mrb[67].mxu0  ;;  %v2974_v1 = vadd.f32 %v2973_v21, %v2972_v17  ;;  %v1372_v25 = vmax.f32 %v4548_v18, %v4550_v7 }
 0x17a   :  { %v2976_v9 = vpop.f32.mrb[51].mxu1  ;;  %v4558_v33 = vsel %vm1349_vm0, %v1339_v13, %v1357_v55  ;;  %v1594_v26 = vadd.f32 %v2934_v22, %v4333_v53  ;;  %v2937_v54 = vadd.f32 %v2936_v47, %v2935_v38 }
 0x17b   :  { %v2977_v6 = vadd.f32 %v2976_v9, %v2975_v39  ;;  %v1373_v45 = vmax.f32 %v4554_v2, %v4558_v33 }
 0x17c   :  { %v1597_v30 = vadd.f32 %v2937_v54, %v4333_v53  ;;  %v1659_v15 = vadd.f32 %v2974_v1, %v1594_v26 }
 0x17e   :  { %v1662_v27 = vadd.f32 %v2977_v6, %v1597_v30  ;;  %v2938_v59 = vpop.f32.mrb[68].mxu0 }
 0x17f   :  { %v2978_v49 = vpop.f32.mrb[52].mxu1  ;;  %v2939_v51 = vpop.f32.mrb[69].mxu0 }
 0x180   :  { %v2979_v58 = vpop.f32.mrb[53].mxu1  ;;  %v2940_v16 = vadd.f32 %v2939_v51, %v2938_v59  ;;  %v2941_v60 = vpop.f32.mrb[70].mxu0 }
 0x181   :  { %v2980_v61 = vadd.f32 %v2979_v58, %v2978_v49  ;;  %v2981_v34 = vpop.f32.mrb[54].mxu1  ;;  %v2942_v35 = vpop.f32.mrb[71].mxu0 }
 0x182   :  { %v2982_v41 = vpop.f32.mrb[55].mxu1  ;;  %v1602_v8 = vadd.f32 %v2940_v16, %v4333_v53  ;;  %v2943_v63 = vadd.f32 %v2942_v35, %v2941_v60 }
 0x183   :  { %v2983_v43 = vadd.f32 %v2982_v41, %v2981_v34 }
 0x184   :  { %v1605_v23 = vadd.f32 %v2943_v63, %v4333_v53  ;;  %v1667_v4 = vadd.f32 %v2980_v61, %v1602_v8 }
 0x186   :  { %v1670_v5 = vadd.f32 %v2983_v43, %v1605_v23  ;;  %v2944_v11 = vpop.f32.mrb[72].mxu0 }
 0x187   :  { %v2984_v56 = vpop.f32.mrb[56].mxu1  ;;  %v2945_v24 = vpop.f32.mrb[73].mxu0 }
 0x188   :  { %v2985_v42 = vpop.f32.mrb[57].mxu1  ;;  %v2946_v13 = vadd.f32 %v2945_v24, %v2944_v11  ;;  %v2947_v14 = vpop.f32.mrb[74].mxu0 }
 0x189   :  { %v2986_v17 = vadd.f32 %v2985_v42, %v2984_v56  ;;  %v2987_v20 = vpop.f32.mrb[58].mxu1  ;;  %v2948_v21 = vpop.f32.mrb[75].mxu0 }
 0x18a   :  { %v2988_v55 = vpop.f32.mrb[59].mxu1  ;;  %v1610_v22 = vadd.f32 %v2946_v13, %v4333_v53  ;;  %v2949_v38 = vadd.f32 %v2948_v21, %v2947_v14 }
 0x18b   :  { %v2989_v39 = vadd.f32 %v2988_v55, %v2987_v20 }
 0x18c   :  { %v1613_v47 = vadd.f32 %v2949_v38, %v4333_v53  ;;  %v1675_v1 = vadd.f32 %v2986_v17, %v1610_v22 }
 0x18e   :  { %v1678_v9 = vadd.f32 %v2989_v39, %v1613_v47  ;;  %v2950_v26 = vpop.f32.mrb[76].mxu0 }
 0x18f   :  { %v2990_v54 = vpop.f32.mrb[60].mxu1  ;;  %v2951_v6 = vpop.f32.mrb[77].mxu0 }
 0x190   :  { %v2991_v30 = vpop.f32.mrb[61].mxu1  ;;  %v2952_v59 = vadd.f32 %v2951_v6, %v2950_v26  ;;  %v2953_v49 = vpop.f32.mrb[78].mxu0 }
 0x191   :  { %v2992_v51 = vadd.f32 %v2991_v30, %v2990_v54  ;;  %v2993_v58 = vpop.f32.mrb[62].mxu1  ;;  %v2954_v16 = vpop.f32.mrb[79].mxu0 }
 0x192   :  { %v2994_v60 = vpop.f32.mrb[63].mxu1  ;;  %v1618_v61 = vadd.f32 %v2952_v59, %v4333_v53  ;;  %v2955_v34 = vadd.f32 %v2954_v16, %v2953_v49 }
 0x193   :  { %v2995_v35 = vadd.f32 %v2994_v60, %v2993_v58 }
 0x194   :  { %v1621_v41 = vadd.f32 %v2955_v34, %v4333_v53  ;;  %v1683_v8 = vadd.f32 %v2992_v51, %v1618_v61 }
 0x196   :  { %v1686_v63 = vadd.f32 %v2995_v35, %v1621_v41  ;;  %v3012_v43 = vpop.f32.mrb[80].mxu0 }
 0x197   :  { %v3198_v23 = vpop.f32.mrb[64].mxu1  ;;  %v3013_v11 = vpop.f32.mrb[81].mxu0 }
 0x198   :  { %v1788_v56 = vpop.f32.mrb[65].mxu1  ;;  %v3014_v24 = vadd.f32 %v3013_v11, %v3012_v43  ;;  %v3015_v42 = vpop.f32.mrb[82].mxu0 }
 0x199   :  { %v3199_v13 = vpop.f32.mrb[66].mxu1  ;;  %v3016_v14 = vpop.f32.mrb[83].mxu0 }
 0x19a   :  { %v1791_v17 = vpop.f32.mrb[67].mxu1  ;;  %v3017_v20 = vadd.f32 %v3016_v14, %v3015_v42  ;;  %v1724_v21 = vadd.f32 %v3014_v24, %v1659_v15 }
 0x19c   :  { %v4570_v55 = vadd.f32 %v1788_v56, %v1724_v21  ;;  %v1727_v22 = vadd.f32 %v3017_v20, %v1662_v27 }
 0x19e   :  { %v4572_v38 = vadd.f32 %v1791_v17, %v1727_v22  ;;  %v3018_v39 = vpop.f32.mrb[84].mxu0  ;;  %vm1819_vm1 = vcmp.gt.f32.partialorder %v4570_v55, 0.0 }
 0x19f   :  { %v3202_v47 = vpop.f32.mrb[68].mxu1  ;;  %v3019_v26 = vpop.f32.mrb[85].mxu0 }
 0x1a0   :  { %v1804_v54 = vpop.f32.mrb[69].mxu1  ;;  %v3020_v6 = vadd.f32 %v3019_v26, %v3018_v39  ;;  %v3021_v30 = vpop.f32.mrb[86].mxu0  ;;  %vm1820_vm2 = vcmp.gt.f32.partialorder %v4572_v38, 0.0 }
 0x1a1   :  { %v3203_v59 = vpop.f32.mrb[70].mxu1  ;;  %v3022_v49 = vpop.f32.mrb[87].mxu0 }
 0x1a2   :  { %v1807_v51 = vpop.f32.mrb[71].mxu1  ;;  %v1732_v58 = vadd.f32 %v3020_v6, %v1667_v4  ;;  %v3023_v16 = vadd.f32 %v3022_v49, %v3021_v30 }
 0x1a4   :  { %v4574_v60 = vadd.f32 %v3198_v23, %v1732_v58  ;;  %v1735_v61 = vadd.f32 %v3023_v16, %v1670_v5 }
 0x1a6   :  { %v4576_v15 = vadd.f32 %v3199_v13, %v1735_v61  ;;  %v3024_v34 = vpop.f32.mrb[88].mxu0  ;;  %vm1821_vm3 = vcmp.gt.f32.partialorder %v4574_v60, 0.0 }
 0x1a7   :  { %v3025_v27 = vpop.f32.mrb[89].mxu0 }
 0x1a8   :  { %v3026_v35 = vadd.f32 %v3025_v27, %v3024_v34  ;;  %v3027_v41 = vpop.f32.mrb[90].mxu0  ;;  %vm1822_vm4 = vcmp.gt.f32.partialorder %v4576_v15, 0.0 }
 0x1a9   :  { %v3028_v43 = vpop.f32.mrb[91].mxu0 }
 0x1aa   :  { %v3029_v11 = vadd.f32 %v3028_v43, %v3027_v41  ;;  %v1740_v56 = vadd.f32 %v3026_v35, %v1675_v1 }
 0x1ac   :  { %v4578_v24 = vadd.f32 %v1804_v54, %v1740_v56  ;;  %v1743_v42 = vadd.f32 %v3029_v11, %v1678_v9 }
 0x1ae   :  { %v4580_v14 = vadd.f32 %v1807_v51, %v1743_v42  ;;  %v3030_v17 = vpop.f32.mrb[92].mxu0  ;;  %vm1823_vm11 = vcmp.gt.f32.partialorder %v4578_v24, 0.0  ;;  %v1831_v48 = vmul.f32 %v4578_v24, %v4459_v52 }
 0x1af   :  { %v3031_v4 = vpop.f32.mrb[93].mxu0 }
 0x1b0   :  { %v3032_v20 = vadd.f32 %v3031_v4, %v3030_v17  ;;  %v3033_v23 = vpop.f32.mrb[94].mxu0  ;;  %vm1824_vm0 = vcmp.gt.f32.partialorder %v4580_v14, 0.0  ;;  %v1839_v31 = vsel %vm1823_vm11, %v4578_v24, %v1831_v48 }
 0x1b1   :  { %v3034_v21 = vpop.f32.mrb[95].mxu0 }
 0x1b2   :  { %v1748_v5 = vadd.f32 %v3032_v20, %v1683_v8  ;;  %v3035_v13 = vadd.f32 %v3034_v21, %v3033_v23 }
 0x1b4   :  { %v4582_v22 = vadd.f32 %v3202_v47, %v1748_v5  ;;  %v1751_v39 = vadd.f32 %v3035_v13, %v1686_v63 }
 0x1b6   :  { %v4584_v26 = vadd.f32 %v3203_v59, %v1751_v39  ;;  %v3058_v6 = vpop.f32.mrb[96].mxu0  ;;  %vm1825_vm8 = vcmp.gt.f32.partialorder %v4582_v22, 0.0 }
 0x1b7   :  { %v3098_v30 = vpop.f32.mrb[72].mxu1  ;;  %v3059_v1 = vpop.f32.mrb[97].mxu0 }
 0x1b8   :  { %v3099_v54 = vpop.f32.mrb[73].mxu1  ;;  %v3060_v49 = vadd.f32 %v3059_v1, %v3058_v6  ;;  %v3061_v9 = vpop.f32.mrb[98].mxu0  ;;  %vm1826_vm9 = vcmp.gt.f32.partialorder %v4584_v26, 0.0 }
 0x1b9   :  { %v3100_v51 = vadd.f32 %v3099_v54, %v3098_v30  ;;  %v3101_v58 = vpop.f32.mrb[74].mxu1  ;;  %v3062_v16 = vpop.f32.mrb[99].mxu0 }
 0x1ba   :  { %v3102_v61 = vpop.f32.mrb[75].mxu1  ;;  %v2063_v34 = vadd.f32 %v3060_v49, %v4333_v53  ;;  %v3063_v27 = vadd.f32 %v3062_v16, %v3061_v9 }
 0x1bb   :  { %v3103_v8 = vadd.f32 %v3102_v61, %v3101_v58 }
 0x1bc   :  { %v2066_v47 = vadd.f32 %v3063_v27, %v4333_v53  ;;  %v2128_v35 = vadd.f32 %v3100_v51, %v2063_v34 }
 0x1be   :  { %v4588_v63 = vadd.f32 %v3103_v8, %v2066_v47  ;;  %v3064_v59 = vpop.f32.mrb[100].mxu0 }
 0x1bf   :  { %v3104_v41 = vpop.f32.mrb[76].mxu1  ;;  %v3065_v43 = vpop.f32.mrb[101].mxu0 }
 0x1c0   :  { %v3105_v11 = vpop.f32.mrb[77].mxu1  ;;  %v3066_v56 = vadd.f32 %v3065_v43, %v3064_v59  ;;  %v3067_v42 = vpop.f32.mrb[102].mxu0 }
 0x1c1   :  { %v3106_v17 = vadd.f32 %v3105_v11, %v3104_v41  ;;  %v3107_v4 = vpop.f32.mrb[78].mxu1  ;;  %v3068_v20 = vpop.f32.mrb[103].mxu0 }
 0x1c2   :  { %v3108_v23 = vpop.f32.mrb[79].mxu1  ;;  %v2071_v21 = vadd.f32 %v3066_v56, %v4333_v53  ;;  %v3069_v5 = vadd.f32 %v3068_v20, %v3067_v42 }
 0x1c3   :  { %v3109_v13 = vadd.f32 %v3108_v23, %v3107_v4 }
 0x1c4   :  { %v2074_v39 = vadd.f32 %v3069_v5, %v4333_v53  ;;  %v4592_v6 = vadd.f32 %v3106_v17, %v2071_v21 }
 0x1c6   :  { %v4594_v30 = vadd.f32 %v3109_v13, %v2074_v39  ;;  %v3070_v1 = vpop.f32.mrb[104].mxu0 }
 0x1c7   :  { %v3110_v54 = vpop.f32.mrb[80].mxu1  ;;  %v3071_v49 = vpop.f32.mrb[105].mxu0 }
 0x1c8   :  { %v3111_v9 = vpop.f32.mrb[81].mxu1  ;;  %v3072_v51 = vadd.f32 %v3071_v49, %v3070_v1  ;;  %v3073_v58 = vpop.f32.mrb[106].mxu0 }
 0x1c9   :  { %v3112_v16 = vadd.f32 %v3111_v9, %v3110_v54  ;;  %v3113_v61 = vpop.f32.mrb[82].mxu1  ;;  %v3074_v34 = vpop.f32.mrb[107].mxu0 }
 0x1ca   :  { %v3114_v27 = vpop.f32.mrb[83].mxu1  ;;  %v2079_v8 = vadd.f32 %v3072_v51, %v4333_v53  ;;  %v3075_v47 = vadd.f32 %v3074_v34, %v3073_v58 }
 0x1cb   :  { %v3115_v59 = vadd.f32 %v3114_v27, %v3113_v61 }
 0x1cc   :  { %v2082_v41 = vadd.f32 %v3075_v47, %v4333_v53  ;;  %v4598_v43 = vadd.f32 %v3112_v16, %v2079_v8 }
 0x1ce   :  { %v4600_v11 = vadd.f32 %v3115_v59, %v2082_v41  ;;  %v3076_v56 = vpop.f32.mrb[108].mxu0 }
 0x1cf   :  { %v3116_v42 = vpop.f32.mrb[84].mxu1  ;;  %v3077_v17 = vpop.f32.mrb[109].mxu0 }
 0x1d0   :  { %v3117_v4 = vpop.f32.mrb[85].mxu1  ;;  %v3078_v20 = vadd.f32 %v3077_v17, %v3076_v56  ;;  %v3079_v23 = vpop.f32.mrb[110].mxu0 }
 0x1d1   :  { %v3118_v21 = vadd.f32 %v3117_v4, %v3116_v42  ;;  %v3119_v5 = vpop.f32.mrb[86].mxu1  ;;  %v3080_v13 = vpop.f32.mrb[111].mxu0 }
 0x1d2   :  { %v3120_v39 = vpop.f32.mrb[87].mxu1  ;;  %v2087_v1 = vadd.f32 %v3078_v20, %v4333_v53  ;;  %v3081_v54 = vadd.f32 %v3080_v13, %v3079_v23 }
 0x1d3   :  { %v3121_v49 = vadd.f32 %v3120_v39, %v3119_v5  ;;  %v1828_v39 = vmul.f32 %v4572_v38, %v4459_v52 }
 0x1d4   :  { %v2152_v9 = vadd.f32 %v3118_v21, %v2087_v1  ;;  %v2090_v51 = vadd.f32 %v3081_v54, %v4333_v53  ;;  %v1827_v53 = vmul.f32 %v4570_v55, %v4459_v52  ;;  %v1829_v1 = vmul.f32 %v4574_v60, %v4459_v52 }
 0x1d6   :  { %v2155_v58 = vadd.f32 %v3121_v49, %v2090_v51  ;;  %v3138_v61 = vpop.f32.mrb[112].mxu0 }
 0x1d7   :  { %v3156_v16 = vpop.f32.mrb[88].mxu1  ;;  %v3139_v27 = vpop.f32.mrb[113].mxu0 }
 0x1d8   :  { %v3157_v34 = vpop.f32.mrb[89].mxu1  ;;  %v3140_v59 = vadd.f32 %v3139_v27, %v3138_v61  ;;  %v3141_v41 = vpop.f32.mrb[114].mxu0 }
 0x1d9   :  { %v3158_v8 = vadd.f32 %v3157_v34, %v3156_v16  ;;  %v3159_v47 = vpop.f32.mrb[90].mxu1  ;;  %v3142_v42 = vpop.f32.mrb[115].mxu0  ;;  %v1830_v16 = vmul.f32 %v4576_v15, %v4459_v52 }
 0x1da   :  { %v3160_v56 = vpop.f32.mrb[91].mxu1  ;;  %v3143_v4 = vadd.f32 %v3142_v42, %v3141_v41  ;;  %v2193_v10 = vadd.f32 %v3140_v59, %v2128_v35  ;;  %v1833_v59 = vmul.f32 %v4582_v22, %v4459_v52 }
 0x1db   :  { %v3161_v17 = vadd.f32 %v3160_v56, %v3159_v47  ;;  %v2217_v20 = vadd.f32 %v3158_v8, %v2152_v9 }
 0x1dc   :  { %v2196_v23 = vadd.f32 %v3143_v4, %v4588_v63 }
 0x1dd   :  { %v4605_v21 = vadd.f32 %v3161_v17, %v2155_v58  ;;  %v1835_v58 = vsel %vm1819_vm1, %v4570_v55, %v1827_v53  ;;  %v1837_v55 = vsel %vm1821_vm3, %v4574_v60, %v1829_v1 }
 0x1de   :  { %v3144_v13 = vpop.f32.mrb[116].mxu0 }
 0x1df   :  { %v3210_v5 = vpop.f32.mrb[92].mxu1  ;;  %v3145_v35 = vpop.f32.mrb[117].mxu0 }
 0x1e0   :  { %v2257_v54 = vpop.f32.mrb[93].mxu1  ;;  %v3146_v9 = vadd.f32 %v3145_v35, %v3144_v13  ;;  %v3147_v51 = vpop.f32.mrb[118].mxu0 }
 0x1e1   :  { %v2258_v63 = vadd.f32 %v2257_v54, %v2193_v10  ;;  %v3211_v49 = vpop.f32.mrb[94].mxu1  ;;  %v3148_v34 = vpop.f32.mrb[119].mxu0  ;;  %v1836_v10 = vsel %vm1820_vm2, %v4572_v38, %v1828_v39 }
 0x1e2   :  { %v2260_v61 = vpop.f32.mrb[95].mxu1  ;;  %v2201_v47 = vadd.f32 %v3146_v9, %v4592_v6  ;;  %v3149_v41 = vadd.f32 %v3148_v34, %v3147_v51  ;;  %v1838_v6 = vsel %vm1822_vm4, %v4576_v15, %v1830_v16  ;;  %v1841_v9 = vsel %vm1825_vm8, %v4582_v22, %v1833_v59 }
 0x1e3   :  { %vm2288_vm6 = vcmp.gt.f32.partialorder %v2258_v63, 0.0  ;;  %v2296_v27 = vmul.f32 %v2258_v63, %v4459_v52  ;;  %v2261_v8 = vadd.f32 %v2260_v61, %v2196_v23 }
 0x1e4   :  { %v2266_v17 = vadd.f32 %v3210_v5, %v2201_v47  ;;  %v2204_v4 = vadd.f32 %v3149_v41, %v4594_v30  ;;  %v1834_v30 = vmul.f32 %v4584_v26, %v4459_v52 }
 0x1e5   :  { %v2304_v56 = vsel %vm2288_vm6, %v2258_v63, %v2296_v27  ;;  %vm2289_vm7 = vcmp.gt.f32.partialorder %v2261_v8, 0.0  ;;  %v2297_v42 = vmul.f32 %v2261_v8, %v4459_v52 }
 0x1e6   :  { %v2312_v38 = vmax.f32 %v1835_v58, %v2304_v56  ;;  %vm2290_vm10 = vcmp.gt.f32.partialorder %v2266_v17, 0.0  ;;  %v2298_v23 = vmul.f32 %v2266_v17, %v4459_v52  ;;  %v3150_v13 = vpop.f32.mrb[120].mxu0  ;;  %v2269_v39 = vadd.f32 %v3211_v49, %v2204_v4 }
 0x1e7   :  { %v2305_v60 = vsel %vm2289_vm7, %v2261_v8, %v2297_v42  ;;  %v3214_v53 = vpop.f32.mrb[96].mxu1  ;;  %v3151_v35 = vpop.f32.mrb[121].mxu0  ;;  %v1842_v28 = vsel %vm1826_vm9, %v4584_v26, %v1834_v30  ;;  %v1832_v26 = vmul.f32 %v4580_v14, %v4459_v52 }
 0x1e8   :  { %v2320_v5 = vmax.f32 %v1366_v62, %v2312_v38  ;;  %v2313_v15 = vmax.f32 %v1836_v10, %v2305_v60  ;;  %v2282_v1 = vadd.f32 %v3214_v53, %v2217_v20  ;;  %v2273_v54 = vpop.f32.mrb[97].mxu1  ;;  %v2306_v63 = vsel %vm2290_vm10, %v2266_v17, %v2298_v23  ;;  %v3153_v16 = vpop.f32.mrb[122].mxu0 }
 0x1e9   :  { %v3215_v51 = vpop.f32.mrb[98].mxu1  ;;  %v3152_v58 = vadd.f32 %v3151_v35, %v3150_v13  ;;  %v2314_v12 = vmax.f32 %v1837_v55, %v2306_v63  ;;  %vm2291_vm12 = vcmp.gt.f32.partialorder %v2269_v39, 0.0  ;;  %v3154_v62 = vpop.f32.mrb[123].mxu0  ;;  %v2299_v49 = vmul.f32 %v2269_v39, %v4459_v52 }
 0x1ea   :  { %v2656_v61 = vpack.c.bf16 %v2320_v5, %v2320_v5  ;;  %v2321_v57 = vmax.f32 %v1367_v37, %v2313_v15  ;;  %v2276_v20 = vpop.f32.mrb[99].mxu1  ;;  %vm2294_vm13 = vcmp.gt.f32.partialorder %v2282_v1, 0.0  ;;  %v2302_v34 = vmul.f32 %v2282_v1, %v4459_v52 }
 0x1eb   :  { %v2285_v27 = vadd.f32 %v3215_v51, %v4605_v21  ;;  %v2322_v0 = vmax.f32 %v1368_v29, %v2314_v12  ;;  %v2209_v19 = vadd.f32 %v3152_v58, %v4598_v43  ;;  %v3155_v37 = vadd.f32 %v3154_v62, %v3153_v16 }
 0x1ec   :  { %2361 = vst.msk [vmem:[%s4724_s4] sm:$0xf] %vm2360_vm5, %v2656_v61  ;;  %v2657_v22 = vpack.c.bf16 %v2321_v57, %v2321_v57  ;;  %v2307_v8 = vsel %vm2291_vm12, %v2269_v39, %v2299_v49  ;;  %v2310_v47 = vsel %vm2294_vm13, %v2282_v1, %v2302_v34  ;;  %v4725_v60 = vmax.f32 %v4530_v44, %v4532_v3 }
 0x1ed   :  { %vm2295_vm14 = vcmp.gt.f32.partialorder %v2285_v27, 0.0  ;;  %v2303_v10 = vmul.f32 %v2285_v27, %v4459_v52  ;;  %v2658_v21 = vpack.c.bf16 %v2322_v0, %v2322_v0  ;;  %v2315_v55 = vmax.f32 %v1838_v6, %v2307_v8 }
 0x1ee   :  { %2362 = vst.msk [vmem:[%s4724_s4 + $0x4] sm:$0xf] %vm2360_vm5, %v2657_v22  ;;  %v2318_v59 = vmax.f32 %v1841_v9, %v2310_v47  ;;  %v2274_v41 = vadd.f32 %v2273_v54, %v2209_v19  ;;  %v2212_v43 = vadd.f32 %v3155_v37, %v4600_v11 }
 0x1ef   :  { %v2311_v29 = vsel %vm2295_vm14, %v2285_v27, %v2303_v10  ;;  %2363 = vst.msk [vmem:[%s4724_s4 + $0x8] sm:$0xf] %vm2360_vm5, %v2658_v21  ;;  %v2323_v56 = vmax.f32 %v1369_v50, %v2315_v55 }
 0x1f0   :  { %v2326_v42 = vmax.f32 %v1372_v25, %v2318_v59  ;;  %v2319_v17 = vmax.f32 %v1842_v28, %v2311_v29  ;;  %vm2292_vm15 = vcmp.gt.f32.partialorder %v2274_v41, 0.0  ;;  %v2300_v11 = vmul.f32 %v2274_v41, %v4459_v52 }
 0x1f1   :  { %v2277_v6 = vadd.f32 %v2276_v20, %v2212_v43  ;;  %v2659_v38 = vpack.c.bf16 %v2323_v56, %v2323_v56  ;;  %v1840_v25 = vsel %vm1824_vm0, %v4580_v14, %v1832_v26 }
 0x1f2   :  { %v2662_v4 = vpack.c.bf16 %v2326_v42, %v2326_v42  ;;  %v2327_v46 = vmax.f32 %v1373_v45, %v2319_v17  ;;  %v2308_v50 = vsel %vm2292_vm15, %v2274_v41, %v2300_v11 }
 0x1f3   :  { %vm2293_vm1 = vcmp.gt.f32.partialorder %v2277_v6, 0.0  ;;  %v2301_v18 = vmul.f32 %v2277_v6, %v4459_v52  ;;  %2364 = vst.msk [vmem:[%s4724_s4 + $0xc] sm:$0xf] %vm2360_vm5, %v2659_v38  ;;  %v2316_v2 = vmax.f32 %v1839_v31, %v2308_v50 }
 0x1f4   :  { %2367 = vst.msk [vmem:[%s4724_s4 + $0x18] sm:$0xf] %vm2360_vm5, %v2662_v4  ;;  %v2663_v7 = vpack.c.bf16 %v2327_v46, %v2327_v46 }
 0x1f5   :  { %v2309_v33 = vsel %vm2293_vm1, %v2277_v6, %v2301_v18  ;;  %v2324_v52 = vmax.f32 %v1370_v32, %v2316_v2 }
 0x1f6   :  { %2368 = vst.msk [vmem:[%s4724_s4 + $0x1c] sm:$0xf] %vm2360_vm5, %v2663_v7  ;;  %v2317_v45 = vmax.f32 %v1840_v25, %v2309_v33 }
 0x1f7   :  { %v2660_v24 = vpack.c.bf16 %v2324_v52, %v2324_v52 }
 0x1f8   :  { %v2325_v23 = vmax.f32 %v4725_v60, %v2317_v45 }
 0x1f9   :  { %2365 = vst.msk [vmem:[%s4724_s4 + $0x10] sm:$0xf] %vm2360_vm5, %v2660_v24 }
 0x1fa   :  { %v2661_v14 = vpack.c.bf16 %v2325_v23, %v2325_v23 }
 0x1fc   :  { %2366 = vst.msk [vmem:[%s4724_s4 + $0x14] sm:$0xf] %vm2360_vm5, %v2661_v14 }

</bundles_post_ra>
